<compile_context>
chip_gen: v5e
topology: v5e:2x2
jax: 0.10.0
libtpu: 0.0.40
codegen_flags: <defaults>
</compile_context>

<pallas_src>
import functools

import jax
import jax.numpy as jnp
from jax import lax
from jax.experimental import pallas as pl
from jax.experimental.pallas import tpu as pltpu

BINS = (5, 9, 13)
NEG_SLOPE = 0.01                       # nn.LeakyReLU default
BN_EPS = 1e-5                          # nn.BatchNorm2d default
_NEG = float(jnp.finfo(jnp.float32).min)   # pooling sentinel (never wins: window
                                           # always contains the finite center)


def _leaky(v):
    # LeakyReLU(0.01) as a single VPU max (exact for 0 < slope < 1).
    return jnp.maximum(v, NEG_SLOPE * v)


def _slide_max5_h(t):
    """Sliding max (window 5, stride 1, pad 2) along the leading (H) axis.
    Leading-dim concat/slice is vreg-granular -> no sublane relayout."""
    h = t.shape[0]
    neg = jnp.full((2,) + t.shape[1:], _NEG, t.dtype)
    tp = jnp.concatenate([neg, t, neg], axis=0)            # (h+4, Wp, C)
    out = lax.slice_in_dim(tp, 0, h, axis=0)
    for d in range(1, 5):
        out = jnp.maximum(out, lax.slice_in_dim(tp, d, d + h, axis=0))
    return out


# -----------------------------------------------------------------------------
# Fused kernel: one grid step == one image
# -----------------------------------------------------------------------------
def _spp_fused_kernel(x_ref, w1_ref, s1_ref, b1_ref,
                      w20_ref, w21_ref, w22_ref, w23_ref,
                      s2_ref, b2_ref, o_ref, *, w_true):
    _, h, wp, cin = x_ref.shape
    cmid = w1_ref.shape[1]
    cout = w20_ref.shape[1]
    m = h * wp

    # ---- in_conv: 1x1 conv (channel matmul) + folded BN + LeakyReLU ---------
    x2d = x_ref[0].reshape(m, cin)                    # layout no-op (wp % 8 == 0)
    y2d = jnp.dot(x2d, w1_ref[...], preferred_element_type=jnp.float32)
    y2d = _leaky(y2d * s1_ref[...] + b1_ref[...])     # (M, Cmid)
    y = y2d.reshape(h, wp, cmid)

    # ---- W(sublane)-axis boundary masks, hoisted once and reused by all 3
    #      cascade levels (also exclude the W padding columns) ----------------
    col = lax.broadcasted_iota(jnp.int32, (h, wp, cmid), 1)
    center_mask = col < w_true
    shift_masks = [(d, jnp.logical_and(col + d >= 0, col + d < w_true))
                   for d in (-2, -1, 1, 2)]

    def _slide_max5_w(t):
        # pltpu.roll runs in the XLU slot -> essentially free next to VPU maxes,
        # and avoids sublane concat/slice relayout copies.
        out = jnp.where(center_mask, t, _NEG)
        for d, mask in shift_masks:
            shifted = pltpu.roll(t, shift=(-d) % wp, axis=1)  # [j] = t[(j+d)%wp]
            out = jnp.maximum(out, jnp.where(mask, shifted, _NEG))
        return out

    def pool5(t):                                     # 5x5 max, stride 1, "same"
        return _slide_max5_w(_slide_max5_h(t))

    # ---- SPPF cascade interleaved with out_conv partial matmuls -------------
    # pool5(pool5(y)) == MaxPool2d(9), pool5^3(y) == MaxPool2d(13) (exact).
    acc = jnp.dot(y2d, w20_ref[...], preferred_element_type=jnp.float32)
    p = pool5(y)                                      # == MaxPool2d(k=5)
    acc = acc + jnp.dot(p.reshape(m, cmid), w21_ref[...],
                        preferred_element_type=jnp.float32)
    p = pool5(p)                                      # == MaxPool2d(k=9)
    acc = acc + jnp.dot(p.reshape(m, cmid), w22_ref[...],
                        preferred_element_type=jnp.float32)
    p = pool5(p)                                      # == MaxPool2d(k=13)
    acc = acc + jnp.dot(p.reshape(m, cmid), w23_ref[...],
                        preferred_element_type=jnp.float32)

    # ---- out_conv folded BN + LeakyReLU --------------------------------------
    z = _leaky(acc * s2_ref[...] + b2_ref[...])       # (M, Cout)
    o_ref[0] = z.reshape(h, wp, cout)


# -----------------------------------------------------------------------------
# Public forward (NCHW in / NCHW out, matching the PyTorch module)
# -----------------------------------------------------------------------------
def spp_yolo_forward(x_nchw, params, *, single_buffer_weights=True):
    """x_nchw: (N, Cin, H, W) float32 -> (N, Cout, H, W) float32."""
    n, cin, h, w = x_nchw.shape
    cmid = params["w1"].shape[1]
    cout = params["w2_parts"][0].shape[1]

    # NCHW -> NHWC so channels sit on the lane dimension in-kernel.
    x = jnp.transpose(x_nchw, (0, 2, 3, 1))

    # Pad W to a multiple of 8: makes in-kernel reshapes layout no-ops.
    wp = ((w + 7) // 8) * 8
    if wp != w:
        x = jnp.pad(x, ((0, 0), (0, 0), (0, wp - w), (0, 0)))

    w1 = params["w1"]
    s1 = params["scale1"].reshape(1, cmid)
    b1 = params["bias1"].reshape(1, cmid)
    w2 = list(params["w2_parts"])
    s2 = params["scale2"].reshape(1, cout)
    b2 = params["bias2"].reshape(1, cout)

    # Resident (grid-invariant) inputs: single-buffer them to halve their VMEM.
    def const_spec(shape):
        if single_buffer_weights:
            return pl.BlockSpec(shape, lambda i: (0,) * len(shape),
                                pipeline_mode=pl.Buffered(1))
        return pl.BlockSpec(shape, lambda i: (0,) * len(shape))

    mtot = n * h * wp
    cost = pl.CostEstimate(
        flops=2 * mtot * cin * cmid + 2 * mtot * (4 * cmid) * cout
              + 24 * mtot * cmid,                     # pooling maxes
        transcendentals=0,
        bytes_accessed=4 * (x.size + mtot * cout + w1.size
                            + sum(p.size for p in w2) + 2 * cmid + 2 * cout))

    # Right-sized explicit VMEM budget (re-derived after single-buffering).
    fb = 4
    weight_b = (cin * cmid + 4 * cmid * cout + 2 * (cmid + cout)) * fb
    weight_b *= 1 if single_buffer_weights else 2
    io_b = 2 * (h * wp * (cin + cout)) * fb           # double-buffered x / out blocks
    live_b = (4 * h * wp * cmid + 2 * h * wp * cout) * fb
    vmem_limit = int(min(64 * 2**20, max(32 * 2**20,
                                         2 * (weight_b + io_b + live_b))))

    kernel = functools.partial(_spp_fused_kernel, w_true=w)

    out_nhwc = pl.pallas_call(
        kernel,
        out_shape=jax.ShapeDtypeStruct((n, h, wp, cout), jnp.float32),
        grid=(n,),
        in_specs=[
            pl.BlockSpec((1, h, wp, cin), lambda i: (i, 0, 0, 0)),   # x
            const_spec((cin, cmid)),                                 # w1
            const_spec((1, cmid)), const_spec((1, cmid)),            # bn1 scale/bias
            const_spec((cmid, cout)), const_spec((cmid, cout)),      # w2 parts
            const_spec((cmid, cout)), const_spec((cmid, cout)),
            const_spec((1, cout)), const_spec((1, cout)),            # bn2 scale/bias
        ],
        out_specs=pl.BlockSpec((1, h, wp, cout), lambda i: (i, 0, 0, 0)),
        compiler_params=pltpu.CompilerParams(
            dimension_semantics=("parallel",),        # megacore/pipelining over N
            vmem_limit_bytes=vmem_limit),
        cost_estimate=cost,
    )(x, w1, s1, b1, *w2, s2, b2)

    out_nhwc = out_nhwc[:, :, :w, :]                  # drop W padding (if any)
    return jnp.transpose(out_nhwc, (0, 3, 1, 2))      # NHWC -> NCHW


# -----------------------------------------------------------------------------
# Deterministic parameter init (shapes from SppYolo.__init__)
# -----------------------------------------------------------------------------
def init_params(key, in_channel, out_channel):
    cmid = in_channel // 2
    cat_ch = in_channel * 2
    ks = jax.random.split(key, 10)

    def bn_fold(kg, kb, km, kv, c):
        gamma = 1.0 + 0.1 * jax.random.normal(kg, (c,), jnp.float32)
        beta = 0.1 * jax.random.normal(kb, (c,), jnp.float32)
        mean = 0.1 * jax.random.normal(km, (c,), jnp.float32)
        var = jnp.abs(jax.random.normal(kv, (c,), jnp.float32)) + 0.5
        scale = gamma / jnp.sqrt(var + BN_EPS)
        bias = beta - mean * scale
        return scale, bias

    # Conv2d(in_channel, in_channel//2, 1, bias=False) + BN + LeakyReLU
    w1 = 0.1 * jax.random.normal(ks[0], (in_channel, cmid), jnp.float32)
    scale1, bias1 = bn_fold(ks[1], ks[2], ks[3], ks[4], cmid)

    # Conv2d(in_channel*2, out_channel, 1, bias=False) + BN + LeakyReLU
    w2 = 0.1 * jax.random.normal(ks[5], (cat_ch, out_channel), jnp.float32)
    scale2, bias2 = bn_fold(ks[6], ks[7], ks[8], ks[9], out_channel)
    w2_parts = [w2[i * cmid:(i + 1) * cmid] for i in range(4)]

    return dict(w1=w1, scale1=scale1, bias1=bias1,
                w2_parts=w2_parts, scale2=scale2, bias2=bias2)


# -----------------------------------------------------------------------------
# Pure-JAX reference for verification (direct 5/9/13 pools, no cascade)
# -----------------------------------------------------------------------------
def spp_yolo_reference(x_nchw, params):
    x = jnp.transpose(x_nchw, (0, 2, 3, 1))
    y = jnp.einsum("nhwc,cd->nhwd", x, params["w1"],
                   precision=lax.Precision.HIGHEST)
    y = y * params["scale1"] + params["bias1"]
    y = jnp.where(y >= 0, y, NEG_SLOPE * y)
    pools = [y]
    for k in BINS:
        pad = k // 2
        pools.append(lax.reduce_window(
            y, -jnp.inf, lax.max,
            window_dimensions=(1, k, k, 1), window_strides=(1, 1, 1, 1),
            padding=((0, 0), (pad, pad), (pad, pad), (0, 0))))
    cat = jnp.concatenate(pools, axis=-1)
    w2 = jnp.concatenate(params["w2_parts"], axis=0)
    z = jnp.einsum("nhwc,cd->nhwd", cat, w2, precision=lax.Precision.HIGHEST)
    z = z * params["scale2"] + params["bias2"]
    z = jnp.where(z >= 0, z, NEG_SLOPE * z)
    return jnp.transpose(z, (0, 3, 1, 2))


if __name__ == "__main__":
    key = jax.random.PRNGKey(0)
    kx, kp = jax.random.split(key)

    N, CIN, H, W = 2, 16, 16, 16
    COUT = 16

    x = jax.random.normal(kx, (N, CIN, H, W), jnp.float32)
    params = init_params(kp, CIN, COUT)

    try:
        out = jax.block_until_ready(spp_yolo_forward(x, params))
    except Exception:
        # TODO(synk): defensive fallback — if this JAX build rejects
        # pl.Buffered(1) (single-buffered resident weights) on a top-level
        # pallas_call BlockSpec, retry with default double buffering
        # (numerically identical, slightly more VMEM).
        out = jax.block_until_ready(
            spp_yolo_forward(x, params, single_buffer_weights=False))

    ref = spp_yolo_reference(x, params)
    assert out.shape == (N, COUT, H, W), out.shape
    max_err = float(jnp.max(jnp.abs(out - ref)))
    assert jnp.allclose(out, ref, atol=1e-4, rtol=1e-4), max_err

    print("KERNEL_OK")
</pallas_src>

<mosaic_0001>
module attributes {stable_mosaic.version = 11 : i64} {
  func.func @_spp_fused_kernel(%arg0: i32, %arg1: memref<1x16x16x16xf32, #tpu.memory_space<vmem>>, %arg2: memref<16x8xf32, #tpu.memory_space<vmem>>, %arg3: memref<1x8xf32, #tpu.memory_space<vmem>>, %arg4: memref<1x8xf32, #tpu.memory_space<vmem>>, %arg5: memref<8x16xf32, #tpu.memory_space<vmem>>, %arg6: memref<8x16xf32, #tpu.memory_space<vmem>>, %arg7: memref<8x16xf32, #tpu.memory_space<vmem>>, %arg8: memref<8x16xf32, #tpu.memory_space<vmem>>, %arg9: memref<1x16xf32, #tpu.memory_space<vmem>>, %arg10: memref<1x16xf32, #tpu.memory_space<vmem>>, %arg11: memref<1x16x16x16xf32, #tpu.memory_space<vmem>>) attributes {dimension_semantics = [#tpu.dimension_semantics<parallel>], iteration_bounds = array<i64: 2>, scalar_prefetch = 0 : i64, scratch_operands = 0 : i64, tpu.core_type = #tpu.core_type<tc>, window_params = [{transform_indices = @transform_0, window_bounds = array<i64: 1, 16, 16, 16>}, {pipeline_mode = #tpu.pipeline_mode<synchronous>, transform_indices = @transform_1, window_bounds = array<i64: 16, 8>}, {pipeline_mode = #tpu.pipeline_mode<synchronous>, transform_indices = @transform_2, window_bounds = array<i64: 1, 8>}, {pipeline_mode = #tpu.pipeline_mode<synchronous>, transform_indices = @transform_3, window_bounds = array<i64: 1, 8>}, {pipeline_mode = #tpu.pipeline_mode<synchronous>, transform_indices = @transform_4, window_bounds = array<i64: 8, 16>}, {pipeline_mode = #tpu.pipeline_mode<synchronous>, transform_indices = @transform_5, window_bounds = array<i64: 8, 16>}, {pipeline_mode = #tpu.pipeline_mode<synchronous>, transform_indices = @transform_6, window_bounds = array<i64: 8, 16>}, {pipeline_mode = #tpu.pipeline_mode<synchronous>, transform_indices = @transform_7, window_bounds = array<i64: 8, 16>}, {pipeline_mode = #tpu.pipeline_mode<synchronous>, transform_indices = @transform_8, window_bounds = array<i64: 1, 16>}, {pipeline_mode = #tpu.pipeline_mode<synchronous>, transform_indices = @transform_9, window_bounds = array<i64: 1, 16>}, {transform_indices = @transform_10, window_bounds = array<i64: 1, 16, 16, 16>}]} {
    %c0 = arith.constant 0 : index
    %c0_0 = arith.constant 0 : index
    %c0_1 = arith.constant 0 : index
    %c0_2 = arith.constant 0 : index
    %0 = vector.load %arg1[%c0, %c0_0, %c0_1, %c0_2] : memref<1x16x16x16xf32, #tpu.memory_space<vmem>>, vector<1x16x16x16xf32>
    %1 = vector.shape_cast %0 : vector<1x16x16x16xf32> to vector<16x16x16xf32>
    %2 = vector.shape_cast %1 : vector<16x16x16xf32> to vector<256x16xf32>
    %c0_3 = arith.constant 0 : index
    %c0_4 = arith.constant 0 : index
    %3 = vector.load %arg2[%c0_3, %c0_4] : memref<16x8xf32, #tpu.memory_space<vmem>>, vector<16x8xf32>
    %cst = arith.constant dense<0.000000e+00> : vector<256x8xf32>
    %4 = tpu.matmul %2, %3, %cst {dimension_numbers = #tpu.dot_dimension_numbers<[1], [0], [0], [1], [0, 0, 1, 1], [], []>} : vector<256x16xf32>, vector<16x8xf32>, vector<256x8xf32> -> vector<256x8xf32>
    %c0_5 = arith.constant 0 : index
    %c0_6 = arith.constant 0 : index
    %5 = vector.load %arg3[%c0_5, %c0_6] : memref<1x8xf32, #tpu.memory_space<vmem>>, vector<1x8xf32>
    %6 = vector.broadcast %5 : vector<1x8xf32> to vector<256x8xf32>
    %7 = arith.mulf %4, %6 : vector<256x8xf32>
    %c0_7 = arith.constant 0 : index
    %c0_8 = arith.constant 0 : index
    %8 = vector.load %arg4[%c0_7, %c0_8] : memref<1x8xf32, #tpu.memory_space<vmem>>, vector<1x8xf32>
    %9 = vector.broadcast %8 : vector<1x8xf32> to vector<256x8xf32>
    %10 = arith.addf %7, %9 : vector<256x8xf32>
    %cst_9 = arith.constant 0.00999999977 : f32
    %11 = vector.broadcast %cst_9 : f32 to vector<256x8xf32>
    %12 = arith.mulf %11, %10 : vector<256x8xf32>
    %13 = arith.maximumf %10, %12 : vector<256x8xf32>
    %14 = vector.shape_cast %13 : vector<256x8xf32> to vector<16x16x8xf32>
    %15 = tpu.iota {dimensions = array<i32: 1>} : vector<16x16x8xi32>
    %c16_i32 = arith.constant 16 : i32
    %16 = vector.broadcast %c16_i32 : i32 to vector<16x16x8xi32>
    %17 = arith.cmpi slt, %15, %16 : vector<16x16x8xi32>
    %c-2_i32 = arith.constant -2 : i32
    %18 = vector.broadcast %c-2_i32 : i32 to vector<16x16x8xi32>
    %19 = arith.addi %15, %18 : vector<16x16x8xi32>
    %c0_i32 = arith.constant 0 : i32
    %20 = vector.broadcast %c0_i32 : i32 to vector<16x16x8xi32>
    %21 = arith.cmpi sge, %19, %20 : vector<16x16x8xi32>
    %c-2_i32_10 = arith.constant -2 : i32
    %22 = vector.broadcast %c-2_i32_10 : i32 to vector<16x16x8xi32>
    %23 = arith.addi %15, %22 : vector<16x16x8xi32>
    %c16_i32_11 = arith.constant 16 : i32
    %24 = vector.broadcast %c16_i32_11 : i32 to vector<16x16x8xi32>
    %25 = arith.cmpi slt, %23, %24 : vector<16x16x8xi32>
    %26 = arith.andi %21, %25 : vector<16x16x8xi1>
    %c-1_i32 = arith.constant -1 : i32
    %27 = vector.broadcast %c-1_i32 : i32 to vector<16x16x8xi32>
    %28 = arith.addi %15, %27 : vector<16x16x8xi32>
    %c0_i32_12 = arith.constant 0 : i32
    %29 = vector.broadcast %c0_i32_12 : i32 to vector<16x16x8xi32>
    %30 = arith.cmpi sge, %28, %29 : vector<16x16x8xi32>
    %c-1_i32_13 = arith.constant -1 : i32
    %31 = vector.broadcast %c-1_i32_13 : i32 to vector<16x16x8xi32>
    %32 = arith.addi %15, %31 : vector<16x16x8xi32>
    %c16_i32_14 = arith.constant 16 : i32
    %33 = vector.broadcast %c16_i32_14 : i32 to vector<16x16x8xi32>
    %34 = arith.cmpi slt, %32, %33 : vector<16x16x8xi32>
    %35 = arith.andi %30, %34 : vector<16x16x8xi1>
    %c1_i32 = arith.constant 1 : i32
    %36 = vector.broadcast %c1_i32 : i32 to vector<16x16x8xi32>
    %37 = arith.addi %15, %36 : vector<16x16x8xi32>
    %c0_i32_15 = arith.constant 0 : i32
    %38 = vector.broadcast %c0_i32_15 : i32 to vector<16x16x8xi32>
    %39 = arith.cmpi sge, %37, %38 : vector<16x16x8xi32>
    %c1_i32_16 = arith.constant 1 : i32
    %40 = vector.broadcast %c1_i32_16 : i32 to vector<16x16x8xi32>
    %41 = arith.addi %15, %40 : vector<16x16x8xi32>
    %c16_i32_17 = arith.constant 16 : i32
    %42 = vector.broadcast %c16_i32_17 : i32 to vector<16x16x8xi32>
    %43 = arith.cmpi slt, %41, %42 : vector<16x16x8xi32>
    %44 = arith.andi %39, %43 : vector<16x16x8xi1>
    %c2_i32 = arith.constant 2 : i32
    %45 = vector.broadcast %c2_i32 : i32 to vector<16x16x8xi32>
    %46 = arith.addi %15, %45 : vector<16x16x8xi32>
    %c0_i32_18 = arith.constant 0 : i32
    %47 = vector.broadcast %c0_i32_18 : i32 to vector<16x16x8xi32>
    %48 = arith.cmpi sge, %46, %47 : vector<16x16x8xi32>
    %c2_i32_19 = arith.constant 2 : i32
    %49 = vector.broadcast %c2_i32_19 : i32 to vector<16x16x8xi32>
    %50 = arith.addi %15, %49 : vector<16x16x8xi32>
    %c16_i32_20 = arith.constant 16 : i32
    %51 = vector.broadcast %c16_i32_20 : i32 to vector<16x16x8xi32>
    %52 = arith.cmpi slt, %50, %51 : vector<16x16x8xi32>
    %53 = arith.andi %48, %52 : vector<16x16x8xi1>
    %c0_21 = arith.constant 0 : index
    %c0_22 = arith.constant 0 : index
    %54 = vector.load %arg5[%c0_21, %c0_22] : memref<8x16xf32, #tpu.memory_space<vmem>>, vector<8x16xf32>
    %cst_23 = arith.constant dense<0.000000e+00> : vector<256x16xf32>
    %55 = tpu.matmul %13, %54, %cst_23 {dimension_numbers = #tpu.dot_dimension_numbers<[1], [0], [0], [1], [0, 0, 1, 1], [], []>} : vector<256x8xf32>, vector<8x16xf32>, vector<256x16xf32> -> vector<256x16xf32>
    %cst_24 = arith.constant -3.40282347E+38 : f32
    %56 = vector.broadcast %cst_24 : f32 to vector<2x16x8xf32>
    %57 = tpu.concatenate %56, %14, %56 in 0 : vector<2x16x8xf32>, vector<16x16x8xf32>, vector<2x16x8xf32> -> vector<20x16x8xf32>
    %58 = vector.extract_strided_slice %57 {offsets = [0, 0, 0], sizes = [16, 16, 8], strides = [1, 1, 1]} : vector<20x16x8xf32> to vector<16x16x8xf32>
    %59 = vector.extract_strided_slice %57 {offsets = [1, 0, 0], sizes = [16, 16, 8], strides = [1, 1, 1]} : vector<20x16x8xf32> to vector<16x16x8xf32>
    %60 = arith.maximumf %58, %59 : vector<16x16x8xf32>
    %61 = vector.extract_strided_slice %57 {offsets = [2, 0, 0], sizes = [16, 16, 8], strides = [1, 1, 1]} : vector<20x16x8xf32> to vector<16x16x8xf32>
    %62 = arith.maximumf %60, %61 : vector<16x16x8xf32>
    %63 = vector.extract_strided_slice %57 {offsets = [3, 0, 0], sizes = [16, 16, 8], strides = [1, 1, 1]} : vector<20x16x8xf32> to vector<16x16x8xf32>
    %64 = arith.maximumf %62, %63 : vector<16x16x8xf32>
    %65 = vector.extract_strided_slice %57 {offsets = [4, 0, 0], sizes = [16, 16, 8], strides = [1, 1, 1]} : vector<20x16x8xf32> to vector<16x16x8xf32>
    %66 = arith.maximumf %64, %65 : vector<16x16x8xf32>
    %cst_25 = arith.constant -3.40282347E+38 : f32
    %67 = vector.broadcast %cst_25 : f32 to vector<16x16x8xf32>
    %68 = arith.select %17, %66, %67 : vector<16x16x8xi1>, vector<16x16x8xf32>
    %c2_i32_26 = arith.constant 2 : i32
    %69 = tpu.dynamic_rotate %66 by %c2_i32_26 dim 1 : vector<16x16x8xf32>, i32 -> vector<16x16x8xf32>
    %cst_27 = arith.constant -3.40282347E+38 : f32
    %70 = vector.broadcast %cst_27 : f32 to vector<16x16x8xf32>
    %71 = arith.select %26, %69, %70 : vector<16x16x8xi1>, vector<16x16x8xf32>
    %72 = arith.maximumf %68, %71 : vector<16x16x8xf32>
    %c1_i32_28 = arith.constant 1 : i32
    %73 = tpu.dynamic_rotate %66 by %c1_i32_28 dim 1 : vector<16x16x8xf32>, i32 -> vector<16x16x8xf32>
    %cst_29 = arith.constant -3.40282347E+38 : f32
    %74 = vector.broadcast %cst_29 : f32 to vector<16x16x8xf32>
    %75 = arith.select %35, %73, %74 : vector<16x16x8xi1>, vector<16x16x8xf32>
    %76 = arith.maximumf %72, %75 : vector<16x16x8xf32>
    %c15_i32 = arith.constant 15 : i32
    %77 = tpu.dynamic_rotate %66 by %c15_i32 dim 1 : vector<16x16x8xf32>, i32 -> vector<16x16x8xf32>
    %cst_30 = arith.constant -3.40282347E+38 : f32
    %78 = vector.broadcast %cst_30 : f32 to vector<16x16x8xf32>
    %79 = arith.select %44, %77, %78 : vector<16x16x8xi1>, vector<16x16x8xf32>
    %80 = arith.maximumf %76, %79 : vector<16x16x8xf32>
    %c14_i32 = arith.constant 14 : i32
    %81 = tpu.dynamic_rotate %66 by %c14_i32 dim 1 : vector<16x16x8xf32>, i32 -> vector<16x16x8xf32>
    %cst_31 = arith.constant -3.40282347E+38 : f32
    %82 = vector.broadcast %cst_31 : f32 to vector<16x16x8xf32>
    %83 = arith.select %53, %81, %82 : vector<16x16x8xi1>, vector<16x16x8xf32>
    %84 = arith.maximumf %80, %83 : vector<16x16x8xf32>
    %85 = vector.shape_cast %84 : vector<16x16x8xf32> to vector<256x8xf32>
    %c0_32 = arith.constant 0 : index
    %c0_33 = arith.constant 0 : index
    %86 = vector.load %arg6[%c0_32, %c0_33] : memref<8x16xf32, #tpu.memory_space<vmem>>, vector<8x16xf32>
    %cst_34 = arith.constant dense<0.000000e+00> : vector<256x16xf32>
    %87 = tpu.matmul %85, %86, %cst_34 {dimension_numbers = #tpu.dot_dimension_numbers<[1], [0], [0], [1], [0, 0, 1, 1], [], []>} : vector<256x8xf32>, vector<8x16xf32>, vector<256x16xf32> -> vector<256x16xf32>
    %88 = arith.addf %55, %87 : vector<256x16xf32>
    %cst_35 = arith.constant -3.40282347E+38 : f32
    %89 = vector.broadcast %cst_35 : f32 to vector<2x16x8xf32>
    %90 = tpu.concatenate %89, %84, %89 in 0 : vector<2x16x8xf32>, vector<16x16x8xf32>, vector<2x16x8xf32> -> vector<20x16x8xf32>
    %91 = vector.extract_strided_slice %90 {offsets = [0, 0, 0], sizes = [16, 16, 8], strides = [1, 1, 1]} : vector<20x16x8xf32> to vector<16x16x8xf32>
    %92 = vector.extract_strided_slice %90 {offsets = [1, 0, 0], sizes = [16, 16, 8], strides = [1, 1, 1]} : vector<20x16x8xf32> to vector<16x16x8xf32>
    %93 = arith.maximumf %91, %92 : vector<16x16x8xf32>
    %94 = vector.extract_strided_slice %90 {offsets = [2, 0, 0], sizes = [16, 16, 8], strides = [1, 1, 1]} : vector<20x16x8xf32> to vector<16x16x8xf32>
    %95 = arith.maximumf %93, %94 : vector<16x16x8xf32>
    %96 = vector.extract_strided_slice %90 {offsets = [3, 0, 0], sizes = [16, 16, 8], strides = [1, 1, 1]} : vector<20x16x8xf32> to vector<16x16x8xf32>
    %97 = arith.maximumf %95, %96 : vector<16x16x8xf32>
    %98 = vector.extract_strided_slice %90 {offsets = [4, 0, 0], sizes = [16, 16, 8], strides = [1, 1, 1]} : vector<20x16x8xf32> to vector<16x16x8xf32>
    %99 = arith.maximumf %97, %98 : vector<16x16x8xf32>
    %cst_36 = arith.constant -3.40282347E+38 : f32
    %100 = vector.broadcast %cst_36 : f32 to vector<16x16x8xf32>
    %101 = arith.select %17, %99, %100 : vector<16x16x8xi1>, vector<16x16x8xf32>
    %c2_i32_37 = arith.constant 2 : i32
    %102 = tpu.dynamic_rotate %99 by %c2_i32_37 dim 1 : vector<16x16x8xf32>, i32 -> vector<16x16x8xf32>
    %cst_38 = arith.constant -3.40282347E+38 : f32
    %103 = vector.broadcast %cst_38 : f32 to vector<16x16x8xf32>
    %104 = arith.select %26, %102, %103 : vector<16x16x8xi1>, vector<16x16x8xf32>
    %105 = arith.maximumf %101, %104 : vector<16x16x8xf32>
    %c1_i32_39 = arith.constant 1 : i32
    %106 = tpu.dynamic_rotate %99 by %c1_i32_39 dim 1 : vector<16x16x8xf32>, i32 -> vector<16x16x8xf32>
    %cst_40 = arith.constant -3.40282347E+38 : f32
    %107 = vector.broadcast %cst_40 : f32 to vector<16x16x8xf32>
    %108 = arith.select %35, %106, %107 : vector<16x16x8xi1>, vector<16x16x8xf32>
    %109 = arith.maximumf %105, %108 : vector<16x16x8xf32>
    %c15_i32_41 = arith.constant 15 : i32
    %110 = tpu.dynamic_rotate %99 by %c15_i32_41 dim 1 : vector<16x16x8xf32>, i32 -> vector<16x16x8xf32>
    %cst_42 = arith.constant -3.40282347E+38 : f32
    %111 = vector.broadcast %cst_42 : f32 to vector<16x16x8xf32>
    %112 = arith.select %44, %110, %111 : vector<16x16x8xi1>, vector<16x16x8xf32>
    %113 = arith.maximumf %109, %112 : vector<16x16x8xf32>
    %c14_i32_43 = arith.constant 14 : i32
    %114 = tpu.dynamic_rotate %99 by %c14_i32_43 dim 1 : vector<16x16x8xf32>, i32 -> vector<16x16x8xf32>
    %cst_44 = arith.constant -3.40282347E+38 : f32
    %115 = vector.broadcast %cst_44 : f32 to vector<16x16x8xf32>
    %116 = arith.select %53, %114, %115 : vector<16x16x8xi1>, vector<16x16x8xf32>
    %117 = arith.maximumf %113, %116 : vector<16x16x8xf32>
    %118 = vector.shape_cast %117 : vector<16x16x8xf32> to vector<256x8xf32>
    %c0_45 = arith.constant 0 : index
    %c0_46 = arith.constant 0 : index
    %119 = vector.load %arg7[%c0_45, %c0_46] : memref<8x16xf32, #tpu.memory_space<vmem>>, vector<8x16xf32>
    %cst_47 = arith.constant dense<0.000000e+00> : vector<256x16xf32>
    %120 = tpu.matmul %118, %119, %cst_47 {dimension_numbers = #tpu.dot_dimension_numbers<[1], [0], [0], [1], [0, 0, 1, 1], [], []>} : vector<256x8xf32>, vector<8x16xf32>, vector<256x16xf32> -> vector<256x16xf32>
    %121 = arith.addf %88, %120 : vector<256x16xf32>
    %cst_48 = arith.constant -3.40282347E+38 : f32
    %122 = vector.broadcast %cst_48 : f32 to vector<2x16x8xf32>
    %123 = tpu.concatenate %122, %117, %122 in 0 : vector<2x16x8xf32>, vector<16x16x8xf32>, vector<2x16x8xf32> -> vector<20x16x8xf32>
    %124 = vector.extract_strided_slice %123 {offsets = [0, 0, 0], sizes = [16, 16, 8], strides = [1, 1, 1]} : vector<20x16x8xf32> to vector<16x16x8xf32>
    %125 = vector.extract_strided_slice %123 {offsets = [1, 0, 0], sizes = [16, 16, 8], strides = [1, 1, 1]} : vector<20x16x8xf32> to vector<16x16x8xf32>
    %126 = arith.maximumf %124, %125 : vector<16x16x8xf32>
    %127 = vector.extract_strided_slice %123 {offsets = [2, 0, 0], sizes = [16, 16, 8], strides = [1, 1, 1]} : vector<20x16x8xf32> to vector<16x16x8xf32>
    %128 = arith.maximumf %126, %127 : vector<16x16x8xf32>
    %129 = vector.extract_strided_slice %123 {offsets = [3, 0, 0], sizes = [16, 16, 8], strides = [1, 1, 1]} : vector<20x16x8xf32> to vector<16x16x8xf32>
    %130 = arith.maximumf %128, %129 : vector<16x16x8xf32>
    %131 = vector.extract_strided_slice %123 {offsets = [4, 0, 0], sizes = [16, 16, 8], strides = [1, 1, 1]} : vector<20x16x8xf32> to vector<16x16x8xf32>
    %132 = arith.maximumf %130, %131 : vector<16x16x8xf32>
    %cst_49 = arith.constant -3.40282347E+38 : f32
    %133 = vector.broadcast %cst_49 : f32 to vector<16x16x8xf32>
    %134 = arith.select %17, %132, %133 : vector<16x16x8xi1>, vector<16x16x8xf32>
    %c2_i32_50 = arith.constant 2 : i32
    %135 = tpu.dynamic_rotate %132 by %c2_i32_50 dim 1 : vector<16x16x8xf32>, i32 -> vector<16x16x8xf32>
    %cst_51 = arith.constant -3.40282347E+38 : f32
    %136 = vector.broadcast %cst_51 : f32 to vector<16x16x8xf32>
    %137 = arith.select %26, %135, %136 : vector<16x16x8xi1>, vector<16x16x8xf32>
    %138 = arith.maximumf %134, %137 : vector<16x16x8xf32>
    %c1_i32_52 = arith.constant 1 : i32
    %139 = tpu.dynamic_rotate %132 by %c1_i32_52 dim 1 : vector<16x16x8xf32>, i32 -> vector<16x16x8xf32>
    %cst_53 = arith.constant -3.40282347E+38 : f32
    %140 = vector.broadcast %cst_53 : f32 to vector<16x16x8xf32>
    %141 = arith.select %35, %139, %140 : vector<16x16x8xi1>, vector<16x16x8xf32>
    %142 = arith.maximumf %138, %141 : vector<16x16x8xf32>
    %c15_i32_54 = arith.constant 15 : i32
    %143 = tpu.dynamic_rotate %132 by %c15_i32_54 dim 1 : vector<16x16x8xf32>, i32 -> vector<16x16x8xf32>
    %cst_55 = arith.constant -3.40282347E+38 : f32
    %144 = vector.broadcast %cst_55 : f32 to vector<16x16x8xf32>
    %145 = arith.select %44, %143, %144 : vector<16x16x8xi1>, vector<16x16x8xf32>
    %146 = arith.maximumf %142, %145 : vector<16x16x8xf32>
    %c14_i32_56 = arith.constant 14 : i32
    %147 = tpu.dynamic_rotate %132 by %c14_i32_56 dim 1 : vector<16x16x8xf32>, i32 -> vector<16x16x8xf32>
    %cst_57 = arith.constant -3.40282347E+38 : f32
    %148 = vector.broadcast %cst_57 : f32 to vector<16x16x8xf32>
    %149 = arith.select %53, %147, %148 : vector<16x16x8xi1>, vector<16x16x8xf32>
    %150 = arith.maximumf %146, %149 : vector<16x16x8xf32>
    %151 = vector.shape_cast %150 : vector<16x16x8xf32> to vector<256x8xf32>
    %c0_58 = arith.constant 0 : index
    %c0_59 = arith.constant 0 : index
    %152 = vector.load %arg8[%c0_58, %c0_59] : memref<8x16xf32, #tpu.memory_space<vmem>>, vector<8x16xf32>
    %cst_60 = arith.constant dense<0.000000e+00> : vector<256x16xf32>
    %153 = tpu.matmul %151, %152, %cst_60 {dimension_numbers = #tpu.dot_dimension_numbers<[1], [0], [0], [1], [0, 0, 1, 1], [], []>} : vector<256x8xf32>, vector<8x16xf32>, vector<256x16xf32> -> vector<256x16xf32>
    %154 = arith.addf %121, %153 : vector<256x16xf32>
    %c0_61 = arith.constant 0 : index
    %c0_62 = arith.constant 0 : index
    %155 = vector.load %arg9[%c0_61, %c0_62] : memref<1x16xf32, #tpu.memory_space<vmem>>, vector<1x16xf32>
    %156 = vector.broadcast %155 : vector<1x16xf32> to vector<256x16xf32>
    %157 = arith.mulf %154, %156 : vector<256x16xf32>
    %c0_63 = arith.constant 0 : index
    %c0_64 = arith.constant 0 : index
    %158 = vector.load %arg10[%c0_63, %c0_64] : memref<1x16xf32, #tpu.memory_space<vmem>>, vector<1x16xf32>
    %159 = vector.broadcast %158 : vector<1x16xf32> to vector<256x16xf32>
    %160 = arith.addf %157, %159 : vector<256x16xf32>
    %cst_65 = arith.constant 0.00999999977 : f32
    %161 = vector.broadcast %cst_65 : f32 to vector<256x16xf32>
    %162 = arith.mulf %161, %160 : vector<256x16xf32>
    %163 = arith.maximumf %160, %162 : vector<256x16xf32>
    %164 = vector.shape_cast %163 : vector<256x16xf32> to vector<16x16x16xf32>
    %c0_66 = arith.constant 0 : index
    %c0_67 = arith.constant 0 : index
    %c0_68 = arith.constant 0 : index
    %c0_69 = arith.constant 0 : index
    %165 = vector.load %arg11[%c0_66, %c0_67, %c0_68, %c0_69] : memref<1x16x16x16xf32, #tpu.memory_space<vmem>>, vector<1x16x16x16xf32>
    %166 = vector.shape_cast %165 : vector<1x16x16x16xf32> to vector<16x16x16xf32>
    %167 = vector.shape_cast %164 : vector<16x16x16xf32> to vector<1x16x16x16xf32>
    tpu.vector_store %arg11[%c0_66, %c0_67, %c0_68, %c0_69], %167 {strides = array<i32>} : memref<1x16x16x16xf32, #tpu.memory_space<vmem>>, vector<1x16x16x16xf32>,
    return
  }
  func.func @transform_0(%arg0: i32) -> (i32, i32, i32, i32) {
    %c0_i32 = arith.constant 0 : i32
    %c0_i32_0 = arith.constant 0 : i32
    %c0_i32_1 = arith.constant 0 : i32
    %c0_i32_2 = arith.constant 0 : i32
    return %arg0, %c0_i32, %c0_i32_0, %c0_i32_1 : i32, i32, i32, i32
  }
  func.func @transform_1(%arg0: i32) -> (i32, i32) {
    %c0_i32 = arith.constant 0 : i32
    %c0_i32_0 = arith.constant 0 : i32
    %c0_i32_1 = arith.constant 0 : i32
    return %c0_i32, %c0_i32_0 : i32, i32
  }
  func.func @transform_2(%arg0: i32) -> (i32, i32) {
    %c0_i32 = arith.constant 0 : i32
    %c0_i32_0 = arith.constant 0 : i32
    %c0_i32_1 = arith.constant 0 : i32
    return %c0_i32, %c0_i32_0 : i32, i32
  }
  func.func @transform_3(%arg0: i32) -> (i32, i32) {
    %c0_i32 = arith.constant 0 : i32
    %c0_i32_0 = arith.constant 0 : i32
    %c0_i32_1 = arith.constant 0 : i32
    return %c0_i32, %c0_i32_0 : i32, i32
  }
  func.func @transform_4(%arg0: i32) -> (i32, i32) {
    %c0_i32 = arith.constant 0 : i32
    %c0_i32_0 = arith.constant 0 : i32
    %c0_i32_1 = arith.constant 0 : i32
    return %c0_i32, %c0_i32_0 : i32, i32
  }
  func.func @transform_5(%arg0: i32) -> (i32, i32) {
    %c0_i32 = arith.constant 0 : i32
    %c0_i32_0 = arith.constant 0 : i32
    %c0_i32_1 = arith.constant 0 : i32
    return %c0_i32, %c0_i32_0 : i32, i32
  }
  func.func @transform_6(%arg0: i32) -> (i32, i32) {
    %c0_i32 = arith.constant 0 : i32
    %c0_i32_0 = arith.constant 0 : i32
    %c0_i32_1 = arith.constant 0 : i32
    return %c0_i32, %c0_i32_0 : i32, i32
  }
  func.func @transform_7(%arg0: i32) -> (i32, i32) {
    %c0_i32 = arith.constant 0 : i32
    %c0_i32_0 = arith.constant 0 : i32
    %c0_i32_1 = arith.constant 0 : i32
    return %c0_i32, %c0_i32_0 : i32, i32
  }
  func.func @transform_8(%arg0: i32) -> (i32, i32) {
    %c0_i32 = arith.constant 0 : i32
    %c0_i32_0 = arith.constant 0 : i32
    %c0_i32_1 = arith.constant 0 : i32
    return %c0_i32, %c0_i32_0 : i32, i32
  }
  func.func @transform_9(%arg0: i32) -> (i32, i32) {
    %c0_i32 = arith.constant 0 : i32
    %c0_i32_0 = arith.constant 0 : i32
    %c0_i32_1 = arith.constant 0 : i32
    return %c0_i32, %c0_i32_0 : i32, i32
  }
  func.func @transform_10(%arg0: i32) -> (i32, i32, i32, i32) {
    %c0_i32 = arith.constant 0 : i32
    %c0_i32_0 = arith.constant 0 : i32
    %c0_i32_1 = arith.constant 0 : i32
    %c0_i32_2 = arith.constant 0 : i32
    return %arg0, %c0_i32, %c0_i32_0, %c0_i32_1 : i32, i32, i32, i32
  }
}

module attributes {stable_mosaic.version = 11 : i64} {
  func.func @_spp_fused_kernel(%arg0: i32, %arg1: memref<1x16x16x16xf32, #tpu.memory_space<vmem>>, %arg2: memref<16x8xf32, #tpu.memory_space<vmem>>, %arg3: memref<1x8xf32, #tpu.memory_space<vmem>>, %arg4: memref<1x8xf32, #tpu.memory_space<vmem>>, %arg5: memref<8x16xf32, #tpu.memory_space<vmem>>, %arg6: memref<8x16xf32, #tpu.memory_space<vmem>>, %arg7: memref<8x16xf32, #tpu.memory_space<vmem>>, %arg8: memref<8x16xf32, #tpu.memory_space<vmem>>, %arg9: memref<1x16xf32, #tpu.memory_space<vmem>>, %arg10: memref<1x16xf32, #tpu.memory_space<vmem>>, %arg11: memref<1x16x16x16xf32, #tpu.memory_space<vmem>>) attributes {dimension_semantics = [#tpu.dimension_semantics<parallel>], iteration_bounds = array<i64: 2>, scalar_prefetch = 0 : i64, scratch_operands = 0 : i64, tpu.core_type = #tpu.core_type<tc>, window_params = [{transform_indices = @transform_0, window_bounds = array<i64: 1, 16, 16, 16>}, {pipeline_mode = #tpu.pipeline_mode<synchronous>, transform_indices = @transform_1, window_bounds = array<i64: 16, 8>}, {pipeline_mode = #tpu.pipeline_mode<synchronous>, transform_indices = @transform_2, window_bounds = array<i64: 1, 8>}, {pipeline_mode = #tpu.pipeline_mode<synchronous>, transform_indices = @transform_3, window_bounds = array<i64: 1, 8>}, {pipeline_mode = #tpu.pipeline_mode<synchronous>, transform_indices = @transform_4, window_bounds = array<i64: 8, 16>}, {pipeline_mode = #tpu.pipeline_mode<synchronous>, transform_indices = @transform_5, window_bounds = array<i64: 8, 16>}, {pipeline_mode = #tpu.pipeline_mode<synchronous>, transform_indices = @transform_6, window_bounds = array<i64: 8, 16>}, {pipeline_mode = #tpu.pipeline_mode<synchronous>, transform_indices = @transform_7, window_bounds = array<i64: 8, 16>}, {pipeline_mode = #tpu.pipeline_mode<synchronous>, transform_indices = @transform_8, window_bounds = array<i64: 1, 16>}, {pipeline_mode = #tpu.pipeline_mode<synchronous>, transform_indices = @transform_9, window_bounds = array<i64: 1, 16>}, {transform_indices = @transform_10, window_bounds = array<i64: 1, 16, 16, 16>}]} {
    %c0 = arith.constant 0 : index
    %c0_0 = arith.constant 0 : index
    %c0_1 = arith.constant 0 : index
    %c0_2 = arith.constant 0 : index
    %0 = vector.load %arg1[%c0, %c0_0, %c0_1, %c0_2] : memref<1x16x16x16xf32, #tpu.memory_space<vmem>>, vector<1x16x16x16xf32>
    %1 = vector.shape_cast %0 : vector<1x16x16x16xf32> to vector<16x16x16xf32>
    %2 = vector.shape_cast %1 : vector<16x16x16xf32> to vector<256x16xf32>
    %c0_3 = arith.constant 0 : index
    %c0_4 = arith.constant 0 : index
    %3 = vector.load %arg2[%c0_3, %c0_4] : memref<16x8xf32, #tpu.memory_space<vmem>>, vector<16x8xf32>
    %cst = arith.constant dense<0.000000e+00> : vector<256x8xf32>
    %4 = tpu.matmul %2, %3, %cst {dimension_numbers = #tpu.dot_dimension_numbers<[1], [0], [0], [1], [0, 0, 1, 1], [], []>} : vector<256x16xf32>, vector<16x8xf32>, vector<256x8xf32> -> vector<256x8xf32>
    %c0_5 = arith.constant 0 : index
    %c0_6 = arith.constant 0 : index
    %5 = vector.load %arg3[%c0_5, %c0_6] : memref<1x8xf32, #tpu.memory_space<vmem>>, vector<1x8xf32>
    %6 = vector.broadcast %5 : vector<1x8xf32> to vector<256x8xf32>
    %7 = arith.mulf %4, %6 : vector<256x8xf32>
    %c0_7 = arith.constant 0 : index
    %c0_8 = arith.constant 0 : index
    %8 = vector.load %arg4[%c0_7, %c0_8] : memref<1x8xf32, #tpu.memory_space<vmem>>, vector<1x8xf32>
    %9 = vector.broadcast %8 : vector<1x8xf32> to vector<256x8xf32>
    %10 = arith.addf %7, %9 : vector<256x8xf32>
    %cst_9 = arith.constant 0.00999999977 : f32
    %11 = vector.broadcast %cst_9 : f32 to vector<256x8xf32>
    %12 = arith.mulf %11, %10 : vector<256x8xf32>
    %13 = arith.maximumf %10, %12 : vector<256x8xf32>
    %14 = vector.shape_cast %13 : vector<256x8xf32> to vector<16x16x8xf32>
    %15 = tpu.iota {dimensions = array<i32: 1>} : vector<16x16x8xi32>
    %c16_i32 = arith.constant 16 : i32
    %16 = vector.broadcast %c16_i32 : i32 to vector<16x16x8xi32>
    %17 = arith.cmpi slt, %15, %16 : vector<16x16x8xi32>
    %c-2_i32 = arith.constant -2 : i32
    %18 = vector.broadcast %c-2_i32 : i32 to vector<16x16x8xi32>
    %19 = arith.addi %15, %18 : vector<16x16x8xi32>
    %c0_i32 = arith.constant 0 : i32
    %20 = vector.broadcast %c0_i32 : i32 to vector<16x16x8xi32>
    %21 = arith.cmpi sge, %19, %20 : vector<16x16x8xi32>
    %c-2_i32_10 = arith.constant -2 : i32
    %22 = vector.broadcast %c-2_i32_10 : i32 to vector<16x16x8xi32>
    %23 = arith.addi %15, %22 : vector<16x16x8xi32>
    %c16_i32_11 = arith.constant 16 : i32
    %24 = vector.broadcast %c16_i32_11 : i32 to vector<16x16x8xi32>
    %25 = arith.cmpi slt, %23, %24 : vector<16x16x8xi32>
    %26 = arith.andi %21, %25 : vector<16x16x8xi1>
    %c-1_i32 = arith.constant -1 : i32
    %27 = vector.broadcast %c-1_i32 : i32 to vector<16x16x8xi32>
    %28 = arith.addi %15, %27 : vector<16x16x8xi32>
    %c0_i32_12 = arith.constant 0 : i32
    %29 = vector.broadcast %c0_i32_12 : i32 to vector<16x16x8xi32>
    %30 = arith.cmpi sge, %28, %29 : vector<16x16x8xi32>
    %c-1_i32_13 = arith.constant -1 : i32
    %31 = vector.broadcast %c-1_i32_13 : i32 to vector<16x16x8xi32>
    %32 = arith.addi %15, %31 : vector<16x16x8xi32>
    %c16_i32_14 = arith.constant 16 : i32
    %33 = vector.broadcast %c16_i32_14 : i32 to vector<16x16x8xi32>
    %34 = arith.cmpi slt, %32, %33 : vector<16x16x8xi32>
    %35 = arith.andi %30, %34 : vector<16x16x8xi1>
    %c1_i32 = arith.constant 1 : i32
    %36 = vector.broadcast %c1_i32 : i32 to vector<16x16x8xi32>
    %37 = arith.addi %15, %36 : vector<16x16x8xi32>
    %c0_i32_15 = arith.constant 0 : i32
    %38 = vector.broadcast %c0_i32_15 : i32 to vector<16x16x8xi32>
    %39 = arith.cmpi sge, %37, %38 : vector<16x16x8xi32>
    %c1_i32_16 = arith.constant 1 : i32
    %40 = vector.broadcast %c1_i32_16 : i32 to vector<16x16x8xi32>
    %41 = arith.addi %15, %40 : vector<16x16x8xi32>
    %c16_i32_17 = arith.constant 16 : i32
    %42 = vector.broadcast %c16_i32_17 : i32 to vector<16x16x8xi32>
    %43 = arith.cmpi slt, %41, %42 : vector<16x16x8xi32>
    %44 = arith.andi %39, %43 : vector<16x16x8xi1>
    %c2_i32 = arith.constant 2 : i32
    %45 = vector.broadcast %c2_i32 : i32 to vector<16x16x8xi32>
    %46 = arith.addi %15, %45 : vector<16x16x8xi32>
    %c0_i32_18 = arith.constant 0 : i32
    %47 = vector.broadcast %c0_i32_18 : i32 to vector<16x16x8xi32>
    %48 = arith.cmpi sge, %46, %47 : vector<16x16x8xi32>
    %c2_i32_19 = arith.constant 2 : i32
    %49 = vector.broadcast %c2_i32_19 : i32 to vector<16x16x8xi32>
    %50 = arith.addi %15, %49 : vector<16x16x8xi32>
    %c16_i32_20 = arith.constant 16 : i32
    %51 = vector.broadcast %c16_i32_20 : i32 to vector<16x16x8xi32>
    %52 = arith.cmpi slt, %50, %51 : vector<16x16x8xi32>
    %53 = arith.andi %48, %52 : vector<16x16x8xi1>
    %c0_21 = arith.constant 0 : index
    %c0_22 = arith.constant 0 : index
    %54 = vector.load %arg5[%c0_21, %c0_22] : memref<8x16xf32, #tpu.memory_space<vmem>>, vector<8x16xf32>
    %cst_23 = arith.constant dense<0.000000e+00> : vector<256x16xf32>
    %55 = tpu.matmul %13, %54, %cst_23 {dimension_numbers = #tpu.dot_dimension_numbers<[1], [0], [0], [1], [0, 0, 1, 1], [], []>} : vector<256x8xf32>, vector<8x16xf32>, vector<256x16xf32> -> vector<256x16xf32>
    %cst_24 = arith.constant -3.40282347E+38 : f32
    %56 = vector.broadcast %cst_24 : f32 to vector<2x16x8xf32>
    %57 = tpu.concatenate %56, %14, %56 in 0 : vector<2x16x8xf32>, vector<16x16x8xf32>, vector<2x16x8xf32> -> vector<20x16x8xf32>
    %58 = vector.extract_strided_slice %57 {offsets = [0, 0, 0], sizes = [16, 16, 8], strides = [1, 1, 1]} : vector<20x16x8xf32> to vector<16x16x8xf32>
    %59 = vector.extract_strided_slice %57 {offsets = [1, 0, 0], sizes = [16, 16, 8], strides = [1, 1, 1]} : vector<20x16x8xf32> to vector<16x16x8xf32>
    %60 = arith.maximumf %58, %59 : vector<16x16x8xf32>
    %61 = vector.extract_strided_slice %57 {offsets = [2, 0, 0], sizes = [16, 16, 8], strides = [1, 1, 1]} : vector<20x16x8xf32> to vector<16x16x8xf32>
    %62 = arith.maximumf %60, %61 : vector<16x16x8xf32>
    %63 = vector.extract_strided_slice %57 {offsets = [3, 0, 0], sizes = [16, 16, 8], strides = [1, 1, 1]} : vector<20x16x8xf32> to vector<16x16x8xf32>
    %64 = arith.maximumf %62, %63 : vector<16x16x8xf32>
    %65 = vector.extract_strided_slice %57 {offsets = [4, 0, 0], sizes = [16, 16, 8], strides = [1, 1, 1]} : vector<20x16x8xf32> to vector<16x16x8xf32>
    %66 = arith.maximumf %64, %65 : vector<16x16x8xf32>
    %cst_25 = arith.constant -3.40282347E+38 : f32
    %67 = vector.broadcast %cst_25 : f32 to vector<16x16x8xf32>
    %68 = arith.select %17, %66, %67 : vector<16x16x8xi1>, vector<16x16x8xf32>
    %c2_i32_26 = arith.constant 2 : i32
    %69 = tpu.dynamic_rotate %66 by %c2_i32_26 dim 1 : vector<16x16x8xf32>, i32 -> vector<16x16x8xf32>
    %cst_27 = arith.constant -3.40282347E+38 : f32
    %70 = vector.broadcast %cst_27 : f32 to vector<16x16x8xf32>
    %71 = arith.select %26, %69, %70 : vector<16x16x8xi1>, vector<16x16x8xf32>
    %72 = arith.maximumf %68, %71 : vector<16x16x8xf32>
    %c1_i32_28 = arith.constant 1 : i32
    %73 = tpu.dynamic_rotate %66 by %c1_i32_28 dim 1 : vector<16x16x8xf32>, i32 -> vector<16x16x8xf32>
    %cst_29 = arith.constant -3.40282347E+38 : f32
    %74 = vector.broadcast %cst_29 : f32 to vector<16x16x8xf32>
    %75 = arith.select %35, %73, %74 : vector<16x16x8xi1>, vector<16x16x8xf32>
    %76 = arith.maximumf %72, %75 : vector<16x16x8xf32>
    %c15_i32 = arith.constant 15 : i32
    %77 = tpu.dynamic_rotate %66 by %c15_i32 dim 1 : vector<16x16x8xf32>, i32 -> vector<16x16x8xf32>
    %cst_30 = arith.constant -3.40282347E+38 : f32
    %78 = vector.broadcast %cst_30 : f32 to vector<16x16x8xf32>
    %79 = arith.select %44, %77, %78 : vector<16x16x8xi1>, vector<16x16x8xf32>
    %80 = arith.maximumf %76, %79 : vector<16x16x8xf32>
    %c14_i32 = arith.constant 14 : i32
    %81 = tpu.dynamic_rotate %66 by %c14_i32 dim 1 : vector<16x16x8xf32>, i32 -> vector<16x16x8xf32>
    %cst_31 = arith.constant -3.40282347E+38 : f32
    %82 = vector.broadcast %cst_31 : f32 to vector<16x16x8xf32>
    %83 = arith.select %53, %81, %82 : vector<16x16x8xi1>, vector<16x16x8xf32>
    %84 = arith.maximumf %80, %83 : vector<16x16x8xf32>
    %85 = vector.shape_cast %84 : vector<16x16x8xf32> to vector<256x8xf32>
    %c0_32 = arith.constant 0 : index
    %c0_33 = arith.constant 0 : index
    %86 = vector.load %arg6[%c0_32, %c0_33] : memref<8x16xf32, #tpu.memory_space<vmem>>, vector<8x16xf32>
    %cst_34 = arith.constant dense<0.000000e+00> : vector<256x16xf32>
    %87 = tpu.matmul %85, %86, %cst_34 {dimension_numbers = #tpu.dot_dimension_numbers<[1], [0], [0], [1], [0, 0, 1, 1], [], []>} : vector<256x8xf32>, vector<8x16xf32>, vector<256x16xf32> -> vector<256x16xf32>
    %88 = arith.addf %55, %87 : vector<256x16xf32>
    %cst_35 = arith.constant -3.40282347E+38 : f32
    %89 = vector.broadcast %cst_35 : f32 to vector<2x16x8xf32>
    %90 = tpu.concatenate %89, %84, %89 in 0 : vector<2x16x8xf32>, vector<16x16x8xf32>, vector<2x16x8xf32> -> vector<20x16x8xf32>
    %91 = vector.extract_strided_slice %90 {offsets = [0, 0, 0], sizes = [16, 16, 8], strides = [1, 1, 1]} : vector<20x16x8xf32> to vector<16x16x8xf32>
    %92 = vector.extract_strided_slice %90 {offsets = [1, 0, 0], sizes = [16, 16, 8], strides = [1, 1, 1]} : vector<20x16x8xf32> to vector<16x16x8xf32>
    %93 = arith.maximumf %91, %92 : vector<16x16x8xf32>
    %94 = vector.extract_strided_slice %90 {offsets = [2, 0, 0], sizes = [16, 16, 8], strides = [1, 1, 1]} : vector<20x16x8xf32> to vector<16x16x8xf32>
    %95 = arith.maximumf %93, %94 : vector<16x16x8xf32>
    %96 = vector.extract_strided_slice %90 {offsets = [3, 0, 0], sizes = [16, 16, 8], strides = [1, 1, 1]} : vector<20x16x8xf32> to vector<16x16x8xf32>
    %97 = arith.maximumf %95, %96 : vector<16x16x8xf32>
    %98 = vector.extract_strided_slice %90 {offsets = [4, 0, 0], sizes = [16, 16, 8], strides = [1, 1, 1]} : vector<20x16x8xf32> to vector<16x16x8xf32>
    %99 = arith.maximumf %97, %98 : vector<16x16x8xf32>
    %cst_36 = arith.constant -3.40282347E+38 : f32
    %100 = vector.broadcast %cst_36 : f32 to vector<16x16x8xf32>
    %101 = arith.select %17, %99, %100 : vector<16x16x8xi1>, vector<16x16x8xf32>
    %c2_i32_37 = arith.constant 2 : i32
    %102 = tpu.dynamic_rotate %99 by %c2_i32_37 dim 1 : vector<16x16x8xf32>, i32 -> vector<16x16x8xf32>
    %cst_38 = arith.constant -3.40282347E+38 : f32
    %103 = vector.broadcast %cst_38 : f32 to vector<16x16x8xf32>
    %104 = arith.select %26, %102, %103 : vector<16x16x8xi1>, vector<16x16x8xf32>
    %105 = arith.maximumf %101, %104 : vector<16x16x8xf32>
    %c1_i32_39 = arith.constant 1 : i32
    %106 = tpu.dynamic_rotate %99 by %c1_i32_39 dim 1 : vector<16x16x8xf32>, i32 -> vector<16x16x8xf32>
    %cst_40 = arith.constant -3.40282347E+38 : f32
    %107 = vector.broadcast %cst_40 : f32 to vector<16x16x8xf32>
    %108 = arith.select %35, %106, %107 : vector<16x16x8xi1>, vector<16x16x8xf32>
    %109 = arith.maximumf %105, %108 : vector<16x16x8xf32>
    %c15_i32_41 = arith.constant 15 : i32
    %110 = tpu.dynamic_rotate %99 by %c15_i32_41 dim 1 : vector<16x16x8xf32>, i32 -> vector<16x16x8xf32>
    %cst_42 = arith.constant -3.40282347E+38 : f32
    %111 = vector.broadcast %cst_42 : f32 to vector<16x16x8xf32>
    %112 = arith.select %44, %110, %111 : vector<16x16x8xi1>, vector<16x16x8xf32>
    %113 = arith.maximumf %109, %112 : vector<16x16x8xf32>
    %c14_i32_43 = arith.constant 14 : i32
    %114 = tpu.dynamic_rotate %99 by %c14_i32_43 dim 1 : vector<16x16x8xf32>, i32 -> vector<16x16x8xf32>
    %cst_44 = arith.constant -3.40282347E+38 : f32
    %115 = vector.broadcast %cst_44 : f32 to vector<16x16x8xf32>
    %116 = arith.select %53, %114, %115 : vector<16x16x8xi1>, vector<16x16x8xf32>
    %117 = arith.maximumf %113, %116 : vector<16x16x8xf32>
    %118 = vector.shape_cast %117 : vector<16x16x8xf32> to vector<256x8xf32>
    %c0_45 = arith.constant 0 : index
    %c0_46 = arith.constant 0 : index
    %119 = vector.load %arg7[%c0_45, %c0_46] : memref<8x16xf32, #tpu.memory_space<vmem>>, vector<8x16xf32>
    %cst_47 = arith.constant dense<0.000000e+00> : vector<256x16xf32>
    %120 = tpu.matmul %118, %119, %cst_47 {dimension_numbers = #tpu.dot_dimension_numbers<[1], [0], [0], [1], [0, 0, 1, 1], [], []>} : vector<256x8xf32>, vector<8x16xf32>, vector<256x16xf32> -> vector<256x16xf32>
    %121 = arith.addf %88, %120 : vector<256x16xf32>
    %cst_48 = arith.constant -3.40282347E+38 : f32
    %122 = vector.broadcast %cst_48 : f32 to vector<2x16x8xf32>
    %123 = tpu.concatenate %122, %117, %122 in 0 : vector<2x16x8xf32>, vector<16x16x8xf32>, vector<2x16x8xf32> -> vector<20x16x8xf32>
    %124 = vector.extract_strided_slice %123 {offsets = [0, 0, 0], sizes = [16, 16, 8], strides = [1, 1, 1]} : vector<20x16x8xf32> to vector<16x16x8xf32>
    %125 = vector.extract_strided_slice %123 {offsets = [1, 0, 0], sizes = [16, 16, 8], strides = [1, 1, 1]} : vector<20x16x8xf32> to vector<16x16x8xf32>
    %126 = arith.maximumf %124, %125 : vector<16x16x8xf32>
    %127 = vector.extract_strided_slice %123 {offsets = [2, 0, 0], sizes = [16, 16, 8], strides = [1, 1, 1]} : vector<20x16x8xf32> to vector<16x16x8xf32>
    %128 = arith.maximumf %126, %127 : vector<16x16x8xf32>
    %129 = vector.extract_strided_slice %123 {offsets = [3, 0, 0], sizes = [16, 16, 8], strides = [1, 1, 1]} : vector<20x16x8xf32> to vector<16x16x8xf32>
    %130 = arith.maximumf %128, %129 : vector<16x16x8xf32>
    %131 = vector.extract_strided_slice %123 {offsets = [4, 0, 0], sizes = [16, 16, 8], strides = [1, 1, 1]} : vector<20x16x8xf32> to vector<16x16x8xf32>
    %132 = arith.maximumf %130, %131 : vector<16x16x8xf32>
    %cst_49 = arith.constant -3.40282347E+38 : f32
    %133 = vector.broadcast %cst_49 : f32 to vector<16x16x8xf32>
    %134 = arith.select %17, %132, %133 : vector<16x16x8xi1>, vector<16x16x8xf32>
    %c2_i32_50 = arith.constant 2 : i32
    %135 = tpu.dynamic_rotate %132 by %c2_i32_50 dim 1 : vector<16x16x8xf32>, i32 -> vector<16x16x8xf32>
    %cst_51 = arith.constant -3.40282347E+38 : f32
    %136 = vector.broadcast %cst_51 : f32 to vector<16x16x8xf32>
    %137 = arith.select %26, %135, %136 : vector<16x16x8xi1>, vector<16x16x8xf32>
    %138 = arith.maximumf %134, %137 : vector<16x16x8xf32>
    %c1_i32_52 = arith.constant 1 : i32
    %139 = tpu.dynamic_rotate %132 by %c1_i32_52 dim 1 : vector<16x16x8xf32>, i32 -> vector<16x16x8xf32>
    %cst_53 = arith.constant -3.40282347E+38 : f32
    %140 = vector.broadcast %cst_53 : f32 to vector<16x16x8xf32>
    %141 = arith.select %35, %139, %140 : vector<16x16x8xi1>, vector<16x16x8xf32>
    %142 = arith.maximumf %138, %141 : vector<16x16x8xf32>
    %c15_i32_54 = arith.constant 15 : i32
    %143 = tpu.dynamic_rotate %132 by %c15_i32_54 dim 1 : vector<16x16x8xf32>, i32 -> vector<16x16x8xf32>
    %cst_55 = arith.constant -3.40282347E+38 : f32
    %144 = vector.broadcast %cst_55 : f32 to vector<16x16x8xf32>
    %145 = arith.select %44, %143, %144 : vector<16x16x8xi1>, vector<16x16x8xf32>
    %146 = arith.maximumf %142, %145 : vector<16x16x8xf32>
    %c14_i32_56 = arith.constant 14 : i32
    %147 = tpu.dynamic_rotate %132 by %c14_i32_56 dim 1 : vector<16x16x8xf32>, i32 -> vector<16x16x8xf32>
    %cst_57 = arith.constant -3.40282347E+38 : f32
    %148 = vector.broadcast %cst_57 : f32 to vector<16x16x8xf32>
    %149 = arith.select %53, %147, %148 : vector<16x16x8xi1>, vector<16x16x8xf32>
    %150 = arith.maximumf %146, %149 : vector<16x16x8xf32>
    %151 = vector.shape_cast %150 : vector<16x16x8xf32> to vector<256x8xf32>
    %c0_58 = arith.constant 0 : index
    %c0_59 = arith.constant 0 : index
    %152 = vector.load %arg8[%c0_58, %c0_59] : memref<8x16xf32, #tpu.memory_space<vmem>>, vector<8x16xf32>
    %cst_60 = arith.constant dense<0.000000e+00> : vector<256x16xf32>
    %153 = tpu.matmul %151, %152, %cst_60 {dimension_numbers = #tpu.dot_dimension_numbers<[1], [0], [0], [1], [0, 0, 1, 1], [], []>} : vector<256x8xf32>, vector<8x16xf32>, vector<256x16xf32> -> vector<256x16xf32>
    %154 = arith.addf %121, %153 : vector<256x16xf32>
    %c0_61 = arith.constant 0 : index
    %c0_62 = arith.constant 0 : index
    %155 = vector.load %arg9[%c0_61, %c0_62] : memref<1x16xf32, #tpu.memory_space<vmem>>, vector<1x16xf32>
    %156 = vector.broadcast %155 : vector<1x16xf32> to vector<256x16xf32>
    %157 = arith.mulf %154, %156 : vector<256x16xf32>
    %c0_63 = arith.constant 0 : index
    %c0_64 = arith.constant 0 : index
    %158 = vector.load %arg10[%c0_63, %c0_64] : memref<1x16xf32, #tpu.memory_space<vmem>>, vector<1x16xf32>
    %159 = vector.broadcast %158 : vector<1x16xf32> to vector<256x16xf32>
    %160 = arith.addf %157, %159 : vector<256x16xf32>
    %cst_65 = arith.constant 0.00999999977 : f32
    %161 = vector.broadcast %cst_65 : f32 to vector<256x16xf32>
    %162 = arith.mulf %161, %160 : vector<256x16xf32>
    %163 = arith.maximumf %160, %162 : vector<256x16xf32>
    %164 = vector.shape_cast %163 : vector<256x16xf32> to vector<16x16x16xf32>
    %c0_66 = arith.constant 0 : index
    %c0_67 = arith.constant 0 : index
    %c0_68 = arith.constant 0 : index
    %c0_69 = arith.constant 0 : index
    %165 = vector.load %arg11[%c0_66, %c0_67, %c0_68, %c0_69] : memref<1x16x16x16xf32, #tpu.memory_space<vmem>>, vector<1x16x16x16xf32>
    %166 = vector.shape_cast %165 : vector<1x16x16x16xf32> to vector<16x16x16xf32>
    %167 = vector.shape_cast %164 : vector<16x16x16xf32> to vector<1x16x16x16xf32>
    tpu.vector_store %arg11[%c0_66, %c0_67, %c0_68, %c0_69], %167 {strides = array<i32>} : memref<1x16x16x16xf32, #tpu.memory_space<vmem>>, vector<1x16x16x16xf32>,
    return
  }
  func.func @transform_0(%arg0: i32) -> (i32, i32, i32, i32) {
    %c0_i32 = arith.constant 0 : i32
    %c0_i32_0 = arith.constant 0 : i32
    %c0_i32_1 = arith.constant 0 : i32
    %c0_i32_2 = arith.constant 0 : i32
    return %arg0, %c0_i32, %c0_i32_0, %c0_i32_1 : i32, i32, i32, i32
  }
  func.func @transform_1(%arg0: i32) -> (i32, i32) {
    %c0_i32 = arith.constant 0 : i32
    %c0_i32_0 = arith.constant 0 : i32
    %c0_i32_1 = arith.constant 0 : i32
    return %c0_i32, %c0_i32_0 : i32, i32
  }
  func.func @transform_2(%arg0: i32) -> (i32, i32) {
    %c0_i32 = arith.constant 0 : i32
    %c0_i32_0 = arith.constant 0 : i32
    %c0_i32_1 = arith.constant 0 : i32
    return %c0_i32, %c0_i32_0 : i32, i32
  }
  func.func @transform_3(%arg0: i32) -> (i32, i32) {
    %c0_i32 = arith.constant 0 : i32
    %c0_i32_0 = arith.constant 0 : i32
    %c0_i32_1 = arith.constant 0 : i32
    return %c0_i32, %c0_i32_0 : i32, i32
  }
  func.func @transform_4(%arg0: i32) -> (i32, i32) {
    %c0_i32 = arith.constant 0 : i32
    %c0_i32_0 = arith.constant 0 : i32
    %c0_i32_1 = arith.constant 0 : i32
    return %c0_i32, %c0_i32_0 : i32, i32
  }
  func.func @transform_5(%arg0: i32) -> (i32, i32) {
    %c0_i32 = arith.constant 0 : i32
    %c0_i32_0 = arith.constant 0 : i32
    %c0_i32_1 = arith.constant 0 : i32
    return %c0_i32, %c0_i32_0 : i32, i32
  }
  func.func @transform_6(%arg0: i32) -> (i32, i32) {
    %c0_i32 = arith.constant 0 : i32
    %c0_i32_0 = arith.constant 0 : i32
    %c0_i32_1 = arith.constant 0 : i32
    return %c0_i32, %c0_i32_0 : i32, i32
  }
  func.func @transform_7(%arg0: i32) -> (i32, i32) {
    %c0_i32 = arith.constant 0 : i32
    %c0_i32_0 = arith.constant 0 : i32
    %c0_i32_1 = arith.constant 0 : i32
    return %c0_i32, %c0_i32_0 : i32, i32
  }
  func.func @transform_8(%arg0: i32) -> (i32, i32) {
    %c0_i32 = arith.constant 0 : i32
    %c0_i32_0 = arith.constant 0 : i32
    %c0_i32_1 = arith.constant 0 : i32
    return %c0_i32, %c0_i32_0 : i32, i32
  }
  func.func @transform_9(%arg0: i32) -> (i32, i32) {
    %c0_i32 = arith.constant 0 : i32
    %c0_i32_0 = arith.constant 0 : i32
    %c0_i32_1 = arith.constant 0 : i32
    return %c0_i32, %c0_i32_0 : i32, i32
  }
  func.func @transform_10(%arg0: i32) -> (i32, i32, i32, i32) {
    %c0_i32 = arith.constant 0 : i32
    %c0_i32_0 = arith.constant 0 : i32
    %c0_i32_1 = arith.constant 0 : i32
    %c0_i32_2 = arith.constant 0 : i32
    return %arg0, %c0_i32, %c0_i32_0, %c0_i32_1 : i32, i32, i32, i32
  }
}

</mosaic_0001>

<bundles_post_ra>
// kernel: tpu_custom_call.1
= control target key start
LH: loop header
LB: loop body
LE: loop exit
PB: predicated region body
PF: predicated region fallthrough
CT: control target
= control target key end

     0   :  { %s8452_s0 = inlined_call_operand.hbm [shape: f32[2,16,16,16], index: 0, kind: input, shape index: {}]   ;;  %s8453_s1 = inlined_call_operand.vmem [shape: f32[16,8], index: 1, kind: input, shape index: {}]   ;;  %s8454_s2 = inlined_call_operand.vmem [shape: f32[1,8], index: 2, kind: input, shape index: {}]   ;;  %s8455_s3 = inlined_call_operand.vmem [shape: f32[1,8], index: 3, kind: input, shape index: {}]   ;;  %s8456_s4 = inlined_call_operand.vmem [shape: f32[8,16], index: 4, kind: input, shape index: {}]   ;;  %s8457_s5 = inlined_call_operand.vmem [shape: f32[8,16], index: 5, kind: input, shape index: {}]   ;;  %s8458_s6 = inlined_call_operand.vmem [shape: f32[8,16], index: 6, kind: input, shape index: {}]   ;;  %s8459_s7 = inlined_call_operand.hbm [shape: f32[8,16], index: 7, kind: input, shape index: {}]   ;;  %s8460_s8 = inlined_call_operand.vmem [shape: f32[1,16], index: 8, kind: input, shape index: {}]   ;;  %s8461_s9 = inlined_call_operand.vmem [shape: f32[1,16], index: 9, kind: input, shape index: {}]   ;;  %s8462_s10 = inlined_call_operand.hbm [shape: f32[2,16,16,16], index: 10, kind: output, shape index: {}]  }
   0x1   :  { %8557 = sst [smem:[#allocation58_spill]] %s8459_s7 }
   0x2   :  { %15 = vsyncpa [#allocation3], 0 }
   0x3   :  { %17 = vsyncpa [#allocation3 + $0x1], 0 }
   0x4   :  { %18 = vsyncpa [#allocation6], 0 }
   0x5   :  { %19 = vsyncpa [#allocation4], 0 }
   0x6   :  { %21 = vsyncpa [#allocation4 + $0x1], 0  ;;  %s4422_s13 = smov 0   ;;  %s4424_s14 = smov 0  }
   0x7   :  { %s4426_s15 = smov 0   ;;  %s4428_s16 = smov 0  }
   0x8 LB: > { %8558 = sst [smem:[#allocation11_spill]] %s4348_s13  ;;  %s4443_s17 = sadd.s32 4294967295, %s4360_s16   ;;  %s4360_s16 = sphi %s4428_s16, %s8986_s16   ;;  %s4356_s15 = sphi %s4426_s15, %s8988_s15   ;;  %s4352_s14 = sphi %s4424_s14, %s8990_s14   ;;  %s4348_s13 = sphi %s4422_s13, %s8989_s13  }
   0x9   : > { %8559 = sst [smem:[#allocation12_spill]] %s4356_s15  ;;  %s3980_s18 = sadd.s32 4294967294, %s4360_s16  }
   0xa   : > { %8560 = sst [smem:[#allocation13_spill]] %s4360_s16  ;;  %s4447_s19 = sadd.s32 1, %s4360_s16  }
   0xb   : > { %8561 = sst [smem:[#allocation14_spill]] %s4447_s19  ;;  %s34_s20 = sadd.s32 1, %s4356_s15 }
   0xc   : > { %s31_s21 = ssub.s32 %s4360_s16, %s4447_s19  ;;  %p41_p0 = scmp.ne.s32.totalorder %s4356_s15, %s4352_s14 }
   0xd   : > { %p32_p1 = scmp.eq.s32.totalorder %s31_s21, 0  ;;  %p42_p2 = scmp.eq.s32.totalorder %s4360_s16, 0 }
   0xe   : > { %p47_p3 = scmp.ne.s32.totalorder %s4352_s14, %s4348_s13  ;;  %p48_p4 = scmp.eq.s32.totalorder %s4443_s17, 0 }
   0xf   : > { %s4459_s22 = scalar_select %p32_p1, %s4356_s15, %s34_s20  }
  0x10   : > { %p4461_p5 = por %p42_p2, %p41_p0  ;;  %p4467_p6 = por %p48_p4, %p47_p3 }
  0x11   : > { %8562 = sst [smem:[#allocation15_spill]] %s4459_s22  ;;  %p260_p7 = scmp.eq.s32.totalorder %s4443_s17, 1 }
  0x12   : > { %p266_p8 = scmp.eq.s32.totalorder %s3980_s18, 1  ;;  %p3981_p9 = scmp.ge.s32.totalorder %s4360_s16, 1 }
  0x13   : > { %p273_p10 = scmp.lt.s32.totalorder %s4360_s16, 3  ;;  %p4474_p11 = por %p260_p7, %p41_p0 }
  0x14   : > { %p4478_p12 = por %p266_p8, %p47_p3  ;;  %s8569_s7 = sld [smem:[#allocation58_spill]] }
  0x15   : > { %p4482_p13 = pnand %p3981_p9, %p273_p10  ;;  %s4362_s11 = smov [#allocation5]  }
  0x16   : > { %s8566_s26 = scalar_select %p4478_p12, 1, 0 }
  0x17   : > { %p4169_p1 = pneg %p4482_p13  ;;  %s305_s12 = sshll.u32 %s4362_s11, 4  ;;  %s306_s12 = int_to_ptr.vmem [resolvable:$true] %s305_s12 }
  0x18   : > { %8567 = sst [smem:[#allocation16_spill]] %s8566_s26  ;;  %p4182_p3 = scmp.lt.s32.totalorder %s4360_s16, 2 }
  0x19   : > { %p4170_p2 = pnand %p4169_p1, %p48_p4  ;;  %s322_s18 = sand.u32 1, %s4356_s15  }
  0x1a   : > { %s303_s30 = sshll.u32 %s8569_s7, 4  ;;  %p4498_p7 = pnand %p4182_p3, %p4461_p5  ;;  %s304_s30 = int_to_ptr.hbm [resolvable:$true] %s303_s30 }
  0x1b   : > { %4172 = dma.hbm_to_vmem [thread:$0]  (!%p4170_p2), %s304_s30, 128, %s306_s12, [#allocation6]  }
  0x1c   : > { %s3984_s21 = sshll.u32 %s322_s18, 8  ;;  %s4156_s28 = sshll.u32 %s4360_s16, 8 }
  0x1d   : > { %s331_s22 = scalar_lea.hbm %s8452_s0, %s4156_s28  ;;  %s326_s19 = scalar_lea.vmem [#allocation2], %s3984_s21 }
  0x1e   : > { %s332_s11 = sshll.u32 %s331_s22, 4  ;;  %s334_s26 = sshll.u32 %s326_s19, 4  ;;  %s333_s11 = int_to_ptr.hbm [resolvable:$true] %s332_s11  ;;  %s335_s26 = int_to_ptr.vmem [resolvable:$true] %s334_s26 }
  0x1f   : > { %s323_s13 = scalar_lea.sflag [#allocation3], %s322_s18  ;;  %s4260_s15 = sshra.s32 %s333_s11, 4  ;;  %s4261_s15 = int_to_ptr.hbm [resolvable:$true] %s4260_s15 }
  0x20   : > { %s4262_s23 = scalar_lea.hbm %s4261_s15, 256  ;;  %p4264_p8 = pneg %p4498_p7 }
  0x21   : > { %p4263_p5 = scmp.ne.s32.totalorder %s4261_s15, %s4262_s23  ;;  %s4267_s16 = scalar_lea.hbm %s8452_s0, 512 }
  0x22   : > { %p4268_p1 = scmp.lt.s32.totalorder %s4261_s15, %s8452_s0  ;;  %p4269_p2 = scmp.lt.s32.totalorder %s4267_s16, %s4262_s23 }
  0x23   : > { %p4265_p9 = pnand %p4264_p8, %p4263_p5 }
  0x24   : > { %p4270_p3 = por %p4269_p2, %p4268_p1 }
  0x25   : > { %p4266_p10 = pneg %p4265_p9 }
  0x27   : > { %p4271_p0 = pnand %p4270_p3, %p4266_p10 }
  0x29   : > { %4274 = shalt.err (!%p4271_p0)
}
  0x2a   : > { %s4363_s19 = smov 128   ;;  %s4364_s22 = smov 8  }
  0x2b   : > { %4176 = dma.hbm_to_vmem [thread:$0]  (!%p4498_p7), %s333_s11, 4096, %s335_s26, %s323_s13, %s4363_s19, %s4363_s19, %s4364_s22  }
  0x2c   : > { %346 = sbr.rel (%p4482_p13) target bundleno = 1033 (0x409), region = 60 }
  0x31   : > { %s4519_s18 = sand.u32 1, %s4352_s14  }
  0x32   : > { %s3988_s15 = sshll.u32 %s4519_s18, 8  ;;  %s349_s16 = scalar_lea.sflag [#allocation3], %s4519_s18 }
  0x33   : > { %s4525_s21 = scalar_lea.vmem [#allocation2], %s3988_s15 }
  0x34   : > { %4335 = dma.done.wait (%p4467_p6), %s349_s16, 4096  }
  0x35   : > { %4337 = vsyncadd (%p4467_p6), %s349_s16, 4294963200 }
  0x36   : > { %4339 = dma.done.wait (%p48_p4), [#allocation6], 128  }
  0x37   : > { %4341 = vsyncadd (%p48_p4), [#allocation6], 4294967168  ;;  %v428_v0 = vld [vmem:[%s8453_s1 + $0x8] sm:$0xff]  ;;  %v427_v1 = vld [vmem:[%s8453_s1] sm:$0xff]  ;;  %vm429_vm0 = vcmask 130048   ;;  %v775_v57 = vlaneseq  ;;  %vm1482_vm9 = vcmask 64512  }
  0x38   : > { %540 = vmatpush.msra.mxu0 %v428_v0  ;;  %v395_v2 = vld [vmem:[%s4525_s21] sm:$0xff]  ;;  %v396_v3 = vld [vmem:[%s4525_s21 + $0x8] sm:$0xff]  ;;  %v397_v4 = vld [vmem:[%s4525_s21 + $0x10] sm:$0xff]  ;;  %s8200_s7 = scalar_lea.vmem [#allocation7], %s3988_s15  ;;  %s4157_s15 = sshll.u32 %s4443_s17, 8 }
  0x39   : > { %v398_v5 = vld [vmem:[%s4525_s21 + $0x18] sm:$0xff]  ;;  %v399_v6 = vld [vmem:[%s4525_s21 + $0x20] sm:$0xff]  ;;  %v400_v7 = vld [vmem:[%s4525_s21 + $0x28] sm:$0xff]  ;;  %s3893_s22 = scalar_lea.hbm %s8462_s10, %s4157_s15  ;;  %s3894_s16 = sshll.u32 %s8200_s7, 4  ;;  %s3895_s16 = int_to_ptr.vmem [resolvable:$true] %s3894_s16 }
  0x3a   : > { %541 = vmatpush.msra.mxu0 %v427_v1  ;;  %v401_v8 = vld [vmem:[%s4525_s21 + $0x30] sm:$0xff]  ;;  %v402_v9 = vld [vmem:[%s4525_s21 + $0x38] sm:$0xff]  ;;  %v403_v10 = vld [vmem:[%s4525_s21 + $0x40] sm:$0xff]  ;;  %s3882_s17 = scalar_lea.sflag [#allocation4], %s4519_s18  ;;  %s4310_s24 = scalar_lea.hbm %s8462_s10, 512 }
  0x3b   : > { %3991 = vmatmul.msk.f32.vlgmr.msra.gmra.mxu0 %vm429_vm0, %v395_v2  ;;  %v404_v11 = vld [vmem:[%s4525_s21 + $0x48] sm:$0xff]  ;;  %v405_v12 = vld [vmem:[%s4525_s21 + $0x50] sm:$0xff]  ;;  %v406_v13 = vld [vmem:[%s4525_s21 + $0x58] sm:$0xff]  ;;  %v4631_v2 = vshrl.u32 %v775_v57, 7 }
  0x3c   : > { %v407_v14 = vld [vmem:[%s4525_s21 + $0x60] sm:$0xff]  ;;  %v408_v15 = vld [vmem:[%s4525_s21 + $0x68] sm:$0xff]  ;;  %v409_v16 = vld [vmem:[%s4525_s21 + $0x70] sm:$0xff] }
  0x3d   : > { %v410_v17 = vld [vmem:[%s4525_s21 + $0x78] sm:$0xff]  ;;  %v411_v19 = vld [vmem:[%s4525_s21 + $0x80] sm:$0xff]  ;;  %v412_v21 = vld [vmem:[%s4525_s21 + $0x88] sm:$0xff]  ;;  %vm997_vm1 = vcmp.lt.s32.totalorder %v4631_v2, 2  ;;  %vm1126_vm3 = vcmp.lt.s32.totalorder %v4631_v2, 1  ;;  %vm1255_vm6 = vcmp.lt.s32.totalorder %v4631_v2, 7 }
  0x3e   : > { %v413_v23 = vld [vmem:[%s4525_s21 + $0x90] sm:$0xff]  ;;  %v414_v25 = vld [vmem:[%s4525_s21 + $0x98] sm:$0xff]  ;;  %v4583_v26 = vld [vmem:[%s8454_s2] ss:$0 sm:$0xff]  ;;  %vm1384_vm7 = vcmp.lt.s32.totalorder %v4631_v2, 6 }
  0x3f   : > { %v4591_v29 = vld [vmem:[%s8455_s3] ss:$0 sm:$0xff]  ;;  %v416_v45 = vld [vmem:[%s4525_s21 + $0xa8] sm:$0xff]  ;;  %v417_v62 = vld [vmem:[%s4525_s21 + $0xb0] sm:$0xff] }
  0x40   : > { %v415_v33 = vld [vmem:[%s4525_s21 + $0xa0] sm:$0xff] }
  0x43   : > { %3992 = vmatmul.msk.f32.gmra.mxu0 %vm429_vm0, %v396_v3 }
  0x4b   : > { %3993 = vmatmul.msk.f32.gmra.mxu0 %vm429_vm0, %v397_v4  ;;  %v4636_v4 = vadd.s32 4294967294, %v4631_v2 }
  0x4d   : > { %vm782_vm2 = vcmp.ge.s32.totalorder %v4636_v4, 0 }
  0x53   : > { %3994 = vmatmul.msk.f32.gmra.mxu0 %vm429_vm0, %v398_v5 }
  0x5b   : > { %3995 = vmatmul.msk.f32.gmra.mxu0 %vm429_vm0, %v399_v6 }
  0x63   : > { %3996 = vmatmul.msk.f32.gmra.mxu0 %vm429_vm0, %v400_v7  ;;  %v777_v7 = vadd.s32 8, %v4631_v2 }
  0x6b   : > { %3997 = vmatmul.msk.f32.gmra.mxu0 %vm429_vm0, %v401_v8 }
  0x73   : > { %3998 = vmatmul.msk.f32.gmra.mxu0 %vm429_vm0, %v402_v9 }
  0x7b   : > { %3999 = vmatmul.msk.f32.gmra.mxu0 %vm429_vm0, %v403_v10  ;;  %v418_v10 = vld [vmem:[%s4525_s21 + $0xb8] sm:$0xff] }
  0x83   : > { %4000 = vmatmul.msk.f32.gmra.mxu0 %vm429_vm0, %v404_v11 }
  0x8b   : > { %4001 = vmatmul.msk.f32.gmra.mxu0 %vm429_vm0, %v405_v12 }
  0x93   : > { %4002 = vmatmul.msk.f32.gmra.mxu0 %vm429_vm0, %v406_v13  ;;  %v4648_v13 = vadd.s32 4294967295, %v4631_v2 }
  0x95   : > { %vm790_vm4 = vcmp.ge.s32.totalorder %v4648_v13, 0 }
  0x9b   : > { %4003 = vmatmul.msk.f32.gmra.mxu0 %vm429_vm0, %v407_v14 }
  0xa3   : > { %4004 = vmatmul.msk.f32.gmra.mxu0 %vm429_vm0, %v408_v15  ;;  %v4652_v15 = vadd.s32 1, %v777_v7 }
  0xa5   : > { %vm801_vm5 = vcmp.lt.s32.totalorder %v4652_v15, 16 }
  0xab   : > { %4005 = vmatmul.msk.f32.gmra.mxu0 %vm429_vm0, %v409_v16 }
  0xb3   : > { %4006 = vmatmul.msk.f32.gmra.mxu0 %vm429_vm0, %v410_v17 }
  0xb8   : > { %v543_v18 = vpop.f32.mrf.mxu0 }
  0xb9   : > { %v643_v28 = vmul.f32 %v4583_v26, %v543_v18 }
  0xbb   : > { %4007 = vmatmul.msk.f32.gmra.mxu0 %vm429_vm0, %v411_v19  ;;  %v679_v35 = vadd.f32 %v4591_v29, %v643_v28 }
  0xbd   : > { %v711_v40 = vmul.f32 0.01, %v679_v35 }
  0xbf   : > { %v4607_v48 = vmax.f32 %v679_v35, %v711_v40 }
  0xc0   : > { %v546_v20 = vpop.f32.mrf.mxu0 }
  0xc1   : > { %v644_v27 = vmul.f32 %v4583_v26, %v546_v20  ;;  %8572 = vst [vmem:[#allocation18_spill] sm:$0xff] %v4607_v48  ;;  %v813_v55 = vmax.f32 %v4607_v48, -3.4028235e+38 }
  0xc3   : > { %4008 = vmatmul.msk.f32.gmra.mxu0 %vm429_vm0, %v412_v21  ;;  %v680_v34 = vadd.f32 %v4591_v29, %v644_v27 }
  0xc5   : > { %v712_v39 = vmul.f32 0.01, %v680_v34 }
  0xc7   : > { %v4604_v46 = vmax.f32 %v680_v34, %v712_v39 }
  0xc8   : > { %v549_v22 = vpop.f32.mrf.mxu0 }
  0xc9   : > { %v645_v31 = vmul.f32 %v4583_v26, %v549_v22  ;;  %8571 = vst [vmem:[#allocation17_spill] sm:$0xff] %v4604_v46  ;;  %v814_v53 = vmax.f32 %v4604_v46, -3.4028235e+38 }
  0xcb   : > { %4009 = vmatmul.msk.f32.gmra.mxu0 %vm429_vm0, %v413_v23  ;;  %v681_v38 = vadd.f32 %v4591_v29, %v645_v31 }
  0xcd   : > { %v713_v43 = vmul.f32 0.01, %v681_v38 }
  0xcf   : > { %v4613_v52 = vmax.f32 %v681_v38, %v713_v43 }
  0xd0   : > { %v552_v24 = vpop.f32.mrf.mxu0 }
  0xd1   : > { %v646_v30 = vmul.f32 %v4583_v26, %v552_v24  ;;  %8574 = vst [vmem:[#allocation20_spill] sm:$0xff] %v4613_v52  ;;  %v843_v60 = vmax.f32 %v813_v55, %v4613_v52  ;;  %v4667_v24 = vadd.s32 2, %v777_v7 }
  0xd3   : > { %4010 = vmatmul.msk.f32.gmra.mxu0 %vm429_vm0, %v414_v25  ;;  %v682_v37 = vadd.f32 %v4591_v29, %v646_v30  ;;  %vm809_vm8 = vcmp.lt.s32.totalorder %v4667_v24, 16 }
  0xd5   : > { %v714_v42 = vmul.f32 0.01, %v682_v37 }
  0xd7   : > { %v4609_v50 = vmax.f32 %v682_v37, %v714_v42 }
  0xd8   : > { %v555_v32 = vpop.f32.mrf.mxu0 }
  0xd9   : > { %v647_v36 = vmul.f32 %v4583_v26, %v555_v32  ;;  %8573 = vst [vmem:[#allocation19_spill] sm:$0xff] %v4609_v50  ;;  %v844_v58 = vmax.f32 %v814_v53, %v4609_v50  ;;  %v419_v32 = vld [vmem:[%s4525_s21 + $0xc0] sm:$0xff] }
  0xdb   : > { %4011 = vmatmul.msk.f32.gmra.mxu0 %vm429_vm0, %v415_v33  ;;  %v683_v41 = vadd.f32 %v4591_v29, %v647_v36 }
  0xdd   : > { %v715_v49 = vmul.f32 0.01, %v683_v41 }
  0xdf   : > { %v4617_v56 = vmax.f32 %v683_v41, %v715_v49 }
  0xe0   : > { %v558_v44 = vpop.f32.mrf.mxu0 }
  0xe1   : > { %v648_v47 = vmul.f32 %v4583_v26, %v558_v44  ;;  %8575 = vst [vmem:[#allocation21_spill] sm:$0xff] %v4617_v56  ;;  %v4629_v1 = vmax.f32 %v843_v60, %v4617_v56 }
  0xe3   : > { %v684_v51 = vadd.f32 %v4591_v29, %v648_v47  ;;  %4012 = vmatmul.msk.f32.gmra.mxu0 %vm429_vm0, %v416_v45  ;;  %v965_v6 = vrot.slane %v4629_v1, 6  ;;  %v1094_v19 = vrot.slane %v4629_v1, 7  ;;  %v1223_v35 = vrot.slane %v4629_v1, 1 }
  0xe4   : > { %v1352_v41 = vrot.slane %v4629_v1, 2  ;;  %v815_v47 = vmax.f32 %v4607_v48, %v4613_v52 }
  0xe5   : > { %v716_v54 = vmul.f32 0.01, %v684_v51 }
  0xe7   : > { %v4620_v59 = vmax.f32 %v684_v51, %v716_v54 }
  0xe8   : > { %v561_v61 = vpop.f32.mrf.mxu0 }
  0xe9   : > { %8576 = vst [vmem:[#allocation22_spill] sm:$0xff] %v4620_v59  ;;  %v4625_v63 = vmax.f32 %v844_v58, %v4620_v59  ;;  %v649_v0 = vmul.f32 %v4583_v26, %v561_v61  ;;  %v818_v7 = vmax.f32 %v4609_v50, %v4620_v59 }
  0xeb   : > { %4013 = vmatmul.msk.f32.gmra.mxu0 %vm429_vm0, %v417_v62  ;;  %v685_v3 = vadd.f32 %v4591_v29, %v649_v0  ;;  %v981_v5 = vrot.slane %v4625_v63, 6  ;;  %v1110_v14 = vrot.slane %v4625_v63, 7  ;;  %v1239_v25 = vrot.slane %v4625_v63, 1 }
  0xec   : > { %v1368_v36 = vrot.slane %v4625_v63, 2  ;;  %v816_v0 = vmax.f32 %v4604_v46, %v4609_v50 }
  0xed   : > { %v717_v8 = vmul.f32 0.01, %v685_v3  ;;  %v1014_v11 = vsel %vm997_vm1, %v981_v5, %v965_v6  ;;  %v998_v20 = vsel %vm997_vm1, %v965_v6, %v981_v5  ;;  %v1143_v23 = vsel %vm1126_vm3, %v1110_v14, %v1094_v19  ;;  %v420_v6 = vld [vmem:[%s4525_s21 + $0xc8] sm:$0xff] }
  0xee   : > { %v1030_v16 = vsel %vm782_vm2, %v1014_v11, -3.4028235e+38  ;;  %v1063_v27 = vmax.f32 %v4625_v63, %v998_v20  ;;  %v1159_v34 = vsel %vm790_vm4, %v1143_v23, -3.4028235e+38  ;;  %v1127_v39 = vsel %vm1126_vm3, %v1094_v19, %v1110_v14 }
  0xef   : > { %v4657_v17 = vmax.f32 %v685_v3, %v717_v8  ;;  %v1062_v22 = vmax.f32 %v4629_v1, %v1030_v16  ;;  %v1272_v43 = vsel %vm1255_vm6, %v1239_v25, %v1223_v35  ;;  %v1256_v49 = vsel %vm1255_vm6, %v1223_v35, %v1239_v25 }
  0xf0   : > { %v564_v9 = vpop.f32.mrf.mxu0  ;;  %v1192_v42 = vmax.f32 %v1063_v27, %v1127_v39  ;;  %v1401_v51 = vsel %vm1384_vm7, %v1368_v36, %v1352_v41  ;;  %v1289_v55 = vsel %vm801_vm5, %v1272_v43, -3.4028235e+38  ;;  %v845_v3 = vmax.f32 %v815_v47, %v4617_v56 }
  0xf1   : > { %v650_v12 = vmul.f32 %v4583_v26, %v564_v9  ;;  %8577 = vst [vmem:[#allocation23_spill] sm:$0xff] %v4657_v17  ;;  %v4673_v28 = vmax.f32 %v4629_v1, %v4657_v17  ;;  %v1191_v38 = vmax.f32 %v1062_v22, %v1159_v34  ;;  %v817_v1 = vmax.f32 %v4613_v52, %v4617_v56 }
  0xf2   : > { %v1321_v61 = vmax.f32 %v1192_v42, %v1289_v55  ;;  %v1385_v8 = vsel %vm1384_vm7, %v1352_v41, %v1368_v36  ;;  %v819_v22 = vmax.f32 %v4617_v56, %v4657_v17 }
  0xf3   : > { %4014 = vmatmul.msk.f32.gmra.mxu0 %vm429_vm0, %v418_v10  ;;  %v686_v18 = vadd.f32 %v4591_v29, %v650_v12  ;;  %v966_v44 = vrot.slane %v4673_v28, 6  ;;  %v1320_v54 = vmax.f32 %v1191_v38, %v1256_v49  ;;  %v1095_v58 = vrot.slane %v4673_v28, 7  ;;  %v421_v49 = vld [vmem:[%s4525_s21 + $0xd0] sm:$0xff] }
  0xf4   : > { %v1418_v12 = vsel %vm809_vm8, %v1401_v51, -3.4028235e+38  ;;  %v1224_v27 = vrot.slane %v4673_v28, 1  ;;  %v1353_v43 = vrot.slane %v4673_v28, 2 }
  0xf5   : > { %v718_v21 = vmul.f32 0.01, %v686_v18  ;;  %v4738_v20 = vmax.f32 %v1320_v54, %v1385_v8 }
  0xf7   : > { %v4675_v30 = vmax.f32 %v686_v18, %v718_v21  ;;  %v846_v18 = vmax.f32 %v816_v0, %v4620_v59  ;;  %v4740_v21 = vmax.f32 %v1321_v61, %v1418_v12  ;;  %v1901_v41 = vmax.f32 %v4738_v20, -3.4028235e+38 }
  0xf8   : > { %v567_v31 = vpop.f32.mrf.mxu0 }
  0xf9   : > { %8578 = vst [vmem:[#allocation24_spill] sm:$0xff] %v4675_v30  ;;  %v651_v33 = vmul.f32 %v4583_v26, %v567_v31  ;;  %v4687_v37 = vmax.f32 %v4625_v63, %v4675_v30  ;;  %v847_v31 = vmax.f32 %v817_v1, %v4657_v17  ;;  %v1902_v42 = vmax.f32 %v4740_v21, -3.4028235e+38 }
  0xfb   : > { %v687_v40 = vadd.f32 %v4591_v29, %v651_v33  ;;  %4015 = vmatmul.msk.f32.gmra.mxu0 %vm429_vm0, %v419_v32  ;;  %v982_v45 = vrot.slane %v4687_v37, 6  ;;  %v1111_v53 = vrot.slane %v4687_v37, 7  ;;  %v1240_v14 = vrot.slane %v4687_v37, 1 }
  0xfc   : > { %v875_v32 = vmax.f32 %v845_v3, %v4657_v17  ;;  %v1369_v36 = vrot.slane %v4687_v37, 2 }
  0xfd   : > { %v1015_v57 = vsel %vm997_vm1, %v982_v45, %v966_v44  ;;  %v719_v60 = vmul.f32 0.01, %v687_v40  ;;  %v999_v63 = vsel %vm997_vm1, %v966_v44, %v982_v45  ;;  %v1144_v10 = vsel %vm1126_vm3, %v1111_v53, %v1095_v58 }
  0xfe   : > { %v1032_v62 = vsel %vm782_vm2, %v1015_v57, -3.4028235e+38  ;;  %v1065_v16 = vmax.f32 %v4687_v37, %v999_v63  ;;  %v1161_v25 = vsel %vm790_vm4, %v1144_v10, -3.4028235e+38  ;;  %v1128_v34 = vsel %vm1126_vm3, %v1095_v58, %v1111_v53 }
  0xff   : > { %v1064_v9 = vmax.f32 %v4673_v28, %v1032_v62  ;;  %v4735_v19 = vmax.f32 %v687_v40, %v719_v60  ;;  %v1273_v39 = vsel %vm1255_vm6, %v1240_v14, %v1224_v27  ;;  %v820_v44 = vmax.f32 %v4620_v59, %v4675_v30 }
 0x100   : > { %v570_v5 = vpop.f32.mrf.mxu0  ;;  %v1194_v38 = vmax.f32 %v1065_v16, %v1128_v34  ;;  %v876_v45 = vmax.f32 %v846_v18, %v4675_v30  ;;  %v1257_v51 = vsel %vm1255_vm6, %v1224_v27, %v1240_v14  ;;  %v4770_v53 = vmax.f32 %v818_v7, %v4675_v30 }
 0x101   : > { %v652_v11 = vmul.f32 %v4583_v26, %v570_v5  ;;  %8579 = vst [vmem:[#allocation25_spill] sm:$0xff] %v4735_v19  ;;  %v1193_v33 = vmax.f32 %v1064_v9, %v1161_v25  ;;  %v4756_v40 = vmax.f32 %v875_v32, %v4735_v19  ;;  %v1291_v28 = vsel %vm801_vm5, %v1273_v39, -3.4028235e+38  ;;  %v422_v32 = vld [vmem:[%s4525_s21 + $0xd8] sm:$0xff] }
 0x102   : > { %v1386_v58 = vsel %vm1384_vm7, %v1353_v43, %v1369_v36  ;;  %v1323_v60 = vmax.f32 %v1194_v38, %v1291_v28  ;;  %v1402_v61 = vsel %vm1384_vm7, %v1369_v36, %v1353_v43  ;;  %v821_v62 = vmax.f32 %v4657_v17, %v4735_v19 }
 0x103   : > { %4016 = vmatmul.msk.f32.gmra.mxu0 %vm429_vm0, %v420_v6  ;;  %v688_v23 = vadd.f32 %v4591_v29, %v652_v11  ;;  %v1322_v55 = vmax.f32 %v1193_v33, %v1257_v51  ;;  %v4783_v63 = vmax.f32 %v819_v22, %v4735_v19  ;;  %v967_v1 = vrot.slane %v4756_v40, 6 }
 0x104   : > { %v1096_v5 = vrot.slane %v4756_v40, 7  ;;  %v877_v8 = vmax.f32 %v847_v31, %v4735_v19  ;;  %v1420_v11 = vsel %vm809_vm8, %v1402_v61, -3.4028235e+38  ;;  %v1225_v18 = vrot.slane %v4756_v40, 1 }
 0x105   : > { %v720_v35 = vmul.f32 0.01, %v688_v23  ;;  %v4790_v10 = vmax.f32 %v1322_v55, %v1386_v58  ;;  %v4794_v12 = vmax.f32 %v1323_v60, %v1420_v11  ;;  %v1354_v25 = vrot.slane %v4756_v40, 2 }
 0x107   : > { %v4764_v47 = vmax.f32 %v688_v23, %v720_v35  ;;  %v1903_v38 = vmax.f32 %v4738_v20, %v4790_v10  ;;  %v1931_v39 = vmax.f32 %v1901_v41, %v4790_v10  ;;  %v1932_v41 = vmax.f32 %v1902_v42, %v4794_v12 }
 0x108   : > { %v573_v37 = vpop.f32.mrf.mxu0 }
 0x109   : > { %8580 = vst [vmem:[#allocation26_spill] sm:$0xff] %v4764_v47  ;;  %v653_v54 = vmul.f32 %v4583_v26, %v573_v37  ;;  %v906_v57 = vmax.f32 %v876_v45, %v4764_v47 }
 0x10b   : > { %v689_v0 = vadd.f32 %v4591_v29, %v653_v54  ;;  %4017 = vmatmul.msk.f32.gmra.mxu0 %vm429_vm0, %v421_v49  ;;  %v983_v3 = vrot.slane %v906_v57, 6  ;;  %v1112_v6 = vrot.slane %v906_v57, 7  ;;  %v1241_v7 = vrot.slane %v906_v57, 1 }
 0x10c   : > { %v1370_v34 = vrot.slane %v906_v57, 2 }
 0x10d   : > { %v721_v9 = vmul.f32 0.01, %v689_v0  ;;  %v1016_v14 = vsel %vm997_vm1, %v983_v3, %v967_v1  ;;  %v1145_v16 = vsel %vm1126_vm3, %v1112_v6, %v1096_v5  ;;  %v1000_v27 = vsel %vm997_vm1, %v967_v1, %v983_v3 }
 0x10e   : > { %v1034_v23 = vsel %vm782_vm2, %v1016_v14, -3.4028235e+38  ;;  %v1067_v35 = vmax.f32 %v906_v57, %v1000_v27  ;;  %v1274_v36 = vsel %vm1255_vm6, %v1241_v7, %v1225_v18  ;;  %v1163_v43 = vsel %vm790_vm4, %v1145_v16, -3.4028235e+38  ;;  %v1481_v27 = vld [vmem:[%s8457_s5] sm:$0xff] }
 0x10f   : > { %v4801_v22 = vmax.f32 %v689_v0, %v721_v9  ;;  %v1066_v33 = vmax.f32 %v4756_v40, %v1034_v23  ;;  %v1129_v45 = vsel %vm1126_vm3, %v1096_v5, %v1112_v6  ;;  %v1904_v40 = vmax.f32 %v4740_v21, %v4794_v12  ;;  %4158 = vmatpush.msra.mxu1 %v1481_v27 }
 0x110   : > { %v576_v31 = vpop.f32.mrf.mxu0  ;;  %v1196_v51 = vmax.f32 %v1067_v35, %v1129_v45  ;;  %v1258_v55 = vsel %vm1255_vm6, %v1225_v18, %v1241_v7  ;;  %v1293_v28 = vsel %vm801_vm5, %v1274_v36, -3.4028235e+38  ;;  %v1403_v61 = vsel %vm1384_vm7, %v1370_v34, %v1354_v25  ;;  %1594 = vmatpush.msrb.mxu0 %v1481_v27  ;;  %4159 = vmatpush.msra.mxu2 %v1481_v27 }
 0x111   : > { %8581 = vst [vmem:[#allocation27_spill] sm:$0xff] %v4801_v22  ;;  %v654_v37 = vmul.f32 %v4583_v26, %v576_v31  ;;  %v1195_v49 = vmax.f32 %v1066_v33, %v1163_v43  ;;  %v4823_v54 = vmax.f32 %v877_v8, %v4801_v22  ;;  %v822_v0 = vmax.f32 %v4675_v30, %v4764_v47  ;;  %v426_v30 = vld [vmem:[%s4525_s21 + $0xf8] sm:$0xff] }
 0x112   : > { %v1325_v60 = vmax.f32 %v1196_v51, %v1293_v28  ;;  %v4837_v1 = vmax.f32 %v820_v44, %v4764_v47  ;;  %v1387_v42 = vsel %vm1384_vm7, %v1354_v25, %v1370_v34  ;;  %v1422_v3 = vsel %vm809_vm8, %v1403_v61, -3.4028235e+38  ;;  %v423_v25 = vld [vmem:[%s4525_s21 + $0xe0] sm:$0xff]  ;;  %4160 = vmatpush.msra.mxu3 %v1481_v27 }
 0x113   : > { %4018 = vmatmul.msk.f32.gmra.mxu0 %vm429_vm0, %v422_v32  ;;  %v690_v57 = vadd.f32 %v4591_v29, %v654_v37  ;;  %v1324_v58 = vmax.f32 %v1195_v49, %v1258_v55  ;;  %v878_v5 = vmax.f32 %v4770_v53, %v4764_v47  ;;  %v823_v9 = vmax.f32 %v4735_v19, %v4801_v22 }
 0x114   : > { %v4847_v8 = vmax.f32 %v1325_v60, %v1422_v3  ;;  %v4852_v44 = vmax.f32 %v821_v62, %v4801_v22  ;;  %v879_v11 = vmax.f32 %v4783_v63, %v4801_v22  ;;  %v968_v14 = vrot.slane %v4823_v54, 6 }
 0x115   : > { %v722_v6 = vmul.f32 0.01, %v690_v57  ;;  %v4845_v7 = vmax.f32 %v1324_v58, %v1387_v42  ;;  %v1097_v16 = vrot.slane %v4823_v54, 7  ;;  %v1226_v53 = vrot.slane %v4823_v54, 1 }
 0x116   : > { %v1355_v31 = vrot.slane %v4823_v54, 2  ;;  %v1906_v36 = vmax.f32 %v4794_v12, %v4847_v8  ;;  %v4901_v3 = vmax.f32 %v1932_v41, %v4847_v8 }
 0x117   : > { %v4859_v18 = vmax.f32 %v690_v57, %v722_v6  ;;  %v4866_v62 = vmax.f32 %v1931_v39, %v4845_v7  ;;  %v1905_v32 = vmax.f32 %v4790_v10, %v4845_v7  ;;  %v4873_v33 = vmax.f32 %v1903_v38, %v4845_v7 }
 0x118   : > { %v579_v23 = vpop.f32.mrf.mxu0  ;;  %v4881_v39 = vmax.f32 %v1904_v40, %v4847_v8 }
 0x119   : > { %8582 = vst [vmem:[#allocation28_spill] sm:$0xff] %v4859_v18  ;;  %v655_v63 = vmul.f32 %v4583_v26, %v579_v23  ;;  %v824_v34 = vmax.f32 %v4764_v47, %v4859_v18  ;;  %v908_v35 = vmax.f32 %v878_v5, %v4859_v18  ;;  %v4884_v43 = vmax.f32 %v822_v0, %v4859_v18 }
 0x11a   : > { %v880_v45 = vmax.f32 %v4837_v1, %v4859_v18  ;;  %v2053_v37 = vrot.slane %v4866_v62, 6 }
 0x11b   : > { %v691_v38 = vadd.f32 %v4591_v29, %v655_v63  ;;  %4019 = vmatmul.msk.f32.gmra.mxu0 %vm429_vm0, %v423_v25  ;;  %v984_v49 = vrot.slane %v908_v35, 6  ;;  %v1113_v51 = vrot.slane %v908_v35, 7  ;;  %v1242_v55 = vrot.slane %v908_v35, 1 }
 0x11c   : > { %v1371_v28 = vrot.slane %v908_v35, 2 }
 0x11d   : > { %v723_v40 = vmul.f32 0.01, %v691_v38  ;;  %v1001_v61 = vsel %vm997_vm1, %v968_v14, %v984_v49  ;;  %v1017_v0 = vsel %vm997_vm1, %v984_v49, %v968_v14  ;;  %v1146_v42 = vsel %vm1126_vm3, %v1113_v51, %v1097_v16 }
 0x11e   : > { %v1036_v5 = vsel %vm782_vm2, %v1017_v0, -3.4028235e+38  ;;  %v1069_v6 = vmax.f32 %v908_v35, %v1001_v61  ;;  %v1130_v23 = vsel %vm1126_vm3, %v1097_v16, %v1113_v51  ;;  %v1165_v25 = vsel %vm790_vm4, %v1146_v42, -3.4028235e+38  ;;  %v424_v0 = vld [vmem:[%s4525_s21 + $0xe8] sm:$0xff] }
 0x11f   : > { %v1068_v27 = vmax.f32 %v4823_v54, %v1036_v5  ;;  %v1259_v14 = vsel %vm1255_vm6, %v1226_v53, %v1242_v55  ;;  %v1275_v63 = vsel %vm1255_vm6, %v1242_v55, %v1226_v53  ;;  %v1404_v41 = vsel %vm1384_vm7, %v1371_v28, %v1355_v31 }
 0x120   : > { %v582_v49 = vpop.f32.mrf.mxu0  ;;  %v1198_v35 = vmax.f32 %v1069_v6, %v1130_v23  ;;  %v1295_v16 = vsel %vm801_vm5, %v1275_v63, -3.4028235e+38  ;;  %v1388_v51 = vsel %vm1384_vm7, %v1355_v31, %v1371_v28  ;;  %v4921_v61 = vmax.f32 %v691_v38, %v723_v40 }
 0x121   : > { %v1197_v54 = vmax.f32 %v1068_v27, %v1165_v25  ;;  %v1424_v42 = vsel %vm809_vm8, %v1404_v41, -3.4028235e+38  ;;  %v656_v53 = vmul.f32 %v4583_v26, %v582_v49  ;;  %v2069_v55 = vrot.slane %v4901_v3, 6 }
 0x122   : > { %8583 = vst [vmem:[#allocation29_spill] sm:$0xff] %v4921_v61  ;;  %v1327_v5 = vmax.f32 %v1198_v35, %v1295_v16  ;;  %v4930_v23 = vmax.f32 %v823_v9, %v4921_v61  ;;  %v4935_v28 = vmax.f32 %v879_v11, %v4921_v61  ;;  %v881_v9 = vmax.f32 %v4852_v44, %v4921_v61 }
 0x123   : > { %4020 = vmatmul.msk.f32.gmra.mxu0 %vm429_vm0, %v424_v0  ;;  %v1326_v38 = vmax.f32 %v1197_v54, %v1259_v14  ;;  %v692_v40 = vadd.f32 %v4591_v29, %v656_v53  ;;  %v4940_v25 = vsel %vm997_vm1, %v2053_v37, %v2069_v55  ;;  %v2101_v63 = vsel %vm997_vm1, %v2069_v55, %v2053_v37  ;;  %v425_v53 = vld [vmem:[%s4525_s21 + $0xf0] sm:$0xff]  ;;  %s3896_s21 = sshll.u32 %s3893_s22, 4  ;;  %s3897_s21 = int_to_ptr.hbm [resolvable:$true] %s3896_s21 }
 0x124   : > { %8584 = vst [vmem:[#allocation30_spill] sm:$0xff] %v4940_v25  ;;  %v4942_v27 = vmax.f32 %v1327_v5, %v1424_v42  ;;  %v969_v49 = vrot.slane %v4935_v28, 6  ;;  %v1098_v35 = vrot.slane %v4935_v28, 7  ;;  %v1227_v16 = vrot.slane %v4935_v28, 1  ;;  %s4304_s13 = sshra.s32 %s3897_s21, 4  ;;  %s4305_s13 = int_to_ptr.hbm [resolvable:$true] %s4304_s13 }
 0x125   : > { %v4950_v11 = vmax.f32 %v1326_v38, %v1388_v51  ;;  %v724_v41 = vmul.f32 0.01, %v692_v40  ;;  %v1356_v54 = vrot.slane %v4935_v28, 2  ;;  %v5022_v6 = vsel %vm782_vm2, %v2101_v63, -3.4028235e+38  ;;  %s4306_s26 = scalar_lea.hbm %s4305_s13, 256  ;;  %p4311_p0 = scmp.lt.s32.totalorder %s4305_s13, %s8462_s10 }
 0x126   : > { %v4974_v5 = vmax.f32 %v1906_v36, %v4942_v27  ;;  %v4985_v60 = vmax.f32 %v4901_v3, %v4942_v27  ;;  %8587 = vst [vmem:[#allocation33_spill] sm:$0xff] %v5022_v6  ;;  %p4307_p4 = scmp.ne.s32.totalorder %s4305_s13, %s4306_s26  ;;  %p4312_p7 = scmp.lt.s32.totalorder %s4310_s24, %s4306_s26 }
 0x127   : > { %v4959_v37 = vmax.f32 %v692_v40, %v724_v41  ;;  %v4968_v55 = vmax.f32 %v1905_v32, %v4950_v11  ;;  %v4981_v41 = vmax.f32 %v4866_v62, %v4950_v11 }
 0x128   : > { %v585_v42 = vpop.f32.mrf.mxu0  ;;  %p4308_p6 = pnand %p4307_p4, %p4474_p11  ;;  %p4313_p5 = por %p4312_p7, %p4311_p0 }
 0x129   : > { %8585 = vst [vmem:[#allocation31_spill] sm:$0xff] %v4959_v37  ;;  %v657_v38 = vmul.f32 %v4583_v26, %v585_v42  ;;  %v4993_v36 = vmax.f32 %v824_v34, %v4959_v37  ;;  %v910_v42 = vmax.f32 %v880_v45, %v4959_v37  ;;  %v2054_v32 = vrot.slane %v4981_v41, 6 }
 0x12a   : > { %v2070_v34 = vrot.slane %v4985_v60, 6  ;;  %p4309_p13 = pneg %p4308_p6 }
 0x12b   : > { %v693_v14 = vadd.f32 %v4591_v29, %v657_v38  ;;  %4021 = vmatmul.msk.f32.gmra.mxu0 %vm429_vm0, %v425_v53  ;;  %v985_v44 = vrot.slane %v910_v42, 6  ;;  %v1114_v40 = vrot.slane %v910_v42, 7  ;;  %v1243_v51 = vrot.slane %v910_v42, 1 }
 0x12c   : > { %v1372_v1 = vrot.slane %v910_v42, 2  ;;  %v5010_v0 = vsel %vm997_vm1, %v2054_v32, %v2070_v34  ;;  %v2102_v53 = vsel %vm997_vm1, %v2070_v34, %v2054_v32  ;;  %p4314_p8 = pnand %p4313_p5, %p4309_p13 }
 0x12d   : > { %v725_v45 = vmul.f32 0.01, %v693_v14  ;;  %8586 = vst [vmem:[#allocation32_spill] sm:$0xff] %v5010_v0  ;;  %v1018_v38 = vsel %vm997_vm1, %v985_v44, %v969_v49  ;;  %v1147_v57 = vsel %vm1126_vm3, %v1114_v40, %v1098_v35  ;;  %v1260_v31 = vsel %vm1255_vm6, %v1227_v16, %v1243_v51 }
 0x12e   : > { %v1038_v47 = vsel %vm782_vm2, %v1018_v38, -3.4028235e+38  ;;  %v1389_v32 = vsel %vm1384_vm7, %v1356_v54, %v1372_v1  ;;  %v1002_v34 = vsel %vm997_vm1, %v969_v49, %v985_v44  ;;  %v1167_v59 = vsel %vm790_vm4, %v1147_v57, -3.4028235e+38 }
 0x12f   : > { %v5024_v58 = vmax.f32 %v693_v14, %v725_v45  ;;  %v1070_v17 = vmax.f32 %v4935_v28, %v1038_v47  ;;  %v1071_v63 = vmax.f32 %v910_v42, %v1002_v34  ;;  %v1276_v14 = vsel %vm1255_vm6, %v1243_v51, %v1227_v16 }
 0x130   : > { %v588_v19 = vpop.f32.mrf.mxu0  ;;  %v8589_v38 = vmax.f32 %v4801_v22, %v4921_v61  ;;  %v1131_v47 = vsel %vm1126_vm3, %v1098_v35, %v1114_v40  ;;  %v1297_v51 = vsel %vm801_vm5, %v1276_v14, -3.4028235e+38  ;;  %v1405_v42 = vsel %vm1384_vm7, %v1372_v1, %v1356_v54 }
 0x131   : > { %8588 = vst [vmem:[#allocation34_spill] sm:$0xff] %v5024_v58  ;;  %v5047_v49 = vmax.f32 %v881_v9, %v5024_v58  ;;  %v658_v28 = vmul.f32 %v4583_v26, %v588_v19  ;;  %v1199_v16 = vmax.f32 %v1070_v17, %v1167_v59  ;;  %v1200_v44 = vmax.f32 %v1071_v63, %v1131_v47 }
 0x132   : > { %v5044_v56 = vmax.f32 %v8589_v38, %v5024_v58  ;;  %v1426_v59 = vsel %vm809_vm8, %v1405_v42, -3.4028235e+38  ;;  %v8596_v47 = vmax.f32 %v4847_v8, %v4942_v27 }
 0x133   : > { %4022 = vmatmul.msk.f32.gmra.mxu0 %vm429_vm0, %v426_v30  ;;  %v970_v9 = vrot.slane %v5047_v49, 6  ;;  %v1099_v34 = vrot.slane %v5047_v49, 7  ;;  %v694_v35 = vadd.f32 %v4591_v29, %v658_v28  ;;  %v1328_v40 = vmax.f32 %v1199_v16, %v1260_v31 }
 0x134   : > { %v1329_v38 = vmax.f32 %v1200_v44, %v1297_v51  ;;  %v1228_v19 = vrot.slane %v5047_v49, 1  ;;  %v1357_v17 = vrot.slane %v5047_v49, 2  ;;  %v5068_v30 = vsel %vm782_vm2, %v2102_v53, -3.4028235e+38 }
 0x135   : > { %8590 = vst [vmem:[#allocation35_spill] sm:$0xff] %v5068_v30  ;;  %v726_v1 = vmul.f32 0.01, %v694_v35  ;;  %v5072_v63 = vmax.f32 %v1328_v40, %v1389_v32  ;;  %v8591_v53 = vrot.slane %v4901_v3, 7  ;;  %v8592_v44 = vrot.slane %v4866_v62, 7 }
 0x136   : > { %v5074_v14 = vmax.f32 %v1329_v38, %v1426_v59  ;;  %v8594_v59 = vmax.f32 %v4845_v7, %v4950_v11 }
 0x137   : > { %v5088_v32 = vsel %vm1126_vm3, %v8592_v44, %v8591_v53  ;;  %v5090_v51 = vmax.f32 %v694_v35, %v726_v1  ;;  %4031 = vmatmul.msk.f32.vlgmr.msra.gmra.mxu1 %vm1482_vm9, %v5072_v63  ;;  %v8595_v1 = vmax.f32 %v4873_v33, %v4950_v11 }
 0x138   : > { %v591_v40 = vpop.f32.mrf.mxu0  ;;  %v5102_v31 = vmax.f32 %v8594_v59, %v5072_v63  ;;  %v5117_v54 = vmax.f32 %v8596_v47, %v5074_v14 }
 0x139   : > { %8593 = vst [vmem:[#allocation36_spill] sm:$0xff] %v5090_v51  ;;  %v659_v53 = vmul.f32 %v4583_v26, %v591_v40  ;;  %v5111_v44 = vmax.f32 %v8595_v1, %v5072_v63  ;;  %v8597_v40 = vmax.f32 %v4859_v18, %v4959_v37  ;;  %v8598_v1 = vmax.f32 %v4884_v43, %v4959_v37 }
 0x13b   : > { %v5125_v28 = vmax.f32 %v8597_v40, %v5090_v51  ;;  %v912_v16 = vmax.f32 %v8598_v1, %v5090_v51  ;;  %v695_v47 = vadd.f32 %v4591_v29, %v659_v53  ;;  %4023 = vmatmul.msk.f32.vlgmr.msrb.gmra.mxu0 %vm1482_vm9, %v4738_v20  ;;  %v2055_v59 = vrot.slane %v5111_v44, 6 }
 0x13c   : > { %v2183_v35 = vrot.slane %v5111_v44, 7  ;;  %v8599_v20 = vmax.f32 %v4881_v39, %v4942_v27 }
 0x13d   : > { %v986_v38 = vrot.slane %v912_v16, 6  ;;  %v1115_v42 = vrot.slane %v912_v16, 7  ;;  %v1244_v57 = vrot.slane %v912_v16, 1  ;;  %v1373_v33 = vrot.slane %v912_v16, 2 }
 0x13e   : > { %v727_v45 = vmul.f32 0.01, %v695_v47  ;;  %v5146_v53 = vmax.f32 %v8599_v20, %v5074_v14 }
 0x13f   : > { %v1019_v1 = vsel %vm997_vm1, %v986_v38, %v970_v9  ;;  %v1148_v40 = vsel %vm1126_vm3, %v1115_v42, %v1099_v34  ;;  %v1261_v22 = vsel %vm1255_vm6, %v1228_v19, %v1244_v57  ;;  %v1390_v18 = vsel %vm1384_vm7, %v1357_v17, %v1373_v33  ;;  %4032 = vmatmul.msk.f32.gmra.mxu1 %vm1482_vm9, %v5074_v14 }
 0x140   : > { %v5156_v50 = vmax.f32 %v695_v47, %v727_v45  ;;  %v1040_v43 = vsel %vm782_vm2, %v1019_v1, -3.4028235e+38  ;;  %v1169_v39 = vsel %vm790_vm4, %v1148_v40, -3.4028235e+38  ;;  %v1003_v20 = vsel %vm997_vm1, %v970_v9, %v986_v38  ;;  %v594_v52 = vpop.f32.mrf.mxu0 }
 0x141   : > { %v1072_v46 = vmax.f32 %v5047_v49, %v1040_v43  ;;  %v1073_v48 = vmax.f32 %v912_v16, %v1003_v20  ;;  %v1132_v45 = vsel %vm1126_vm3, %v1099_v34, %v1115_v42  ;;  %v1277_v47 = vsel %vm1255_vm6, %v1244_v57, %v1228_v19 }
 0x142   : > { %8600 = vst [vmem:[#allocation37_spill] sm:$0xff] %v5156_v50  ;;  %v8601_v9 = vmax.f32 %v4921_v61, %v5024_v58  ;;  %v8602_v49 = vmax.f32 %v4930_v23, %v5024_v58  ;;  %v660_v57 = vmul.f32 %v4583_v26, %v594_v52  ;;  %v1299_v42 = vsel %vm801_vm5, %v1277_v47, -3.4028235e+38 }
 0x143   : > { %v1201_v19 = vmax.f32 %v1072_v46, %v1169_v39  ;;  %v1202_v16 = vmax.f32 %v1073_v48, %v1132_v45  ;;  %4024 = vmatmul.msk.f32.gmra.mxu0 %vm1482_vm9, %v4740_v21  ;;  %v1406_v43 = vsel %vm1384_vm7, %v1373_v33, %v1357_v17  ;;  %v2071_v21 = vrot.slane %v5146_v53, 6 }
 0x144   : > { %v5177_v38 = vmax.f32 %v8601_v9, %v5156_v50  ;;  %v5185_v34 = vmax.f32 %v8602_v49, %v5156_v50  ;;  %v696_v49 = vadd.f32 %v4591_v29, %v660_v57  ;;  %v1428_v48 = vsel %vm809_vm8, %v1406_v43, -3.4028235e+38 }
 0x145   : > { %v1330_v52 = vmax.f32 %v1201_v19, %v1261_v22  ;;  %v1331_v46 = vmax.f32 %v1202_v16, %v1299_v42  ;;  %v2199_v45 = vrot.slane %v5146_v53, 7  ;;  %v5211_v22 = vsel %vm997_vm1, %v2055_v59, %v2071_v21 }
 0x146   : > { %v971_v20 = vrot.slane %v5185_v34, 6  ;;  %v1100_v9 = vrot.slane %v5185_v34, 7  ;;  %v1229_v23 = vrot.slane %v5185_v34, 1  ;;  %v728_v33 = vmul.f32 0.01, %v696_v49 }
 0x147   : > { %v5204_v47 = vmax.f32 %v1330_v52, %v1390_v18  ;;  %v5206_v40 = vmax.f32 %v1331_v46, %v1428_v48  ;;  %v2103_v19 = vsel %vm997_vm1, %v2071_v21, %v2055_v59  ;;  %v5217_v16 = vsel %vm1126_vm3, %v2183_v35, %v2199_v45 }
 0x148   : > { %v5221_v42 = vsel %vm1126_vm3, %v2199_v45, %v2183_v35  ;;  %v5223_v18 = vmax.f32 %v696_v49, %v728_v33  ;;  %v8604_v59 = vmax.f32 %v4950_v11, %v5072_v63  ;;  %v597_v46 = vpop.f32.mrf.mxu0  ;;  %v8605_v49 = vmax.f32 %v4942_v27, %v5074_v14 }
 0x149   : > { %4033 = vmatmul.msk.f32.gmra.mxu1 %vm1482_vm9, %v5204_v47  ;;  %v661_v35 = vmul.f32 %v4583_v26, %v597_v46  ;;  %v8606_v33 = vmax.f32 %v4968_v55, %v5072_v63  ;;  %v8608_v46 = vmax.f32 %v4959_v37, %v5090_v51  ;;  %v8609_v45 = vmax.f32 %v4993_v36, %v5090_v51 }
 0x14a   : > { %8603 = vst [vmem:[#allocation38_spill] sm:$0xff] %v5223_v18  ;;  %v5233_v52 = vmax.f32 %v8604_v59, %v5204_v47  ;;  %v5242_v21 = vmax.f32 %v8605_v49, %v5206_v40  ;;  %v8611_v61 = vrot.slane %v5185_v34, 2 }
 0x14b   : > { %v5250_v59 = vmax.f32 %v8606_v33, %v5204_v47  ;;  %v5258_v48 = vmax.f32 %v8608_v46, %v5223_v18  ;;  %v914_v43 = vmax.f32 %v8609_v45, %v5223_v18  ;;  %v697_v55 = vadd.f32 %v4591_v29, %v661_v35  ;;  %4025 = vmatmul.msk.f32.gmra.mxu0 %vm1482_vm9, %v4790_v10 }
 0x14c   : > { %v8610_v10 = vmax.f32 %v4974_v5, %v5074_v14 }
 0x14d   : > { %8607 = vst [vmem:[#allocation39_spill] sm:$0xff] %v5250_v59  ;;  %v2056_v33 = vrot.slane %v5250_v59, 6  ;;  %v987_v17 = vrot.slane %v914_v43, 6  ;;  %v1116_v1 = vrot.slane %v914_v43, 7  ;;  %v1245_v39 = vrot.slane %v914_v43, 1 }
 0x14e   : > { %v1374_v49 = vrot.slane %v914_v43, 2  ;;  %v729_v37 = vmul.f32 0.01, %v697_v55  ;;  %v5279_v35 = vmax.f32 %v8610_v10, %v5206_v40 }
 0x14f   : > { %v1020_v45 = vsel %vm997_vm1, %v987_v17, %v971_v20  ;;  %v1149_v46 = vsel %vm1126_vm3, %v1116_v1, %v1100_v9  ;;  %v1262_v57 = vsel %vm1255_vm6, %v1229_v23, %v1245_v39  ;;  %v1004_v0 = vsel %vm997_vm1, %v971_v20, %v987_v17 }
 0x150   : > { %v1391_v36 = vsel %vm1384_vm7, %v8611_v61, %v1374_v49  ;;  %v5291_v59 = vmax.f32 %v697_v55, %v729_v37  ;;  %v1042_v5 = vsel %vm782_vm2, %v1020_v45, -3.4028235e+38  ;;  %v1171_v10 = vsel %vm790_vm4, %v1149_v46, -3.4028235e+38  ;;  %v600_v30 = vpop.f32.mrf.mxu0 }
 0x151   : > { %4034 = vmatmul.msk.f32.gmra.mxu1 %vm1482_vm9, %v5206_v40  ;;  %v1074_v6 = vmax.f32 %v5185_v34, %v1042_v5  ;;  %v1075_v25 = vmax.f32 %v914_v43, %v1004_v0  ;;  %v1133_v61 = vsel %vm1126_vm3, %v1100_v9, %v1116_v1  ;;  %v1278_v37 = vsel %vm1255_vm6, %v1245_v39, %v1229_v23 }
 0x152   : > { %8612 = vst [vmem:[#allocation40_spill] sm:$0xff] %v5291_v59  ;;  %v831_v55 = vmax.f32 %v5156_v50, %v5291_v59  ;;  %v8613_v20 = vmax.f32 %v5024_v58, %v5156_v50  ;;  %v887_v46 = vmax.f32 %v5177_v38, %v5291_v59  ;;  %v8614_v0 = vmax.f32 %v5044_v56, %v5156_v50 }
 0x153   : > { %v662_v9 = vmul.f32 %v4583_v26, %v600_v30  ;;  %v1203_v23 = vmax.f32 %v1074_v6, %v1171_v10  ;;  %v1204_v39 = vmax.f32 %v1075_v25, %v1133_v61  ;;  %v1301_v43 = vsel %vm801_vm5, %v1278_v37, -3.4028235e+38  ;;  %4026 = vmatmul.msk.f32.gmra.mxu0 %vm1482_vm9, %v4794_v12 }
 0x154   : > { %v5312_v17 = vmax.f32 %v8613_v20, %v5291_v59  ;;  %v5320_v1 = vmax.f32 %v8614_v0, %v5291_v59  ;;  %v8615_v45 = vrot.slane %v5185_v34, 2  ;;  %v2072_v20 = vrot.slane %v5279_v35, 6 }
 0x155   : > { %v5334_v56 = vsel %vm782_vm2, %v2103_v19, -3.4028235e+38  ;;  %v2154_v6 = vmax.f32 %v5146_v53, %v5211_v22  ;;  %v698_v25 = vadd.f32 %v4591_v29, %v662_v9  ;;  %v1332_v30 = vmax.f32 %v1203_v23, %v1262_v57 }
 0x156   : > { %v1407_v5 = vsel %vm1384_vm7, %v1374_v49, %v8615_v45  ;;  %v1333_v10 = vmax.f32 %v1204_v39, %v1301_v43  ;;  %v5343_v34 = vsel %vm997_vm1, %v2056_v33, %v2072_v20  ;;  %v5347_v49 = vsel %vm997_vm1, %v2072_v20, %v2056_v33 }
 0x157   : > { %v1430_v12 = vsel %vm809_vm8, %v1407_v5, -3.4028235e+38  ;;  %v730_v61 = vmul.f32 0.01, %v698_v25  ;;  %v5352_v37 = vmax.f32 %v1332_v30, %v1391_v36  ;;  %v5361_v9 = vsel %vm790_vm4, %v5221_v42, -3.4028235e+38 }
 0x158   : > { %v5354_v57 = vmax.f32 %v1333_v10, %v1430_v12  ;;  %v5364_v33 = vmax.f32 %v2154_v6, %v5217_v16  ;;  %v8616_v39 = vrot.slane %v5146_v53, 1  ;;  %v8617_v36 = vrot.slane %v5111_v44, 1  ;;  %v603_v6 = vpop.f32.mrf.mxu0 }
 0x159   : > { %v5375_v45 = vmax.f32 %v698_v25, %v730_v61  ;;  %4035 = vmatmul.msk.f32.gmra.mxu1 %vm1482_vm9, %v5352_v37  ;;  %v8619_v16 = vmax.f32 %v5072_v63, %v5204_v47  ;;  %v663_v30 = vmul.f32 %v4583_v26, %v603_v6  ;;  %v8620_v25 = vmax.f32 %v5102_v31, %v5204_v47 }
 0x15a   : > { %v5373_v43 = vsel %vm1255_vm6, %v8617_v36, %v8616_v39  ;;  %v8622_v63 = vmax.f32 %v5074_v14, %v5206_v40  ;;  %v3471_v39 = vld [vmem:[#allocation5] sm:$0xff]  ;;  %v8623_v26 = vmax.f32 %v5090_v51, %v5223_v18  ;;  %v8624_v6 = vmax.f32 %v5125_v28, %v5223_v18 }
 0x15b   : > { %8618 = vst [vmem:[#allocation41_spill] sm:$0xff] %v5375_v45  ;;  %v5385_v5 = vmax.f32 %v8619_v16, %v5352_v37  ;;  %v5394_v10 = vmax.f32 %v8620_v25, %v5352_v37  ;;  %3583 = vmatpush.msrb.mxu1 %v3471_v39  ;;  %v699_v25 = vadd.f32 %v4591_v29, %v663_v30  ;;  %v972_v23 = vrot.slane %v5320_v1, 6 }
 0x15c   : > { %v5402_v61 = vmax.f32 %v8622_v63, %v5354_v57  ;;  %v5410_v31 = vmax.f32 %v8623_v26, %v5375_v45  ;;  %v916_v14 = vmax.f32 %v8624_v6, %v5375_v45  ;;  %4027 = vmatmul.msk.f32.gmra.mxu0 %vm1482_vm9, %v4845_v7  ;;  %v8625_v28 = vmax.f32 %v5117_v54, %v5206_v40 }
 0x15d   : > { %8621 = vst [vmem:[#allocation42_spill] sm:$0xff] %v5394_v10  ;;  %v2057_v63 = vrot.slane %v5394_v10, 6  ;;  %v8627_v29 = vmov %v8617_v36  ;;  %v8628_v7 = vrot.slane %v5146_v53, 1  ;;  %v731_v6 = vmul.f32 0.01, %v699_v25 }
 0x15e   : > { %v5431_v39 = vmax.f32 %v8625_v28, %v5354_v57  ;;  %v1117_v28 = vrot.slane %v916_v14, 7  ;;  %v1246_v16 = vrot.slane %v916_v14, 1  ;;  %v1375_v51 = vrot.slane %v916_v14, 2 }
 0x15f   : > { %v2359_v30 = vsel %vm1255_vm6, %v8628_v7, %v8627_v29  ;;  %v5450_v12 = vmax.f32 %v699_v25, %v731_v6  ;;  %v988_v7 = vrot.slane %v916_v14, 6  ;;  %v1230_v25 = vrot.slane %v5320_v1, 1 }
 0x160   : > { %8626 = vst [vmem:[#allocation43_spill] sm:$0xff] %v5431_v39  ;;  %v5441_v0 = vsel %vm801_vm5, %v2359_v30, -3.4028235e+38  ;;  %v2073_v54 = vrot.slane %v5431_v39, 6  ;;  %v1101_v30 = vrot.slane %v5320_v1, 7  ;;  %v606_v26 = vpop.f32.mrf.mxu0 }
 0x161   : > { %8629 = vst [vmem:[#allocation44_spill] sm:$0xff] %v5450_v12  ;;  %4036 = vmatmul.msk.f32.gmra.mxu1 %vm1482_vm9, %v5354_v57  ;;  %v5471_v29 = vmax.f32 %v831_v55, %v5450_v12  ;;  %v1021_v42 = vsel %vm997_vm1, %v988_v7, %v972_v23  ;;  %v5503_v55 = vld [vmem:[%s8455_s3] ss:$0 sm:$0xff] }
 0x162   : > { %v5458_v20 = vsel %vm997_vm1, %v2057_v63, %v2073_v54  ;;  %v5462_v19 = vsel %vm997_vm1, %v2073_v54, %v2057_v63  ;;  %v5479_v63 = vmax.f32 %v887_v46, %v5450_v12  ;;  %v5484_v54 = vld [vmem:[%s8454_s2] ss:$0 sm:$0xff]  ;;  %v1150_v22 = vsel %vm1126_vm3, %v1117_v28, %v1101_v30 }
 0x163   : > { %8630 = vst [vmem:[#allocation45_spill] sm:$0xff] %v5458_v20  ;;  %v664_v6 = vmul.f32 %v5484_v54, %v606_v26  ;;  %v1044_v38 = vsel %vm782_vm2, %v1021_v42, -3.4028235e+38  ;;  %v1173_v46 = vsel %vm790_vm4, %v1150_v22, -3.4028235e+38  ;;  %v1359_v26 = vrot.slane %v5320_v1, 2 }
 0x164   : > { %4028 = vmatmul.msk.f32.gmra.mxu0 %vm1482_vm9, %v4847_v8  ;;  %v1076_v50 = vmax.f32 %v5320_v1, %v1044_v38  ;;  %v1005_v8 = vsel %vm997_vm1, %v972_v23, %v988_v7  ;;  %v1263_v42 = vsel %vm1255_vm6, %v1230_v25, %v1246_v16  ;;  %v1134_v58 = vsel %vm1126_vm3, %v1101_v30, %v1117_v28 }
 0x165   : > { %v700_v36 = vadd.f32 %v5503_v55, %v664_v6  ;;  %v1077_v22 = vmax.f32 %v916_v14, %v1005_v8  ;;  %v1279_v20 = vsel %vm1255_vm6, %v1246_v16, %v1230_v25  ;;  %v1392_v6 = vsel %vm1384_vm7, %v1359_v26, %v1375_v51 }
 0x166   : > { %v1205_v39 = vmax.f32 %v1076_v50, %v1173_v46  ;;  %v1303_v1 = vsel %vm801_vm5, %v1279_v20, -3.4028235e+38  ;;  %v1408_v23 = vsel %vm1384_vm7, %v1375_v51, %v1359_v26  ;;  %v8501_v14 = vrot.slane %v5479_v63, 6 }
 0x167   : > { %v732_v10 = vmul.f32 0.01, %v700_v36  ;;  %v1206_v38 = vmax.f32 %v1077_v22, %v1134_v58  ;;  %v8497_v7 = vrot.slane %v5479_v63, 7  ;;  %v1432_v50 = vsel %vm809_vm8, %v1408_v23, -3.4028235e+38 }
 0x168   : > { %v1334_v30 = vmax.f32 %v1205_v39, %v1263_v42  ;;  %v609_v16 = vpop.f32.mrf.mxu0  ;;  %v8499_v25 = vrot.slane %v5479_v63, 1  ;;  %v8632_v51 = vrot.slane %v4985_v60, 7  ;;  %v8633_v26 = vrot.slane %v4981_v41, 7 }
 0x169   : > { %v5523_v28 = vmax.f32 %v700_v36, %v732_v10  ;;  %v665_v46 = vmul.f32 %v5484_v54, %v609_v16  ;;  %v1335_v20 = vmax.f32 %v1206_v38, %v1303_v1  ;;  %v8634_v39 = vmax.f32 %v5223_v18, %v5375_v45 }
 0x16a   : > { %v2214_v10 = vsel %vm1126_vm3, %v8633_v26, %v8632_v51  ;;  %v8635_v22 = vmax.f32 %v5258_v48, %v5375_v45  ;;  %v5552_v38 = vmax.f32 %v1334_v30, %v1392_v6  ;;  %v8636_v51 = vrot.slane %v4866_v62, 7 }
 0x16b   : > { %8631 = vst [vmem:[#allocation46_spill] sm:$0xff] %v5523_v28  ;;  %v5542_v8 = vmax.f32 %v8634_v39, %v5523_v28  ;;  %v701_v23 = vadd.f32 %v5503_v55, %v665_v46  ;;  %v5557_v16 = vmax.f32 %v1335_v20, %v1432_v50  ;;  %v8637_v26 = vrot.slane %v4901_v3, 7 }
 0x16c   : > { %v5550_v1 = vmax.f32 %v8635_v22, %v5523_v28  ;;  %4029 = vmatmul.msk.f32.gmra.mxu0 %vm1482_vm9, %v4950_v11  ;;  %4037 = vmatmul.msk.f32.gmra.mxu1 %vm1482_vm9, %v5552_v38  ;;  %v1915_v11 = vmax.f32 %v5352_v37, %v5552_v38  ;;  %v8638_v50 = vmax.f32 %v5204_v47, %v5352_v37 }
 0x16d   : > { %v2229_v39 = vsel %vm1126_vm3, %v8637_v26, %v8636_v51  ;;  %v1971_v20 = vmax.f32 %v5385_v5, %v5552_v38  ;;  %v8639_v51 = vmax.f32 %v5233_v52, %v5352_v37  ;;  %v733_v42 = vmul.f32 0.01, %v701_v23 }
 0x16e   : > { %v8502_v48 = vrot.slane %v5550_v1, 6  ;;  %v8500_v22 = vrot.slane %v5550_v1, 7  ;;  %v8498_v6 = vrot.slane %v5550_v1, 1  ;;  %v5577_v46 = vmax.f32 %v8638_v50, %v5552_v38 }
 0x16f   : > { %v5585_v26 = vmax.f32 %v8639_v51, %v5552_v38  ;;  %v8641_v58 = vmax.f32 %v5206_v40, %v5354_v57  ;;  %v8642_v52 = vmax.f32 %v5242_v21, %v5354_v57  ;;  %v8645_v36 = vmax.f32 %v5291_v59, %v5450_v12 }
 0x170   : > { %v1022_v40 = vsel %vm997_vm1, %v8502_v48, %v8501_v14  ;;  %v612_v51 = vpop.f32.mrf.mxu0  ;;  %v1151_v21 = vsel %vm1126_vm3, %v8500_v22, %v8497_v7  ;;  %v8648_v50 = vrot.slane %v5479_v63, 2  ;;  %v8651_v22 = vld [vmem:[#allocation30_spill] sm:$0xff] }
 0x171   : > { %8640 = vst [vmem:[#allocation47_spill] sm:$0xff] %v5585_v26  ;;  %v5593_v47 = vmax.f32 %v8641_v58, %v5557_v16  ;;  %v5603_v37 = vmax.f32 %v8642_v52, %v5557_v16  ;;  %v5611_v58 = vmax.f32 %v701_v23, %v733_v42  ;;  %v1046_v5 = vsel %vm782_vm2, %v1022_v40, -3.4028235e+38 }
 0x172   : > { %v1264_v52 = vsel %vm1255_vm6, %v8499_v25, %v8498_v6  ;;  %v666_v40 = vmul.f32 %v5484_v54, %v612_v51  ;;  %v1078_v30 = vmax.f32 %v5479_v63, %v1046_v5  ;;  %v8646_v23 = vmax.f32 %v5312_v17, %v5450_v12 }
 0x173   : > { %8643 = vst [vmem:[#allocation48_spill] sm:$0xff] %v5603_v37  ;;  %v5637_v7 = vmax.f32 %v8645_v36, %v5611_v58  ;;  %v1175_v51 = vsel %vm790_vm4, %v1151_v21, -3.4028235e+38  ;;  %v8647_v36 = vrot.slane %v5550_v1, 2  ;;  %v8649_v25 = vrot.slane %v4981_v41, 7 }
 0x174   : > { %8644 = vst [vmem:[#allocation49_spill] sm:$0xff] %v5611_v58  ;;  %v5645_v42 = vmax.f32 %v8646_v23, %v5611_v58  ;;  %v702_v5 = vadd.f32 %v5503_v55, %v666_v40  ;;  %4030 = vmatmul.msk.f32.gmra.mxu0 %vm1482_vm9, %v4942_v27  ;;  %v8650_v17 = vrot.slane %v4985_v60, 7  ;;  %v1207_v40 = vmax.f32 %v1078_v30, %v1175_v51  ;;  %v8655_v30 = vld [vmem:[#allocation35_spill] sm:$0xff] }
 0x175   : > { %v1393_v6 = vsel %vm1384_vm7, %v8648_v50, %v8647_v36  ;;  %v2245_v27 = vsel %vm790_vm4, %v2229_v39, -3.4028235e+38  ;;  %v8652_v14 = vmax.f32 %v4901_v3, %v8651_v22  ;;  %4038 = vmatmul.msk.f32.gmra.mxu1 %vm1482_vm9, %v5557_v16  ;;  %v8653_v36 = vld [vmem:[#allocation33_spill] sm:$0xff]  ;;  %v8656_v51 = vmax.f32 %v4981_v41, %v8655_v30 }
 0x176   : > { %v2230_v23 = vsel %vm1126_vm3, %v8650_v17, %v8649_v25  ;;  %v734_v50 = vmul.f32 0.01, %v702_v5  ;;  %v8654_v59 = vmax.f32 %v4866_v62, %v8653_v36  ;;  %v8657_v17 = vld [vmem:[#allocation32_spill] sm:$0xff]  ;;  %v1336_v26 = vmax.f32 %v1207_v40, %v1264_v52 }
 0x177   : > { %v2247_v21 = vsel %vm790_vm4, %v2230_v23, -3.4028235e+38  ;;  %v2278_v48 = vmax.f32 %v8652_v14, %v5088_v32  ;;  %v8658_v23 = vmax.f32 %v4985_v60, %v8657_v17  ;;  %v8659_v32 = vmax.f32 %v5111_v44, %v5334_v56 }
 0x178   : > { %v2277_v25 = vmax.f32 %v8654_v59, %v2245_v27  ;;  %v2279_v39 = vmax.f32 %v8656_v51, %v2247_v21  ;;  %v2310_v22 = vrot.slane %v4981_v41, 1  ;;  %v2326_v37 = vrot.slane %v4985_v60, 1  ;;  %v615_v51 = vpop.f32.mrf.mxu0 }
 0x179   : > { %v2280_v18 = vmax.f32 %v8658_v23, %v2214_v10  ;;  %v2281_v14 = vmax.f32 %v8659_v32, %v5361_v9  ;;  %v5689_v36 = vmax.f32 %v702_v5, %v734_v50  ;;  %v8661_v59 = vrot.slane %v4901_v3, 1 }
 0x17a   : > { %v8662_v27 = vrot.slane %v4866_v62, 1  ;;  %v2438_v9 = vrot.slane %v4981_v41, 2  ;;  %v5704_v40 = vmax.f32 %v1336_v26, %v1393_v6  ;;  %v2342_v5 = vsel %vm1255_vm6, %v2310_v22, %v2326_v37 }
 0x17b   : > { %8660 = vst [vmem:[#allocation30_spill] sm:$0xff] %v5689_v36  ;;  %v8664_v52 = vmov %v8661_v59  ;;  %v2358_v50 = vsel %vm1255_vm6, %v2326_v37, %v2310_v22  ;;  %v8665_v23 = vmax.f32 %v5375_v45, %v5523_v28  ;;  %v8666_v26 = vmax.f32 %v5410_v31, %v5523_v28 }
 0x17c   : > { %v2341_v21 = vsel %vm1255_vm6, %v8662_v27, %v8661_v59  ;;  %v8663_v10 = vmov %v8662_v27  ;;  %4039 = vmatmul.msk.f32.vlgmr.msra.gmra.mxu2 %vm1482_vm9, %v5704_v40  ;;  %v5733_v22 = vmax.f32 %v1915_v11, %v5704_v40  ;;  %v5738_v27 = vmax.f32 %v1971_v20, %v5704_v40 }
 0x17d   : > { %v2357_v56 = vsel %vm1255_vm6, %v8664_v52, %v8663_v10  ;;  %v5718_v41 = vmax.f32 %v8665_v23, %v5689_v36  ;;  %v5726_v37 = vmax.f32 %v8666_v26, %v5689_v36  ;;  %v2376_v31 = vsel %vm801_vm5, %v2358_v50, -3.4028235e+38 }
 0x17e   : > { %v2374_v30 = vsel %vm801_vm5, %v2357_v56, -3.4028235e+38  ;;  %8667 = vst [vmem:[#allocation33_spill] sm:$0xff] %v5738_v27  ;;  %v2405_v10 = vmax.f32 %v2277_v25, %v2341_v21  ;;  %v2407_v56 = vmax.f32 %v2279_v39, %v2342_v5  ;;  %v2408_v17 = vmax.f32 %v2280_v18, %v2376_v31 }
 0x17f   : > { %v2406_v52 = vmax.f32 %v2278_v48, %v2374_v30  ;;  %v2409_v11 = vmax.f32 %v2281_v14, %v5373_v43  ;;  %v2454_v32 = vrot.slane %v4985_v60, 2  ;;  %v8668_v59 = vrot.slane %v4901_v3, 2 }
 0x180   : > { %v8669_v20 = vrot.slane %v4866_v62, 2  ;;  %v8670_v25 = vrot.slane %v5146_v53, 2  ;;  %v8671_v48 = vrot.slane %v5111_v44, 2 }
 0x181   : > { %v8673_v43 = vmov %v8668_v59  ;;  %v2470_v62 = vsel %vm1384_vm7, %v2438_v9, %v2454_v32  ;;  %v2486_v3 = vsel %vm1384_vm7, %v2454_v32, %v2438_v9  ;;  %v667_v32 = vmul.f32 %v5484_v54, %v615_v51 }
 0x182   : > { %v2469_v6 = vsel %vm1384_vm7, %v8669_v20, %v8668_v59  ;;  %v2471_v39 = vsel %vm1384_vm7, %v8671_v48, %v8670_v25  ;;  %v8672_v18 = vmov %v8669_v20  ;;  %v8674_v14 = vmov %v8671_v48 }
 0x183   : > { %v2485_v60 = vsel %vm1384_vm7, %v8673_v43, %v8672_v18  ;;  %v8675_v21 = vmov %v8670_v25  ;;  %v5772_v30 = vmax.f32 %v2405_v10, %v2469_v6  ;;  %v5774_v59 = vmax.f32 %v2409_v11, %v2471_v39  ;;  %v618_v39 = vpop.f32.mrf.mxu0 }
 0x184   : > { %v2487_v5 = vsel %vm1384_vm7, %v8675_v21, %v8674_v14  ;;  %v2502_v50 = vsel %vm809_vm8, %v2485_v60, -3.4028235e+38  ;;  %v2504_v31 = vsel %vm809_vm8, %v2486_v3, -3.4028235e+38  ;;  %v5786_v20 = vmax.f32 %v2407_v56, %v2470_v62 }
 0x185   : > { %v2506_v44 = vsel %vm809_vm8, %v2487_v5, -3.4028235e+38  ;;  %v5782_v53 = vmax.f32 %v2406_v52, %v2502_v50  ;;  %v8677_v6 = vmax.f32 %v5364_v33, %v5441_v0  ;;  %v2807_v11 = vmax.f32 %v5772_v30, -3.4028235e+38 }
 0x186   : > { %8676 = vst [vmem:[#allocation35_spill] sm:$0xff] %v5786_v20  ;;  %v5794_v25 = vmax.f32 %v2408_v17, %v2504_v31  ;;  %v8679_v52 = vrot.slane %v5550_v1, 6  ;;  %v8680_v48 = vrot.slane %v5479_v63, 6  ;;  %v8681_v18 = vrot.slane %v5550_v1, 7 }
 0x187   : > { %v5791_v10 = vmax.f32 %v8677_v6, %v2506_v44  ;;  %v2808_v9 = vmax.f32 %v5782_v53, -3.4028235e+38  ;;  %v2837_v0 = vmax.f32 %v2807_v11, %v5786_v20  ;;  %v8682_v17 = vrot.slane %v5479_v63, 7 }
 0x188   : > { %8678 = vst [vmem:[#allocation32_spill] sm:$0xff] %v5794_v25  ;;  %v1006_v56 = vsel %vm997_vm1, %v8680_v48, %v8679_v52  ;;  %v8683_v51 = vrot.slane %v5479_v63, 1  ;;  %v8684_v60 = vrot.slane %v5550_v1, 1  ;;  %v703_v5 = vadd.f32 %v5503_v55, %v667_v32 }
 0x189   : > { %v1079_v33 = vmax.f32 %v5550_v1, %v1006_v56  ;;  %v1135_v43 = vsel %vm1126_vm3, %v8682_v17, %v8681_v18  ;;  %v2838_v21 = vmax.f32 %v2808_v9, %v5794_v25  ;;  %v8685_v62 = vrot.slane %v5479_v63, 2 }
 0x18a   : > { %v1280_v14 = vsel %vm1255_vm6, %v8684_v60, %v8683_v51  ;;  %v8686_v3 = vrot.slane %v5550_v1, 2  ;;  %v5829_v31 = vmax.f32 %v2837_v0, %v5774_v59  ;;  %v668_v9 = vmul.f32 %v5484_v54, %v618_v39 }
 0x18b   : > { %v1305_v50 = vsel %vm801_vm5, %v1280_v14, -3.4028235e+38  ;;  %v1208_v6 = vmax.f32 %v1079_v33, %v1135_v43  ;;  %v5835_v32 = vmax.f32 %v2838_v21, %v5791_v10  ;;  %v735_v52 = vmul.f32 0.01, %v703_v5 }
 0x18c   : > { %v1409_v44 = vsel %vm1384_vm7, %v8686_v3, %v8685_v62  ;;  %v8509_v63 = vrot.slane %v5645_v42, 6  ;;  %v8510_v1 = vrot.slane %v5726_v37, 6  ;;  %v2959_v48 = vrot.slane %v5829_v31, 6 }
 0x18d   : > { %v1434_v11 = vsel %vm809_vm8, %v1409_v44, -3.4028235e+38  ;;  %v3087_v56 = vrot.slane %v5829_v31, 7  ;;  %v3215_v0 = vrot.slane %v5829_v31, 1  ;;  %v3343_v33 = vrot.slane %v5829_v31, 2 }
 0x18e   : > { %v2975_v18 = vrot.slane %v5835_v32, 6  ;;  %v3103_v39 = vrot.slane %v5835_v32, 7  ;;  %v3231_v17 = vrot.slane %v5835_v32, 1  ;;  %v3359_v43 = vrot.slane %v5835_v32, 2 }
 0x18f   : > { %v5847_v51 = vmax.f32 %v703_v5, %v735_v52  ;;  %v1337_v60 = vmax.f32 %v1208_v6, %v1305_v50  ;;  %v704_v14 = vadd.f32 %v5503_v55, %v668_v9  ;;  %v1023_v21 = vsel %vm997_vm1, %v8510_v1, %v8509_v63 }
 0x190   : > { %v3007_v62 = vsel %vm997_vm1, %v2975_v18, %v2959_v48  ;;  %v3135_v3 = vsel %vm1126_vm3, %v3103_v39, %v3087_v56  ;;  %v3247_v5 = vsel %vm1255_vm6, %v3215_v0, %v3231_v17  ;;  %v3375_v50 = vsel %vm1384_vm7, %v3343_v33, %v3359_v43 }
 0x191   : > { %8687 = vst [vmem:[#allocation50_spill] sm:$0xff] %v5847_v51  ;;  %v3023_v44 = vsel %vm782_vm2, %v3007_v62, -3.4028235e+38  ;;  %v3151_v6 = vsel %vm790_vm4, %v3135_v3, -3.4028235e+38  ;;  %v8688_v52 = vmax.f32 %v5471_v29, %v5611_v58  ;;  %v5877_v63 = vmax.f32 %v1337_v60, %v1434_v11 }
 0x192   : > { %v3055_v23 = vmax.f32 %v5829_v31, %v3023_v44  ;;  %v2991_v1 = vsel %vm997_vm1, %v2959_v48, %v2975_v18  ;;  %v3119_v62 = vsel %vm1126_vm3, %v3087_v56, %v3103_v39  ;;  %v3263_v9 = vsel %vm1255_vm6, %v3231_v17, %v3215_v0 }
 0x193   : > { %v5874_v26 = vmax.f32 %v8688_v52, %v5847_v51  ;;  %v3056_v3 = vmax.f32 %v5835_v32, %v2991_v1  ;;  %v3391_v29 = vsel %vm1384_vm7, %v3359_v43, %v3343_v33  ;;  %v736_v52 = vmul.f32 0.01, %v704_v14  ;;  %4040 = vmatmul.msk.f32.gmra.mxu2 %vm1482_vm9, %v5877_v63 }
 0x194   : > { %v3183_v45 = vmax.f32 %v3055_v23, %v3151_v6  ;;  %v8689_v48 = vmax.f32 %v5354_v57, %v5557_v16  ;;  %v8690_v0 = vmax.f32 %v5402_v61, %v5557_v16  ;;  %v3280_v18 = vsel %vm801_vm5, %v3263_v9, -3.4028235e+38 }
 0x195   : > { %v3184_v33 = vmax.f32 %v3056_v3, %v3119_v62  ;;  %v3408_v39 = vsel %vm809_vm8, %v3391_v29, -3.4028235e+38  ;;  %v5910_v57 = vmax.f32 %v704_v14, %v736_v52  ;;  %v1048_v43 = vsel %vm782_vm2, %v1023_v21, -3.4028235e+38  ;;  %v621_v3 = vpop.f32.mrf.mxu0 }
 0x196   : > { %v5896_v56 = vmax.f32 %v8689_v48, %v5877_v63  ;;  %v5904_v23 = vmax.f32 %v8690_v0, %v5877_v63  ;;  %v3311_v17 = vmax.f32 %v3183_v45, %v3247_v5  ;;  %v1103_v60 = vrot.slane %v5645_v42, 7 }
 0x197   : > { %8692 = vst [vmem:[#allocation52_spill] sm:$0xff] %v5910_v57  ;;  %v3312_v6 = vmax.f32 %v3184_v33, %v3280_v18  ;;  %v1080_v62 = vmax.f32 %v5645_v42, %v1048_v43  ;;  %v8693_v45 = vmax.f32 %v5542_v8, %v5689_v36  ;;  %v1119_v21 = vrot.slane %v5726_v37, 7 }
 0x198   : > { %8691 = vst [vmem:[#allocation51_spill] sm:$0xff] %v5904_v23  ;;  %v3439_v9 = vmax.f32 %v3311_v17, %v3375_v50  ;;  %v1232_v52 = vrot.slane %v5645_v42, 1  ;;  %v1248_v48 = vrot.slane %v5726_v37, 1  ;;  %v1361_v0 = vrot.slane %v5645_v42, 2 }
 0x199   : > { %v5924_v14 = vmax.f32 %v8693_v45, %v5910_v57  ;;  %v3440_v5 = vmax.f32 %v3312_v6, %v3408_v39  ;;  %v1152_v50 = vsel %vm1126_vm3, %v1119_v21, %v1103_v60  ;;  %v1377_v33 = vrot.slane %v5726_v37, 2  ;;  %v8695_v39 = vld [vmem:[#allocation39_spill] sm:$0xff] }
 0x19a   : > { %4119 = vmatmul.msk.f32.vlgmr.msrb.gmra.mxu1 %vm1482_vm9, %v3439_v9  ;;  %v2123_v8 = vsel %vm782_vm2, %v5347_v49, -3.4028235e+38  ;;  %v8694_v18 = vrot.slane %v5279_v35, 7  ;;  %v8696_v17 = vrot.slane %v8695_v39, 7  ;;  %v1177_v6 = vsel %vm790_vm4, %v1152_v50, -3.4028235e+38 }
 0x19b   : > { %v1265_v9 = vsel %vm1255_vm6, %v1232_v52, %v1248_v48  ;;  %v2155_v45 = vmax.f32 %v8695_v39, %v2123_v8  ;;  %v1209_v29 = vmax.f32 %v1080_v62, %v1177_v6  ;;  %v1394_v1 = vsel %vm1384_vm7, %v1361_v0, %v1377_v33 }
 0x19c   : > { %v2216_v43 = vsel %vm1126_vm3, %v8696_v17, %v8694_v18  ;;  %v8697_v61 = vmov %v8696_v17  ;;  %v8698_v44 = vmov %v8694_v18  ;;  %v8699_v50 = vmax.f32 %v5279_v35, %v5343_v34 }
 0x19d   : > { %v2232_v49 = vsel %vm1126_vm3, %v8698_v44, %v8697_v61  ;;  %v8700_v8 = vrot.slane %v5279_v35, 1  ;;  %v8701_v27 = vrot.slane %v8695_v39, 1  ;;  %v8704_v6 = vrot.slane %v5279_v35, 2 }
 0x19e   : > { %v2251_v18 = vsel %vm790_vm4, %v2232_v49, -3.4028235e+38  ;;  %v2284_v17 = vmax.f32 %v8699_v50, %v2216_v43  ;;  %v8705_v34 = vrot.slane %v8695_v39, 2 }
 0x19f   : > { %v2283_v11 = vmax.f32 %v2155_v45, %v2251_v18  ;;  %v2344_v23 = vsel %vm1255_vm6, %v8701_v27, %v8700_v8  ;;  %v8702_v44 = vmov %v8701_v27  ;;  %v8703_v61 = vmov %v8700_v8 }
 0x1a0   : > { %v2360_v62 = vsel %vm1255_vm6, %v8703_v61, %v8702_v44  ;;  %v2472_v43 = vsel %vm1384_vm7, %v8705_v34, %v8704_v6  ;;  %v1338_v45 = vmax.f32 %v1209_v29, %v1265_v9  ;;  %v8706_v27 = vmov %v8705_v34  ;;  %v624_v34 = vpop.f32.mrf.mxu0 }
 0x1a1   : > { %v2380_v49 = vsel %vm801_vm5, %v2360_v62, -3.4028235e+38  ;;  %v8707_v18 = vmov %v8704_v6  ;;  %v669_v8 = vmul.f32 %v5484_v54, %v621_v3  ;;  %v2411_v44 = vmax.f32 %v2283_v11, %v2344_v23 }
 0x1a2   : > { %v2488_v50 = vsel %vm1384_vm7, %v8707_v18, %v8706_v27  ;;  %v2412_v61 = vmax.f32 %v2284_v17, %v2380_v49  ;;  %v8708_v6 = vrot.slane %v5726_v37, 6  ;;  %v8709_v29 = vrot.slane %v5645_v42, 6  ;;  %4120 = vmatmul.msk.f32.gmra.mxu1 %vm1482_vm9, %v3440_v5 }
 0x1a3   : > { %v2508_v36 = vsel %vm809_vm8, %v2488_v50, -3.4028235e+38  ;;  %v5996_v39 = vmax.f32 %v1338_v45, %v1394_v1  ;;  %v705_v35 = vadd.f32 %v5503_v55, %v669_v8  ;;  %v1136_v11 = vsel %vm1126_vm3, %v1103_v60, %v1119_v21 }
 0x1a4   : > { %v1007_v9 = vsel %vm997_vm1, %v8709_v29, %v8708_v6  ;;  %v6002_v23 = vmax.f32 %v2411_v44, %v2472_v43  ;;  %v6004_v3 = vmax.f32 %v2412_v61, %v2508_v36  ;;  %v1281_v17 = vsel %vm1255_vm6, %v1248_v48, %v1232_v52 }
 0x1a5   : > { %v1081_v62 = vmax.f32 %v5726_v37, %v1007_v9  ;;  %v1410_v42 = vsel %vm1384_vm7, %v1377_v33, %v1361_v0  ;;  %4041 = vmatmul.msk.f32.gmra.mxu2 %vm1482_vm9, %v5996_v39  ;;  %v8710_v36 = vmax.f32 %v5552_v38, %v5704_v40  ;;  %v737_v21 = vmul.f32 0.01, %v705_v35 }
 0x1a6   : > { %v8711_v5 = vmax.f32 %v5577_v46, %v5704_v40  ;;  %v2897_v48 = vmax.f32 %v5829_v31, %v6002_v23  ;;  %v2898_v0 = vmax.f32 %v5835_v32, %v6004_v3  ;;  %v1307_v43 = vsel %vm801_vm5, %v1281_v17, -3.4028235e+38 }
 0x1a7   : > { %v6019_v1 = vmax.f32 %v8710_v36, %v5996_v39  ;;  %v1210_v33 = vmax.f32 %v1081_v62, %v1136_v11  ;;  %v6033_v38 = vmax.f32 %v705_v35, %v737_v21  ;;  %v1436_v45 = vsel %vm809_vm8, %v1410_v42, -3.4028235e+38 }
 0x1a8   : > { %v6027_v52 = vmax.f32 %v8711_v5, %v5996_v39  ;;  %v670_v49 = vmul.f32 %v5484_v54, %v624_v34  ;;  %v2960_v18 = vrot.slane %v2897_v48, 6  ;;  %v2976_v31 = vrot.slane %v2898_v0, 6 }
 0x1a9   : > { %8713 = vst [vmem:[#allocation53_spill] sm:$0xff] %v6033_v38  ;;  %v3088_v50 = vrot.slane %v2897_v48, 7  ;;  %v3104_v8 = vrot.slane %v2898_v0, 7  ;;  %v3216_v32 = vrot.slane %v2897_v48, 1  ;;  %v3232_v44 = vrot.slane %v2898_v0, 1 }
 0x1aa   : > { %8712 = vst [vmem:[#allocation39_spill] sm:$0xff] %v6027_v52  ;;  %v3008_v61 = vsel %vm997_vm1, %v2976_v31, %v2960_v18  ;;  %v3344_v6 = vrot.slane %v2897_v48, 2  ;;  %v3360_v29 = vrot.slane %v2898_v0, 2  ;;  %v8714_v9 = vmax.f32 %v5637_v7, %v5847_v51 }
 0x1ab   : > { %v3025_v62 = vsel %vm782_vm2, %v3008_v61, -3.4028235e+38  ;;  %v3136_v11 = vsel %vm1126_vm3, %v3104_v8, %v3088_v50  ;;  %v3248_v17 = vsel %vm1255_vm6, %v3216_v32, %v3232_v44  ;;  %v1339_v42 = vmax.f32 %v1210_v33, %v1307_v43 }
 0x1ac   : > { %v6048_v35 = vmax.f32 %v8714_v9, %v6033_v38  ;;  %v3057_v34 = vmax.f32 %v2897_v48, %v3025_v62  ;;  %v3153_v36 = vsel %vm790_vm4, %v3136_v11, -3.4028235e+38  ;;  %v3376_v21 = vsel %vm1384_vm7, %v3344_v6, %v3360_v29 }
 0x1ad   : > { %v2992_v7 = vsel %vm997_vm1, %v2960_v18, %v2976_v31  ;;  %v6062_v5 = vmax.f32 %v1339_v42, %v1436_v45  ;;  %v3120_v9 = vsel %vm1126_vm3, %v3088_v50, %v3104_v8  ;;  %v3264_v27 = vsel %vm1255_vm6, %v3232_v44, %v3216_v32 }
 0x1ae   : > { %v3058_v61 = vmax.f32 %v2898_v0, %v2992_v7  ;;  %v3185_v33 = vmax.f32 %v3057_v34, %v3153_v36  ;;  %v3282_v48 = vsel %vm801_vm5, %v3264_v27, -3.4028235e+38  ;;  %v3392_v43 = vsel %vm1384_vm7, %v3360_v29, %v3344_v6  ;;  %v8727_v0 = vld [vmem:[#allocation45_spill] sm:$0xff] }
 0x1af   : > { %v706_v62 = vadd.f32 %v5503_v55, %v670_v49  ;;  %4042 = vmatmul.msk.f32.gmra.mxu2 %vm1482_vm9, %v6062_v5  ;;  %v8715_v45 = vmax.f32 %v5557_v16, %v5877_v63  ;;  %v8716_v31 = vmax.f32 %v5593_v47, %v5877_v63  ;;  %v3410_v32 = vsel %vm809_vm8, %v3392_v43, -3.4028235e+38 }
 0x1b0   : > { %v3313_v50 = vmax.f32 %v3185_v33, %v3248_v17  ;;  %v3186_v8 = vmax.f32 %v3058_v61, %v3120_v9  ;;  %v975_v29 = vrot.slane %v5874_v26, 6  ;;  %v991_v11 = vrot.slane %v5924_v14, 6 }
 0x1b1   : > { %v6081_v18 = vmax.f32 %v8715_v45, %v6062_v5  ;;  %v6089_v49 = vmax.f32 %v8716_v31, %v6062_v5  ;;  %v738_v44 = vmul.f32 0.01, %v706_v62  ;;  %v1104_v47 = vrot.slane %v5874_v26, 7  ;;  %v627_v45 = vpop.f32.mrf.mxu0 }
 0x1b2   : > { %v3441_v42 = vmax.f32 %v3313_v50, %v3376_v21  ;;  %v3314_v34 = vmax.f32 %v3186_v8, %v3282_v48  ;;  %v1024_v17 = vsel %vm997_vm1, %v991_v11, %v975_v29  ;;  %v1120_v7 = vrot.slane %v5924_v14, 7 }
 0x1b3   : > { %8717 = vst [vmem:[#allocation54_spill] sm:$0xff] %v6089_v49  ;;  %v6097_v36 = vmax.f32 %v706_v62, %v738_v44  ;;  %v1233_v61 = vrot.slane %v5874_v26, 1  ;;  %v1249_v9 = vrot.slane %v5924_v14, 1  ;;  %v8719_v21 = vmax.f32 %v5718_v41, %v5910_v57 }
 0x1b4   : > { %4121 = vmatmul.msk.f32.gmra.mxu1 %vm1482_vm9, %v3441_v42  ;;  %v3442_v33 = vmax.f32 %v3314_v34, %v3410_v32  ;;  %v1050_v43 = vsel %vm782_vm2, %v1024_v17, -3.4028235e+38  ;;  %v1362_v62 = vrot.slane %v5874_v26, 2  ;;  %v1153_v50 = vsel %vm1126_vm3, %v1120_v7, %v1104_v47  ;;  %v8721_v42 = vld [vmem:[#allocation43_spill] sm:$0xff]  ;;  %v8723_v17 = vld [vmem:[#allocation42_spill] sm:$0xff] }
 0x1b5   : > { %8718 = vst [vmem:[#allocation55_spill] sm:$0xff] %v6097_v36  ;;  %v6110_v48 = vmax.f32 %v8719_v21, %v6097_v36  ;;  %v1082_v31 = vmax.f32 %v5874_v26, %v1050_v43  ;;  %v1266_v8 = vsel %vm1255_vm6, %v1233_v61, %v1249_v9  ;;  %v1378_v32 = vrot.slane %v5924_v14, 2 }
 0x1b6   : > { %v1179_v41 = vsel %vm790_vm4, %v1153_v50, -3.4028235e+38  ;;  %v2125_v44 = vsel %vm782_vm2, %v5462_v19, -3.4028235e+38  ;;  %v8722_v34 = vrot.slane %v8721_v42, 7  ;;  %v8724_v21 = vrot.slane %v8723_v17, 7 }
 0x1b7   : > { %8720 = vst [vmem:[#allocation56_spill] sm:$0xff] %v6110_v48  ;;  %v1211_v6 = vmax.f32 %v1082_v31, %v1179_v41  ;;  %v1395_v50 = vsel %vm1384_vm7, %v1362_v62, %v1378_v32  ;;  %v2157_v19 = vmax.f32 %v8723_v17, %v2125_v44  ;;  %v8728_v60 = vmax.f32 %v8721_v42, %v8727_v0 }
 0x1b8   : > { %v2217_v26 = vsel %vm1126_vm3, %v8724_v21, %v8722_v34  ;;  %v8725_v43 = vmov %v8724_v21  ;;  %v8726_v16 = vmov %v8722_v34  ;;  %v8729_v21 = vrot.slane %v8721_v42, 1 }
 0x1b9   : > { %v2233_v46 = vsel %vm1126_vm3, %v8726_v16, %v8725_v43  ;;  %v2286_v34 = vmax.f32 %v8728_v60, %v2217_v26  ;;  %v8730_v37 = vrot.slane %v8723_v17, 1  ;;  %v8734_v43 = vrot.slane %v8723_v17, 2 }
 0x1ba   : > { %v2253_v27 = vsel %vm790_vm4, %v2233_v46, -3.4028235e+38  ;;  %v8732_v41 = vmov %v8729_v21  ;;  %v8733_v46 = vrot.slane %v8721_v42, 2  ;;  %v1340_v0 = vmax.f32 %v1211_v6, %v1266_v8 }
 0x1bb   : > { %v2345_v16 = vsel %vm1255_vm6, %v8730_v37, %v8729_v21  ;;  %v8731_v31 = vmov %v8730_v37  ;;  %v2285_v26 = vmax.f32 %v2157_v19, %v2253_v27  ;;  %v8735_v37 = vmov %v8734_v43 }
 0x1bc   : > { %v2361_v44 = vsel %vm1255_vm6, %v8732_v41, %v8731_v31  ;;  %v2473_v60 = vsel %vm1384_vm7, %v8734_v43, %v8733_v46  ;;  %v8736_v21 = vmov %v8733_v46  ;;  %v2809_v48 = vmax.f32 %v5772_v30, %v5786_v20  ;;  %4122 = vmatmul.msk.f32.gmra.mxu1 %vm1482_vm9, %v3442_v33 }
 0x1bd   : > { %v2382_v52 = vsel %vm801_vm5, %v2361_v44, -3.4028235e+38  ;;  %v2489_v49 = vsel %vm1384_vm7, %v8736_v21, %v8735_v37  ;;  %v2810_v27 = vmax.f32 %v5782_v53, %v5794_v25  ;;  %v6178_v6 = vmax.f32 %v1340_v0, %v1395_v50 }
 0x1be   : > { %v2414_v31 = vmax.f32 %v2286_v34, %v2382_v52  ;;  %v2510_v41 = vsel %vm809_vm8, %v2489_v49, -3.4028235e+38  ;;  %v2413_v8 = vmax.f32 %v2285_v26, %v2345_v16  ;;  %v671_v17 = vmul.f32 %v5484_v54, %v627_v45 }
 0x1bf   : > { %v8737_v42 = vmax.f32 %v5450_v12, %v5611_v58  ;;  %v2839_v49 = vmax.f32 %v2809_v48, %v5774_v59  ;;  %v2840_v34 = vmax.f32 %v2810_v27, %v5791_v10  ;;  %v1008_v50 = vsel %vm997_vm1, %v975_v29, %v991_v11  ;;  %4043 = vmatmul.msk.f32.gmra.mxu2 %vm1482_vm9, %v6178_v6 }
 0x1c0   : > { %v6186_v52 = vmax.f32 %v2414_v31, %v2510_v41  ;;  %v1921_v45 = vmax.f32 %v5996_v39, %v6178_v6  ;;  %v8739_v16 = vmax.f32 %v5704_v40, %v5996_v39  ;;  %v1977_v48 = vmax.f32 %v6019_v1, %v6178_v6  ;;  %v630_v40 = vpop.f32.mrf.mxu0 }
 0x1c1   : > { %v865_v19 = vmax.f32 %v8737_v42, %v5847_v51  ;;  %v8740_v44 = vmax.f32 %v5733_v22, %v5996_v39  ;;  %v6210_v11 = vmax.f32 %v2413_v8, %v2473_v60  ;;  %v2869_v46 = vmax.f32 %v2839_v49, %v6002_v23 }
 0x1c2   : > { %8738 = vst [vmem:[#allocation43_spill] sm:$0xff] %v6186_v52  ;;  %v6200_v33 = vmax.f32 %v8739_v16, %v6178_v6  ;;  %v2870_v43 = vmax.f32 %v2840_v34, %v6004_v3  ;;  %v707_v0 = vadd.f32 %v5503_v55, %v671_v17  ;;  %v1083_v31 = vmax.f32 %v5924_v14, %v1008_v50 }
 0x1c3   : > { %v6208_v29 = vmax.f32 %v8740_v44, %v6178_v6  ;;  %v895_v21 = vmax.f32 %v865_v19, %v6033_v38  ;;  %v2899_v22 = vmax.f32 %v2869_v46, %v6210_v11  ;;  %v1137_v27 = vsel %vm1126_vm3, %v1104_v47, %v1120_v7 }
 0x1c4   : > { %v2900_v60 = vmax.f32 %v2870_v43, %v6186_v52  ;;  %v739_v41 = vmul.f32 0.01, %v707_v0  ;;  %v1212_v8 = vmax.f32 %v1083_v31, %v1137_v27  ;;  %v1282_v17 = vsel %vm1255_vm6, %v1249_v9, %v1233_v61 }
 0x1c5   : > { %v1411_v42 = vsel %vm1384_vm7, %v1378_v32, %v1362_v62  ;;  %v672_v49 = vmul.f32 %v5484_v54, %v630_v40  ;;  %v2961_v19 = vrot.slane %v2899_v22, 6  ;;  %v3089_v14 = vrot.slane %v2899_v22, 7 }
 0x1c6   : > { %v2977_v34 = vrot.slane %v2900_v60, 6  ;;  %v3105_v50 = vrot.slane %v2900_v60, 7  ;;  %v3217_v16 = vrot.slane %v2899_v22, 1  ;;  %v3233_v44 = vrot.slane %v2900_v60, 1 }
 0x1c7   : > { %v3345_v46 = vrot.slane %v2899_v22, 2  ;;  %v3361_v43 = vrot.slane %v2900_v60, 2  ;;  %v6232_v61 = vmax.f32 %v707_v0, %v739_v41  ;;  %v1309_v9 = vsel %vm801_vm5, %v1282_v17, -3.4028235e+38 }
 0x1c8   : > { %v3009_v47 = vsel %vm997_vm1, %v2977_v34, %v2961_v19  ;;  %v3137_v7 = vsel %vm1126_vm3, %v3105_v50, %v3089_v14  ;;  %v3249_v40 = vsel %vm1255_vm6, %v3217_v16, %v3233_v44  ;;  %v1341_v0 = vmax.f32 %v1212_v8, %v1309_v9 }
 0x1c9   : > { %8741 = vst [vmem:[#allocation42_spill] sm:$0xff] %v6232_v61  ;;  %v3027_v62 = vsel %vm782_vm2, %v3009_v47, -3.4028235e+38  ;;  %v3155_v32 = vsel %vm790_vm4, %v3137_v7, -3.4028235e+38  ;;  %v3377_v31 = vsel %vm1384_vm7, %v3345_v46, %v3361_v43  ;;  %v6245_v37 = vmax.f32 %v895_v21, %v6232_v61 }
 0x1ca   : > { %v3059_v27 = vmax.f32 %v2899_v22, %v3027_v62  ;;  %v1438_v41 = vsel %vm809_vm8, %v1411_v42, -3.4028235e+38  ;;  %v2993_v17 = vsel %vm997_vm1, %v2961_v19, %v2977_v34  ;;  %v3121_v47 = vsel %vm1126_vm3, %v3089_v14, %v3105_v50  ;;  %v8742_v14 = vld [vmem:[#allocation30_spill] sm:$0xff] }
 0x1cb   : > { %v3265_v7 = vsel %vm1255_vm6, %v3233_v44, %v3217_v16  ;;  %v3393_v26 = vsel %vm1384_vm7, %v3361_v43, %v3345_v46  ;;  %v6258_v62 = vmax.f32 %v1341_v0, %v1438_v41  ;;  %v3060_v8 = vmax.f32 %v2900_v60, %v2993_v17  ;;  %v8746_v17 = vld [vmem:[#allocation56_spill] sm:$0xff] }
 0x1cc   : > { %v3187_v22 = vmax.f32 %v3059_v27, %v3155_v32  ;;  %v3284_v42 = vsel %vm801_vm5, %v3265_v7, -3.4028235e+38  ;;  %v3412_v19 = vsel %vm809_vm8, %v3393_v26, -3.4028235e+38  ;;  %v708_v34 = vadd.f32 %v5503_v55, %v672_v49 }
 0x1cd   : > { %v8743_v50 = vmax.f32 %v5523_v28, %v8742_v14  ;;  %4044 = vmatmul.msk.f32.gmra.mxu2 %vm1482_vm9, %v6258_v62  ;;  %v8744_v46 = vmax.f32 %v5877_v63, %v6062_v5  ;;  %v8745_v49 = vmax.f32 %v5896_v56, %v6062_v5  ;;  %v3188_v32 = vmax.f32 %v3060_v8, %v3121_v47 }
 0x1ce   : > { %v3315_v44 = vmax.f32 %v3187_v22, %v3249_v40  ;;  %v740_v40 = vmul.f32 0.01, %v708_v34  ;;  %v8529_v41 = vrot.slane %v6048_v35, 6  ;;  %v8530_v63 = vrot.slane %v8746_v17, 6 }
 0x1cf   : > { %v866_v16 = vmax.f32 %v8743_v50, %v5910_v57  ;;  %v6277_v43 = vmax.f32 %v8744_v46, %v6258_v62  ;;  %v6285_v9 = vmax.f32 %v8745_v49, %v6258_v62  ;;  %v8525_v7 = vrot.slane %v6048_v35, 7 }
 0x1d0   : > { %v3443_v0 = vmax.f32 %v3315_v44, %v3377_v31  ;;  %v3316_v46 = vmax.f32 %v3188_v32, %v3284_v42  ;;  %v6293_v21 = vmax.f32 %v708_v34, %v740_v40  ;;  %v1025_v56 = vsel %vm997_vm1, %v8530_v63, %v8529_v41 }
 0x1d1   : > { %v896_v27 = vmax.f32 %v866_v16, %v6097_v36  ;;  %v8526_v31 = vrot.slane %v8746_v17, 7  ;;  %v8524_v47 = vrot.slane %v6048_v35, 1  ;;  %v8523_v8 = vrot.slane %v8746_v17, 1 }
 0x1d2   : > { %8747 = vst [vmem:[#allocation45_spill] sm:$0xff] %v6293_v21  ;;  %4123 = vmatmul.msk.f32.gmra.mxu1 %vm1482_vm9, %v3443_v0  ;;  %v3444_v16 = vmax.f32 %v3316_v46, %v3412_v19  ;;  %v1052_v34 = vsel %vm782_vm2, %v1025_v56, -3.4028235e+38  ;;  %v8528_v44 = vrot.slane %v6048_v35, 2  ;;  %v8527_v40 = vrot.slane %v8746_v17, 2  ;;  %v8748_v46 = vld [vmem:[#allocation48_spill] sm:$0xff] }
 0x1d3   : > { %v6306_v42 = vmax.f32 %v896_v27, %v6293_v21  ;;  %v1084_v49 = vmax.f32 %v6048_v35, %v1052_v34  ;;  %v1154_v32 = vsel %vm1126_vm3, %v8526_v31, %v8525_v7  ;;  %v1267_v19 = vsel %vm1255_vm6, %v8524_v47, %v8523_v8  ;;  %v8750_v34 = vld [vmem:[#allocation47_spill] sm:$0xff] }
 0x1d4   : > { %v1181_v0 = vsel %vm790_vm4, %v1154_v32, -3.4028235e+38  ;;  %v8749_v56 = vrot.slane %v8748_v46, 6  ;;  %v8751_v50 = vrot.slane %v8750_v34, 6  ;;  %v1396_v32 = vsel %vm1384_vm7, %v8528_v44, %v8527_v40 }
 0x1d5   : > { %v1213_v47 = vmax.f32 %v1084_v49, %v1181_v0  ;;  %v8754_v7 = vrot.slane %v8748_v46, 7  ;;  %v8755_v31 = vrot.slane %v8750_v34, 7  ;;  %v2330_v44 = vrot.slane %v8748_v46, 1 }
 0x1d6   : > { %v2090_v22 = vsel %vm997_vm1, %v8751_v50, %v8749_v56  ;;  %v8752_v26 = vmov %v8751_v50  ;;  %v8753_v60 = vmov %v8749_v56  ;;  %v2442_v63 = vrot.slane %v8750_v34, 2 }
 0x1d7   : > { %v2106_v8 = vsel %vm997_vm1, %v8753_v60, %v8752_v26  ;;  %v2160_v50 = vmax.f32 %v8748_v46, %v2090_v22  ;;  %v2218_v60 = vsel %vm1126_vm3, %v8755_v31, %v8754_v7  ;;  %v8756_v26 = vmov %v8755_v31 }
 0x1d8   : > { %v2127_v27 = vsel %vm782_vm2, %v2106_v8, -3.4028235e+38  ;;  %v8757_v49 = vmov %v8754_v7  ;;  %v2314_v8 = vrot.slane %v8750_v34, 1  ;;  %v1342_v40 = vmax.f32 %v1213_v47, %v1267_v19 }
 0x1d9   : > { %v2159_v56 = vmax.f32 %v8750_v34, %v2127_v27  ;;  %v2234_v0 = vsel %vm1126_vm3, %v8757_v49, %v8756_v26  ;;  %v2288_v27 = vmax.f32 %v2160_v50, %v2218_v60  ;;  %v2458_v7 = vrot.slane %v8748_v46, 2  ;;  %v812_v26 = vld [vmem:[%s8456_s4] sm:$0xff] }
 0x1da   : > { %v2255_v22 = vsel %vm790_vm4, %v2234_v0, -3.4028235e+38  ;;  %v2811_v31 = vmax.f32 %v5786_v20, %v5774_v59  ;;  %4124 = vmatmul.msk.f32.gmra.mxu1 %vm1482_vm9, %v3444_v16  ;;  %v6374_v47 = vmax.f32 %v1342_v40, %v1396_v32  ;;  %v2346_v19 = vsel %vm1255_vm6, %v2314_v8, %v2330_v44  ;;  %v633_v40 = vpop.f32.mrf.mxu0  ;;  %1803 = vmatpush.msrb.mxu2 %v812_v26 }
 0x1db   : > { %v2287_v41 = vmax.f32 %v2159_v56, %v2255_v22  ;;  %v2362_v50 = vsel %vm1255_vm6, %v2330_v44, %v2314_v8  ;;  %v2812_v46 = vmax.f32 %v5794_v25, %v5791_v10  ;;  %v2474_v60 = vsel %vm1384_vm7, %v2442_v63, %v2458_v7 }
 0x1dc   : > { %v2384_v34 = vsel %vm801_vm5, %v2362_v50, -3.4028235e+38  ;;  %v2490_v16 = vsel %vm1384_vm7, %v2458_v7, %v2442_v63  ;;  %4045 = vmatmul.msk.f32.gmra.mxu2 %vm1482_vm9, %v6374_v47  ;;  %v6394_v44 = vmax.f32 %v1921_v45, %v6374_v47  ;;  %v6402_v32 = vmax.f32 %v1977_v48, %v6374_v47  ;;  %v2565_v48 = vld [vmem:[%s8458_s6] sm:$0xff] }
 0x1dd   : > { %v2415_v56 = vmax.f32 %v2287_v41, %v2346_v19  ;;  %v2416_v63 = vmax.f32 %v2288_v27, %v2384_v34  ;;  %v2512_v49 = vsel %vm809_vm8, %v2490_v16, -3.4028235e+38  ;;  %v2841_v8 = vmax.f32 %v2811_v31, %v6002_v23  ;;  %2677 = vmatpush.msrb.mxu3 %v2565_v48 }
 0x1de   : > { %v2842_v39 = vmax.f32 %v2812_v46, %v6004_v3  ;;  %v673_v1 = vmul.f32 %v5484_v54, %v633_v40  ;;  %v837_v31 = vmax.f32 %v5611_v58, %v5847_v51  ;;  %v839_v19 = vmax.f32 %v5847_v51, %v6033_v38 }
 0x1df   : > { %v6406_v0 = vmax.f32 %v2415_v56, %v2474_v60  ;;  %v6412_v7 = vmax.f32 %v2416_v63, %v2512_v49  ;;  %v2871_v27 = vmax.f32 %v2841_v8, %v6210_v11  ;;  %v841_v54 = vmax.f32 %v6033_v38, %v6232_v61 }
 0x1e0   : > { %v2872_v26 = vmax.f32 %v2842_v39, %v6186_v52  ;;  %v709_v50 = vadd.f32 %v5503_v55, %v673_v1  ;;  %v8760_v46 = vrot.slane %v8746_v17, 6  ;;  %v8761_v34 = vrot.slane %v6048_v35, 6 }
 0x1e1   : > { %8758 = vst [vmem:[#allocation56_spill] sm:$0xff] %v6406_v0  ;;  %v8762_v60 = vrot.slane %v8746_v17, 7  ;;  %v8763_v16 = vrot.slane %v6048_v35, 7  ;;  %v2901_v63 = vmax.f32 %v2871_v27, %v6406_v0  ;;  %v867_v49 = vmax.f32 %v837_v31, %v6033_v38 }
 0x1e2   : > { %8759 = vst [vmem:[#allocation48_spill] sm:$0xff] %v6412_v7  ;;  %v1009_v56 = vsel %vm997_vm1, %v8761_v34, %v8760_v46  ;;  %v2902_v55 = vmax.f32 %v2872_v26, %v6412_v7  ;;  %v869_v8 = vmax.f32 %v839_v19, %v6232_v61  ;;  %v741_v39 = vmul.f32 0.01, %v709_v50 }
 0x1e3   : > { %v1138_v40 = vsel %vm1126_vm3, %v8763_v16, %v8762_v60  ;;  %v1085_v1 = vmax.f32 %v8746_v17, %v1009_v56  ;;  %v8764_v48 = vrot.slane %v6048_v35, 1  ;;  %v8765_v46 = vrot.slane %v8746_v17, 1 }
 0x1e4   : > { %v8766_v60 = vrot.slane %v6048_v35, 2  ;;  %v8767_v27 = vrot.slane %v8746_v17, 2  ;;  %v2962_v31 = vrot.slane %v2901_v63, 6  ;;  %v2978_v16 = vrot.slane %v2902_v55, 6 }
 0x1e5   : > { %v1283_v34 = vsel %vm1255_vm6, %v8765_v46, %v8764_v48  ;;  %v3090_v19 = vrot.slane %v2901_v63, 7  ;;  %v3106_v22 = vrot.slane %v2902_v55, 7  ;;  %v3218_v45 = vrot.slane %v2901_v63, 1 }
 0x1e6   : > { %v1412_v26 = vsel %vm1384_vm7, %v8767_v27, %v8766_v60  ;;  %v3234_v56 = vrot.slane %v2902_v55, 1  ;;  %v3346_v41 = vrot.slane %v2901_v63, 2  ;;  %v3362_v38 = vrot.slane %v2902_v55, 2 }
 0x1e7   : > { %v3010_v51 = vsel %vm997_vm1, %v2978_v16, %v2962_v31  ;;  %v3138_v48 = vsel %vm1126_vm3, %v3106_v22, %v3090_v19  ;;  %v6460_v35 = vmax.f32 %v709_v50, %v741_v39  ;;  %v897_v17 = vmax.f32 %v867_v49, %v6232_v61 }
 0x1e8   : > { %v3029_v46 = vsel %vm782_vm2, %v3010_v51, -3.4028235e+38  ;;  %v3157_v60 = vsel %vm790_vm4, %v3138_v48, -3.4028235e+38  ;;  %v3250_v27 = vsel %vm1255_vm6, %v3218_v45, %v3234_v56  ;;  %v3378_v58 = vsel %vm1384_vm7, %v3346_v41, %v3362_v38 }
 0x1e9   : > { %8768 = vst [vmem:[#allocation47_spill] sm:$0xff] %v6460_v35  ;;  %v3061_v28 = vmax.f32 %v2901_v63, %v3029_v46  ;;  %v871_v12 = vmax.f32 %v841_v54, %v6460_v35  ;;  %v899_v50 = vmax.f32 %v869_v8, %v6460_v35  ;;  %v6474_v39 = vmax.f32 %v897_v17, %v6460_v35 }
 0x1ea   : > { %v1214_v49 = vmax.f32 %v1085_v1, %v1138_v40  ;;  %v1311_v51 = vsel %vm801_vm5, %v1283_v34, -3.4028235e+38  ;;  %v1440_v48 = vsel %vm809_vm8, %v1412_v26, -3.4028235e+38  ;;  %v2994_v61 = vsel %vm997_vm1, %v2962_v31, %v2978_v16  ;;  %v636_v1 = vpop.f32.mrf.mxu0 }
 0x1eb   : > { %v3189_v25 = vmax.f32 %v3061_v28, %v3157_v60  ;;  %v901_v20 = vmax.f32 %v871_v12, -3.4028235e+38  ;;  %v6482_v63 = vmax.f32 %v899_v50, -3.4028235e+38  ;;  %v3062_v46 = vmax.f32 %v2902_v55, %v2994_v61 }
 0x1ec   : > { %v1343_v17 = vmax.f32 %v1214_v49, %v1311_v51  ;;  %v3122_v40 = vsel %vm1126_vm3, %v3090_v19, %v3106_v22  ;;  %v3266_v26 = vsel %vm1255_vm6, %v3234_v56, %v3218_v45  ;;  %v3394_v12 = vsel %vm1384_vm7, %v3362_v38, %v3346_v41 }
 0x1ed   : > { %v3317_v34 = vmax.f32 %v3189_v25, %v3250_v27  ;;  %v6488_v35 = vmax.f32 %v901_v20, -3.4028235e+38  ;;  %v3190_v31 = vmax.f32 %v3062_v46, %v3122_v40  ;;  %v3286_v16 = vsel %vm801_vm5, %v3266_v26, -3.4028235e+38  ;;  %v4228_v20 = vld [vmem:[%s8454_s2] ss:$0 sm:$0xff] }
 0x1ee   : > { %v6494_v28 = vmax.f32 %v1343_v17, %v1440_v48  ;;  %v3414_v61 = vsel %vm809_vm8, %v3394_v12, -3.4028235e+38  ;;  %v674_v25 = vmul.f32 %v4228_v20, %v636_v1  ;;  %v838_v45 = vmax.f32 %v8742_v14, %v5910_v57  ;;  %v4229_v27 = vld [vmem:[%s8455_s3] ss:$0 sm:$0xff] }
 0x1ef   : > { %v3445_v22 = vmax.f32 %v3317_v34, %v3378_v58  ;;  %v840_v38 = vmax.f32 %v5910_v57, %v6097_v36  ;;  %v8769_v41 = vmax.f32 %v6062_v5, %v6258_v62  ;;  %v8770_v19 = vmax.f32 %v6081_v18, %v6258_v62 }
 0x1f0   : > { %4046 = vmatmul.msk.f32.gmra.mxu2 %vm1482_vm9, %v6494_v28  ;;  %v3318_v60 = vmax.f32 %v3190_v31, %v3286_v16  ;;  %v710_v50 = vadd.f32 %v4229_v27, %v674_v25  ;;  %v842_v5 = vmax.f32 %v6097_v36, %v6293_v21  ;;  %v868_v49 = vmax.f32 %v838_v45, %v6097_v36 }
 0x1f1   : > { %v6513_v55 = vmax.f32 %v8769_v41, %v6494_v28  ;;  %v6521_v56 = vmax.f32 %v8770_v19, %v6494_v28  ;;  %4125 = vmatmul.msk.f32.gmra.mxu1 %vm1482_vm9, %v3445_v22  ;;  %v870_v51 = vmax.f32 %v840_v38, %v6293_v21  ;;  %v8771_v46 = vrot.slane %v6245_v37, 6  ;;  %v8774_v41 = vld [vmem:[#allocation51_spill] sm:$0xff] }
 0x1f2   : > { %v3446_v17 = vmax.f32 %v3318_v60, %v3414_v61  ;;  %v8772_v40 = vrot.slane %v6306_v42, 6  ;;  %v742_v34 = vmul.f32 0.01, %v710_v50  ;;  %v898_v26 = vmax.f32 %v868_v49, %v6293_v21  ;;  %v8776_v60 = vld [vmem:[#allocation33_spill] sm:$0xff] }
 0x1f3   : > { %v1106_v31 = vrot.slane %v6245_v37, 7  ;;  %v1122_v22 = vrot.slane %v6306_v42, 7  ;;  %v1235_v61 = vrot.slane %v6245_v37, 1  ;;  %v1251_v20 = vrot.slane %v6306_v42, 1 }
 0x1f4   : > { %v1026_v1 = vsel %vm997_vm1, %v8772_v40, %v8771_v46  ;;  %v6547_v25 = vmax.f32 %v710_v50, %v742_v34  ;;  %v8541_v45 = vrot.slane %v6245_v37, 2  ;;  %v8540_v38 = vrot.slane %v6306_v42, 2 }
 0x1f5   : > { %v1054_v12 = vsel %vm782_vm2, %v1026_v1, -3.4028235e+38  ;;  %v8775_v19 = vrot.slane %v8774_v41, 6  ;;  %v8777_v27 = vrot.slane %v8776_v60, 6  ;;  %v1155_v46 = vsel %vm1126_vm3, %v1122_v22, %v1106_v31 }
 0x1f6   : > { %v1086_v16 = vmax.f32 %v6245_v37, %v1054_v12  ;;  %8773 = vst [vmem:[#allocation57_spill] sm:$0xff] %v6547_v25  ;;  %v1268_v50 = vsel %vm1255_vm6, %v1235_v61, %v1251_v20  ;;  %v872_v18 = vmax.f32 %v842_v5, %v6547_v25  ;;  %v1183_v48 = vsel %vm790_vm4, %v1155_v46, -3.4028235e+38  ;;  %v8786_v46 = vld [vmem:[#allocation17_spill] sm:$0xff] }
 0x1f7   : > { %v2091_v49 = vsel %vm997_vm1, %v8777_v27, %v8775_v19  ;;  %v8778_v40 = vmov %v8777_v27  ;;  %v8779_v1 = vmov %v8775_v19  ;;  %v900_v19 = vmax.f32 %v870_v51, %v6547_v25 }
 0x1f8   : > { %v2107_v34 = vsel %vm997_vm1, %v8779_v1, %v8778_v40  ;;  %v2162_v12 = vmax.f32 %v8774_v41, %v2091_v49  ;;  %v6573_v27 = vmax.f32 %v898_v26, %v6547_v25  ;;  %v1215_v58 = vmax.f32 %v1086_v16, %v1183_v48  ;;  %v8780_v1 = vld [vmem:[#allocation18_spill] sm:$0xff]  ;;  %v8795_v25 = vld [vmem:[#allocation20_spill] sm:$0xff] }
 0x1f9   : > { %v1397_v40 = vsel %vm1384_vm7, %v8541_v45, %v8540_v38  ;;  %4055 = vmatmul.msk.f32.vlgmr.msrb.gmra.mxu2 %vm1482_vm9, %v8780_v1  ;;  %v2129_v5 = vsel %vm782_vm2, %v2107_v34, -3.4028235e+38  ;;  %v8781_v51 = vrot.slane %v8774_v41, 7  ;;  %v8782_v26 = vrot.slane %v8776_v60, 7  ;;  %4126 = vmatmul.msk.f32.gmra.mxu1 %vm1482_vm9, %v3446_v17 }
 0x1fa   : > { %v902_v16 = vmax.f32 %v872_v18, -3.4028235e+38  ;;  %v6594_v49 = vmax.f32 %v900_v19, -3.4028235e+38  ;;  %v1344_v1 = vmax.f32 %v1215_v58, %v1268_v50  ;;  %v2161_v54 = vmax.f32 %v8776_v60, %v2129_v5 }
 0x1fb   : > { %v2219_v48 = vsel %vm1126_vm3, %v8782_v26, %v8781_v51  ;;  %v8783_v34 = vmov %v8782_v26  ;;  %v8784_v38 = vmov %v8781_v51  ;;  %v2315_v17 = vrot.slane %v8776_v60, 1 }
 0x1fc   : > { %v2235_v45 = vsel %vm1126_vm3, %v8784_v38, %v8783_v34  ;;  %v2290_v51 = vmax.f32 %v2162_v12, %v2219_v48  ;;  %v6605_v26 = vmax.f32 %v902_v16, -3.4028235e+38  ;;  %v2331_v19 = vrot.slane %v8774_v41, 1 }
 0x1fd   : > { %v2257_v18 = vsel %vm790_vm4, %v2235_v45, -3.4028235e+38  ;;  %v6611_v58 = vmax.f32 %v1344_v1, %v1397_v40  ;;  %v2443_v5 = vrot.slane %v8776_v60, 2  ;;  %v2459_v8 = vrot.slane %v8774_v41, 2 }
 0x1fe   : > { %v2289_v50 = vmax.f32 %v2161_v54, %v2257_v18  ;;  %v2347_v38 = vsel %vm1255_vm6, %v2315_v17, %v2331_v19  ;;  %v2363_v12 = vsel %vm1255_vm6, %v2331_v19, %v2315_v17  ;;  %v2813_v45 = vmax.f32 %v5774_v59, %v6002_v23 }
 0x1ff   : > { %v2814_v48 = vmax.f32 %v5791_v10, %v6004_v3  ;;  %4047 = vmatmul.msk.f32.vlgmr.msra.gmra.mxu3 %vm1482_vm9, %v6611_v58  ;;  %v8785_v41 = vmax.f32 %v6200_v33, %v6374_v47  ;;  %v2386_v40 = vsel %vm801_vm5, %v2363_v12, -3.4028235e+38  ;;  %v2475_v34 = vsel %vm1384_vm7, %v2443_v5, %v2459_v8 }
 0x200   : > { %v2417_v16 = vmax.f32 %v2289_v50, %v2347_v38  ;;  %v2418_v1 = vmax.f32 %v2290_v51, %v2386_v40  ;;  %v2491_v18 = vsel %vm1384_vm7, %v2459_v8, %v2443_v5  ;;  %v2843_v17 = vmax.f32 %v2813_v45, %v6210_v11 }
 0x201   : > { %v6631_v60 = vmax.f32 %v8785_v41, %v6611_v58  ;;  %4056 = vmatmul.msk.f32.gmra.mxu2 %vm1482_vm9, %v8786_v46  ;;  %v2514_v51 = vsel %vm809_vm8, %v2491_v18, -3.4028235e+38  ;;  %v2844_v8 = vmax.f32 %v2814_v48, %v6186_v52  ;;  %v8787_v12 = vrot.slane %v6306_v42, 6 }
 0x202   : > { %v6648_v50 = vmax.f32 %v2417_v16, %v2475_v34  ;;  %v2873_v5 = vmax.f32 %v2843_v17, %v6406_v0  ;;  %v6652_v38 = vmax.f32 %v2418_v1, %v2514_v51  ;;  %v8788_v45 = vrot.slane %v6245_v37, 6 }
 0x203   : > { %v1139_v46 = vsel %vm1126_vm3, %v1106_v31, %v1122_v22  ;;  %v1284_v16 = vsel %vm1255_vm6, %v1251_v20, %v1235_v61  ;;  %v2874_v48 = vmax.f32 %v2844_v8, %v6412_v7  ;;  %v8789_v17 = vrot.slane %v6245_v37, 2 }
 0x204   : > { %v1010_v40 = vsel %vm997_vm1, %v8788_v45, %v8787_v12  ;;  %v2903_v1 = vmax.f32 %v2873_v5, %v6648_v50  ;;  %v1313_v18 = vsel %vm801_vm5, %v1284_v16, -3.4028235e+38  ;;  %v8790_v51 = vrot.slane %v6306_v42, 2 }
 0x205   : > { %v1087_v34 = vmax.f32 %v6306_v42, %v1010_v40  ;;  %v8791_v31 = vrot.slane %v6474_v39, 6  ;;  %v8792_v22 = vrot.slane %v6573_v27, 6  ;;  %v8793_v20 = vrot.slane %v6474_v39, 7 }
 0x206   : > { %v1413_v12 = vsel %vm1384_vm7, %v8790_v51, %v8789_v17  ;;  %v8794_v8 = vrot.slane %v6573_v27, 7  ;;  %v2904_v42 = vmax.f32 %v2874_v48, %v6652_v38  ;;  %v2963_v45 = vrot.slane %v2903_v1, 6 }
 0x207   : > { %v1027_v61 = vsel %vm997_vm1, %v8792_v22, %v8791_v31  ;;  %v3091_v40 = vrot.slane %v2903_v1, 7  ;;  %v3219_v16 = vrot.slane %v2903_v1, 1  ;;  %v3347_v17 = vrot.slane %v2903_v1, 2 }
 0x208   : > { %v1156_v5 = vsel %vm1126_vm3, %v8794_v8, %v8793_v20  ;;  %v1216_v51 = vmax.f32 %v1087_v34, %v1139_v46  ;;  %v1442_v41 = vsel %vm809_vm8, %v1413_v12, -3.4028235e+38  ;;  %v1056_v31 = vsel %vm782_vm2, %v1027_v61, -3.4028235e+38 }
 0x209   : > { %v2979_v22 = vrot.slane %v2904_v42, 6  ;;  %v3107_v33 = vrot.slane %v2904_v42, 7  ;;  %v3235_v54 = vrot.slane %v2904_v42, 1  ;;  %v3363_v19 = vrot.slane %v2904_v42, 2  ;;  %4057 = vmatmul.msk.f32.gmra.mxu2 %vm1482_vm9, %v8795_v25 }
 0x20a   : > { %v1345_v20 = vmax.f32 %v1216_v51, %v1313_v18  ;;  %v1088_v8 = vmax.f32 %v6474_v39, %v1056_v31  ;;  %v1185_v48 = vsel %vm790_vm4, %v1156_v5, -3.4028235e+38 }
 0x20b   : > { %v3011_v46 = vsel %vm997_vm1, %v2979_v22, %v2963_v45  ;;  %v3139_v34 = vsel %vm1126_vm3, %v3107_v33, %v3091_v40  ;;  %v3251_v12 = vsel %vm1255_vm6, %v3219_v16, %v3235_v54  ;;  %v3379_v18 = vsel %vm1384_vm7, %v3347_v17, %v3363_v19 }
 0x20c   : > { %v3031_v61 = vsel %vm782_vm2, %v3011_v46, -3.4028235e+38  ;;  %v3159_v5 = vsel %vm790_vm4, %v3139_v34, -3.4028235e+38  ;;  %v6713_v51 = vmax.f32 %v1345_v20, %v1442_v41  ;;  %v2995_v25 = vsel %vm997_vm1, %v2963_v45, %v2979_v22  ;;  %v8814_v46 = vld [vmem:[#allocation21_spill] sm:$0xff] }
 0x20d   : > { %v3063_v31 = vmax.f32 %v2903_v1, %v3031_v61  ;;  %v3064_v37 = vmax.f32 %v2904_v42, %v2995_v25  ;;  %v3123_v21 = vsel %vm1126_vm3, %v3091_v40, %v3107_v33  ;;  %v3267_v36 = vsel %vm1255_vm6, %v3235_v54, %v3219_v16 }
 0x20e   : > { %4048 = vmatmul.msk.f32.gmra.mxu3 %vm1482_vm9, %v6713_v51  ;;  %v8796_v41 = vmax.f32 %v6277_v43, %v6494_v28  ;;  %v3288_v1 = vsel %vm801_vm5, %v3267_v36, -3.4028235e+38  ;;  %v3395_v33 = vsel %vm1384_vm7, %v3363_v19, %v3347_v17  ;;  %v1217_v40 = vmax.f32 %v1088_v8, %v1185_v48 }
 0x20f   : > { %v3191_v42 = vmax.f32 %v3063_v31, %v3159_v5  ;;  %v3192_v54 = vmax.f32 %v3064_v37, %v3123_v21  ;;  %v3416_v45 = vsel %vm809_vm8, %v3395_v33, -3.4028235e+38  ;;  %v8797_v36 = vrot.slane %v6573_v27, 1  ;;  %v8800_v5 = vld [vmem:[#allocation54_spill] sm:$0xff] }
 0x210   : > { %v6729_v20 = vmax.f32 %v8796_v41, %v6713_v51  ;;  %v8798_v19 = vrot.slane %v6474_v39, 1  ;;  %v1365_v37 = vrot.slane %v6474_v39, 2  ;;  %v8799_v17 = vrot.slane %v6631_v60, 6  ;;  %v8802_v41 = vld [vmem:[#allocation39_spill] sm:$0xff] }
 0x211   : > { %v3319_v61 = vmax.f32 %v3191_v42, %v3251_v12  ;;  %v3320_v25 = vmax.f32 %v3192_v54, %v3288_v1  ;;  %v1381_v12 = vrot.slane %v6573_v27, 2  ;;  %v8801_v31 = vrot.slane %v8800_v5, 6  ;;  %v8804_v42 = vld [vmem:[#allocation19_spill] sm:$0xff] }
 0x212   : > { %v8545_v16 = vrot.slane %v6729_v20, 6  ;;  %v1269_v21 = vsel %vm1255_vm6, %v8798_v19, %v8797_v36  ;;  %v8803_v1 = vrot.slane %v8802_v41, 6  ;;  %4058 = vmatmul.msk.f32.gmra.mxu2 %vm1482_vm9, %v8804_v42 }
 0x213   : > { %v1346_v48 = vmax.f32 %v1217_v40, %v1269_v21  ;;  %v3447_v54 = vmax.f32 %v3319_v61, %v3379_v18  ;;  %v3448_v19 = vmax.f32 %v3320_v25, %v3416_v45  ;;  %v8806_v40 = vmov %v8801_v31 }
 0x214   : > { %v6754_v8 = vsel %vm997_vm1, %v8799_v17, %v8545_v16  ;;  %v2092_v33 = vsel %vm997_vm1, %v8803_v1, %v8801_v31  ;;  %v8805_v17 = vmov %v8803_v1  ;;  %v1398_v34 = vsel %vm1384_vm7, %v1365_v37, %v1381_v12 }
 0x215   : > { %v2108_v21 = vsel %vm997_vm1, %v8806_v40, %v8805_v17  ;;  %v2164_v1 = vmax.f32 %v8800_v5, %v2092_v33  ;;  %v8807_v18 = vrot.slane %v8800_v5, 7  ;;  %v8808_v61 = vrot.slane %v8802_v41, 7  ;;  %4127 = vmatmul.msk.f32.gmra.mxu1 %vm1482_vm9, %v3447_v54 }
 0x216   : > { %v2131_v31 = vsel %vm782_vm2, %v2108_v21, -3.4028235e+38  ;;  %v6785_v25 = vmax.f32 %v1346_v48, %v1398_v34  ;;  %v2316_v21 = vrot.slane %v8802_v41, 1  ;;  %v2444_v34 = vrot.slane %v8802_v41, 2 }
 0x217   : > { %v2220_v45 = vsel %vm1126_vm3, %v8808_v61, %v8807_v18  ;;  %v2163_v42 = vmax.f32 %v8802_v41, %v2131_v31  ;;  %v8809_v17 = vmov %v8808_v61  ;;  %v8810_v40 = vmov %v8807_v18 }
 0x218   : > { %v2236_v33 = vsel %vm1126_vm3, %v8810_v40, %v8809_v17  ;;  %v2292_v36 = vmax.f32 %v2164_v1, %v2220_v45  ;;  %v2332_v18 = vrot.slane %v8800_v5, 1  ;;  %4049 = vmatmul.msk.f32.gmra.mxu3 %vm1482_vm9, %v6785_v25  ;;  %v8811_v48 = vmax.f32 %v6394_v44, %v6611_v58 }
 0x219   : > { %v2259_v43 = vsel %vm790_vm4, %v2236_v33, -3.4028235e+38  ;;  %v2460_v61 = vrot.slane %v8800_v5, 2  ;;  %v2815_v17 = vmax.f32 %v6002_v23, %v6210_v11  ;;  %v2816_v45 = vmax.f32 %v6004_v3, %v6186_v52 }
 0x21a   : > { %v6805_v54 = vmax.f32 %v8811_v48, %v6785_v25  ;;  %v2291_v31 = vmax.f32 %v2163_v42, %v2259_v43  ;;  %v2348_v1 = vsel %vm1255_vm6, %v2316_v21, %v2332_v18  ;;  %v2364_v41 = vsel %vm1255_vm6, %v2332_v18, %v2316_v21  ;;  %4059 = vmatmul.msk.f32.gmra.mxu2 %vm1482_vm9, %v8814_v46 }
 0x21b   : > { %v8812_v40 = vrot.slane %v6573_v27, 6  ;;  %v8813_v44 = vrot.slane %v6474_v39, 6  ;;  %v2388_v21 = vsel %vm801_vm5, %v2364_v41, -3.4028235e+38  ;;  %v2476_v22 = vsel %vm1384_vm7, %v2444_v34, %v2460_v61 }
 0x21c   : > { %v2419_v18 = vmax.f32 %v2291_v31, %v2348_v1  ;;  %v2492_v16 = vsel %vm1384_vm7, %v2460_v61, %v2444_v34  ;;  %v2845_v33 = vmax.f32 %v2815_v17, %v6406_v0  ;;  %v2846_v48 = vmax.f32 %v2816_v45, %v6412_v7 }
 0x21d   : > { %v1011_v43 = vsel %vm997_vm1, %v8813_v44, %v8812_v40  ;;  %v2420_v40 = vmax.f32 %v2292_v36, %v2388_v21  ;;  %v2516_v44 = vsel %vm809_vm8, %v2492_v16, -3.4028235e+38  ;;  %v8815_v1 = vrot.slane %v6573_v27, 7  ;;  %4128 = vmatmul.msk.f32.gmra.mxu1 %vm1482_vm9, %v3448_v19 }
 0x21e   : > { %v6838_v42 = vmax.f32 %v2419_v18, %v2476_v22  ;;  %v1089_v31 = vmax.f32 %v6573_v27, %v1011_v43  ;;  %v8816_v41 = vrot.slane %v6474_v39, 7  ;;  %v8817_v46 = vrot.slane %v6474_v39, 1 }
 0x21f   : > { %v8818_v36 = vrot.slane %v6573_v27, 1  ;;  %v6854_v22 = vmax.f32 %v2420_v40, %v2516_v44  ;;  %v2875_v61 = vmax.f32 %v2845_v33, %v6648_v50  ;;  %v2876_v17 = vmax.f32 %v2846_v48, %v6652_v38 }
 0x220   : > { %v1140_v34 = vsel %vm1126_vm3, %v8816_v41, %v8815_v1  ;;  %v1414_v39 = vsel %vm1384_vm7, %v1381_v12, %v1365_v37  ;;  %v8546_v27 = vrot.slane %v6482_v63, 6  ;;  %v8547_v21 = vrot.slane %v6594_v49, 6 }
 0x221   : > { %v1285_v16 = vsel %vm1255_vm6, %v8818_v36, %v8817_v46  ;;  %v1218_v43 = vmax.f32 %v1089_v31, %v1140_v34  ;;  %v2905_v18 = vmax.f32 %v2875_v61, %v6838_v42  ;;  %v2906_v19 = vmax.f32 %v2876_v17, %v6854_v22  ;;  %v8819_v17 = vld [vmem:[#allocation22_spill] sm:$0xff] }
 0x222   : > { %v1315_v45 = vsel %vm801_vm5, %v1285_v16, -3.4028235e+38  ;;  %v1444_v33 = vsel %vm809_vm8, %v1414_v39, -3.4028235e+38  ;;  %v1108_v48 = vrot.slane %v6482_v63, 7  ;;  %v1028_v37 = vsel %vm997_vm1, %v8547_v21, %v8546_v27  ;;  %4060 = vmatmul.msk.f32.gmra.mxu2 %vm1482_vm9, %v8819_v17 }
 0x223   : > { %v1347_v40 = vmax.f32 %v1218_v43, %v1315_v45  ;;  %v2964_v31 = vrot.slane %v2905_v18, 6  ;;  %v2980_v1 = vrot.slane %v2906_v19, 6  ;;  %v3092_v41 = vrot.slane %v2905_v18, 7 }
 0x224   : > { %v3108_v34 = vrot.slane %v2906_v19, 7  ;;  %v3220_v46 = vrot.slane %v2905_v18, 1  ;;  %v3236_v36 = vrot.slane %v2906_v19, 1  ;;  %v3348_v16 = vrot.slane %v2905_v18, 2 }
 0x225   : > { %v3364_v61 = vrot.slane %v2906_v19, 2  ;;  %v3012_v45 = vsel %vm997_vm1, %v2980_v1, %v2964_v31  ;;  %v6883_v39 = vmax.f32 %v1347_v40, %v1444_v33  ;;  %v2996_v27 = vsel %vm997_vm1, %v2964_v31, %v2980_v1 }
 0x226   : > { %v3140_v43 = vsel %vm1126_vm3, %v3108_v34, %v3092_v41  ;;  %v3033_v21 = vsel %vm782_vm2, %v3012_v45, -3.4028235e+38  ;;  %v3252_v17 = vsel %vm1255_vm6, %v3220_v46, %v3236_v36  ;;  %v8820_v33 = vmax.f32 %v6513_v55, %v6713_v51 }
 0x227   : > { %v3161_v44 = vsel %vm790_vm4, %v3140_v43, -3.4028235e+38  ;;  %v3380_v5 = vsel %vm1384_vm7, %v3348_v16, %v3364_v61  ;;  %v3065_v12 = vmax.f32 %v2905_v18, %v3033_v21  ;;  %4050 = vmatmul.msk.f32.gmra.mxu3 %vm1482_vm9, %v6883_v39  ;;  %v3066_v31 = vmax.f32 %v2906_v19, %v2996_v27 }
 0x228   : > { %v6901_v40 = vmax.f32 %v8820_v33, %v6883_v39  ;;  %v3124_v1 = vsel %vm1126_vm3, %v3092_v41, %v3108_v34  ;;  %v3268_v45 = vsel %vm1255_vm6, %v3236_v36, %v3220_v46  ;;  %v3396_v43 = vsel %vm1384_vm7, %v3364_v61, %v3348_v16 }
 0x229   : > { %v1058_v21 = vsel %vm782_vm2, %v1028_v37, -3.4028235e+38  ;;  %v8821_v18 = vrot.slane %v6594_v49, 7  ;;  %v3193_v27 = vmax.f32 %v3065_v12, %v3161_v44  ;;  %v3194_v36 = vmax.f32 %v3066_v31, %v3124_v1 }
 0x22a   : > { %v8548_v19 = vrot.slane %v6901_v40, 6  ;;  %v3290_v37 = vsel %vm801_vm5, %v3268_v45, -3.4028235e+38  ;;  %v3418_v16 = vsel %vm809_vm8, %v3396_v43, -3.4028235e+38  ;;  %v8822_v12 = vrot.slane %v6805_v54, 6 }
 0x22b   : > { %v1157_v55 = vsel %vm1126_vm3, %v8821_v18, %v1108_v48  ;;  %v3321_v61 = vmax.f32 %v3193_v27, %v3252_v17  ;;  %v1090_v33 = vmax.f32 %v6482_v63, %v1058_v21  ;;  %v3322_v45 = vmax.f32 %v3194_v36, %v3290_v37  ;;  %v8823_v18 = vld [vmem:[#allocation23_spill] sm:$0xff] }
 0x22c   : > { %v6931_v44 = vsel %vm997_vm1, %v8822_v12, %v8548_v19  ;;  %v1187_v31 = vsel %vm790_vm4, %v1157_v55, -3.4028235e+38  ;;  %v1253_v43 = vrot.slane %v6594_v49, 1  ;;  %v1366_v17 = vrot.slane %v6482_v63, 2  ;;  %4061 = vmatmul.msk.f32.gmra.mxu2 %vm1482_vm9, %v8823_v18 }
 0x22d   : > { %v3449_v27 = vmax.f32 %v3321_v61, %v3380_v5  ;;  %v1219_v46 = vmax.f32 %v1090_v33, %v1187_v31  ;;  %v1382_v12 = vrot.slane %v6594_v49, 2  ;;  %v1923_v21 = vmax.f32 %v6178_v6, %v6374_v47 }
 0x22e   : > { %v3450_v34 = vmax.f32 %v3322_v45, %v3418_v16  ;;  %v8824_v55 = vrot.slane %v6482_v63, 1  ;;  %v8825_v37 = vrot.slane %v6285_v9, 6  ;;  %v8826_v1 = vrot.slane %v6208_v29, 6 }
 0x22f   : > { %4129 = vmatmul.msk.f32.gmra.mxu1 %vm1482_vm9, %v3449_v27  ;;  %v1399_v33 = vsel %vm1384_vm7, %v1366_v17, %v1382_v12  ;;  %v1953_v31 = vmax.f32 %v1923_v21, %v6611_v58  ;;  %v8830_v41 = vrot.slane %v6208_v29, 7 }
 0x230   : > { %v1270_v36 = vsel %vm1255_vm6, %v8824_v55, %v1253_v43  ;;  %v2093_v18 = vsel %vm997_vm1, %v8826_v1, %v8825_v37  ;;  %v8827_v5 = vmov %v8826_v1  ;;  %v8828_v61 = vmov %v8825_v37 }
 0x231   : > { %v2109_v6 = vsel %vm997_vm1, %v8828_v61, %v8827_v5  ;;  %v1348_v16 = vmax.f32 %v1219_v46, %v1270_v36  ;;  %v2166_v55 = vmax.f32 %v6285_v9, %v2093_v18  ;;  %v8829_v37 = vrot.slane %v6285_v9, 7 }
 0x232   : > { %v2133_v45 = vsel %vm782_vm2, %v2109_v6, -3.4028235e+38  ;;  %v8831_v46 = vmov %v8830_v41  ;;  %v1983_v61 = vmax.f32 %v1953_v31, %v6785_v25  ;;  %v2317_v6 = vrot.slane %v6208_v29, 1 }
 0x233   : > { %v2165_v1 = vmax.f32 %v6208_v29, %v2133_v45  ;;  %v2221_v27 = vsel %vm1126_vm3, %v8830_v41, %v8829_v37  ;;  %v8832_v36 = vmov %v8829_v37  ;;  %v6981_v5 = vmax.f32 %v1348_v16, %v1399_v33 }
 0x234   : > { %v2237_v21 = vsel %vm1126_vm3, %v8832_v36, %v8831_v46  ;;  %v2294_v19 = vmax.f32 %v2166_v55, %v2221_v27  ;;  %v2333_v41 = vrot.slane %v6285_v9, 1  ;;  %v2445_v37 = vrot.slane %v6208_v29, 2 }
 0x235   : > { %v2261_v18 = vsel %vm790_vm4, %v2237_v21, -3.4028235e+38  ;;  %4051 = vmatmul.msk.f32.gmra.mxu3 %vm1482_vm9, %v6981_v5  ;;  %v6992_v46 = vmax.f32 %v1983_v61, %v6981_v5  ;;  %v2461_v16 = vrot.slane %v6285_v9, 2  ;;  %v2817_v33 = vmax.f32 %v6210_v11, %v6406_v0  ;;  %v8836_v61 = vld [vmem:[#allocation24_spill] sm:$0xff] }
 0x236   : > { %v2293_v45 = vmax.f32 %v2165_v1, %v2261_v18  ;;  %v2818_v31 = vmax.f32 %v6186_v52, %v6412_v7  ;;  %v2349_v1 = vsel %vm1255_vm6, %v2317_v6, %v2333_v41  ;;  %v2365_v29 = vsel %vm1255_vm6, %v2333_v41, %v2317_v6  ;;  %4062 = vmatmul.msk.f32.gmra.mxu2 %vm1482_vm9, %v8836_v61 }
 0x237   : > { %v8833_v55 = vrot.slane %v6594_v49, 6  ;;  %v8834_v27 = vrot.slane %v6482_v63, 6  ;;  %v8835_v9 = vrot.slane %v6594_v49, 7  ;;  %v2477_v14 = vsel %vm1384_vm7, %v2445_v37, %v2461_v16  ;;  %4130 = vmatmul.msk.f32.gmra.mxu1 %vm1482_vm9, %v3450_v34 }
 0x238   : > { %v2847_v41 = vmax.f32 %v2817_v33, %v6648_v50  ;;  %v2848_v57 = vmax.f32 %v2818_v31, %v6652_v38  ;;  %v1415_v34 = vsel %vm1384_vm7, %v1382_v12, %v1366_v17  ;;  %v996_v31 = vrot.slane %v6605_v26, 6 }
 0x239   : > { %v1012_v36 = vsel %vm997_vm1, %v8834_v27, %v8833_v55  ;;  %v1141_v21 = vsel %vm1126_vm3, %v1108_v48, %v8835_v9  ;;  %v2390_v55 = vsel %vm801_vm5, %v2365_v29, -3.4028235e+38  ;;  %v2421_v27 = vmax.f32 %v2293_v45, %v2349_v1 }
 0x23a   : > { %v2493_v48 = vsel %vm1384_vm7, %v2461_v16, %v2445_v37  ;;  %v2422_v9 = vmax.f32 %v2294_v19, %v2390_v55  ;;  %v1091_v45 = vmax.f32 %v6594_v49, %v1012_v36  ;;  %v8837_v1 = vrot.slane %v6482_v63, 1 }
 0x23b   : > { %v2518_v61 = vsel %vm809_vm8, %v2493_v48, -3.4028235e+38  ;;  %v7032_v6 = vmax.f32 %v2421_v27, %v2477_v14  ;;  %v2877_v37 = vmax.f32 %v2847_v41, %v6838_v42  ;;  %v2878_v16 = vmax.f32 %v2848_v57, %v6854_v22  ;;  %v8838_v27 = vld [vmem:[#allocation25_spill] sm:$0xff] }
 0x23c   : > { %v1286_v29 = vsel %vm1255_vm6, %v1253_v43, %v8837_v1  ;;  %v7041_v19 = vmax.f32 %v2422_v9, %v2518_v61  ;;  %v1220_v33 = vmax.f32 %v1091_v45, %v1141_v21  ;;  %v1446_v49 = vsel %vm809_vm8, %v1415_v34, -3.4028235e+38 }
 0x23d   : > { %v1317_v14 = vsel %vm801_vm5, %v1286_v29, -3.4028235e+38  ;;  %v1924_v63 = vmax.f32 %v6258_v62, %v6494_v28  ;;  %v980_v43 = vrot.slane %v6488_v35, 6  ;;  %v2907_v17 = vmax.f32 %v2877_v37, %v7032_v6 }
 0x23e   : > { %v2908_v12 = vmax.f32 %v2878_v16, %v7041_v19  ;;  %v1349_v36 = vmax.f32 %v1220_v33, %v1317_v14  ;;  %4063 = vmatmul.msk.f32.gmra.mxu2 %vm1482_vm9, %v8838_v27 }
 0x23f   : > { %v1954_v41 = vmax.f32 %v1924_v63, %v6713_v51  ;;  %v2965_v62 = vrot.slane %v2907_v17, 6  ;;  %v3093_v9 = vrot.slane %v2907_v17, 7  ;;  %v3221_v45 = vrot.slane %v2907_v17, 1 }
 0x240   : > { %v2981_v48 = vrot.slane %v2908_v12, 6  ;;  %v3109_v61 = vrot.slane %v2908_v12, 7  ;;  %v3237_v1 = vrot.slane %v2908_v12, 1  ;;  %v3349_v29 = vrot.slane %v2907_v17, 2 }
 0x241   : > { %v3365_v34 = vrot.slane %v2908_v12, 2  ;;  %v7065_v14 = vmax.f32 %v1349_v36, %v1446_v49  ;;  %v1984_v33 = vmax.f32 %v1954_v41, %v6883_v39 }
 0x242   : > { %v3013_v37 = vsel %vm997_vm1, %v2981_v48, %v2965_v62  ;;  %v3141_v16 = vsel %vm1126_vm3, %v3109_v61, %v3093_v9  ;;  %v3253_v55 = vsel %vm1255_vm6, %v3221_v45, %v3237_v1  ;;  %v2997_v36 = vsel %vm997_vm1, %v2965_v62, %v2981_v48 }
 0x243   : > { %v3035_v63 = vsel %vm782_vm2, %v3013_v37, -3.4028235e+38  ;;  %v3163_v27 = vsel %vm790_vm4, %v3141_v16, -3.4028235e+38  ;;  %v3381_v21 = vsel %vm1384_vm7, %v3349_v29, %v3365_v34  ;;  %4052 = vmatmul.msk.f32.gmra.mxu3 %vm1482_vm9, %v7065_v14  ;;  %v2014_v49 = vmax.f32 %v1984_v33, %v7065_v14 }
 0x244   : > { %v3067_v57 = vmax.f32 %v2907_v17, %v3035_v63  ;;  %v3125_v41 = vsel %vm1126_vm3, %v3093_v9, %v3109_v61  ;;  %v3068_v37 = vmax.f32 %v2908_v12, %v2997_v36  ;;  %v3269_v16 = vsel %vm1255_vm6, %v3237_v1, %v3221_v45  ;;  %v8839_v45 = vld [vmem:[#allocation26_spill] sm:$0xff] }
 0x245   : > { %v3397_v18 = vsel %vm1384_vm7, %v3365_v34, %v3349_v29  ;;  %v1029_v17 = vsel %vm997_vm1, %v996_v31, %v980_v43  ;;  %v2081_v63 = vrot.slane %v2014_v49, 6  ;;  %v2209_v62 = vrot.slane %v2014_v49, 7 }
 0x246   : > { %v3195_v33 = vmax.f32 %v3067_v57, %v3163_v27  ;;  %v2337_v48 = vrot.slane %v2014_v49, 1  ;;  %v2465_v52 = vrot.slane %v2014_v49, 2  ;;  %v3196_v9 = vmax.f32 %v3068_v37, %v3125_v41  ;;  %4064 = vmatmul.msk.f32.gmra.mxu2 %vm1482_vm9, %v8839_v45 }
 0x247   : > { %v3292_v12 = vsel %vm801_vm5, %v3269_v16, -3.4028235e+38  ;;  %v3420_v61 = vsel %vm809_vm8, %v3397_v18, -3.4028235e+38  ;;  %v8840_v29 = vrot.slane %v6992_v46, 6  ;;  %v8842_v36 = vrot.slane %v6992_v46, 7 }
 0x248   : > { %v3323_v1 = vmax.f32 %v3195_v33, %v3253_v55  ;;  %v8844_v33 = vrot.slane %v6992_v46, 1 }
 0x249   : > { %v2097_v57 = vsel %vm997_vm1, %v8840_v29, %v2081_v63  ;;  %v8841_v34 = vmov %v8840_v29  ;;  %v2225_v41 = vsel %vm1126_vm3, %v8842_v36, %v2209_v62  ;;  %v8843_v55 = vmov %v8842_v36 }
 0x24a   : > { %v2113_v27 = vsel %vm997_vm1, %v2081_v63, %v8841_v34  ;;  %v2174_v37 = vmax.f32 %v2014_v49, %v2097_v57  ;;  %v2241_v16 = vsel %vm1126_vm3, %v2209_v62, %v8843_v55  ;;  %v2353_v45 = vsel %vm1255_vm6, %v8844_v33, %v2337_v48 }
 0x24b   : > { %v2141_v18 = vsel %vm782_vm2, %v2113_v27, -3.4028235e+38  ;;  %v3451_v63 = vmax.f32 %v3323_v1, %v3381_v21  ;;  %v2269_v34 = vsel %vm790_vm4, %v2241_v16, -3.4028235e+38  ;;  %v8845_v36 = vmov %v8844_v33 }
 0x24c   : > { %v2173_v29 = vmax.f32 %v6992_v46, %v2141_v18  ;;  %v2369_v49 = vsel %vm1255_vm6, %v2337_v48, %v8845_v36  ;;  %v2302_v57 = vmax.f32 %v2174_v37, %v2225_v41  ;;  %v8846_v27 = vrot.slane %v6992_v46, 2 }
 0x24d   : > { %v2398_v62 = vsel %vm801_vm5, %v2369_v49, -3.4028235e+38  ;;  %4131 = vmatmul.msk.f32.gmra.mxu1 %vm1482_vm9, %v3451_v63  ;;  %v3324_v41 = vmax.f32 %v3196_v9, %v3292_v12  ;;  %v1060_v37 = vsel %vm782_vm2, %v1029_v17, -3.4028235e+38  ;;  %v8848_v36 = vrot.slane %v6488_v35, 7 }
 0x24e   : > { %v2481_v55 = vsel %vm1384_vm7, %v8846_v27, %v2465_v52  ;;  %v8847_v21 = vmov %v8846_v27  ;;  %v2301_v18 = vmax.f32 %v2173_v29, %v2269_v34  ;;  %v2430_v16 = vmax.f32 %v2302_v57, %v2398_v62 }
 0x24f   : > { %v2497_v1 = vsel %vm1384_vm7, %v2465_v52, %v8847_v21  ;;  %v1092_v33 = vmax.f32 %v6488_v35, %v1060_v37  ;;  %v8849_v46 = vrot.slane %v6605_v26, 7  ;;  %v1254_v63 = vrot.slane %v6605_v26, 1  ;;  %v8851_v21 = vld [vmem:[#allocation27_spill] sm:$0xff] }
 0x250   : > { %v2526_v48 = vsel %vm809_vm8, %v2497_v1, -3.4028235e+38  ;;  %v2429_v29 = vmax.f32 %v2301_v18, %v2353_v45  ;;  %v3452_v34 = vmax.f32 %v3324_v41, %v3420_v61  ;;  %v1367_v12 = vrot.slane %v6488_v35, 2  ;;  %4065 = vmatmul.msk.f32.gmra.mxu2 %vm1482_vm9, %v8851_v21 }
 0x251   : > { %v1158_v52 = vsel %vm1126_vm3, %v8849_v46, %v8848_v36  ;;  %v7154_v17 = vmax.f32 %v2430_v16, %v2526_v48  ;;  %v8850_v57 = vrot.slane %v6488_v35, 1  ;;  %v1383_v27 = vrot.slane %v6605_v26, 2 }
 0x252   : > { %v1189_v9 = vsel %vm790_vm4, %v1158_v52, -3.4028235e+38  ;;  %v7165_v61 = vmax.f32 %v2429_v29, %v2481_v55  ;;  %v1925_v45 = vmax.f32 %v6374_v47, %v6611_v58  ;;  %v1927_v1 = vmax.f32 %v6611_v58, %v6785_v25 }
 0x253   : > { %v1221_v49 = vmax.f32 %v1092_v33, %v1189_v9  ;;  %v1271_v62 = vsel %vm1255_vm6, %v8850_v57, %v1254_v63  ;;  %v1929_v18 = vmax.f32 %v6785_v25, %v6981_v5  ;;  %v1400_v41 = vsel %vm1384_vm7, %v1367_v12, %v1383_v27 }
 0x254   : > { %v8852_v55 = vrot.slane %v6521_v56, 6  ;;  %v8853_v37 = vrot.slane %v6402_v32, 6  ;;  %v1955_v36 = vmax.f32 %v1925_v45, %v6785_v25  ;;  %v1957_v46 = vmax.f32 %v1927_v1, %v6981_v5 }
 0x255   : > { %v1350_v48 = vmax.f32 %v1221_v49, %v1271_v62  ;;  %v8856_v57 = vrot.slane %v6521_v56, 7  ;;  %v8857_v62 = vrot.slane %v6402_v32, 7  ;;  %4132 = vmatmul.msk.f32.gmra.mxu1 %vm1482_vm9, %v3452_v34  ;;  %v2462_v34 = vrot.slane %v6521_v56, 2 }
 0x256   : > { %v2094_v47 = vsel %vm997_vm1, %v8853_v37, %v8852_v55  ;;  %v8854_v58 = vmov %v8853_v37  ;;  %v8855_v16 = vmov %v8852_v55  ;;  %v1985_v1 = vmax.f32 %v1955_v36, %v6981_v5 }
 0x257   : > { %v2110_v33 = vsel %vm997_vm1, %v8855_v16, %v8854_v58  ;;  %v2168_v29 = vmax.f32 %v6521_v56, %v2094_v47  ;;  %v1479_v9 = vmax.f32 %v1350_v48, %v1400_v41  ;;  %v2222_v21 = vsel %vm1126_vm3, %v8857_v62, %v8856_v57 }
 0x258   : > { %v2135_v52 = vsel %vm782_vm2, %v2110_v33, -3.4028235e+38  ;;  %v8858_v55 = vmov %v8857_v62  ;;  %v8859_v25 = vmov %v8856_v57  ;;  %v2318_v37 = vrot.slane %v6402_v32, 1 }
 0x259   : > { %v2167_v49 = vmax.f32 %v6402_v32, %v2135_v52  ;;  %v2238_v45 = vsel %vm1126_vm3, %v8859_v25, %v8858_v55  ;;  %v2296_v41 = vmax.f32 %v2168_v29, %v2222_v21  ;;  %4053 = vmatmul.msk.f32.gmra.mxu3 %vm1482_vm9, %v1479_v9  ;;  %v1959_v47 = vmax.f32 %v1929_v18, %v1479_v9 }
 0x25a   : > { %v2263_v48 = vsel %vm790_vm4, %v2238_v45, -3.4028235e+38  ;;  %v1987_v58 = vmax.f32 %v1957_v46, %v1479_v9  ;;  %v2334_v33 = vrot.slane %v6521_v56, 1  ;;  %v7216_v52 = vmax.f32 %v1985_v1, %v1479_v9  ;;  %v8860_v46 = vld [vmem:[#allocation28_spill] sm:$0xff] }
 0x25b   : > { %v2295_v16 = vmax.f32 %v2167_v49, %v2263_v48  ;;  %v2446_v57 = vrot.slane %v6402_v32, 2  ;;  %v2819_v5 = vmax.f32 %v6406_v0, %v6648_v50  ;;  %v1989_v36 = vmax.f32 %v1959_v47, -3.4028235e+38  ;;  %4066 = vmatmul.msk.f32.gmra.mxu2 %vm1482_vm9, %v8860_v46 }
 0x25c   : > { %v7222_v29 = vmax.f32 %v1987_v58, -3.4028235e+38  ;;  %v2350_v62 = vsel %vm1255_vm6, %v2318_v37, %v2334_v33  ;;  %v2366_v18 = vsel %vm1255_vm6, %v2334_v33, %v2318_v37  ;;  %v2066_v9 = vrot.slane %v7216_v52, 6  ;;  %v7355_v33 = vpop.f32.mrf.mxu1 }
 0x25d   : > { %v8554_v32 = vrot.slane %v7216_v52, 7  ;;  %v7234_v21 = vmax.f32 %v1989_v36, -3.4028235e+38  ;;  %v2392_v48 = vsel %vm801_vm5, %v2366_v18, -3.4028235e+38  ;;  %v2423_v37 = vmax.f32 %v2295_v16, %v2350_v62  ;;  %8870 = vst [vmem:[#allocation51_spill] sm:$0xff] %v7355_v33 }
 0x25e   : > { %v2067_v55 = vrot.slane %v7222_v29, 6  ;;  %v2478_v47 = vsel %vm1384_vm7, %v2446_v57, %v2462_v34  ;;  %v2424_v49 = vmax.f32 %v2296_v41, %v2392_v48  ;;  %v2494_v45 = vsel %vm1384_vm7, %v2462_v34, %v2446_v57 }
 0x25f   : > { %v7250_v1 = vmax.f32 %v2423_v37, %v2478_v47  ;;  %v2820_v16 = vmax.f32 %v6412_v7, %v6652_v38  ;;  %v2520_v62 = vsel %vm809_vm8, %v2494_v45, -3.4028235e+38  ;;  %v2849_v18 = vmax.f32 %v2819_v5, %v6838_v42 }
 0x260   : > { %v1013_v41 = vsel %vm997_vm1, %v980_v43, %v996_v31  ;;  %v8861_v48 = vrot.slane %v6605_v26, 7  ;;  %v8862_v57 = vrot.slane %v6488_v35, 7  ;;  %v7269_v37 = vmax.f32 %v2424_v49, %v2520_v62  ;;  %v8864_v62 = vld [vmem:[#allocation29_spill] sm:$0xff] }
 0x261   : > { %v2850_v45 = vmax.f32 %v2820_v16, %v6854_v22  ;;  %v1093_v5 = vmax.f32 %v6605_v26, %v1013_v41  ;;  %v8863_v47 = vrot.slane %v6488_v35, 1  ;;  %v2879_v31 = vmax.f32 %v2849_v18, %v7032_v6 }
 0x262   : > { %v1142_v34 = vsel %vm1126_vm3, %v8862_v57, %v8861_v48  ;;  %v1416_v49 = vsel %vm1384_vm7, %v1383_v27, %v1367_v12  ;;  %v1926_v16 = vmax.f32 %v6494_v28, %v6713_v51  ;;  %v1928_v35 = vmax.f32 %v6713_v51, %v6883_v39 }
 0x263   : > { %v1287_v43 = vsel %vm1255_vm6, %v1254_v63, %v8863_v47  ;;  %4067 = vmatmul.msk.f32.gmra.mxu2 %vm1482_vm9, %v8864_v62  ;;  %v2880_v63 = vmax.f32 %v2850_v45, %v7041_v19  ;;  %v1222_v41 = vmax.f32 %v1093_v5, %v1142_v34  ;;  %v1448_v18 = vsel %vm809_vm8, %v1416_v49, -3.4028235e+38 }
 0x264   : > { %v1319_v46 = vsel %vm801_vm5, %v1287_v43, -3.4028235e+38  ;;  %v7298_v26 = vmax.f32 %v2879_v31, %v7250_v1  ;;  %v1930_v12 = vmax.f32 %v6883_v39, %v7065_v14  ;;  %v1956_v28 = vmax.f32 %v1926_v16, %v6883_v39 }
 0x265   : > { %v8865_v27 = vrot.slane %v6631_v60, 6  ;;  %v8866_v48 = vrot.slane %v6729_v20, 6  ;;  %v7310_v34 = vmax.f32 %v2880_v63, %v7269_v37  ;;  %v1351_v45 = vmax.f32 %v1222_v41, %v1319_v46 }
 0x266   : > { %v1958_v51 = vmax.f32 %v1928_v35, %v7065_v14  ;;  %v2966_v47 = vrot.slane %v7298_v26, 6  ;;  %v3094_v39 = vrot.slane %v7298_v26, 7  ;;  %v3222_v43 = vrot.slane %v7298_v26, 1  ;;  %v8869_v35 = vld [vmem:[#allocation31_spill] sm:$0xff] }
 0x267   : > { %v2111_v57 = vsel %vm997_vm1, %v8866_v48, %v8865_v27  ;;  %v8553_v31 = vrot.slane %v7298_v26, 2  ;;  %v2982_v49 = vrot.slane %v7310_v34, 6  ;;  %v3110_v16 = vrot.slane %v7310_v34, 7 }
 0x268   : > { %v7315_v5 = vsel %vm782_vm2, %v2111_v57, -3.4028235e+38  ;;  %v3238_v46 = vrot.slane %v7310_v34, 1  ;;  %v8552_v62 = vrot.slane %v7310_v34, 2  ;;  %v1480_v63 = vmax.f32 %v1351_v45, %v1448_v18 }
 0x269   : > { %v1986_v41 = vmax.f32 %v1956_v28, %v7065_v14  ;;  %v8867_v27 = vrot.slane %v6729_v20, 7  ;;  %v8868_v48 = vrot.slane %v6631_v60, 7  ;;  %v3014_v36 = vsel %vm997_vm1, %v2982_v49, %v2966_v47 }
 0x26a   : > { %v3142_v56 = vsel %vm1126_vm3, %v3110_v16, %v3094_v39  ;;  %v3254_v14 = vsel %vm1255_vm6, %v3222_v43, %v3238_v46  ;;  %v3382_v18 = vsel %vm1384_vm7, %v8553_v31, %v8552_v62  ;;  %v3037_v28 = vsel %vm782_vm2, %v3014_v36, -3.4028235e+38  ;;  %4054 = vmatmul.msk.f32.gmra.mxu3 %vm1482_vm9, %v1480_v63 }
 0x26b   : > { %v7334_v57 = vsel %vm1126_vm3, %v8868_v48, %v8867_v27  ;;  %v3165_v45 = vsel %vm790_vm4, %v3142_v56, -3.4028235e+38  ;;  %v1960_v27 = vmax.f32 %v1930_v12, %v1480_v63  ;;  %v1988_v48 = vmax.f32 %v1958_v51, %v1480_v63  ;;  %4068 = vmatmul.msk.f32.gmra.mxu2 %vm1482_vm9, %v8869_v35 }
 0x26c   : > { %v3069_v25 = vmax.f32 %v7298_v26, %v3037_v28  ;;  %v7358_v58 = vmax.f32 %v1986_v41, %v1480_v63  ;;  %v7362_v62 = vsel %vm997_vm1, %v2966_v47, %v2982_v49  ;;  %v7366_v56 = vsel %vm1126_vm3, %v3094_v39, %v3110_v16 }
 0x26d   : > { %v1990_v36 = vmax.f32 %v1960_v27, -3.4028235e+38  ;;  %v7368_v12 = vmax.f32 %v1988_v48, -3.4028235e+38  ;;  %v7374_v35 = vsel %vm1255_vm6, %v3238_v46, %v3222_v43 }
 0x26e   : > { %v3197_v63 = vmax.f32 %v3069_v25, %v3165_v45  ;;  %v2082_v41 = vrot.slane %v7358_v58, 6  ;;  %v2210_v47 = vrot.slane %v7358_v58, 7  ;;  %v2338_v49 = vrot.slane %v7358_v58, 1 }
 0x26f   : > { %v7379_v28 = vmax.f32 %v1990_v36, -3.4028235e+38  ;;  %v2083_v39 = vrot.slane %v7368_v12, 6  ;;  %v2211_v16 = vrot.slane %v7368_v12, 7  ;;  %v2339_v27 = vrot.slane %v7368_v12, 1 }
 0x270   : > { %v3325_v48 = vmax.f32 %v3197_v63, %v3254_v14  ;;  %v2098_v25 = vsel %vm997_vm1, %v2066_v9, %v2082_v41  ;;  %v2114_v43 = vsel %vm997_vm1, %v2082_v41, %v2066_v9  ;;  %v2226_v46 = vsel %vm1126_vm3, %v8554_v32, %v2210_v47 }
 0x271   : > { %v2084_v45 = vrot.slane %v7379_v28, 6  ;;  %v2099_v14 = vsel %vm997_vm1, %v2067_v55, %v2083_v39  ;;  %v2115_v36 = vsel %vm997_vm1, %v2083_v39, %v2067_v55  ;;  %v2143_v9 = vsel %vm782_vm2, %v2114_v43, -3.4028235e+38 }
 0x272   : > { %v3453_v63 = vmax.f32 %v3325_v48, %v3382_v18  ;;  %v2145_v41 = vsel %vm782_vm2, %v2115_v36, -3.4028235e+38  ;;  %v2175_v31 = vmax.f32 %v7216_v52, %v2143_v9  ;;  %v2176_v51 = vmax.f32 %v7358_v58, %v2098_v25  ;;  %4087 = vmatmul.msk.f32.vlgmr.msrb.gmra.mxu3 %vm1482_vm9, %v5772_v30 }
 0x273   : > { %v8871_v32 = vrot.slane %v7234_v21, 6  ;;  %v2177_v39 = vmax.f32 %v7222_v29, %v2145_v41  ;;  %v2178_v18 = vmax.f32 %v7368_v12, %v2099_v14  ;;  %v8873_v43 = vrot.slane %v7222_v29, 7  ;;  %v7443_v41 = vpop.f32.mrf.mxu1 }
 0x274   : > { %4133 = vmatmul.msk.f32.gmra.mxu1 %vm1482_vm9, %v3453_v63  ;;  %v8875_v30 = vrot.slane %v7216_v52, 7  ;;  %v2304_v63 = vmax.f32 %v2176_v51, %v2226_v46  ;;  %8877 = vst [vmem:[#allocation33_spill] sm:$0xff] %v7443_v41  ;;  %v2340_v0 = vrot.slane %v7379_v28, 1 }
 0x275   : > { %v2100_v33 = vsel %vm997_vm1, %v8871_v32, %v2084_v45  ;;  %v8872_v7 = vmov %v8871_v32  ;;  %v2212_v32 = vrot.slane %v7379_v28, 7  ;;  %v8876_v9 = vmov %v8873_v43 }
 0x276   : > { %v2116_v55 = vsel %vm997_vm1, %v2084_v45, %v8872_v7  ;;  %v2180_v25 = vmax.f32 %v7379_v28, %v2100_v33  ;;  %v2227_v7 = vsel %vm1126_vm3, %v8873_v43, %v2211_v16  ;;  %v8874_v45 = vld [vmem:[#allocation34_spill] sm:$0xff]  ;;  %v2242_v36 = vsel %vm1126_vm3, %v2210_v47, %v8875_v30 }
 0x277   : > { %v2147_v48 = vsel %vm782_vm2, %v2116_v55, -3.4028235e+38  ;;  %4069 = vmatmul.msk.f32.gmra.mxu2 %vm1482_vm9, %v8874_v45  ;;  %v2243_v33 = vsel %vm1126_vm3, %v2211_v16, %v8876_v9  ;;  %v8878_v55 = vrot.slane %v7234_v21, 7  ;;  %v2271_v47 = vsel %vm790_vm4, %v2242_v36, -3.4028235e+38 }
 0x278   : > { %v2179_v14 = vmax.f32 %v7234_v21, %v2147_v48  ;;  %v2273_v30 = vsel %vm790_vm4, %v2243_v33, -3.4028235e+38  ;;  %v2303_v16 = vmax.f32 %v2175_v31, %v2271_v47  ;;  %v2306_v9 = vmax.f32 %v2178_v18, %v2227_v7 }
 0x279   : > { %v2228_v43 = vsel %vm1126_vm3, %v8878_v55, %v2212_v32  ;;  %v8879_v48 = vmov %v8878_v55  ;;  %v2305_v46 = vmax.f32 %v2177_v39, %v2273_v30  ;;  %v8882_v33 = vrot.slane %v7222_v29, 1 }
 0x27a   : > { %v2244_v45 = vsel %vm1126_vm3, %v2212_v32, %v8879_v48  ;;  %v7461_v55 = vmax.f32 %v2180_v25, %v2228_v43  ;;  %v8880_v32 = vrot.slane %v7216_v52, 1  ;;  %v7468_v48 = vpop.f32.mrf.mxu2  ;;  %v8885_v43 = vrot.slane %v7234_v21, 1  ;;  %4088 = vmatmul.msk.f32.gmra.mxu3 %vm1482_vm9, %v5782_v53 }
 0x27b   : > { %v2275_v51 = vsel %vm790_vm4, %v2244_v45, -3.4028235e+38  ;;  %8881 = vst [vmem:[#allocation18_spill] sm:$0xff] %v7468_v48  ;;  %v2355_v31 = vsel %vm1255_vm6, %v8882_v33, %v2339_v27  ;;  %v8884_v25 = vmov %v8882_v33 }
 0x27c   : > { %v7459_v41 = vmax.f32 %v2179_v14, %v2275_v51  ;;  %v2354_v36 = vsel %vm1255_vm6, %v8880_v32, %v2338_v49  ;;  %v8883_v39 = vmov %v8880_v32  ;;  %v2371_v7 = vsel %vm1255_vm6, %v2339_v27, %v8884_v25  ;;  %v8887_v25 = vld [vmem:[#allocation36_spill] sm:$0xff] }
 0x27d   : > { %v2370_v18 = vsel %vm1255_vm6, %v2338_v49, %v8883_v39  ;;  %v2431_v14 = vmax.f32 %v2303_v16, %v2354_v36  ;;  %v7486_v45 = vsel %vm1255_vm6, %v8885_v43, %v2340_v0  ;;  %v8886_v47 = vmov %v8885_v43 }
 0x27e   : > { %v2372_v30 = vsel %vm1255_vm6, %v2340_v0, %v8886_v47  ;;  %v2400_v49 = vsel %vm801_vm5, %v2370_v18, -3.4028235e+38  ;;  %v2402_v51 = vsel %vm801_vm5, %v2371_v7, -3.4028235e+38  ;;  %v2433_v32 = vmax.f32 %v2305_v46, %v2355_v31 }
 0x27f   : > { %v7498_v27 = vsel %vm801_vm5, %v2372_v30, -3.4028235e+38  ;;  %v2432_v16 = vmax.f32 %v2304_v63, %v2400_v49  ;;  %v2434_v36 = vmax.f32 %v2306_v9, %v2402_v51  ;;  %v2466_v39 = vrot.slane %v7358_v58, 2  ;;  %4070 = vmatmul.msk.f32.gmra.mxu2 %vm1482_vm9, %v8887_v25 }
 0x280   : > { %v2467_v18 = vrot.slane %v7368_v12, 2  ;;  %v2468_v63 = vrot.slane %v7379_v28, 2  ;;  %v8888_v46 = vmax.f32 %v7310_v34, %v7362_v62  ;;  %v3294_v9 = vsel %vm801_vm5, %v7374_v35, -3.4028235e+38 }
 0x281   : > { %v8889_v31 = vrot.slane %v7298_v26, 2  ;;  %v8890_v58 = vrot.slane %v7310_v34, 2  ;;  %v8891_v7 = vrot.slane %v7216_v52, 2  ;;  %v8892_v43 = vrot.slane %v7222_v29, 2 }
 0x282   : > { %v3198_v53 = vmax.f32 %v8888_v46, %v7366_v56  ;;  %v8895_v47 = vrot.slane %v7234_v21, 2  ;;  %v7566_v21 = vpop.f32.mrf.mxu2 }
 0x283   : > { %v3398_v12 = vsel %vm1384_vm7, %v8890_v58, %v8889_v31  ;;  %v2482_v28 = vsel %vm1384_vm7, %v8891_v7, %v2466_v39  ;;  %v2483_v62 = vsel %vm1384_vm7, %v8892_v43, %v2467_v18  ;;  %v8893_v56 = vmov %v8891_v7  ;;  %8897 = vst [vmem:[#allocation17_spill] sm:$0xff] %v7566_v21 }
 0x284   : > { %v2498_v26 = vsel %vm1384_vm7, %v2466_v39, %v8893_v56  ;;  %v8894_v34 = vmov %v8892_v43  ;;  %v7544_v30 = vsel %vm1384_vm7, %v8895_v47, %v2468_v63  ;;  %v8896_v49 = vmov %v8895_v47  ;;  %v7556_v39 = vpop.f32.mrf.mxu1 }
 0x285   : > { %v2499_v35 = vsel %vm1384_vm7, %v2467_v18, %v8894_v34  ;;  %v7550_v51 = vsel %vm1384_vm7, %v2468_v63, %v8896_v49  ;;  %v2528_v52 = vsel %vm809_vm8, %v2498_v26, -3.4028235e+38  ;;  %v7558_v18 = vmax.f32 %v2431_v14, %v2482_v28 }
 0x286   : > { %v2530_v29 = vsel %vm809_vm8, %v2499_v35, -3.4028235e+38  ;;  %v7560_v25 = vmax.f32 %v2432_v16, %v2528_v52  ;;  %v7562_v46 = vmax.f32 %v2433_v32, %v2483_v62  ;;  %v3326_v63 = vmax.f32 %v3198_v53, %v3294_v9 }
 0x287   : > { %v7564_v31 = vmax.f32 %v2434_v36, %v2530_v29  ;;  %v3422_v58 = vsel %vm809_vm8, %v3398_v12, -3.4028235e+38  ;;  %v8898_v7 = vrot.slane %v6631_v60, 7  ;;  %v8899_v43 = vrot.slane %v6729_v20, 7 }
 0x288   : > { %v8900_v16 = vmax.f32 %v6729_v20, %v6754_v8  ;;  %v8901_v53 = vrot.slane %v6729_v20, 1  ;;  %v8902_v9 = vrot.slane %v6631_v60, 1  ;;  %v8905_v8 = vrot.slane %v6729_v20, 2 }
 0x289   : > { %v2239_v14 = vsel %vm1126_vm3, %v8899_v43, %v8898_v7  ;;  %v3454_v34 = vmax.f32 %v3326_v63, %v3422_v58  ;;  %v8907_v35 = vmax.f32 %v6631_v60, %v7315_v5  ;;  %v8910_v43 = vld [vmem:[#allocation35_spill] sm:$0xff]  ;;  %v2821_v5 = vmax.f32 %v6648_v50, %v6838_v42 }
 0x28a   : > { %v2298_v32 = vmax.f32 %v8900_v16, %v7334_v57  ;;  %v2265_v36 = vsel %vm790_vm4, %v2239_v14, -3.4028235e+38  ;;  %v2351_v12 = vsel %vm1255_vm6, %v8902_v9, %v8901_v53  ;;  %v8903_v28 = vmov %v8902_v9  ;;  %4089 = vmatmul.msk.f32.gmra.mxu3 %vm1482_vm9, %v8910_v43  ;;  %v8911_v16 = vld [vmem:[#allocation37_spill] sm:$0xff] }
 0x28b   : > { %v8904_v62 = vmov %v8901_v53  ;;  %v8906_v57 = vrot.slane %v6631_v60, 2  ;;  %v2297_v47 = vmax.f32 %v8907_v35, %v2265_v36  ;;  %v8909_v29 = vmov %v8905_v8  ;;  %4071 = vmatmul.msk.f32.gmra.mxu2 %vm1482_vm9, %v8911_v16  ;;  %4134 = vmatmul.msk.f32.gmra.mxu1 %vm1482_vm9, %v3454_v34 }
 0x28c   : > { %v2367_v56 = vsel %vm1255_vm6, %v8904_v62, %v8903_v28  ;;  %v2822_v58 = vmax.f32 %v6652_v38, %v6854_v22  ;;  %v8912_v20 = vrot.slane %v6805_v54, 6  ;;  %v8913_v36 = vrot.slane %v6901_v40, 6 }
 0x28d   : > { %v2479_v26 = vsel %vm1384_vm7, %v8906_v57, %v8905_v8  ;;  %v2394_v49 = vsel %vm801_vm5, %v2367_v56, -3.4028235e+38  ;;  %v8908_v52 = vmov %v8906_v57  ;;  %v2425_v60 = vmax.f32 %v2297_v47, %v2351_v12 }
 0x28e   : > { %v2495_v7 = vsel %vm1384_vm7, %v8909_v29, %v8908_v52  ;;  %v2426_v14 = vmax.f32 %v2298_v32, %v2394_v49  ;;  %v2112_v32 = vsel %vm997_vm1, %v8913_v36, %v8912_v20  ;;  %v8914_v53 = vrot.slane %v6901_v40, 7 }
 0x28f   : > { %v2522_v63 = vsel %vm809_vm8, %v2495_v7, -3.4028235e+38  ;;  %v8915_v9 = vrot.slane %v6805_v54, 7  ;;  %v2851_v57 = vmax.f32 %v2821_v5, %v7032_v6  ;;  %v2852_v34 = vmax.f32 %v2822_v58, %v7041_v19 }
 0x290   : > { %v8917_v56 = vmov %v8914_v53  ;;  %v7640_v8 = vmax.f32 %v2426_v14, %v2522_v63  ;;  %v2139_v35 = vsel %vm782_vm2, %v2112_v32, -3.4028235e+38  ;;  %v7646_v47 = vmax.f32 %v2425_v60, %v2479_v26 }
 0x291   : > { %v2224_v28 = vsel %vm1126_vm3, %v8915_v9, %v8914_v53  ;;  %v8916_v62 = vmov %v8915_v9  ;;  %v2171_v49 = vmax.f32 %v6805_v54, %v2139_v35  ;;  %v8918_v29 = vmax.f32 %v6901_v40, %v6931_v44  ;;  %v7668_v44 = vpop.f32.mrf.mxu2 }
 0x292   : > { %v2240_v12 = vsel %vm1126_vm3, %v8917_v56, %v8916_v62  ;;  %v2881_v43 = vmax.f32 %v2851_v57, %v7250_v1  ;;  %v2882_v14 = vmax.f32 %v2852_v34, %v7269_v37  ;;  %v8919_v63 = vrot.slane %v6901_v40, 1  ;;  %8923 = vst [vmem:[#allocation20_spill] sm:$0xff] %v7668_v44 }
 0x293   : > { %v2267_v52 = vsel %vm790_vm4, %v2240_v12, -3.4028235e+38  ;;  %v2300_v7 = vmax.f32 %v8918_v29, %v2224_v28  ;;  %v8920_v5 = vrot.slane %v6805_v54, 1  ;;  %v8924_v32 = vrot.slane %v6901_v40, 2  ;;  %v7684_v12 = vpop.f32.mrf.mxu1 }
 0x294   : > { %v8922_v16 = vmov %v8919_v63  ;;  %v2299_v20 = vmax.f32 %v2171_v49, %v2267_v52  ;;  %v8925_v53 = vrot.slane %v6805_v54, 2  ;;  %v2911_v57 = vmax.f32 %v2881_v43, %v7646_v47  ;;  %v8928_v52 = vld [vmem:[#allocation32_spill] sm:$0xff] }
 0x295   : > { %v2352_v26 = vsel %vm1255_vm6, %v8920_v5, %v8919_v63  ;;  %v8921_v58 = vmov %v8920_v5  ;;  %v8927_v62 = vmov %v8924_v32  ;;  %v2912_v34 = vmax.f32 %v2882_v14, %v7640_v8  ;;  %4090 = vmatmul.msk.f32.gmra.mxu3 %vm1482_vm9, %v8928_v52 }
 0x296   : > { %v2368_v60 = vsel %vm1255_vm6, %v8922_v16, %v8921_v58  ;;  %v2480_v9 = vsel %vm1384_vm7, %v8925_v53, %v8924_v32  ;;  %v8926_v28 = vmov %v8925_v53  ;;  %v2427_v49 = vmax.f32 %v2299_v20, %v2352_v26  ;;  %v8929_v58 = vld [vmem:[#allocation38_spill] sm:$0xff] }
 0x297   : > { %v2396_v36 = vsel %vm801_vm5, %v2368_v60, -3.4028235e+38  ;;  %v2496_v56 = vsel %vm1384_vm7, %v8927_v62, %v8926_v28  ;;  %v2967_v29 = vrot.slane %v2911_v57, 6  ;;  %v2983_v63 = vrot.slane %v2912_v34, 6  ;;  %4072 = vmatmul.msk.f32.gmra.mxu2 %vm1482_vm9, %v8929_v58 }
 0x298   : > { %v2428_v35 = vmax.f32 %v2300_v7, %v2396_v36  ;;  %v3095_v5 = vrot.slane %v2911_v57, 7  ;;  %v3111_v54 = vrot.slane %v2912_v34, 7  ;;  %v2524_v7 = vsel %vm809_vm8, %v2496_v56, -3.4028235e+38 }
 0x299   : > { %v3015_v40 = vsel %vm997_vm1, %v2983_v63, %v2967_v29  ;;  %v3223_v26 = vrot.slane %v2911_v57, 1  ;;  %v3239_v16 = vrot.slane %v2912_v34, 1  ;;  %v2999_v60 = vsel %vm997_vm1, %v2967_v29, %v2983_v63  ;;  %v7706_v28 = vpop.f32.mrf.mxu2 }
 0x29a   : > { %v3143_v43 = vsel %vm1126_vm3, %v3111_v54, %v3095_v5  ;;  %v3039_v14 = vsel %vm782_vm2, %v3015_v40, -3.4028235e+38  ;;  %v3351_v36 = vrot.slane %v2911_v57, 2  ;;  %v2823_v32 = vmax.f32 %v6838_v42, %v7032_v6  ;;  %8930 = vst [vmem:[#allocation54_spill] sm:$0xff] %v7706_v28 }
 0x29b   : > { %v3071_v20 = vmax.f32 %v2911_v57, %v3039_v14  ;;  %v2824_v53 = vmax.f32 %v6854_v22, %v7041_v19  ;;  %v3167_v62 = vsel %vm790_vm4, %v3143_v43, -3.4028235e+38  ;;  %v3367_v56 = vrot.slane %v2912_v34, 2  ;;  %v7722_v0 = vpop.f32.mrf.mxu1 }
 0x29c   : > { %v7710_v52 = vmax.f32 %v2427_v49, %v2480_v9  ;;  %v7712_v58 = vmax.f32 %v2428_v35, %v2524_v7  ;;  %v3072_v29 = vmax.f32 %v2912_v34, %v2999_v60  ;;  %v2853_v57 = vmax.f32 %v2823_v32, %v7250_v1  ;;  %v8931_v7 = vld [vmem:[#allocation40_spill] sm:$0xff] }
 0x29d   : > { %v3199_v40 = vmax.f32 %v3071_v20, %v3167_v62  ;;  %v2854_v63 = vmax.f32 %v2824_v53, %v7269_v37  ;;  %v3255_v14 = vsel %vm1255_vm6, %v3223_v26, %v3239_v16  ;;  %4091 = vmatmul.msk.f32.gmra.mxu3 %vm1482_vm9, %v5774_v59  ;;  %v2825_v43 = vmax.f32 %v7032_v6, %v7250_v1 }
 0x29e   : > { %v3127_v35 = vsel %vm1126_vm3, %v3095_v5, %v3111_v54  ;;  %v2883_v34 = vmax.f32 %v2853_v57, %v7646_v47  ;;  %v3383_v60 = vsel %vm1384_vm7, %v3351_v36, %v3367_v56  ;;  %v3271_v59 = vsel %vm1255_vm6, %v3239_v16, %v3223_v26 }
 0x29f   : > { %v3327_v9 = vmax.f32 %v3199_v40, %v3255_v14  ;;  %v2884_v49 = vmax.f32 %v2854_v63, %v7640_v8  ;;  %4073 = vmatmul.msk.f32.gmra.mxu2 %vm1482_vm9, %v8931_v7  ;;  %v2826_v20 = vmax.f32 %v7041_v19, %v7269_v37  ;;  %v2855_v32 = vmax.f32 %v2825_v43, %v7646_v47 }
 0x2a0   : > { %v3200_v5 = vmax.f32 %v3072_v29, %v3127_v35  ;;  %v2913_v54 = vmax.f32 %v2883_v34, %v7710_v52  ;;  %v3296_v43 = vsel %vm801_vm5, %v3271_v59, -3.4028235e+38  ;;  %v3399_v29 = vsel %vm1384_vm7, %v3367_v56, %v3351_v36  ;;  %v8933_v56 = vld [vmem:[#allocation41_spill] sm:$0xff] }
 0x2a1   : > { %v3455_v53 = vmax.f32 %v3327_v9, %v3383_v60  ;;  %v2914_v62 = vmax.f32 %v2884_v49, %v7712_v58  ;;  %v2856_v40 = vmax.f32 %v2826_v20, %v7640_v8  ;;  %v2885_v57 = vmax.f32 %v2855_v32, %v7710_v52  ;;  %v7742_v7 = vpop.f32.mrf.mxu2 }
 0x2a2   : > { %v2968_v63 = vrot.slane %v2913_v54, 6  ;;  %v3096_v26 = vrot.slane %v2913_v54, 7  ;;  %8932 = vst [vmem:[#allocation39_spill] sm:$0xff] %v7742_v7  ;;  %v3328_v35 = vmax.f32 %v3200_v5, %v3296_v43  ;;  %v3424_v59 = vsel %vm809_vm8, %v3399_v29, -3.4028235e+38 }
 0x2a3   : > { %4135 = vmatmul.msk.f32.gmra.mxu1 %vm1482_vm9, %v3455_v53  ;;  %v2984_v14 = vrot.slane %v2914_v62, 6  ;;  %v3112_v16 = vrot.slane %v2914_v62, 7  ;;  %v2886_v9 = vmax.f32 %v2856_v40, %v7712_v58  ;;  %v7760_v36 = vmax.f32 %v2885_v57, %v7165_v61  ;;  %v7769_v43 = vpop.f32.mrf.mxu1 }
 0x2a4   : > { %v3224_v53 = vrot.slane %v2913_v54, 1  ;;  %v3240_v5 = vrot.slane %v2914_v62, 1  ;;  %v3368_v33 = vrot.slane %v2914_v62, 2 }
 0x2a5   : > { %v3016_v34 = vsel %vm997_vm1, %v2984_v14, %v2968_v63  ;;  %v3144_v49 = vsel %vm1126_vm3, %v3112_v16, %v3096_v26  ;;  %4092 = vmatmul.msk.f32.gmra.mxu3 %vm1482_vm9, %v5791_v10  ;;  %v7767_v40 = vmax.f32 %v2886_v9, %v7154_v17  ;;  %v3456_v10 = vmax.f32 %v3328_v35, %v3424_v59 }
 0x2a6   : > { %v3041_v60 = vsel %vm782_vm2, %v3016_v34, -3.4028235e+38  ;;  %v3169_v32 = vsel %vm790_vm4, %v3144_v49, -3.4028235e+38  ;;  %v3000_v29 = vsel %vm997_vm1, %v2968_v63, %v2984_v14  ;;  %v2969_v57 = vrot.slane %v7760_v36, 6 }
 0x2a7   : > { %v3073_v20 = vmax.f32 %v2913_v54, %v3041_v60  ;;  %4074 = vmatmul.msk.f32.gmra.mxu2 %vm1482_vm9, %v8933_v56  ;;  %v2985_v60 = vrot.slane %v7767_v40, 6  ;;  %v3256_v49 = vsel %vm1255_vm6, %v3224_v53, %v3240_v5  ;;  %v3352_v9 = vrot.slane %v2913_v54, 2  ;;  %v8935_v54 = vld [vmem:[#allocation44_spill] sm:$0xff] }
 0x2a8   : > { %v3074_v28 = vmax.f32 %v2914_v62, %v3000_v29  ;;  %v2827_v35 = vmax.f32 %v7250_v1, %v7646_v47  ;;  %v2828_v63 = vmax.f32 %v7269_v37, %v7640_v8  ;;  %v3097_v29 = vrot.slane %v7760_v36, 7 }
 0x2a9   : > { %v3201_v34 = vmax.f32 %v3073_v20, %v3169_v32  ;;  %v7776_v56 = vpop.f32.mrf.mxu2  ;;  %v3017_v14 = vsel %vm997_vm1, %v2985_v60, %v2969_v57  ;;  %v3384_v62 = vsel %vm1384_vm7, %v3352_v9, %v3368_v33  ;;  %v3128_v32 = vsel %vm1126_vm3, %v3096_v26, %v3112_v16 }
 0x2aa   : > { %8934 = vst [vmem:[#allocation19_spill] sm:$0xff] %v7776_v56  ;;  %v2857_v59 = vmax.f32 %v2827_v35, %v7710_v52  ;;  %v2858_v20 = vmax.f32 %v2828_v63, %v7712_v58  ;;  %v3043_v35 = vsel %vm782_vm2, %v3017_v14, -3.4028235e+38  ;;  %v8953_v56 = vld [vmem:[#allocation53_spill] sm:$0xff] }
 0x2ab   : > { %4136 = vmatmul.msk.f32.gmra.mxu1 %vm1482_vm9, %v3456_v10  ;;  %v3329_v7 = vmax.f32 %v3201_v34, %v3256_v49  ;;  %v3272_v10 = vsel %vm1255_vm6, %v3240_v5, %v3224_v53  ;;  %v3202_v34 = vmax.f32 %v3074_v28, %v3128_v32  ;;  %v3113_v49 = vrot.slane %v7767_v40, 7  ;;  %v7802_v63 = vpop.f32.mrf.mxu1 }
 0x2ac   : > { %v2888_v26 = vmax.f32 %v2858_v20, %v7154_v17  ;;  %v3298_v28 = vsel %vm801_vm5, %v3272_v10, -3.4028235e+38  ;;  %v3075_v5 = vmax.f32 %v7760_v36, %v3043_v35  ;;  %v8937_v20 = vmax.f32 %v7459_v41, %v7486_v45 }
 0x2ad   : > { %4093 = vmatmul.msk.f32.gmra.mxu3 %vm1482_vm9, %v6002_v23  ;;  %v3457_v23 = vmax.f32 %v3329_v7, %v3384_v62  ;;  %v3400_v7 = vsel %vm1384_vm7, %v3368_v33, %v3352_v9  ;;  %v3330_v53 = vmax.f32 %v3202_v34, %v3298_v28  ;;  %v3145_v14 = vsel %vm1126_vm3, %v3113_v49, %v3097_v29 }
 0x2ae   : > { %v7825_v62 = vmax.f32 %v8937_v20, %v7544_v30  ;;  %v8938_v33 = vmax.f32 %v7461_v55, %v7498_v27  ;;  %v7836_v10 = vmax.f32 %v2888_v26, %v7560_v25  ;;  %v3171_v41 = vsel %vm790_vm4, %v3145_v14, -3.4028235e+38 }
 0x2af   : > { %4075 = vmatmul.msk.f32.gmra.mxu2 %vm1482_vm9, %v8935_v54  ;;  %v2887_v54 = vmax.f32 %v2857_v59, %v7165_v61  ;;  %v2532_v59 = vsel %vm809_vm8, %v7550_v51, -3.4028235e+38  ;;  %v8939_v51 = vld [vmem:[#allocation46_spill] sm:$0xff]  ;;  %v3225_v45 = vrot.slane %v7760_v36, 1  ;;  %v3241_v55 = vrot.slane %v7767_v40, 1 }
 0x2b0   : > { %v7830_v9 = vmax.f32 %v8938_v33, %v2532_v59  ;;  %v3203_v30 = vmax.f32 %v3075_v5, %v3171_v41  ;;  %v2986_v35 = vrot.slane %v7836_v10, 6  ;;  %v2829_v26 = vmax.f32 %v7646_v47, %v7710_v52 }
 0x2b1   : > { %v7807_v16 = vpop.f32.mrf.mxu2  ;;  %v7833_v32 = vmax.f32 %v2887_v54, %v7558_v18  ;;  %v2830_v28 = vmax.f32 %v7640_v8, %v7712_v58 }
 0x2b2   : > { %8936 = vst [vmem:[#allocation21_spill] sm:$0xff] %v7807_v16  ;;  %v2859_v20 = vmax.f32 %v2829_v26, %v7165_v61 }
 0x2b3   : > { %4137 = vmatmul.msk.f32.gmra.mxu1 %vm1482_vm9, %v3457_v23  ;;  %v3001_v23 = vsel %vm997_vm1, %v2969_v57, %v2985_v60  ;;  %v2970_v34 = vrot.slane %v7833_v32, 6  ;;  %v3369_v57 = vrot.slane %v7767_v40, 2  ;;  %v7861_v60 = vpop.f32.mrf.mxu1  ;;  %v2860_v33 = vmax.f32 %v2830_v28, %v7154_v17 }
 0x2b4   : > { %8941 = vst [vmem:[#allocation23_spill] sm:$0xff] %v7861_v60  ;;  %v3076_v14 = vmax.f32 %v7767_v40, %v3001_v23  ;;  %v3273_v40 = vsel %vm1255_vm6, %v3241_v55, %v3225_v45  ;;  %v2889_v26 = vmax.f32 %v2859_v20, %v7558_v18 }
 0x2b5   : > { %4094 = vmatmul.msk.f32.gmra.mxu3 %vm1482_vm9, %v6004_v3  ;;  %v3426_v3 = vsel %vm809_vm8, %v3400_v7, -3.4028235e+38  ;;  %v3257_v7 = vsel %vm1255_vm6, %v3225_v45, %v3241_v55  ;;  %v3018_v59 = vsel %vm997_vm1, %v2986_v35, %v2970_v34  ;;  %v2890_v28 = vmax.f32 %v2860_v33, %v7560_v25 }
 0x2b6   : > { %v3458_v27 = vmax.f32 %v3330_v53, %v3426_v3  ;;  %v3353_v53 = vrot.slane %v7760_v36, 2  ;;  %v3331_v5 = vmax.f32 %v3203_v30, %v3257_v7  ;;  %v3129_v3 = vsel %vm1126_vm3, %v3097_v29, %v3113_v49  ;;  %v7885_v7 = vpop.f32.mrf.mxu3 }
 0x2b7   : > { %4076 = vmatmul.msk.f32.gmra.mxu2 %vm1482_vm9, %v8939_v51  ;;  %v8942_v51 = vld [vmem:[#allocation49_spill] sm:$0xff]  ;;  %v3204_v41 = vmax.f32 %v3076_v14, %v3129_v3  ;;  %v3114_v30 = vrot.slane %v7836_v10, 7  ;;  %v3045_v23 = vsel %vm782_vm2, %v3018_v59, -3.4028235e+38  ;;  %8943 = vst [vmem:[#allocation24_spill] sm:$0xff] %v7885_v7  ;;  %v8944_v59 = vld [vmem:[#allocation43_spill] sm:$0xff]  ;;  %v7901_v33 = vmax.f32 %v2889_v26, %v7562_v46 }
 0x2b8   : > { %v3385_v36 = vsel %vm1384_vm7, %v3353_v53, %v3369_v57  ;;  %v3300_v49 = vsel %vm801_vm5, %v3273_v40, -3.4028235e+38  ;;  %v3401_v55 = vsel %vm1384_vm7, %v3369_v57, %v3353_v53  ;;  %v3226_v3 = vrot.slane %v7833_v32, 1  ;;  %v8948_v7 = vld [vmem:[#allocation50_spill] sm:$0xff] }
 0x2b9   : > { %v7851_v54 = vpop.f32.mrf.mxu2  ;;  %v3332_v45 = vmax.f32 %v3204_v41, %v3300_v49  ;;  %v3428_v53 = vsel %vm809_vm8, %v3401_v55, -3.4028235e+38  ;;  %v3242_v40 = vrot.slane %v7836_v10, 1  ;;  %v2971_v26 = vrot.slane %v7901_v33, 6 }
 0x2ba   : > { %8940 = vst [vmem:[#allocation22_spill] sm:$0xff] %v7851_v54 }
 0x2bb   : > { %4138 = vmatmul.msk.f32.gmra.mxu1 %vm1482_vm9, %v3458_v27  ;;  %v3098_v27 = vrot.slane %v7833_v32, 7  ;;  %v7898_v20 = vpop.f32.mrf.mxu1 }
 0x2bd   : > { %4095 = vmatmul.msk.f32.gmra.mxu3 %vm1482_vm9, %v6210_v11  ;;  %v3459_v11 = vmax.f32 %v3331_v5, %v3385_v36  ;;  %v3077_v5 = vmax.f32 %v7833_v32, %v3045_v23  ;;  %v3146_v14 = vsel %vm1126_vm3, %v3114_v30, %v3098_v27  ;;  %v8945_v36 = vld [vmem:[#allocation30_spill] sm:$0xff]  ;;  %v3002_v23 = vsel %vm997_vm1, %v2970_v34, %v2986_v35 }
 0x2be   : > { %v3173_v57 = vsel %vm790_vm4, %v3146_v14, -3.4028235e+38  ;;  %v7919_v49 = vpop.f32.mrf.mxu3  ;;  %v2831_v14 = vmax.f32 %v7710_v52, %v7165_v61  ;;  %v3354_v34 = vrot.slane %v7833_v32, 2  ;;  %v3370_v35 = vrot.slane %v7836_v10, 2 }
 0x2bf   : > { %4077 = vmatmul.msk.f32.gmra.mxu2 %vm1482_vm9, %v8942_v51  ;;  %v7904_v51 = vmax.f32 %v2890_v28, %v7564_v31  ;;  %v3205_v41 = vmax.f32 %v3077_v5, %v3173_v57  ;;  %8946 = vst [vmem:[#allocation25_spill] sm:$0xff] %v7919_v49  ;;  %v3258_v5 = vsel %vm1255_vm6, %v3226_v3, %v3242_v40 }
 0x2c0   : > { %v3386_v32 = vsel %vm1384_vm7, %v3354_v34, %v3370_v35 }
 0x2c1   : > { %v7887_v29 = vpop.f32.mrf.mxu2  ;;  %v2987_v28 = vrot.slane %v7904_v51, 6 }
 0x2c3   : > { %4139 = vmatmul.msk.f32.gmra.mxu1 %vm1482_vm9, %v3459_v11  ;;  %v3460_v11 = vmax.f32 %v3332_v45, %v3428_v53  ;;  %v2832_v45 = vmax.f32 %v7712_v58, %v7154_v17  ;;  %v8947_v53 = vld [vmem:[#allocation56_spill] sm:$0xff]  ;;  %v3019_v57 = vsel %vm997_vm1, %v2987_v28, %v2971_v26 }
 0x2c5   : > { %4096 = vmatmul.msk.f32.gmra.mxu3 %vm1482_vm9, %v8944_v59  ;;  %v3333_v59 = vmax.f32 %v3205_v41, %v3258_v5  ;;  %v2862_v49 = vmax.f32 %v2832_v45, %v7560_v25  ;;  %v3130_v41 = vsel %vm1126_vm3, %v3098_v27, %v3114_v30  ;;  %v3115_v45 = vrot.slane %v7904_v51, 7 }
 0x2c6   : > { %v7955_v30 = vpop.f32.mrf.mxu3 }
 0x2c7   : > { %4078 = vmatmul.msk.f32.gmra.mxu2 %vm1482_vm9, %v8945_v36  ;;  %v3078_v36 = vmax.f32 %v7836_v10, %v3002_v23  ;;  %v3274_v10 = vsel %vm1255_vm6, %v3242_v40, %v3226_v3  ;;  %v7946_v23 = vpop.f32.mrf.mxu1  ;;  %v3461_v5 = vmax.f32 %v3333_v59, %v3386_v32  ;;  %v2892_v27 = vmax.f32 %v2862_v49, %v7564_v31 }
 0x2c8   : > { %8949 = vst [vmem:[#allocation26_spill] sm:$0xff] %v7955_v30  ;;  %v3302_v3 = vsel %vm801_vm5, %v3274_v10, -3.4028235e+38  ;;  %v3402_v59 = vsel %vm1384_vm7, %v3370_v35, %v3354_v34  ;;  %v8951_v10 = vld [vmem:[#allocation52_spill] sm:$0xff] }
 0x2c9   : > { %v7921_v55 = vpop.f32.mrf.mxu2  ;;  %v3430_v34 = vsel %vm809_vm8, %v3402_v59, -3.4028235e+38 }
 0x2cb   : > { %4140 = vmatmul.msk.f32.gmra.mxu1 %vm1482_vm9, %v3460_v11  ;;  %v2861_v11 = vmax.f32 %v2831_v14, %v7558_v18  ;;  %v3099_v14 = vrot.slane %v7901_v33, 7 }
 0x2cd   : > { %4097 = vmatmul.msk.f32.gmra.mxu3 %vm1482_vm9, %v8947_v53  ;;  %v3206_v53 = vmax.f32 %v3078_v36, %v3130_v41  ;;  %v2891_v54 = vmax.f32 %v2861_v11, %v7562_v46  ;;  %v8950_v41 = vld [vmem:[#allocation48_spill] sm:$0xff]  ;;  %v7972_v11 = vmax.f32 %v2892_v27, %v7830_v9 }
 0x2cf   : > { %4079 = vmatmul.msk.f32.gmra.mxu2 %vm1482_vm9, %v8948_v7  ;;  %v3047_v7 = vsel %vm782_vm2, %v3019_v57, -3.4028235e+38  ;;  %v3334_v40 = vmax.f32 %v3206_v53, %v3302_v3  ;;  %v3147_v57 = vsel %vm1126_vm3, %v3115_v45, %v3099_v14  ;;  %v7969_v49 = vmax.f32 %v2891_v54, %v7825_v62  ;;  %v7984_v27 = vpop.f32.mrf.mxu1 }
 0x2d0   : > { %v3079_v36 = vmax.f32 %v7901_v33, %v3047_v7  ;;  %v3175_v35 = vsel %vm790_vm4, %v3147_v57, -3.4028235e+38  ;;  %v3243_v53 = vrot.slane %v7904_v51, 1  ;;  %v3003_v54 = vsel %vm997_vm1, %v2971_v26, %v2987_v28 }
 0x2d1   : > { %v7964_v32 = vpop.f32.mrf.mxu2  ;;  %v3462_v7 = vmax.f32 %v3334_v40, %v3430_v34  ;;  %v2988_v59 = vrot.slane %v7972_v11, 6  ;;  %v2833_v57 = vmax.f32 %v7165_v61, %v7558_v18  ;;  %v2834_v40 = vmax.f32 %v7154_v17, %v7560_v25 }
 0x2d2   : > { %v3207_v3 = vmax.f32 %v3079_v36, %v3175_v35  ;;  %v3355_v26 = vrot.slane %v7901_v33, 2  ;;  %v3371_v28 = vrot.slane %v7904_v51, 2  ;;  %v3080_v35 = vmax.f32 %v7904_v51, %v3003_v54 }
 0x2d3   : > { %4141 = vmatmul.msk.f32.gmra.mxu1 %vm1482_vm9, %v3461_v5  ;;  %v3227_v5 = vrot.slane %v7901_v33, 1  ;;  %v2863_v30 = vmax.f32 %v2833_v57, %v7562_v46  ;;  %v2864_v16 = vmax.f32 %v2834_v40, %v7564_v31  ;;  %v3131_v51 = vsel %vm1126_vm3, %v3099_v14, %v3115_v45 }
 0x2d4   : > { %v3387_v33 = vsel %vm1384_vm7, %v3355_v26, %v3371_v28  ;;  %v3208_v54 = vmax.f32 %v3080_v35, %v3131_v51  ;;  %v3116_v57 = vrot.slane %v7972_v11, 7  ;;  %v3244_v51 = vrot.slane %v7972_v11, 1 }
 0x2d5   : > { %4098 = vmatmul.msk.f32.gmra.mxu3 %vm1482_vm9, %v8950_v41  ;;  %v2972_v41 = vrot.slane %v7969_v49, 6  ;;  %v3259_v36 = vsel %vm1255_vm6, %v3227_v5, %v3243_v53  ;;  %v2894_v44 = vmax.f32 %v2864_v16, %v7830_v9 }
 0x2d6   : > { %v3335_v34 = vmax.f32 %v3207_v3, %v3259_v36  ;;  %v3100_v36 = vrot.slane %v7969_v49, 7 }
 0x2d7   : > { %4080 = vmatmul.msk.f32.gmra.mxu2 %vm1482_vm9, %v8951_v10  ;;  %v7989_v10 = vpop.f32.mrf.mxu3  ;;  %v8027_v45 = vpop.f32.mrf.mxu1 }
 0x2d8   : > { %8952 = vst [vmem:[#allocation27_spill] sm:$0xff] %v7989_v10  ;;  %v3463_v3 = vmax.f32 %v3335_v34, %v3387_v33  ;;  %v3148_v35 = vsel %vm1126_vm3, %v3116_v57, %v3100_v36 }
 0x2d9   : > { %v8004_v10 = vpop.f32.mrf.mxu2 }
 0x2db   : > { %4142 = vmatmul.msk.f32.gmra.mxu1 %vm1482_vm9, %v3462_v7  ;;  %v3020_v7 = vsel %vm997_vm1, %v2988_v59, %v2972_v41 }
 0x2dc   : > { %v3049_v40 = vsel %vm782_vm2, %v3020_v7, -3.4028235e+38  ;;  %v8955_v7 = vld [vmem:[#allocation55_spill] sm:$0xff] }
 0x2dd   : > { %4099 = vmatmul.msk.f32.gmra.mxu3 %vm1482_vm9, %v6648_v50  ;;  %v3275_v50 = vsel %vm1255_vm6, %v3243_v53, %v3227_v5  ;;  %v3403_v53 = vsel %vm1384_vm7, %v3371_v28, %v3355_v26  ;;  %v3081_v34 = vmax.f32 %v7969_v49, %v3049_v40  ;;  %v3177_v26 = vsel %vm790_vm4, %v3148_v35, -3.4028235e+38 }
 0x2de   : > { %v3304_v14 = vsel %vm801_vm5, %v3275_v50, -3.4028235e+38  ;;  %v3432_v33 = vsel %vm809_vm8, %v3403_v53, -3.4028235e+38  ;;  %v3228_v28 = vrot.slane %v7969_v49, 1 }
 0x2df   : > { %4081 = vmatmul.msk.f32.gmra.mxu2 %vm1482_vm9, %v8953_v56  ;;  %v2893_v56 = vmax.f32 %v2863_v30, %v7825_v62  ;;  %v8023_v21 = vpop.f32.mrf.mxu3  ;;  %v3336_v5 = vmax.f32 %v3208_v54, %v3304_v14  ;;  %v8038_v30 = vmax.f32 %v2894_v44, -3.4028235e+38  ;;  %v3004_v44 = vsel %vm997_vm1, %v2972_v41, %v2988_v59 }
 0x2e0   : > { %8954 = vst [vmem:[#allocation28_spill] sm:$0xff] %v8023_v21  ;;  %v2835_v14 = vmax.f32 %v7558_v18, %v7562_v46  ;;  %v3260_v53 = vsel %vm1255_vm6, %v3228_v28, %v3244_v51  ;;  %v3372_v41 = vrot.slane %v7972_v11, 2  ;;  %v3082_v35 = vmax.f32 %v7972_v11, %v3004_v44  ;;  %v1596_v21 = vpop.f32.mrf.mxu0 }
 0x2e1   : > { %v8036_v16 = vmax.f32 %v2893_v56, -3.4028235e+38  ;;  %v3464_v50 = vmax.f32 %v3336_v5, %v3432_v33  ;;  %v2989_v40 = vrot.slane %v8038_v30, 6  ;;  %v2836_v5 = vmax.f32 %v7560_v25, %v7564_v31 }
 0x2e2   : > { %v3132_v11 = vsel %vm1126_vm3, %v3100_v36, %v3116_v57 }
 0x2e3   : > { %4143 = vmatmul.msk.f32.gmra.mxu1 %vm1482_vm9, %v3463_v3  ;;  %v3209_v3 = vmax.f32 %v3081_v34, %v3177_v26  ;;  %v2973_v54 = vrot.slane %v8036_v16, 6  ;;  %v3356_v34 = vrot.slane %v7969_v49, 2  ;;  %v2865_v26 = vmax.f32 %v2835_v14, %v7825_v62 }
 0x2e4   : > { %v3210_v44 = vmax.f32 %v3082_v35, %v3132_v11  ;;  %v3117_v14 = vrot.slane %v8038_v30, 7  ;;  %v3245_v11 = vrot.slane %v8038_v30, 1 }
 0x2e5   : > { %4100 = vmatmul.msk.f32.gmra.mxu3 %vm1482_vm9, %v6652_v38  ;;  %v8048_v38 = vpop.f32.mrf.mxu2  ;;  %v3337_v59 = vmax.f32 %v3209_v3, %v3260_v53  ;;  %v3021_v33 = vsel %vm997_vm1, %v2989_v40, %v2973_v54  ;;  %v3388_v49 = vsel %vm1384_vm7, %v3356_v34, %v3372_v41  ;;  %v3101_v53 = vrot.slane %v8036_v16, 7 }
 0x2e6   : > { %v2895_v48 = vmax.f32 %v2865_v26, -3.4028235e+38 }
 0x2e7   : > { %4082 = vmatmul.msk.f32.gmra.mxu2 %vm1482_vm9, %v8955_v7  ;;  %v8055_v56 = vpop.f32.mrf.mxu3  ;;  %v8068_v7 = vpop.f32.mrf.mxu1  ;;  %v3465_v3 = vmax.f32 %v3337_v59, %v3388_v49  ;;  %v3149_v35 = vsel %vm1126_vm3, %v3117_v14, %v3101_v53 }
 0x2e8   : > { %8956 = vst [vmem:[#allocation29_spill] sm:$0xff] %v8055_v56  ;;  %v8957_v56 = vld [vmem:[#allocation42_spill] sm:$0xff] }
 0x2eb   : > { %4144 = vmatmul.msk.f32.gmra.mxu1 %vm1482_vm9, %v3464_v50  ;;  %v2866_v50 = vmax.f32 %v2836_v5, %v7830_v9  ;;  %v3051_v5 = vsel %vm782_vm2, %v3021_v33, -3.4028235e+38  ;;  %v8100_v33 = vmax.f32 %v2895_v48, -3.4028235e+38 }
 0x2ec   : > { %v3083_v59 = vmax.f32 %v8036_v16, %v3051_v5 }
 0x2ed   : > { %4101 = vmatmul.msk.f32.gmra.mxu3 %vm1482_vm9, %v6838_v42  ;;  %v3276_v42 = vsel %vm1255_vm6, %v3244_v51, %v3228_v28  ;;  %v2896_v60 = vmax.f32 %v2866_v50, -3.4028235e+38  ;;  %v3404_v51 = vsel %vm1384_vm7, %v3372_v41, %v3356_v34  ;;  %v8959_v50 = vld [vmem:[#allocation45_spill] sm:$0xff]  ;;  %v3179_v34 = vsel %vm790_vm4, %v3149_v35, -3.4028235e+38 }
 0x2ee   : > { %v3306_v57 = vsel %vm801_vm5, %v3276_v42, -3.4028235e+38  ;;  %v3434_v49 = vsel %vm809_vm8, %v3404_v51, -3.4028235e+38  ;;  %v3229_v41 = vrot.slane %v8036_v16, 1  ;;  %v3211_v48 = vmax.f32 %v3083_v59, %v3179_v34 }
 0x2ef   : > { %4083 = vmatmul.msk.f32.gmra.mxu2 %vm1482_vm9, %v8957_v56  ;;  %v8087_v56 = vpop.f32.mrf.mxu2  ;;  %v8089_v36 = vpop.f32.mrf.mxu3  ;;  %v3338_v28 = vmax.f32 %v3210_v44, %v3306_v57  ;;  %v8102_v26 = vmax.f32 %v2896_v60, -3.4028235e+38  ;;  %v3005_v60 = vsel %vm997_vm1, %v2973_v54, %v2989_v40  ;;  %v3357_v35 = vrot.slane %v8036_v16, 2 }
 0x2f0   : > { %8958 = vst [vmem:[#allocation31_spill] sm:$0xff] %v8089_v36  ;;  %v8112_v42 = vpop.f32.mrf.mxu1  ;;  %v1599_v57 = vpop.f32.mrf.mxu0  ;;  %v3261_v51 = vsel %vm1255_vm6, %v3229_v41, %v3245_v11  ;;  %v3133_v16 = vsel %vm1126_vm3, %v3101_v53, %v3117_v14  ;;  %v3358_v13 = vrot.slane %v8100_v33, 2 }
 0x2f1   : > { %v2990_v44 = vrot.slane %v8102_v26, 6  ;;  %v3339_v59 = vmax.f32 %v3211_v48, %v3261_v51  ;;  %v1806_v51 = vadd.f32 %v7887_v29, %v1596_v21 }
 0x2f3   : > { %4145 = vmatmul.msk.f32.gmra.mxu1 %vm1482_vm9, %v3465_v3  ;;  %v2974_v3 = vrot.slane %v8100_v33, 6 }
 0x2f5   : > { %4102 = vmatmul.msk.f32.gmra.mxu3 %vm1482_vm9, %v6854_v22  ;;  %v3466_v22 = vmax.f32 %v3338_v28, %v3434_v49  ;;  %v3373_v28 = vrot.slane %v8038_v30, 2  ;;  %v3022_v40 = vsel %vm997_vm1, %v2990_v44, %v2974_v3  ;;  %v8961_v49 = vld [vmem:[#allocation47_spill] sm:$0xff] }
 0x2f7   : > { %4084 = vmatmul.msk.f32.gmra.mxu2 %vm1482_vm9, %v8959_v50  ;;  %v8119_v5 = vpop.f32.mrf.mxu3  ;;  %v3084_v50 = vmax.f32 %v8038_v30, %v3005_v60  ;;  %v8126_v54 = vpop.f32.mrf.mxu2  ;;  %v3389_v34 = vsel %vm1384_vm7, %v3357_v35, %v3373_v28  ;;  %v3277_v30 = vsel %vm1255_vm6, %v3245_v11, %v3229_v41  ;;  %v3102_v60 = vrot.slane %v8100_v33, 7  ;;  %v8155_v11 = vld [vmem:[%s8460_s8] ss:$0 sm:$0xff] }
 0x2f8   : > { %8960 = vst [vmem:[#allocation34_spill] sm:$0xff] %v8119_v5  ;;  %v8145_v5 = vpop.f32.mrf.mxu1  ;;  %v3308_v53 = vsel %vm801_vm5, %v3277_v30, -3.4028235e+38  ;;  %v3405_v14 = vsel %vm1384_vm7, %v3373_v28, %v3357_v35  ;;  %v8962_v28 = vld [vmem:[#allocation57_spill] sm:$0xff] }
 0x2f9   : > { %v3212_v48 = vmax.f32 %v3084_v50, %v3133_v16  ;;  %v3246_v16 = vrot.slane %v8102_v26, 1 }
 0x2fb   : > { %4146 = vmatmul.msk.f32.gmra.mxu1 %vm1482_vm9, %v3466_v22  ;;  %v3467_v22 = vmax.f32 %v3339_v59, %v3389_v34  ;;  %v3340_v21 = vmax.f32 %v3212_v48, %v3308_v53  ;;  %v1602_v59 = vpop.f32.mrf.mxu0 }
 0x2fd   : > { %4103 = vmatmul.msk.f32.gmra.mxu3 %vm1482_vm9, %v7032_v6  ;;  %v3118_v6 = vrot.slane %v8102_v26, 7 }
 0x2ff   : > { %4085 = vmatmul.msk.f32.gmra.mxu2 %vm1482_vm9, %v8961_v49  ;;  %v3053_v49 = vsel %vm782_vm2, %v3022_v40, -3.4028235e+38  ;;  %v2679_v36 = vpop.f32.mrf.mxu3  ;;  %v3150_v29 = vsel %vm1126_vm3, %v3118_v6, %v3102_v60  ;;  %v8164_v40 = vld [vmem:[%s8461_s9] ss:$0 sm:$0xff]  ;;  %v8170_v35 = vpop.f32.mrf.mxu2 }
 0x300   : > { %v2775_v41 = vadd.f32 %v2679_v36, %v1806_v51  ;;  %v3085_v4 = vmax.f32 %v8100_v33, %v3053_v49  ;;  %v3436_v36 = vsel %vm809_vm8, %v3405_v14, -3.4028235e+38  ;;  %v3181_v34 = vsel %vm790_vm4, %v3150_v29, -3.4028235e+38  ;;  %v8188_v29 = vpop.f32.mrf.mxu1 }
 0x301   : > { %v3006_v51 = vsel %vm997_vm1, %v2974_v3, %v2990_v44 }
 0x302   : > { %v3681_v50 = vadd.f32 %v7898_v20, %v2775_v41  ;;  %v3230_v20 = vrot.slane %v8100_v33, 1  ;;  %v3213_v48 = vmax.f32 %v3085_v4, %v3181_v34  ;;  %v3374_v41 = vrot.slane %v8102_v26, 2 }
 0x303   : > { %4147 = vmatmul.msk.f32.gmra.mxu1 %vm1482_vm9, %v3467_v22  ;;  %v3468_v22 = vmax.f32 %v3340_v21, %v3436_v36  ;;  %v3086_v3 = vmax.f32 %v8102_v26, %v3006_v51  ;;  %v1605_v33 = vpop.f32.mrf.mxu0  ;;  %v3134_v36 = vsel %vm1126_vm3, %v3102_v60, %v3118_v6 }
 0x304   : > { %v3717_v30 = vmul.f32 %v8155_v11, %v3681_v50  ;;  %v3262_v14 = vsel %vm1255_vm6, %v3230_v20, %v3246_v16  ;;  %v3390_v50 = vsel %vm1384_vm7, %v3358_v13, %v3374_v41  ;;  %v1815_v2 = vadd.f32 %v8004_v10, %v1605_v33 }
 0x305   : > { %4104 = vmatmul.msk.f32.gmra.mxu3 %vm1482_vm9, %v7041_v19  ;;  %v1809_v19 = vadd.f32 %v7921_v55, %v1599_v57  ;;  %v3341_v55 = vmax.f32 %v3213_v48, %v3262_v14 }
 0x306   : > { %v3753_v49 = vadd.f32 %v8164_v40, %v3717_v30  ;;  %v1812_v30 = vadd.f32 %v7964_v32, %v1602_v59 }
 0x307   : > { %4086 = vmatmul.msk.f32.gmra.mxu2 %vm1482_vm9, %v8962_v28  ;;  %v2682_v53 = vpop.f32.mrf.mxu3  ;;  %v3469_v28 = vmax.f32 %v3341_v55, %v3390_v50  ;;  %v8207_v34 = vpop.f32.mrf.mxu2 }
 0x308   : > { %v3785_v21 = vmul.f32 0.01, %v3753_v49  ;;  %v2776_v4 = vadd.f32 %v2682_v53, %v1809_v19  ;;  %v8219_v32 = vpop.f32.mrf.mxu1 }
 0x30a   : > { %v3817_v44 = vmax.f32 %v3753_v49, %v3785_v21  ;;  %v3682_v57 = vadd.f32 %v7946_v23, %v2776_v4  ;;  %v3214_v23 = vmax.f32 %v3086_v3, %v3134_v36  ;;  %v3406_v49 = vsel %vm1384_vm7, %v3374_v41, %v3358_v13 }
 0x30b   : > { %4148 = vmatmul.msk.f32.gmra.mxu1 %vm1482_vm9, %v3468_v22  ;;  %v3438_v59 = vsel %vm809_vm8, %v3406_v49, -3.4028235e+38  ;;  %v1608_v14 = vpop.f32.mrf.mxu0 }
 0x30c   : > { %3849 = vst.msk [vmem:[%s8200_s7] sm:$0xff] %vm429_vm0, %v3817_v44  ;;  %v3718_v26 = vmul.f32 %v8155_v11, %v3682_v57  ;;  %v1818_v3 = vadd.f32 %v8048_v38, %v1608_v14 }
 0x30d   : > { %4105 = vmatmul.msk.f32.gmra.mxu3 %vm1482_vm9, %v7250_v1  ;;  %v3278_v1 = vsel %vm1255_vm6, %v3246_v16, %v3230_v20 }
 0x30e   : > { %v3754_v60 = vadd.f32 %v8164_v40, %v3718_v26  ;;  %v3310_v22 = vsel %vm801_vm5, %v3278_v1, -3.4028235e+38 }
 0x30f   : > { %v2685_v6 = vpop.f32.mrf.mxu3  ;;  %v3342_v51 = vmax.f32 %v3214_v23, %v3310_v22 }
 0x310   : > { %v3786_v48 = vmul.f32 0.01, %v3754_v60  ;;  %v2777_v19 = vadd.f32 %v2685_v6, %v1812_v30  ;;  %v8237_v55 = vpop.f32.mrf.mxu1 }
 0x311   : > { %v3470_v53 = vmax.f32 %v3342_v51, %v3438_v59 }
 0x312   : > { %v3818_v20 = vmax.f32 %v3754_v60, %v3786_v48  ;;  %v3683_v16 = vadd.f32 %v7984_v27, %v2777_v19  ;;  %v8229_v27 = vpop.f32.mrf.mxu2 }
 0x313   : > { %4149 = vmatmul.msk.f32.gmra.mxu1 %vm1482_vm9, %v3469_v28  ;;  %v1611_v36 = vpop.f32.mrf.mxu0 }
 0x314   : > { %3850 = vst.msk [vmem:[%s8200_s7 + $0x8] sm:$0xff] %vm429_vm0, %v3818_v20  ;;  %v3719_v15 = vmul.f32 %v8155_v11, %v3683_v16  ;;  %v1821_v38 = vadd.f32 %v8087_v56, %v1611_v36 }
 0x315   : > { %4106 = vmatmul.msk.f32.gmra.mxu3 %vm1482_vm9, %v7269_v37 }
 0x316   : > { %v3755_v13 = vadd.f32 %v8164_v40, %v3719_v15 }
 0x318   : > { %v2688_v37 = vpop.f32.mrf.mxu3  ;;  %v3787_v41 = vmul.f32 0.01, %v3755_v13  ;;  %v8251_v1 = vpop.f32.mrf.mxu1 }
 0x319   : > { %v2778_v21 = vadd.f32 %v2688_v37, %v1815_v2 }
 0x31a   : > { %v3819_v24 = vmax.f32 %v3755_v13, %v3787_v41  ;;  %v8241_v26 = vpop.f32.mrf.mxu2 }
 0x31b   : > { %4150 = vmatmul.msk.f32.gmra.mxu1 %vm1482_vm9, %v3470_v53  ;;  %v3684_v4 = vadd.f32 %v8027_v45, %v2778_v21 }
 0x31c   : > { %3851 = vst.msk [vmem:[%s8200_s7 + $0x10] sm:$0xff] %vm429_vm0, %v3819_v24 }
 0x31d   : > { %4107 = vmatmul.msk.f32.gmra.mxu3 %vm1482_vm9, %v7646_v47  ;;  %v3720_v10 = vmul.f32 %v8155_v11, %v3684_v4  ;;  %v8963_v4 = vld [vmem:[#allocation51_spill] sm:$0xff] }
 0x31f   : > { %v3756_v44 = vadd.f32 %v8164_v40, %v3720_v10 }
 0x320   : > { %v2691_v57 = vpop.f32.mrf.mxu3  ;;  %v3618_v59 = vpop.f32.mrf.mxu1 }
 0x321   : > { %v3788_v33 = vmul.f32 0.01, %v3756_v44  ;;  %v2779_v50 = vadd.f32 %v2691_v57, %v1818_v3 }
 0x322   : > { %v1838_v48 = vpop.f32.mrf.mxu2 }
 0x323   : > { %v3820_v45 = vmax.f32 %v3756_v44, %v3788_v33  ;;  %v3685_v47 = vadd.f32 %v8068_v7, %v2779_v50 }
 0x325   : > { %4108 = vmatmul.msk.f32.gmra.mxu3 %vm1482_vm9, %v7640_v8  ;;  %3852 = vst.msk [vmem:[%s8200_s7 + $0x18] sm:$0xff] %vm429_vm0, %v3820_v45  ;;  %v3721_v28 = vmul.f32 %v8155_v11, %v3685_v47  ;;  %v1614_v8 = vpop.f32.mrf.mxu0  ;;  %v8964_v45 = vld [vmem:[#allocation33_spill] sm:$0xff] }
 0x326   : > { %v1824_v19 = vadd.f32 %v8126_v54, %v1614_v8 }
 0x327   : > { %v3757_v23 = vadd.f32 %v8164_v40, %v3721_v28 }
 0x328   : > { %v2694_v30 = vpop.f32.mrf.mxu3 }
 0x329   : > { %v3789_v60 = vmul.f32 0.01, %v3757_v23  ;;  %v2780_v6 = vadd.f32 %v2694_v30, %v1821_v38 }
 0x32a   : > { %v1841_v14 = vpop.f32.mrf.mxu2 }
 0x32b   : > { %v3821_v22 = vmax.f32 %v3757_v23, %v3789_v60  ;;  %v3686_v7 = vadd.f32 %v8112_v42, %v2780_v6 }
 0x32d   : > { %4109 = vmatmul.msk.f32.gmra.mxu3 %vm1482_vm9, %v7710_v52  ;;  %3853 = vst.msk [vmem:[%s8200_s7 + $0x20] sm:$0xff] %vm429_vm0, %v3821_v22  ;;  %v3722_v56 = vmul.f32 %v8155_v11, %v3686_v7  ;;  %v1617_v53 = vpop.f32.mrf.mxu0 }
 0x32e   : > { %v1827_v54 = vadd.f32 %v8170_v35, %v1617_v53  ;;  %v1830_v35 = vadd.f32 %v8207_v34, %v8963_v4  ;;  %v1833_v34 = vadd.f32 %v8229_v27, %v8964_v45  ;;  %v1836_v27 = vadd.f32 %v8241_v26, %v7556_v39 }
 0x32f   : > { %v3758_v51 = vadd.f32 %v8164_v40, %v3722_v56  ;;  %v1839_v39 = vadd.f32 %v1838_v48, %v7684_v12  ;;  %v1842_v53 = vadd.f32 %v1841_v14, %v7722_v0 }
 0x330   : > { %v2697_v49 = vpop.f32.mrf.mxu3 }
 0x331   : > { %v3790_v20 = vmul.f32 0.01, %v3758_v51  ;;  %v2781_v16 = vadd.f32 %v2697_v49, %v1824_v19 }
 0x332   : > { %v1844_v3 = vpop.f32.mrf.mxu2 }
 0x333   : > { %v3822_v15 = vmax.f32 %v3758_v51, %v3790_v20  ;;  %v3687_v42 = vadd.f32 %v8145_v5, %v2781_v16 }
 0x335   : > { %4110 = vmatmul.msk.f32.gmra.mxu3 %vm1482_vm9, %v7712_v58  ;;  %3854 = vst.msk [vmem:[%s8200_s7 + $0x28] sm:$0xff] %vm429_vm0, %v3822_v15  ;;  %v3723_v52 = vmul.f32 %v8155_v11, %v3687_v42  ;;  %v3621_v58 = vpop.f32.mrf.mxu1 }
 0x337   : > { %v3759_v2 = vadd.f32 %v8164_v40, %v3723_v52 }
 0x338   : > { %v2700_v13 = vpop.f32.mrf.mxu3 }
 0x339   : > { %v3791_v37 = vmul.f32 0.01, %v3759_v2  ;;  %v2782_v41 = vadd.f32 %v2700_v13, %v1827_v54 }
 0x33a   : > { %v1847_v30 = vpop.f32.mrf.mxu2 }
 0x33b   : > { %v3823_v21 = vmax.f32 %v3759_v2, %v3791_v37  ;;  %v3688_v5 = vadd.f32 %v8188_v29, %v2782_v41  ;;  %v1845_v41 = vadd.f32 %v1844_v3, %v7769_v43 }
 0x33d   : > { %4111 = vmatmul.msk.f32.gmra.mxu3 %vm1482_vm9, %v7165_v61  ;;  %3855 = vst.msk [vmem:[%s8200_s7 + $0x30] sm:$0xff] %vm429_vm0, %v3823_v21  ;;  %v3724_v24 = vmul.f32 %v8155_v11, %v3688_v5  ;;  %v3624_v36 = vpop.f32.mrf.mxu1 }
 0x33f   : > { %v3760_v10 = vadd.f32 %v8164_v40, %v3724_v24 }
 0x340   : > { %v2703_v44 = vpop.f32.mrf.mxu3 }
 0x341   : > { %v3792_v57 = vmul.f32 0.01, %v3760_v10  ;;  %v2783_v33 = vadd.f32 %v2703_v44, %v1830_v35 }
 0x343   : > { %v3824_v50 = vmax.f32 %v3760_v10, %v3792_v57  ;;  %v3689_v29 = vadd.f32 %v8219_v32, %v2783_v33  ;;  %v1848_v10 = vadd.f32 %v1847_v30, %v7802_v63 }
 0x345   : > { %4112 = vmatmul.msk.f32.gmra.mxu3 %vm1482_vm9, %v7154_v17  ;;  %3856 = vst.msk [vmem:[%s8200_s7 + $0x38] sm:$0xff] %vm429_vm0, %v3824_v50  ;;  %v3725_v61 = vmul.f32 %v8155_v11, %v3689_v29  ;;  %v3627_v22 = vpop.f32.mrf.mxu1 }
 0x347   : > { %v3761_v47 = vadd.f32 %v8164_v40, %v3725_v61  ;;  %v8965_v61 = vld [vmem:[#allocation23_spill] sm:$0xff] }
 0x348   : > { %v2706_v28 = vpop.f32.mrf.mxu3 }
 0x349   : > { %v3793_v38 = vmul.f32 0.01, %v3761_v47  ;;  %v2784_v23 = vadd.f32 %v2706_v28, %v1833_v34 }
 0x34b   : > { %v3825_v60 = vmax.f32 %v3761_v47, %v3793_v38  ;;  %v3690_v32 = vadd.f32 %v8237_v55, %v2784_v23 }
 0x34d   : > { %4113 = vmatmul.msk.f32.gmra.mxu3 %vm1482_vm9, %v7558_v18  ;;  %3857 = vst.msk [vmem:[%s8200_s7 + $0x40] sm:$0xff] %vm429_vm0, %v3825_v60  ;;  %v3726_v17 = vmul.f32 %v8155_v11, %v3690_v32  ;;  %v1850_v18 = vpop.f32.mrf.mxu2  ;;  %v3630_v15 = vpop.f32.mrf.mxu1  ;;  %v8966_v60 = vld [vmem:[#allocation18_spill] sm:$0xff] }
 0x34f   : > { %v3762_v6 = vadd.f32 %v8164_v40, %v3726_v17 }
 0x350   : > { %v2709_v7 = vpop.f32.mrf.mxu3 }
 0x351   : > { %v3794_v8 = vmul.f32 0.01, %v3762_v6  ;;  %v2785_v56 = vadd.f32 %v2709_v7, %v1836_v27 }
 0x353   : > { %v3826_v19 = vmax.f32 %v3762_v6, %v3794_v8  ;;  %v3691_v55 = vadd.f32 %v8251_v1, %v2785_v56 }
 0x355   : > { %4114 = vmatmul.msk.f32.gmra.mxu3 %vm1482_vm9, %v7560_v25  ;;  %3858 = vst.msk [vmem:[%s8200_s7 + $0x48] sm:$0xff] %vm429_vm0, %v3826_v19  ;;  %v3727_v51 = vmul.f32 %v8155_v11, %v3691_v55  ;;  %v1853_v1 = vpop.f32.mrf.mxu2 }
 0x356   : > { %v1854_v32 = vadd.f32 %v1853_v1, %v8966_v60 }
 0x357   : > { %v3763_v26 = vadd.f32 %v8164_v40, %v3727_v51 }
 0x358   : > { %v2712_v49 = vpop.f32.mrf.mxu3 }
 0x359   : > { %v3795_v20 = vmul.f32 0.01, %v3763_v26  ;;  %v2786_v16 = vadd.f32 %v2712_v49, %v1839_v39 }
 0x35b   : > { %v3827_v42 = vmax.f32 %v3763_v26, %v3795_v20  ;;  %v3692_v52 = vadd.f32 %v3618_v59, %v2786_v16  ;;  %v3633_v59 = vpop.f32.mrf.mxu1 }
 0x35d   : > { %4115 = vmatmul.msk.f32.gmra.mxu3 %vm1482_vm9, %v7562_v46  ;;  %3859 = vst.msk [vmem:[%s8200_s7 + $0x50] sm:$0xff] %vm429_vm0, %v3827_v42  ;;  %v3728_v25 = vmul.f32 %v8155_v11, %v3692_v52  ;;  %v1856_v14 = vpop.f32.mrf.mxu2 }
 0x35f   : > { %v3764_v12 = vadd.f32 %v8164_v40, %v3728_v25  ;;  %v8968_v25 = vld [vmem:[#allocation20_spill] sm:$0xff] }
 0x360   : > { %v2715_v48 = vpop.f32.mrf.mxu3 }
 0x361   : > { %v3796_v54 = vmul.f32 0.01, %v3764_v12  ;;  %v2787_v2 = vadd.f32 %v2715_v48, %v1842_v53 }
 0x363   : > { %v3828_v13 = vmax.f32 %v3764_v12, %v3796_v54  ;;  %v3693_v37 = vadd.f32 %v3621_v58, %v2787_v2  ;;  %v3636_v58 = vpop.f32.mrf.mxu1 }
 0x365   : > { %4116 = vmatmul.msk.f32.gmra.mxu3 %vm1482_vm9, %v7564_v31  ;;  %3860 = vst.msk [vmem:[%s8200_s7 + $0x58] sm:$0xff] %vm429_vm0, %v3828_v13  ;;  %v3729_v46 = vmul.f32 %v8155_v11, %v3693_v37  ;;  %v1859_v33 = vpop.f32.mrf.mxu2 }
 0x366   : > { %v1860_v1 = vadd.f32 %v1859_v33, %v8968_v25 }
 0x367   : > { %v3765_v0 = vadd.f32 %v8164_v40, %v3729_v46 }
 0x368   : > { %v2718_v21 = vpop.f32.mrf.mxu3 }
 0x369   : > { %v3797_v5 = vmul.f32 0.01, %v3765_v0  ;;  %v2788_v24 = vadd.f32 %v2718_v21, %v1845_v41  ;;  %v8969_v41 = vld [vmem:[#allocation54_spill] sm:$0xff] }
 0x36b   : > { %v3829_v4 = vmax.f32 %v3765_v0, %v3797_v5  ;;  %v3694_v35 = vadd.f32 %v3624_v36, %v2788_v24  ;;  %v1851_v36 = vadd.f32 %v1850_v18, %v8965_v61  ;;  %v3639_v45 = vpop.f32.mrf.mxu1  ;;  %v8967_v18 = vld [vmem:[#allocation17_spill] sm:$0xff] }
 0x36c   : > { %v1857_v51 = vadd.f32 %v1856_v14, %v8967_v18 }
 0x36d   : > { %4117 = vmatmul.msk.f32.gmra.mxu3 %vm1482_vm9, %v7825_v62  ;;  %3861 = vst.msk [vmem:[%s8200_s7 + $0x60] sm:$0xff] %vm429_vm0, %v3829_v4  ;;  %v3730_v31 = vmul.f32 %v8155_v11, %v3694_v35  ;;  %v1862_v30 = vpop.f32.mrf.mxu2 }
 0x36e   : > { %v1863_v0 = vadd.f32 %v1862_v30, %v8969_v41 }
 0x36f   : > { %v3766_v43 = vadd.f32 %v8164_v40, %v3730_v31 }
 0x370   : > { %v2721_v3 = vpop.f32.mrf.mxu3 }
 0x371   : > { %v3798_v44 = vmul.f32 0.01, %v3766_v43  ;;  %v2789_v57 = vadd.f32 %v2721_v3, %v1848_v10  ;;  %v8970_v10 = vld [vmem:[#allocation39_spill] sm:$0xff] }
 0x373   : > { %v3830_v50 = vmax.f32 %v3766_v43, %v3798_v44  ;;  %v3695_v29 = vadd.f32 %v3627_v22, %v2789_v57  ;;  %v3642_v7 = vpop.f32.mrf.mxu1 }
 0x375   : > { %4118 = vmatmul.msk.f32.gmra.mxu3 %vm1482_vm9, %v7830_v9  ;;  %3862 = vst.msk [vmem:[%s8200_s7 + $0x68] sm:$0xff] %vm429_vm0, %v3830_v50  ;;  %v3731_v62 = vmul.f32 %v8155_v11, %v3695_v29  ;;  %v1865_v55 = vpop.f32.mrf.mxu2 }
 0x376   : > { %v1866_v43 = vadd.f32 %v1865_v55, %v8970_v10 }
 0x377   : > { %v3767_v63 = vadd.f32 %v8164_v40, %v3731_v62 }
 0x378   : > { %v2724_v34 = vpop.f32.mrf.mxu3 }
 0x379   : > { %v3799_v47 = vmul.f32 0.01, %v3767_v63  ;;  %v2790_v28 = vadd.f32 %v2724_v34, %v1851_v36 }
 0x37b   : > { %v3831_v38 = vmax.f32 %v3767_v63, %v3799_v47  ;;  %v3696_v23 = vadd.f32 %v3630_v15, %v2790_v28  ;;  %v3645_v42 = vpop.f32.mrf.mxu1  ;;  %v8971_v63 = vld [vmem:[#allocation19_spill] sm:$0xff] }
 0x37d   : > { %3863 = vst.msk [vmem:[%s8200_s7 + $0x70] sm:$0xff] %vm429_vm0, %v3831_v38  ;;  %v3732_v9 = vmul.f32 %v8155_v11, %v3696_v23  ;;  %v1868_v12 = vpop.f32.mrf.mxu2 }
 0x37f   : > { %v3768_v17 = vadd.f32 %v8164_v40, %v3732_v9 }
 0x380   : > { %v2727_v27 = vpop.f32.mrf.mxu3 }
 0x381   : > { %v3800_v6 = vmul.f32 0.01, %v3768_v17  ;;  %v2791_v22 = vadd.f32 %v2727_v27, %v1854_v32 }
 0x383   : > { %v3832_v8 = vmax.f32 %v3768_v17, %v3800_v6  ;;  %v3697_v56 = vadd.f32 %v3633_v59, %v2791_v22  ;;  %v3648_v46 = vpop.f32.mrf.mxu1  ;;  %v8972_v17 = vld [vmem:[#allocation21_spill] sm:$0xff] }
 0x385   : > { %3864 = vst.msk [vmem:[%s8200_s7 + $0x78] sm:$0xff] %vm429_vm0, %v3832_v8  ;;  %v3733_v19 = vmul.f32 %v8155_v11, %v3697_v56  ;;  %v1871_v4 = vpop.f32.mrf.mxu2 }
 0x386   : > { %v1872_v27 = vadd.f32 %v1871_v4, %v8972_v17 }
 0x387   : > { %v3769_v39 = vadd.f32 %v8164_v40, %v3733_v19 }
 0x388   : > { %v2730_v26 = vpop.f32.mrf.mxu3 }
 0x389   : > { %v3801_v49 = vmul.f32 0.01, %v3769_v39  ;;  %v2792_v20 = vadd.f32 %v2730_v26, %v1857_v51  ;;  %v8973_v51 = vld [vmem:[#allocation22_spill] sm:$0xff] }
 0x38b   : > { %v3833_v16 = vmax.f32 %v3769_v39, %v3801_v49  ;;  %v3698_v15 = vadd.f32 %v3636_v58, %v2792_v20  ;;  %v3651_v44 = vpop.f32.mrf.mxu1 }
 0x38d   : > { %3865 = vst.msk [vmem:[%s8200_s7 + $0x80] sm:$0xff] %vm429_vm0, %v3833_v16  ;;  %v3734_v52 = vmul.f32 %v8155_v11, %v3698_v15  ;;  %v1874_v61 = vpop.f32.mrf.mxu2 }
 0x38e   : > { %v1875_v39 = vadd.f32 %v1874_v61, %v8973_v51 }
 0x38f   : > { %v3770_v53 = vadd.f32 %v8164_v40, %v3734_v52 }
 0x390   : > { %v2733_v48 = vpop.f32.mrf.mxu3 }
 0x391   : > { %v3802_v54 = vmul.f32 0.01, %v3770_v53  ;;  %v2793_v2 = vadd.f32 %v2733_v48, %v1860_v1 }
 0x393   : > { %v3834_v13 = vmax.f32 %v3770_v53, %v3802_v54  ;;  %v3699_v37 = vadd.f32 %v3639_v45, %v2793_v2  ;;  %v1869_v45 = vadd.f32 %v1868_v12, %v8971_v63  ;;  %v3654_v23 = vpop.f32.mrf.mxu1  ;;  %v8974_v53 = vld [vmem:[#allocation24_spill] sm:$0xff] }
 0x395   : > { %3866 = vst.msk [vmem:[%s8200_s7 + $0x88] sm:$0xff] %vm429_vm0, %v3834_v13  ;;  %v3735_v59 = vmul.f32 %v8155_v11, %v3699_v37  ;;  %v1877_v32 = vpop.f32.mrf.mxu2 }
 0x396   : > { %v1878_v12 = vadd.f32 %v1877_v32, %v8974_v53 }
 0x397   : > { %v3771_v14 = vadd.f32 %v8164_v40, %v3735_v59 }
 0x398   : > { %v2736_v21 = vpop.f32.mrf.mxu3 }
 0x399   : > { %v3803_v5 = vmul.f32 0.01, %v3771_v14  ;;  %v2794_v24 = vadd.f32 %v2736_v21, %v1863_v0  ;;  %v8975_v0 = vld [vmem:[#allocation25_spill] sm:$0xff] }
 0x39b   : > { %v3835_v35 = vmax.f32 %v3771_v14, %v3803_v5  ;;  %v3700_v31 = vadd.f32 %v3642_v7, %v2794_v24  ;;  %v3657_v55 = vpop.f32.mrf.mxu1 }
 0x39d   : > { %3867 = vst.msk [vmem:[%s8200_s7 + $0x90] sm:$0xff] %vm429_vm0, %v3835_v35  ;;  %v3736_v58 = vmul.f32 %v8155_v11, %v3700_v31  ;;  %v1880_v49 = vpop.f32.mrf.mxu2 }
 0x39e   : > { %v1881_v14 = vadd.f32 %v1880_v49, %v8975_v0 }
 0x39f   : > { %v3772_v3 = vadd.f32 %v8164_v40, %v3736_v58 }
 0x3a0   : > { %v2739_v57 = vpop.f32.mrf.mxu3 }
 0x3a1   : > { %v3804_v33 = vmul.f32 0.01, %v3772_v3  ;;  %v2795_v50 = vadd.f32 %v2739_v57, %v1866_v43 }
 0x3a3   : > { %v3836_v29 = vmax.f32 %v3772_v3, %v3804_v33  ;;  %v3701_v62 = vadd.f32 %v3645_v42, %v2795_v50  ;;  %v3660_v1 = vpop.f32.mrf.mxu1  ;;  %v8976_v3 = vld [vmem:[#allocation26_spill] sm:$0xff] }
 0x3a5   : > { %3868 = vst.msk [vmem:[%s8200_s7 + $0x98] sm:$0xff] %vm429_vm0, %v3836_v29  ;;  %v3737_v36 = vmul.f32 %v8155_v11, %v3701_v62  ;;  %v1883_v37 = vpop.f32.mrf.mxu2 }
 0x3a7   : > { %v3773_v34 = vadd.f32 %v8164_v40, %v3737_v36 }
 0x3a8   : > { %v2742_v47 = vpop.f32.mrf.mxu3 }
 0x3a9   : > { %v3805_v28 = vmul.f32 0.01, %v3773_v34  ;;  %v2796_v38 = vadd.f32 %v2742_v47, %v1869_v45 }
 0x3ab   : > { %v3837_v30 = vmax.f32 %v3773_v34, %v3805_v28  ;;  %v3702_v9 = vadd.f32 %v3648_v46, %v2796_v38  ;;  %v3663_v5 = vpop.f32.mrf.mxu1  ;;  %v8977_v34 = vld [vmem:[#allocation27_spill] sm:$0xff] }
 0x3ad   : > { %3869 = vst.msk [vmem:[%s8200_s7 + $0xa0] sm:$0xff] %vm429_vm0, %v3837_v30  ;;  %v3738_v60 = vmul.f32 %v8155_v11, %v3702_v9  ;;  %v1886_v10 = vpop.f32.mrf.mxu2 }
 0x3ae   : > { %v1887_v47 = vadd.f32 %v1886_v10, %v8977_v34 }
 0x3af   : > { %v3774_v6 = vadd.f32 %v8164_v40, %v3738_v60 }
 0x3b0   : > { %v2745_v22 = vpop.f32.mrf.mxu3 }
 0x3b1   : > { %v3806_v7 = vmul.f32 0.01, %v3774_v6  ;;  %v2797_v8 = vadd.f32 %v2745_v22, %v1872_v27  ;;  %v8978_v27 = vld [vmem:[#allocation28_spill] sm:$0xff] }
 0x3b3   : > { %v3838_v56 = vmax.f32 %v3774_v6, %v3806_v7  ;;  %v3703_v19 = vadd.f32 %v3651_v44, %v2797_v8  ;;  %v1884_v44 = vadd.f32 %v1883_v37, %v8976_v3  ;;  %v3666_v62 = vpop.f32.mrf.mxu1 }
 0x3b5   : > { %3870 = vst.msk [vmem:[%s8200_s7 + $0xa8] sm:$0xff] %vm429_vm0, %v3838_v56  ;;  %v3739_v18 = vmul.f32 %v8155_v11, %v3703_v19  ;;  %v1889_v45 = vpop.f32.mrf.mxu2 }
 0x3b6   : > { %v1890_v6 = vadd.f32 %v1889_v45, %v8978_v27 }
 0x3b7   : > { %v3775_v26 = vadd.f32 %v8164_v40, %v3739_v18 }
 0x3b8   : > { %v2748_v20 = vpop.f32.mrf.mxu3 }
 0x3b9   : > { %v3807_v16 = vmul.f32 0.01, %v3775_v26  ;;  %v2798_v15 = vadd.f32 %v2748_v20, %v1875_v39 }
 0x3bb   : > { %v3839_v42 = vmax.f32 %v3775_v26, %v3807_v16  ;;  %v3704_v52 = vadd.f32 %v3654_v23, %v2798_v15  ;;  %v3669_v32 = vpop.f32.mrf.mxu1  ;;  %v8979_v26 = vld [vmem:[#allocation29_spill] sm:$0xff] }
 0x3bd   : > { %3871 = vst.msk [vmem:[%s8200_s7 + $0xb0] sm:$0xff] %vm429_vm0, %v3839_v42  ;;  %v3740_v25 = vmul.f32 %v8155_v11, %v3704_v52  ;;  %v1892_v7 = vpop.f32.mrf.mxu2 }
 0x3be   : > { %v1893_v49 = vadd.f32 %v1892_v7, %v8979_v26 }
 0x3bf   : > { %v3776_v48 = vadd.f32 %v8164_v40, %v3740_v25 }
 0x3c0   : > { %v2751_v54 = vpop.f32.mrf.mxu3 }
 0x3c1   : > { %v3808_v2 = vmul.f32 0.01, %v3776_v48  ;;  %v2799_v13 = vadd.f32 %v2751_v54, %v1878_v12  ;;  %v8980_v12 = vld [vmem:[#allocation31_spill] sm:$0xff] }
 0x3c3   : > { %v3840_v59 = vmax.f32 %v3776_v48, %v3808_v2  ;;  %v3705_v46 = vadd.f32 %v3657_v55, %v2799_v13  ;;  %v3672_v39 = vpop.f32.mrf.mxu1 }
 0x3c5   : > { %3872 = vst.msk [vmem:[%s8200_s7 + $0xb8] sm:$0xff] %vm429_vm0, %v3840_v59  ;;  %v3741_v41 = vmul.f32 %v8155_v11, %v3705_v46  ;;  %v1895_v52 = vpop.f32.mrf.mxu2 }
 0x3c6   : > { %v1896_v48 = vadd.f32 %v1895_v52, %v8980_v12 }
 0x3c7   : > { %v3777_v21 = vadd.f32 %v8164_v40, %v3741_v41 }
 0x3c8   : > { %v2754_v24 = vpop.f32.mrf.mxu3 }
 0x3c9   : > { %v3809_v4 = vmul.f32 0.01, %v3777_v21  ;;  %v2800_v35 = vadd.f32 %v2754_v24, %v1881_v14 }
 0x3cb   : > { %v3841_v31 = vmax.f32 %v3777_v21, %v3809_v4  ;;  %v3706_v58 = vadd.f32 %v3660_v1, %v2800_v35  ;;  %v3675_v2 = vpop.f32.mrf.mxu1  ;;  %v8981_v21 = vld [vmem:[#allocation34_spill] sm:$0xff] }
 0x3cd   : > { %3873 = vst.msk [vmem:[%s8200_s7 + $0xc0] sm:$0xff] %vm429_vm0, %v3841_v31  ;;  %v3742_v43 = vmul.f32 %v8155_v11, %v3706_v58  ;;  %v1898_v0 = vpop.f32.mrf.mxu2 }
 0x3cf   : > { %v3778_v57 = vadd.f32 %v8164_v40, %v3742_v43 }
 0x3d0   : > { %v2757_v33 = vpop.f32.mrf.mxu3 }
 0x3d1   : > { %v3810_v50 = vmul.f32 0.01, %v3778_v57  ;;  %v2801_v29 = vadd.f32 %v2757_v33, %v1884_v44 }
 0x3d3   : > { %v3842_v61 = vmax.f32 %v3778_v57, %v3810_v50  ;;  %v3707_v36 = vadd.f32 %v3663_v5, %v2801_v29  ;;  %v1899_v5 = vadd.f32 %v1898_v0, %v8981_v21  ;;  %v3678_v58 = vpop.f32.mrf.mxu1 }
 0x3d5   : > { %3874 = vst.msk [vmem:[%s8200_s7 + $0xc8] sm:$0xff] %vm429_vm0, %v3842_v61  ;;  %v3743_v63 = vmul.f32 %v8155_v11, %v3707_v36 }
 0x3d7   : > { %v3779_v28 = vadd.f32 %v8164_v40, %v3743_v63 }
 0x3d8   : > { %v2760_v38 = vpop.f32.mrf.mxu3 }
 0x3d9   : > { %v3811_v23 = vmul.f32 0.01, %v3779_v28  ;;  %v2802_v30 = vadd.f32 %v2760_v38, %v1887_v47 }
 0x3db   : > { %v3843_v9 = vmax.f32 %v3779_v28, %v3811_v23  ;;  %v3708_v60 = vadd.f32 %v3666_v62, %v2802_v30 }
 0x3dd   : > { %3875 = vst.msk [vmem:[%s8200_s7 + $0xd0] sm:$0xff] %vm429_vm0, %v3843_v9  ;;  %v3744_v17 = vmul.f32 %v8155_v11, %v3708_v60 }
 0x3df   : > { %v3780_v22 = vadd.f32 %v8164_v40, %v3744_v17 }
 0x3e0   : > { %v2763_v8 = vpop.f32.mrf.mxu3 }
 0x3e1   : > { %v3812_v56 = vmul.f32 0.01, %v3780_v22  ;;  %v2803_v19 = vadd.f32 %v2763_v8, %v1890_v6 }
 0x3e3   : > { %v3844_v55 = vmax.f32 %v3780_v22, %v3812_v56  ;;  %v3709_v18 = vadd.f32 %v3669_v32, %v2803_v19 }
 0x3e5   : > { %3876 = vst.msk [vmem:[%s8200_s7 + $0xd8] sm:$0xff] %vm429_vm0, %v3844_v55  ;;  %v3745_v51 = vmul.f32 %v8155_v11, %v3709_v18 }
 0x3e7   : > { %v3781_v20 = vadd.f32 %v8164_v40, %v3745_v51 }
 0x3e8   : > { %v2766_v16 = vpop.f32.mrf.mxu3 }
 0x3e9   : > { %v3813_v15 = vmul.f32 0.01, %v3781_v20  ;;  %v2804_v42 = vadd.f32 %v2766_v16, %v1893_v49 }
 0x3eb   : > { %v3845_v25 = vmax.f32 %v3781_v20, %v3813_v15  ;;  %v3710_v1 = vadd.f32 %v3672_v39, %v2804_v42 }
 0x3ed   : > { %3877 = vst.msk [vmem:[%s8200_s7 + $0xe0] sm:$0xff] %vm429_vm0, %v3845_v25  ;;  %v3746_v53 = vmul.f32 %v8155_v11, %v3710_v1 }
 0x3ef   : > { %v3782_v54 = vadd.f32 %v8164_v40, %v3746_v53 }
 0x3f0   : > { %v2769_v13 = vpop.f32.mrf.mxu3 }
 0x3f1   : > { %v3814_v37 = vmul.f32 0.01, %v3782_v54  ;;  %v2805_v59 = vadd.f32 %v2769_v13, %v1896_v48 }
 0x3f3   : > { %v3846_v46 = vmax.f32 %v3782_v54, %v3814_v37  ;;  %v3711_v41 = vadd.f32 %v3675_v2, %v2805_v59 }
 0x3f5   : > { %3878 = vst.msk [vmem:[%s8200_s7 + $0xe8] sm:$0xff] %vm429_vm0, %v3846_v46  ;;  %v3747_v14 = vmul.f32 %v8155_v11, %v3711_v41 }
 0x3f7   : > { %v3783_v24 = vadd.f32 %v8164_v40, %v3747_v14 }
 0x3f8   : > { %v2772_v4 = vpop.f32.mrf.mxu3 }
 0x3f9   : > { %v3815_v35 = vmul.f32 0.01, %v3783_v24  ;;  %v2806_v31 = vadd.f32 %v2772_v4, %v1899_v5 }
 0x3fb   : > { %v3847_v10 = vmax.f32 %v3783_v24, %v3815_v35  ;;  %v3712_v43 = vadd.f32 %v3678_v58, %v2806_v31 }
 0x3fd   : > { %3879 = vst.msk [vmem:[%s8200_s7 + $0xf0] sm:$0xff] %vm429_vm0, %v3847_v10  ;;  %v3748_v3 = vmul.f32 %v8155_v11, %v3712_v43 }
 0x3ff   : > { %v3784_v44 = vadd.f32 %v8164_v40, %v3748_v3 }
 0x401   : > { %v3816_v57 = vmul.f32 0.01, %v3784_v44 }
 0x403   : > { %v3848_v33 = vmax.f32 %v3784_v44, %v3816_v57 }
 0x405   : > { %3880 = vst.msk [vmem:[%s8200_s7 + $0xf8] sm:$0xff] %vm429_vm0, %v3848_v33 }
 0x406   : > { %4317 = shalt.err (!%p4314_p8)
}
 0x407   : > { %s4365_s18 = smov 128   ;;  %s4366_s23 = smov 8  }
 0x408   : > { %4167 = dma.vmem_to_hbm [thread:$0]  (%p4474_p11), %s3895_s16, 4096, %s3897_s21, %s3882_s17, %s4365_s18, %s4365_s18, %s4366_s23  }
 0x409 PF: > { %s8982_s30 = sld [smem:[#allocation11_spill]] }
 0x40a   : > { %s8984_s7 = sld [smem:[#allocation13_spill]] }
 0x40f   : > { %s3911_s15 = sand.u32 1, %s8982_s30  }
 0x410   : > { %p8985_p9 = scmp.ge.s32.totalorder %s8984_s7, 2  ;;  %s3912_s28 = scalar_lea.sflag [#allocation4], %s3911_s15 }
 0x412   : > { %p4178_p10 = pnand %p8985_p9, %p4478_p12 }
 0x414   : > { %p4179_p1 = pneg %p4178_p10 }
 0x416   : > { %4343 = dma.done.wait (%p4179_p1), %s3912_s28, 4096  }
 0x417   : > { %4345 = vsyncadd (%p4179_p1), %s3912_s28, 4294963200  ;;  %s8986_s16 = sld [smem:[#allocation14_spill]]  ;;  %s8989_s13 = smov %s4352_s14 }
 0x418   : > { %s8987_s19 = sld [smem:[#allocation12_spill]] }
 0x419   : > { %s8988_s15 = sld [smem:[#allocation15_spill]] }
 0x41d   : > { %p24_p2 = scmp.ge.s32.totalorder %s8986_s16, 4  }
 0x41e   : > { %s8990_s14 = smov %s8987_s19 }
 0x41f   :  { %26 = sbr.rel (!%p24_p2) target bundleno = 8 (0x8), region = 109 }
 0x424   :  { %3918 = vsyncpa [#allocation3], 1 }
 0x425   :  { %3920 = vsyncpa [#allocation3 + $0x1], 1 }
 0x426   :  { %3921 = vsyncpa [#allocation6], 1 }
 0x427   :  { %3922 = vsyncpa [#allocation4], 1 }
 0x428   :  { %3924 = vsyncpa [#allocation4 + $0x1], 1 }

// kernel: tpu_custom_call.1
= control target key start
LH: loop header
LB: loop body
LE: loop exit
PB: predicated region body
PF: predicated region fallthrough
CT: control target
= control target key end

     0   :  { %s8452_s0 = inlined_call_operand.hbm [shape: f32[2,16,16,16], index: 0, kind: input, shape index: {}]   ;;  %s8453_s1 = inlined_call_operand.vmem [shape: f32[16,8], index: 1, kind: input, shape index: {}]   ;;  %s8454_s2 = inlined_call_operand.vmem [shape: f32[1,8], index: 2, kind: input, shape index: {}]   ;;  %s8455_s3 = inlined_call_operand.vmem [shape: f32[1,8], index: 3, kind: input, shape index: {}]   ;;  %s8456_s4 = inlined_call_operand.vmem [shape: f32[8,16], index: 4, kind: input, shape index: {}]   ;;  %s8457_s5 = inlined_call_operand.vmem [shape: f32[8,16], index: 5, kind: input, shape index: {}]   ;;  %s8458_s6 = inlined_call_operand.vmem [shape: f32[8,16], index: 6, kind: input, shape index: {}]   ;;  %s8459_s7 = inlined_call_operand.hbm [shape: f32[8,16], index: 7, kind: input, shape index: {}]   ;;  %s8460_s8 = inlined_call_operand.vmem [shape: f32[1,16], index: 8, kind: input, shape index: {}]   ;;  %s8461_s9 = inlined_call_operand.vmem [shape: f32[1,16], index: 9, kind: input, shape index: {}]   ;;  %s8462_s10 = inlined_call_operand.hbm [shape: f32[2,16,16,16], index: 10, kind: output, shape index: {}]  }
   0x1   :  { %8557 = sst [smem:[#allocation58_spill]] %s8459_s7 }
   0x2   :  { %15 = vsyncpa [#allocation3], 0 }
   0x3   :  { %17 = vsyncpa [#allocation3 + $0x1], 0 }
   0x4   :  { %18 = vsyncpa [#allocation6], 0 }
   0x5   :  { %19 = vsyncpa [#allocation4], 0 }
   0x6   :  { %21 = vsyncpa [#allocation4 + $0x1], 0  ;;  %s4422_s13 = smov 0   ;;  %s4424_s14 = smov 0  }
   0x7   :  { %s4426_s15 = smov 0   ;;  %s4428_s16 = smov 0  }
   0x8 LB: > { %8558 = sst [smem:[#allocation11_spill]] %s4348_s13  ;;  %s4443_s17 = sadd.s32 4294967295, %s4360_s16   ;;  %s4360_s16 = sphi %s4428_s16, %s8986_s16   ;;  %s4356_s15 = sphi %s4426_s15, %s8988_s15   ;;  %s4352_s14 = sphi %s4424_s14, %s8990_s14   ;;  %s4348_s13 = sphi %s4422_s13, %s8989_s13  }
   0x9   : > { %8559 = sst [smem:[#allocation12_spill]] %s4356_s15  ;;  %s3980_s18 = sadd.s32 4294967294, %s4360_s16  }
   0xa   : > { %8560 = sst [smem:[#allocation13_spill]] %s4360_s16  ;;  %s4447_s19 = sadd.s32 1, %s4360_s16  }
   0xb   : > { %8561 = sst [smem:[#allocation14_spill]] %s4447_s19  ;;  %s34_s20 = sadd.s32 1, %s4356_s15 }
   0xc   : > { %s31_s21 = ssub.s32 %s4360_s16, %s4447_s19  ;;  %p41_p0 = scmp.ne.s32.totalorder %s4356_s15, %s4352_s14 }
   0xd   : > { %p32_p1 = scmp.eq.s32.totalorder %s31_s21, 0  ;;  %p42_p2 = scmp.eq.s32.totalorder %s4360_s16, 0 }
   0xe   : > { %p47_p3 = scmp.ne.s32.totalorder %s4352_s14, %s4348_s13  ;;  %p48_p4 = scmp.eq.s32.totalorder %s4443_s17, 0 }
   0xf   : > { %s4459_s22 = scalar_select %p32_p1, %s4356_s15, %s34_s20  }
  0x10   : > { %p4461_p5 = por %p42_p2, %p41_p0  ;;  %p4467_p6 = por %p48_p4, %p47_p3 }
  0x11   : > { %8562 = sst [smem:[#allocation15_spill]] %s4459_s22  ;;  %p260_p7 = scmp.eq.s32.totalorder %s4443_s17, 1 }
  0x12   : > { %p266_p8 = scmp.eq.s32.totalorder %s3980_s18, 1  ;;  %p3981_p9 = scmp.ge.s32.totalorder %s4360_s16, 1 }
  0x13   : > { %p273_p10 = scmp.lt.s32.totalorder %s4360_s16, 3  ;;  %p4474_p11 = por %p260_p7, %p41_p0 }
  0x14   : > { %p4478_p12 = por %p266_p8, %p47_p3  ;;  %s8569_s7 = sld [smem:[#allocation58_spill]] }
  0x15   : > { %p4482_p13 = pnand %p3981_p9, %p273_p10  ;;  %s4362_s11 = smov [#allocation5]  }
  0x16   : > { %s8566_s26 = scalar_select %p4478_p12, 1, 0 }
  0x17   : > { %p4169_p1 = pneg %p4482_p13  ;;  %s305_s12 = sshll.u32 %s4362_s11, 4  ;;  %s306_s12 = int_to_ptr.vmem [resolvable:$true] %s305_s12 }
  0x18   : > { %8567 = sst [smem:[#allocation16_spill]] %s8566_s26  ;;  %p4182_p3 = scmp.lt.s32.totalorder %s4360_s16, 2 }
  0x19   : > { %p4170_p2 = pnand %p4169_p1, %p48_p4  ;;  %s322_s18 = sand.u32 1, %s4356_s15  }
  0x1a   : > { %s303_s30 = sshll.u32 %s8569_s7, 4  ;;  %p4498_p7 = pnand %p4182_p3, %p4461_p5  ;;  %s304_s30 = int_to_ptr.hbm [resolvable:$true] %s303_s30 }
  0x1b   : > { %4172 = dma.hbm_to_vmem [thread:$0]  (!%p4170_p2), %s304_s30, 128, %s306_s12, [#allocation6]  }
  0x1c   : > { %s3984_s21 = sshll.u32 %s322_s18, 8  ;;  %s4156_s28 = sshll.u32 %s4360_s16, 8 }
  0x1d   : > { %s331_s22 = scalar_lea.hbm %s8452_s0, %s4156_s28  ;;  %s326_s19 = scalar_lea.vmem [#allocation2], %s3984_s21 }
  0x1e   : > { %s332_s11 = sshll.u32 %s331_s22, 4  ;;  %s334_s26 = sshll.u32 %s326_s19, 4  ;;  %s333_s11 = int_to_ptr.hbm [resolvable:$true] %s332_s11  ;;  %s335_s26 = int_to_ptr.vmem [resolvable:$true] %s334_s26 }
  0x1f   : > { %s323_s13 = scalar_lea.sflag [#allocation3], %s322_s18  ;;  %s4260_s15 = sshra.s32 %s333_s11, 4  ;;  %s4261_s15 = int_to_ptr.hbm [resolvable:$true] %s4260_s15 }
  0x20   : > { %s4262_s23 = scalar_lea.hbm %s4261_s15, 256  ;;  %p4264_p8 = pneg %p4498_p7 }
  0x21   : > { %p4263_p5 = scmp.ne.s32.totalorder %s4261_s15, %s4262_s23  ;;  %s4267_s16 = scalar_lea.hbm %s8452_s0, 512 }
  0x22   : > { %p4268_p1 = scmp.lt.s32.totalorder %s4261_s15, %s8452_s0  ;;  %p4269_p2 = scmp.lt.s32.totalorder %s4267_s16, %s4262_s23 }
  0x23   : > { %p4265_p9 = pnand %p4264_p8, %p4263_p5 }
  0x24   : > { %p4270_p3 = por %p4269_p2, %p4268_p1 }
  0x25   : > { %p4266_p10 = pneg %p4265_p9 }
  0x27   : > { %p4271_p0 = pnand %p4270_p3, %p4266_p10 }
  0x29   : > { %4274 = shalt.err (!%p4271_p0)
}
  0x2a   : > { %s4363_s19 = smov 128   ;;  %s4364_s22 = smov 8  }
  0x2b   : > { %4176 = dma.hbm_to_vmem [thread:$0]  (!%p4498_p7), %s333_s11, 4096, %s335_s26, %s323_s13, %s4363_s19, %s4363_s19, %s4364_s22  }
  0x2c   : > { %346 = sbr.rel (%p4482_p13) target bundleno = 1033 (0x409), region = 60 }
  0x31   : > { %s4519_s18 = sand.u32 1, %s4352_s14  }
  0x32   : > { %s3988_s15 = sshll.u32 %s4519_s18, 8  ;;  %s349_s16 = scalar_lea.sflag [#allocation3], %s4519_s18 }
  0x33   : > { %s4525_s21 = scalar_lea.vmem [#allocation2], %s3988_s15 }
  0x34   : > { %4335 = dma.done.wait (%p4467_p6), %s349_s16, 4096  }
  0x35   : > { %4337 = vsyncadd (%p4467_p6), %s349_s16, 4294963200 }
  0x36   : > { %4339 = dma.done.wait (%p48_p4), [#allocation6], 128  }
  0x37   : > { %4341 = vsyncadd (%p48_p4), [#allocation6], 4294967168  ;;  %v428_v0 = vld [vmem:[%s8453_s1 + $0x8] sm:$0xff]  ;;  %v427_v1 = vld [vmem:[%s8453_s1] sm:$0xff]  ;;  %vm429_vm0 = vcmask 130048   ;;  %v775_v57 = vlaneseq  ;;  %vm1482_vm9 = vcmask 64512  }
  0x38   : > { %540 = vmatpush.msra.mxu0 %v428_v0  ;;  %v395_v2 = vld [vmem:[%s4525_s21] sm:$0xff]  ;;  %v396_v3 = vld [vmem:[%s4525_s21 + $0x8] sm:$0xff]  ;;  %v397_v4 = vld [vmem:[%s4525_s21 + $0x10] sm:$0xff]  ;;  %s8200_s7 = scalar_lea.vmem [#allocation7], %s3988_s15  ;;  %s4157_s15 = sshll.u32 %s4443_s17, 8 }
  0x39   : > { %v398_v5 = vld [vmem:[%s4525_s21 + $0x18] sm:$0xff]  ;;  %v399_v6 = vld [vmem:[%s4525_s21 + $0x20] sm:$0xff]  ;;  %v400_v7 = vld [vmem:[%s4525_s21 + $0x28] sm:$0xff]  ;;  %s3893_s22 = scalar_lea.hbm %s8462_s10, %s4157_s15  ;;  %s3894_s16 = sshll.u32 %s8200_s7, 4  ;;  %s3895_s16 = int_to_ptr.vmem [resolvable:$true] %s3894_s16 }
  0x3a   : > { %541 = vmatpush.msra.mxu0 %v427_v1  ;;  %v401_v8 = vld [vmem:[%s4525_s21 + $0x30] sm:$0xff]  ;;  %v402_v9 = vld [vmem:[%s4525_s21 + $0x38] sm:$0xff]  ;;  %v403_v10 = vld [vmem:[%s4525_s21 + $0x40] sm:$0xff]  ;;  %s3882_s17 = scalar_lea.sflag [#allocation4], %s4519_s18  ;;  %s4310_s24 = scalar_lea.hbm %s8462_s10, 512 }
  0x3b   : > { %3991 = vmatmul.msk.f32.vlgmr.msra.gmra.mxu0 %vm429_vm0, %v395_v2  ;;  %v404_v11 = vld [vmem:[%s4525_s21 + $0x48] sm:$0xff]  ;;  %v405_v12 = vld [vmem:[%s4525_s21 + $0x50] sm:$0xff]  ;;  %v406_v13 = vld [vmem:[%s4525_s21 + $0x58] sm:$0xff]  ;;  %v4631_v2 = vshrl.u32 %v775_v57, 7 }
  0x3c   : > { %v407_v14 = vld [vmem:[%s4525_s21 + $0x60] sm:$0xff]  ;;  %v408_v15 = vld [vmem:[%s4525_s21 + $0x68] sm:$0xff]  ;;  %v409_v16 = vld [vmem:[%s4525_s21 + $0x70] sm:$0xff] }
  0x3d   : > { %v410_v17 = vld [vmem:[%s4525_s21 + $0x78] sm:$0xff]  ;;  %v411_v19 = vld [vmem:[%s4525_s21 + $0x80] sm:$0xff]  ;;  %v412_v21 = vld [vmem:[%s4525_s21 + $0x88] sm:$0xff]  ;;  %vm997_vm1 = vcmp.lt.s32.totalorder %v4631_v2, 2  ;;  %vm1126_vm3 = vcmp.lt.s32.totalorder %v4631_v2, 1  ;;  %vm1255_vm6 = vcmp.lt.s32.totalorder %v4631_v2, 7 }
  0x3e   : > { %v413_v23 = vld [vmem:[%s4525_s21 + $0x90] sm:$0xff]  ;;  %v414_v25 = vld [vmem:[%s4525_s21 + $0x98] sm:$0xff]  ;;  %v4583_v26 = vld [vmem:[%s8454_s2] ss:$0 sm:$0xff]  ;;  %vm1384_vm7 = vcmp.lt.s32.totalorder %v4631_v2, 6 }
  0x3f   : > { %v4591_v29 = vld [vmem:[%s8455_s3] ss:$0 sm:$0xff]  ;;  %v416_v45 = vld [vmem:[%s4525_s21 + $0xa8] sm:$0xff]  ;;  %v417_v62 = vld [vmem:[%s4525_s21 + $0xb0] sm:$0xff] }
  0x40   : > { %v415_v33 = vld [vmem:[%s4525_s21 + $0xa0] sm:$0xff] }
  0x43   : > { %3992 = vmatmul.msk.f32.gmra.mxu0 %vm429_vm0, %v396_v3 }
  0x4b   : > { %3993 = vmatmul.msk.f32.gmra.mxu0 %vm429_vm0, %v397_v4  ;;  %v4636_v4 = vadd.s32 4294967294, %v4631_v2 }
  0x4d   : > { %vm782_vm2 = vcmp.ge.s32.totalorder %v4636_v4, 0 }
  0x53   : > { %3994 = vmatmul.msk.f32.gmra.mxu0 %vm429_vm0, %v398_v5 }
  0x5b   : > { %3995 = vmatmul.msk.f32.gmra.mxu0 %vm429_vm0, %v399_v6 }
  0x63   : > { %3996 = vmatmul.msk.f32.gmra.mxu0 %vm429_vm0, %v400_v7  ;;  %v777_v7 = vadd.s32 8, %v4631_v2 }
  0x6b   : > { %3997 = vmatmul.msk.f32.gmra.mxu0 %vm429_vm0, %v401_v8 }
  0x73   : > { %3998 = vmatmul.msk.f32.gmra.mxu0 %vm429_vm0, %v402_v9 }
  0x7b   : > { %3999 = vmatmul.msk.f32.gmra.mxu0 %vm429_vm0, %v403_v10  ;;  %v418_v10 = vld [vmem:[%s4525_s21 + $0xb8] sm:$0xff] }
  0x83   : > { %4000 = vmatmul.msk.f32.gmra.mxu0 %vm429_vm0, %v404_v11 }
  0x8b   : > { %4001 = vmatmul.msk.f32.gmra.mxu0 %vm429_vm0, %v405_v12 }
  0x93   : > { %4002 = vmatmul.msk.f32.gmra.mxu0 %vm429_vm0, %v406_v13  ;;  %v4648_v13 = vadd.s32 4294967295, %v4631_v2 }
  0x95   : > { %vm790_vm4 = vcmp.ge.s32.totalorder %v4648_v13, 0 }
  0x9b   : > { %4003 = vmatmul.msk.f32.gmra.mxu0 %vm429_vm0, %v407_v14 }
  0xa3   : > { %4004 = vmatmul.msk.f32.gmra.mxu0 %vm429_vm0, %v408_v15  ;;  %v4652_v15 = vadd.s32 1, %v777_v7 }
  0xa5   : > { %vm801_vm5 = vcmp.lt.s32.totalorder %v4652_v15, 16 }
  0xab   : > { %4005 = vmatmul.msk.f32.gmra.mxu0 %vm429_vm0, %v409_v16 }
  0xb3   : > { %4006 = vmatmul.msk.f32.gmra.mxu0 %vm429_vm0, %v410_v17 }
  0xb8   : > { %v543_v18 = vpop.f32.mrf.mxu0 }
  0xb9   : > { %v643_v28 = vmul.f32 %v4583_v26, %v543_v18 }
  0xbb   : > { %4007 = vmatmul.msk.f32.gmra.mxu0 %vm429_vm0, %v411_v19  ;;  %v679_v35 = vadd.f32 %v4591_v29, %v643_v28 }
  0xbd   : > { %v711_v40 = vmul.f32 0.01, %v679_v35 }
  0xbf   : > { %v4607_v48 = vmax.f32 %v679_v35, %v711_v40 }
  0xc0   : > { %v546_v20 = vpop.f32.mrf.mxu0 }
  0xc1   : > { %v644_v27 = vmul.f32 %v4583_v26, %v546_v20  ;;  %8572 = vst [vmem:[#allocation18_spill] sm:$0xff] %v4607_v48  ;;  %v813_v55 = vmax.f32 %v4607_v48, -3.4028235e+38 }
  0xc3   : > { %4008 = vmatmul.msk.f32.gmra.mxu0 %vm429_vm0, %v412_v21  ;;  %v680_v34 = vadd.f32 %v4591_v29, %v644_v27 }
  0xc5   : > { %v712_v39 = vmul.f32 0.01, %v680_v34 }
  0xc7   : > { %v4604_v46 = vmax.f32 %v680_v34, %v712_v39 }
  0xc8   : > { %v549_v22 = vpop.f32.mrf.mxu0 }
  0xc9   : > { %v645_v31 = vmul.f32 %v4583_v26, %v549_v22  ;;  %8571 = vst [vmem:[#allocation17_spill] sm:$0xff] %v4604_v46  ;;  %v814_v53 = vmax.f32 %v4604_v46, -3.4028235e+38 }
  0xcb   : > { %4009 = vmatmul.msk.f32.gmra.mxu0 %vm429_vm0, %v413_v23  ;;  %v681_v38 = vadd.f32 %v4591_v29, %v645_v31 }
  0xcd   : > { %v713_v43 = vmul.f32 0.01, %v681_v38 }
  0xcf   : > { %v4613_v52 = vmax.f32 %v681_v38, %v713_v43 }
  0xd0   : > { %v552_v24 = vpop.f32.mrf.mxu0 }
  0xd1   : > { %v646_v30 = vmul.f32 %v4583_v26, %v552_v24  ;;  %8574 = vst [vmem:[#allocation20_spill] sm:$0xff] %v4613_v52  ;;  %v843_v60 = vmax.f32 %v813_v55, %v4613_v52  ;;  %v4667_v24 = vadd.s32 2, %v777_v7 }
  0xd3   : > { %4010 = vmatmul.msk.f32.gmra.mxu0 %vm429_vm0, %v414_v25  ;;  %v682_v37 = vadd.f32 %v4591_v29, %v646_v30  ;;  %vm809_vm8 = vcmp.lt.s32.totalorder %v4667_v24, 16 }
  0xd5   : > { %v714_v42 = vmul.f32 0.01, %v682_v37 }
  0xd7   : > { %v4609_v50 = vmax.f32 %v682_v37, %v714_v42 }
  0xd8   : > { %v555_v32 = vpop.f32.mrf.mxu0 }
  0xd9   : > { %v647_v36 = vmul.f32 %v4583_v26, %v555_v32  ;;  %8573 = vst [vmem:[#allocation19_spill] sm:$0xff] %v4609_v50  ;;  %v844_v58 = vmax.f32 %v814_v53, %v4609_v50  ;;  %v419_v32 = vld [vmem:[%s4525_s21 + $0xc0] sm:$0xff] }
  0xdb   : > { %4011 = vmatmul.msk.f32.gmra.mxu0 %vm429_vm0, %v415_v33  ;;  %v683_v41 = vadd.f32 %v4591_v29, %v647_v36 }
  0xdd   : > { %v715_v49 = vmul.f32 0.01, %v683_v41 }
  0xdf   : > { %v4617_v56 = vmax.f32 %v683_v41, %v715_v49 }
  0xe0   : > { %v558_v44 = vpop.f32.mrf.mxu0 }
  0xe1   : > { %v648_v47 = vmul.f32 %v4583_v26, %v558_v44  ;;  %8575 = vst [vmem:[#allocation21_spill] sm:$0xff] %v4617_v56  ;;  %v4629_v1 = vmax.f32 %v843_v60, %v4617_v56 }
  0xe3   : > { %v684_v51 = vadd.f32 %v4591_v29, %v648_v47  ;;  %4012 = vmatmul.msk.f32.gmra.mxu0 %vm429_vm0, %v416_v45  ;;  %v965_v6 = vrot.slane %v4629_v1, 6  ;;  %v1094_v19 = vrot.slane %v4629_v1, 7  ;;  %v1223_v35 = vrot.slane %v4629_v1, 1 }
  0xe4   : > { %v1352_v41 = vrot.slane %v4629_v1, 2  ;;  %v815_v47 = vmax.f32 %v4607_v48, %v4613_v52 }
  0xe5   : > { %v716_v54 = vmul.f32 0.01, %v684_v51 }
  0xe7   : > { %v4620_v59 = vmax.f32 %v684_v51, %v716_v54 }
  0xe8   : > { %v561_v61 = vpop.f32.mrf.mxu0 }
  0xe9   : > { %8576 = vst [vmem:[#allocation22_spill] sm:$0xff] %v4620_v59  ;;  %v4625_v63 = vmax.f32 %v844_v58, %v4620_v59  ;;  %v649_v0 = vmul.f32 %v4583_v26, %v561_v61  ;;  %v818_v7 = vmax.f32 %v4609_v50, %v4620_v59 }
  0xeb   : > { %4013 = vmatmul.msk.f32.gmra.mxu0 %vm429_vm0, %v417_v62  ;;  %v685_v3 = vadd.f32 %v4591_v29, %v649_v0  ;;  %v981_v5 = vrot.slane %v4625_v63, 6  ;;  %v1110_v14 = vrot.slane %v4625_v63, 7  ;;  %v1239_v25 = vrot.slane %v4625_v63, 1 }
  0xec   : > { %v1368_v36 = vrot.slane %v4625_v63, 2  ;;  %v816_v0 = vmax.f32 %v4604_v46, %v4609_v50 }
  0xed   : > { %v717_v8 = vmul.f32 0.01, %v685_v3  ;;  %v1014_v11 = vsel %vm997_vm1, %v981_v5, %v965_v6  ;;  %v998_v20 = vsel %vm997_vm1, %v965_v6, %v981_v5  ;;  %v1143_v23 = vsel %vm1126_vm3, %v1110_v14, %v1094_v19  ;;  %v420_v6 = vld [vmem:[%s4525_s21 + $0xc8] sm:$0xff] }
  0xee   : > { %v1030_v16 = vsel %vm782_vm2, %v1014_v11, -3.4028235e+38  ;;  %v1063_v27 = vmax.f32 %v4625_v63, %v998_v20  ;;  %v1159_v34 = vsel %vm790_vm4, %v1143_v23, -3.4028235e+38  ;;  %v1127_v39 = vsel %vm1126_vm3, %v1094_v19, %v1110_v14 }
  0xef   : > { %v4657_v17 = vmax.f32 %v685_v3, %v717_v8  ;;  %v1062_v22 = vmax.f32 %v4629_v1, %v1030_v16  ;;  %v1272_v43 = vsel %vm1255_vm6, %v1239_v25, %v1223_v35  ;;  %v1256_v49 = vsel %vm1255_vm6, %v1223_v35, %v1239_v25 }
  0xf0   : > { %v564_v9 = vpop.f32.mrf.mxu0  ;;  %v1192_v42 = vmax.f32 %v1063_v27, %v1127_v39  ;;  %v1401_v51 = vsel %vm1384_vm7, %v1368_v36, %v1352_v41  ;;  %v1289_v55 = vsel %vm801_vm5, %v1272_v43, -3.4028235e+38  ;;  %v845_v3 = vmax.f32 %v815_v47, %v4617_v56 }
  0xf1   : > { %v650_v12 = vmul.f32 %v4583_v26, %v564_v9  ;;  %8577 = vst [vmem:[#allocation23_spill] sm:$0xff] %v4657_v17  ;;  %v4673_v28 = vmax.f32 %v4629_v1, %v4657_v17  ;;  %v1191_v38 = vmax.f32 %v1062_v22, %v1159_v34  ;;  %v817_v1 = vmax.f32 %v4613_v52, %v4617_v56 }
  0xf2   : > { %v1321_v61 = vmax.f32 %v1192_v42, %v1289_v55  ;;  %v1385_v8 = vsel %vm1384_vm7, %v1352_v41, %v1368_v36  ;;  %v819_v22 = vmax.f32 %v4617_v56, %v4657_v17 }
  0xf3   : > { %4014 = vmatmul.msk.f32.gmra.mxu0 %vm429_vm0, %v418_v10  ;;  %v686_v18 = vadd.f32 %v4591_v29, %v650_v12  ;;  %v966_v44 = vrot.slane %v4673_v28, 6  ;;  %v1320_v54 = vmax.f32 %v1191_v38, %v1256_v49  ;;  %v1095_v58 = vrot.slane %v4673_v28, 7  ;;  %v421_v49 = vld [vmem:[%s4525_s21 + $0xd0] sm:$0xff] }
  0xf4   : > { %v1418_v12 = vsel %vm809_vm8, %v1401_v51, -3.4028235e+38  ;;  %v1224_v27 = vrot.slane %v4673_v28, 1  ;;  %v1353_v43 = vrot.slane %v4673_v28, 2 }
  0xf5   : > { %v718_v21 = vmul.f32 0.01, %v686_v18  ;;  %v4738_v20 = vmax.f32 %v1320_v54, %v1385_v8 }
  0xf7   : > { %v4675_v30 = vmax.f32 %v686_v18, %v718_v21  ;;  %v846_v18 = vmax.f32 %v816_v0, %v4620_v59  ;;  %v4740_v21 = vmax.f32 %v1321_v61, %v1418_v12  ;;  %v1901_v41 = vmax.f32 %v4738_v20, -3.4028235e+38 }
  0xf8   : > { %v567_v31 = vpop.f32.mrf.mxu0 }
  0xf9   : > { %8578 = vst [vmem:[#allocation24_spill] sm:$0xff] %v4675_v30  ;;  %v651_v33 = vmul.f32 %v4583_v26, %v567_v31  ;;  %v4687_v37 = vmax.f32 %v4625_v63, %v4675_v30  ;;  %v847_v31 = vmax.f32 %v817_v1, %v4657_v17  ;;  %v1902_v42 = vmax.f32 %v4740_v21, -3.4028235e+38 }
  0xfb   : > { %v687_v40 = vadd.f32 %v4591_v29, %v651_v33  ;;  %4015 = vmatmul.msk.f32.gmra.mxu0 %vm429_vm0, %v419_v32  ;;  %v982_v45 = vrot.slane %v4687_v37, 6  ;;  %v1111_v53 = vrot.slane %v4687_v37, 7  ;;  %v1240_v14 = vrot.slane %v4687_v37, 1 }
  0xfc   : > { %v875_v32 = vmax.f32 %v845_v3, %v4657_v17  ;;  %v1369_v36 = vrot.slane %v4687_v37, 2 }
  0xfd   : > { %v1015_v57 = vsel %vm997_vm1, %v982_v45, %v966_v44  ;;  %v719_v60 = vmul.f32 0.01, %v687_v40  ;;  %v999_v63 = vsel %vm997_vm1, %v966_v44, %v982_v45  ;;  %v1144_v10 = vsel %vm1126_vm3, %v1111_v53, %v1095_v58 }
  0xfe   : > { %v1032_v62 = vsel %vm782_vm2, %v1015_v57, -3.4028235e+38  ;;  %v1065_v16 = vmax.f32 %v4687_v37, %v999_v63  ;;  %v1161_v25 = vsel %vm790_vm4, %v1144_v10, -3.4028235e+38  ;;  %v1128_v34 = vsel %vm1126_vm3, %v1095_v58, %v1111_v53 }
  0xff   : > { %v1064_v9 = vmax.f32 %v4673_v28, %v1032_v62  ;;  %v4735_v19 = vmax.f32 %v687_v40, %v719_v60  ;;  %v1273_v39 = vsel %vm1255_vm6, %v1240_v14, %v1224_v27  ;;  %v820_v44 = vmax.f32 %v4620_v59, %v4675_v30 }
 0x100   : > { %v570_v5 = vpop.f32.mrf.mxu0  ;;  %v1194_v38 = vmax.f32 %v1065_v16, %v1128_v34  ;;  %v876_v45 = vmax.f32 %v846_v18, %v4675_v30  ;;  %v1257_v51 = vsel %vm1255_vm6, %v1224_v27, %v1240_v14  ;;  %v4770_v53 = vmax.f32 %v818_v7, %v4675_v30 }
 0x101   : > { %v652_v11 = vmul.f32 %v4583_v26, %v570_v5  ;;  %8579 = vst [vmem:[#allocation25_spill] sm:$0xff] %v4735_v19  ;;  %v1193_v33 = vmax.f32 %v1064_v9, %v1161_v25  ;;  %v4756_v40 = vmax.f32 %v875_v32, %v4735_v19  ;;  %v1291_v28 = vsel %vm801_vm5, %v1273_v39, -3.4028235e+38  ;;  %v422_v32 = vld [vmem:[%s4525_s21 + $0xd8] sm:$0xff] }
 0x102   : > { %v1386_v58 = vsel %vm1384_vm7, %v1353_v43, %v1369_v36  ;;  %v1323_v60 = vmax.f32 %v1194_v38, %v1291_v28  ;;  %v1402_v61 = vsel %vm1384_vm7, %v1369_v36, %v1353_v43  ;;  %v821_v62 = vmax.f32 %v4657_v17, %v4735_v19 }
 0x103   : > { %4016 = vmatmul.msk.f32.gmra.mxu0 %vm429_vm0, %v420_v6  ;;  %v688_v23 = vadd.f32 %v4591_v29, %v652_v11  ;;  %v1322_v55 = vmax.f32 %v1193_v33, %v1257_v51  ;;  %v4783_v63 = vmax.f32 %v819_v22, %v4735_v19  ;;  %v967_v1 = vrot.slane %v4756_v40, 6 }
 0x104   : > { %v1096_v5 = vrot.slane %v4756_v40, 7  ;;  %v877_v8 = vmax.f32 %v847_v31, %v4735_v19  ;;  %v1420_v11 = vsel %vm809_vm8, %v1402_v61, -3.4028235e+38  ;;  %v1225_v18 = vrot.slane %v4756_v40, 1 }
 0x105   : > { %v720_v35 = vmul.f32 0.01, %v688_v23  ;;  %v4790_v10 = vmax.f32 %v1322_v55, %v1386_v58  ;;  %v4794_v12 = vmax.f32 %v1323_v60, %v1420_v11  ;;  %v1354_v25 = vrot.slane %v4756_v40, 2 }
 0x107   : > { %v4764_v47 = vmax.f32 %v688_v23, %v720_v35  ;;  %v1903_v38 = vmax.f32 %v4738_v20, %v4790_v10  ;;  %v1931_v39 = vmax.f32 %v1901_v41, %v4790_v10  ;;  %v1932_v41 = vmax.f32 %v1902_v42, %v4794_v12 }
 0x108   : > { %v573_v37 = vpop.f32.mrf.mxu0 }
 0x109   : > { %8580 = vst [vmem:[#allocation26_spill] sm:$0xff] %v4764_v47  ;;  %v653_v54 = vmul.f32 %v4583_v26, %v573_v37  ;;  %v906_v57 = vmax.f32 %v876_v45, %v4764_v47 }
 0x10b   : > { %v689_v0 = vadd.f32 %v4591_v29, %v653_v54  ;;  %4017 = vmatmul.msk.f32.gmra.mxu0 %vm429_vm0, %v421_v49  ;;  %v983_v3 = vrot.slane %v906_v57, 6  ;;  %v1112_v6 = vrot.slane %v906_v57, 7  ;;  %v1241_v7 = vrot.slane %v906_v57, 1 }
 0x10c   : > { %v1370_v34 = vrot.slane %v906_v57, 2 }
 0x10d   : > { %v721_v9 = vmul.f32 0.01, %v689_v0  ;;  %v1016_v14 = vsel %vm997_vm1, %v983_v3, %v967_v1  ;;  %v1145_v16 = vsel %vm1126_vm3, %v1112_v6, %v1096_v5  ;;  %v1000_v27 = vsel %vm997_vm1, %v967_v1, %v983_v3 }
 0x10e   : > { %v1034_v23 = vsel %vm782_vm2, %v1016_v14, -3.4028235e+38  ;;  %v1067_v35 = vmax.f32 %v906_v57, %v1000_v27  ;;  %v1274_v36 = vsel %vm1255_vm6, %v1241_v7, %v1225_v18  ;;  %v1163_v43 = vsel %vm790_vm4, %v1145_v16, -3.4028235e+38  ;;  %v1481_v27 = vld [vmem:[%s8457_s5] sm:$0xff] }
 0x10f   : > { %v4801_v22 = vmax.f32 %v689_v0, %v721_v9  ;;  %v1066_v33 = vmax.f32 %v4756_v40, %v1034_v23  ;;  %v1129_v45 = vsel %vm1126_vm3, %v1096_v5, %v1112_v6  ;;  %v1904_v40 = vmax.f32 %v4740_v21, %v4794_v12  ;;  %4158 = vmatpush.msra.mxu1 %v1481_v27 }
 0x110   : > { %v576_v31 = vpop.f32.mrf.mxu0  ;;  %v1196_v51 = vmax.f32 %v1067_v35, %v1129_v45  ;;  %v1258_v55 = vsel %vm1255_vm6, %v1225_v18, %v1241_v7  ;;  %v1293_v28 = vsel %vm801_vm5, %v1274_v36, -3.4028235e+38  ;;  %v1403_v61 = vsel %vm1384_vm7, %v1370_v34, %v1354_v25  ;;  %1594 = vmatpush.msrb.mxu0 %v1481_v27  ;;  %4159 = vmatpush.msra.mxu2 %v1481_v27 }
 0x111   : > { %8581 = vst [vmem:[#allocation27_spill] sm:$0xff] %v4801_v22  ;;  %v654_v37 = vmul.f32 %v4583_v26, %v576_v31  ;;  %v1195_v49 = vmax.f32 %v1066_v33, %v1163_v43  ;;  %v4823_v54 = vmax.f32 %v877_v8, %v4801_v22  ;;  %v822_v0 = vmax.f32 %v4675_v30, %v4764_v47  ;;  %v426_v30 = vld [vmem:[%s4525_s21 + $0xf8] sm:$0xff] }
 0x112   : > { %v1325_v60 = vmax.f32 %v1196_v51, %v1293_v28  ;;  %v4837_v1 = vmax.f32 %v820_v44, %v4764_v47  ;;  %v1387_v42 = vsel %vm1384_vm7, %v1354_v25, %v1370_v34  ;;  %v1422_v3 = vsel %vm809_vm8, %v1403_v61, -3.4028235e+38  ;;  %v423_v25 = vld [vmem:[%s4525_s21 + $0xe0] sm:$0xff]  ;;  %4160 = vmatpush.msra.mxu3 %v1481_v27 }
 0x113   : > { %4018 = vmatmul.msk.f32.gmra.mxu0 %vm429_vm0, %v422_v32  ;;  %v690_v57 = vadd.f32 %v4591_v29, %v654_v37  ;;  %v1324_v58 = vmax.f32 %v1195_v49, %v1258_v55  ;;  %v878_v5 = vmax.f32 %v4770_v53, %v4764_v47  ;;  %v823_v9 = vmax.f32 %v4735_v19, %v4801_v22 }
 0x114   : > { %v4847_v8 = vmax.f32 %v1325_v60, %v1422_v3  ;;  %v4852_v44 = vmax.f32 %v821_v62, %v4801_v22  ;;  %v879_v11 = vmax.f32 %v4783_v63, %v4801_v22  ;;  %v968_v14 = vrot.slane %v4823_v54, 6 }
 0x115   : > { %v722_v6 = vmul.f32 0.01, %v690_v57  ;;  %v4845_v7 = vmax.f32 %v1324_v58, %v1387_v42  ;;  %v1097_v16 = vrot.slane %v4823_v54, 7  ;;  %v1226_v53 = vrot.slane %v4823_v54, 1 }
 0x116   : > { %v1355_v31 = vrot.slane %v4823_v54, 2  ;;  %v1906_v36 = vmax.f32 %v4794_v12, %v4847_v8  ;;  %v4901_v3 = vmax.f32 %v1932_v41, %v4847_v8 }
 0x117   : > { %v4859_v18 = vmax.f32 %v690_v57, %v722_v6  ;;  %v4866_v62 = vmax.f32 %v1931_v39, %v4845_v7  ;;  %v1905_v32 = vmax.f32 %v4790_v10, %v4845_v7  ;;  %v4873_v33 = vmax.f32 %v1903_v38, %v4845_v7 }
 0x118   : > { %v579_v23 = vpop.f32.mrf.mxu0  ;;  %v4881_v39 = vmax.f32 %v1904_v40, %v4847_v8 }
 0x119   : > { %8582 = vst [vmem:[#allocation28_spill] sm:$0xff] %v4859_v18  ;;  %v655_v63 = vmul.f32 %v4583_v26, %v579_v23  ;;  %v824_v34 = vmax.f32 %v4764_v47, %v4859_v18  ;;  %v908_v35 = vmax.f32 %v878_v5, %v4859_v18  ;;  %v4884_v43 = vmax.f32 %v822_v0, %v4859_v18 }
 0x11a   : > { %v880_v45 = vmax.f32 %v4837_v1, %v4859_v18  ;;  %v2053_v37 = vrot.slane %v4866_v62, 6 }
 0x11b   : > { %v691_v38 = vadd.f32 %v4591_v29, %v655_v63  ;;  %4019 = vmatmul.msk.f32.gmra.mxu0 %vm429_vm0, %v423_v25  ;;  %v984_v49 = vrot.slane %v908_v35, 6  ;;  %v1113_v51 = vrot.slane %v908_v35, 7  ;;  %v1242_v55 = vrot.slane %v908_v35, 1 }
 0x11c   : > { %v1371_v28 = vrot.slane %v908_v35, 2 }
 0x11d   : > { %v723_v40 = vmul.f32 0.01, %v691_v38  ;;  %v1001_v61 = vsel %vm997_vm1, %v968_v14, %v984_v49  ;;  %v1017_v0 = vsel %vm997_vm1, %v984_v49, %v968_v14  ;;  %v1146_v42 = vsel %vm1126_vm3, %v1113_v51, %v1097_v16 }
 0x11e   : > { %v1036_v5 = vsel %vm782_vm2, %v1017_v0, -3.4028235e+38  ;;  %v1069_v6 = vmax.f32 %v908_v35, %v1001_v61  ;;  %v1130_v23 = vsel %vm1126_vm3, %v1097_v16, %v1113_v51  ;;  %v1165_v25 = vsel %vm790_vm4, %v1146_v42, -3.4028235e+38  ;;  %v424_v0 = vld [vmem:[%s4525_s21 + $0xe8] sm:$0xff] }
 0x11f   : > { %v1068_v27 = vmax.f32 %v4823_v54, %v1036_v5  ;;  %v1259_v14 = vsel %vm1255_vm6, %v1226_v53, %v1242_v55  ;;  %v1275_v63 = vsel %vm1255_vm6, %v1242_v55, %v1226_v53  ;;  %v1404_v41 = vsel %vm1384_vm7, %v1371_v28, %v1355_v31 }
 0x120   : > { %v582_v49 = vpop.f32.mrf.mxu0  ;;  %v1198_v35 = vmax.f32 %v1069_v6, %v1130_v23  ;;  %v1295_v16 = vsel %vm801_vm5, %v1275_v63, -3.4028235e+38  ;;  %v1388_v51 = vsel %vm1384_vm7, %v1355_v31, %v1371_v28  ;;  %v4921_v61 = vmax.f32 %v691_v38, %v723_v40 }
 0x121   : > { %v1197_v54 = vmax.f32 %v1068_v27, %v1165_v25  ;;  %v1424_v42 = vsel %vm809_vm8, %v1404_v41, -3.4028235e+38  ;;  %v656_v53 = vmul.f32 %v4583_v26, %v582_v49  ;;  %v2069_v55 = vrot.slane %v4901_v3, 6 }
 0x122   : > { %8583 = vst [vmem:[#allocation29_spill] sm:$0xff] %v4921_v61  ;;  %v1327_v5 = vmax.f32 %v1198_v35, %v1295_v16  ;;  %v4930_v23 = vmax.f32 %v823_v9, %v4921_v61  ;;  %v4935_v28 = vmax.f32 %v879_v11, %v4921_v61  ;;  %v881_v9 = vmax.f32 %v4852_v44, %v4921_v61 }
 0x123   : > { %4020 = vmatmul.msk.f32.gmra.mxu0 %vm429_vm0, %v424_v0  ;;  %v1326_v38 = vmax.f32 %v1197_v54, %v1259_v14  ;;  %v692_v40 = vadd.f32 %v4591_v29, %v656_v53  ;;  %v4940_v25 = vsel %vm997_vm1, %v2053_v37, %v2069_v55  ;;  %v2101_v63 = vsel %vm997_vm1, %v2069_v55, %v2053_v37  ;;  %v425_v53 = vld [vmem:[%s4525_s21 + $0xf0] sm:$0xff]  ;;  %s3896_s21 = sshll.u32 %s3893_s22, 4  ;;  %s3897_s21 = int_to_ptr.hbm [resolvable:$true] %s3896_s21 }
 0x124   : > { %8584 = vst [vmem:[#allocation30_spill] sm:$0xff] %v4940_v25  ;;  %v4942_v27 = vmax.f32 %v1327_v5, %v1424_v42  ;;  %v969_v49 = vrot.slane %v4935_v28, 6  ;;  %v1098_v35 = vrot.slane %v4935_v28, 7  ;;  %v1227_v16 = vrot.slane %v4935_v28, 1  ;;  %s4304_s13 = sshra.s32 %s3897_s21, 4  ;;  %s4305_s13 = int_to_ptr.hbm [resolvable:$true] %s4304_s13 }
 0x125   : > { %v4950_v11 = vmax.f32 %v1326_v38, %v1388_v51  ;;  %v724_v41 = vmul.f32 0.01, %v692_v40  ;;  %v1356_v54 = vrot.slane %v4935_v28, 2  ;;  %v5022_v6 = vsel %vm782_vm2, %v2101_v63, -3.4028235e+38  ;;  %s4306_s26 = scalar_lea.hbm %s4305_s13, 256  ;;  %p4311_p0 = scmp.lt.s32.totalorder %s4305_s13, %s8462_s10 }
 0x126   : > { %v4974_v5 = vmax.f32 %v1906_v36, %v4942_v27  ;;  %v4985_v60 = vmax.f32 %v4901_v3, %v4942_v27  ;;  %8587 = vst [vmem:[#allocation33_spill] sm:$0xff] %v5022_v6  ;;  %p4307_p4 = scmp.ne.s32.totalorder %s4305_s13, %s4306_s26  ;;  %p4312_p7 = scmp.lt.s32.totalorder %s4310_s24, %s4306_s26 }
 0x127   : > { %v4959_v37 = vmax.f32 %v692_v40, %v724_v41  ;;  %v4968_v55 = vmax.f32 %v1905_v32, %v4950_v11  ;;  %v4981_v41 = vmax.f32 %v4866_v62, %v4950_v11 }
 0x128   : > { %v585_v42 = vpop.f32.mrf.mxu0  ;;  %p4308_p6 = pnand %p4307_p4, %p4474_p11  ;;  %p4313_p5 = por %p4312_p7, %p4311_p0 }
 0x129   : > { %8585 = vst [vmem:[#allocation31_spill] sm:$0xff] %v4959_v37  ;;  %v657_v38 = vmul.f32 %v4583_v26, %v585_v42  ;;  %v4993_v36 = vmax.f32 %v824_v34, %v4959_v37  ;;  %v910_v42 = vmax.f32 %v880_v45, %v4959_v37  ;;  %v2054_v32 = vrot.slane %v4981_v41, 6 }
 0x12a   : > { %v2070_v34 = vrot.slane %v4985_v60, 6  ;;  %p4309_p13 = pneg %p4308_p6 }
 0x12b   : > { %v693_v14 = vadd.f32 %v4591_v29, %v657_v38  ;;  %4021 = vmatmul.msk.f32.gmra.mxu0 %vm429_vm0, %v425_v53  ;;  %v985_v44 = vrot.slane %v910_v42, 6  ;;  %v1114_v40 = vrot.slane %v910_v42, 7  ;;  %v1243_v51 = vrot.slane %v910_v42, 1 }
 0x12c   : > { %v1372_v1 = vrot.slane %v910_v42, 2  ;;  %v5010_v0 = vsel %vm997_vm1, %v2054_v32, %v2070_v34  ;;  %v2102_v53 = vsel %vm997_vm1, %v2070_v34, %v2054_v32  ;;  %p4314_p8 = pnand %p4313_p5, %p4309_p13 }
 0x12d   : > { %v725_v45 = vmul.f32 0.01, %v693_v14  ;;  %8586 = vst [vmem:[#allocation32_spill] sm:$0xff] %v5010_v0  ;;  %v1018_v38 = vsel %vm997_vm1, %v985_v44, %v969_v49  ;;  %v1147_v57 = vsel %vm1126_vm3, %v1114_v40, %v1098_v35  ;;  %v1260_v31 = vsel %vm1255_vm6, %v1227_v16, %v1243_v51 }
 0x12e   : > { %v1038_v47 = vsel %vm782_vm2, %v1018_v38, -3.4028235e+38  ;;  %v1389_v32 = vsel %vm1384_vm7, %v1356_v54, %v1372_v1  ;;  %v1002_v34 = vsel %vm997_vm1, %v969_v49, %v985_v44  ;;  %v1167_v59 = vsel %vm790_vm4, %v1147_v57, -3.4028235e+38 }
 0x12f   : > { %v5024_v58 = vmax.f32 %v693_v14, %v725_v45  ;;  %v1070_v17 = vmax.f32 %v4935_v28, %v1038_v47  ;;  %v1071_v63 = vmax.f32 %v910_v42, %v1002_v34  ;;  %v1276_v14 = vsel %vm1255_vm6, %v1243_v51, %v1227_v16 }
 0x130   : > { %v588_v19 = vpop.f32.mrf.mxu0  ;;  %v8589_v38 = vmax.f32 %v4801_v22, %v4921_v61  ;;  %v1131_v47 = vsel %vm1126_vm3, %v1098_v35, %v1114_v40  ;;  %v1297_v51 = vsel %vm801_vm5, %v1276_v14, -3.4028235e+38  ;;  %v1405_v42 = vsel %vm1384_vm7, %v1372_v1, %v1356_v54 }
 0x131   : > { %8588 = vst [vmem:[#allocation34_spill] sm:$0xff] %v5024_v58  ;;  %v5047_v49 = vmax.f32 %v881_v9, %v5024_v58  ;;  %v658_v28 = vmul.f32 %v4583_v26, %v588_v19  ;;  %v1199_v16 = vmax.f32 %v1070_v17, %v1167_v59  ;;  %v1200_v44 = vmax.f32 %v1071_v63, %v1131_v47 }
 0x132   : > { %v5044_v56 = vmax.f32 %v8589_v38, %v5024_v58  ;;  %v1426_v59 = vsel %vm809_vm8, %v1405_v42, -3.4028235e+38  ;;  %v8596_v47 = vmax.f32 %v4847_v8, %v4942_v27 }
 0x133   : > { %4022 = vmatmul.msk.f32.gmra.mxu0 %vm429_vm0, %v426_v30  ;;  %v970_v9 = vrot.slane %v5047_v49, 6  ;;  %v1099_v34 = vrot.slane %v5047_v49, 7  ;;  %v694_v35 = vadd.f32 %v4591_v29, %v658_v28  ;;  %v1328_v40 = vmax.f32 %v1199_v16, %v1260_v31 }
 0x134   : > { %v1329_v38 = vmax.f32 %v1200_v44, %v1297_v51  ;;  %v1228_v19 = vrot.slane %v5047_v49, 1  ;;  %v1357_v17 = vrot.slane %v5047_v49, 2  ;;  %v5068_v30 = vsel %vm782_vm2, %v2102_v53, -3.4028235e+38 }
 0x135   : > { %8590 = vst [vmem:[#allocation35_spill] sm:$0xff] %v5068_v30  ;;  %v726_v1 = vmul.f32 0.01, %v694_v35  ;;  %v5072_v63 = vmax.f32 %v1328_v40, %v1389_v32  ;;  %v8591_v53 = vrot.slane %v4901_v3, 7  ;;  %v8592_v44 = vrot.slane %v4866_v62, 7 }
 0x136   : > { %v5074_v14 = vmax.f32 %v1329_v38, %v1426_v59  ;;  %v8594_v59 = vmax.f32 %v4845_v7, %v4950_v11 }
 0x137   : > { %v5088_v32 = vsel %vm1126_vm3, %v8592_v44, %v8591_v53  ;;  %v5090_v51 = vmax.f32 %v694_v35, %v726_v1  ;;  %4031 = vmatmul.msk.f32.vlgmr.msra.gmra.mxu1 %vm1482_vm9, %v5072_v63  ;;  %v8595_v1 = vmax.f32 %v4873_v33, %v4950_v11 }
 0x138   : > { %v591_v40 = vpop.f32.mrf.mxu0  ;;  %v5102_v31 = vmax.f32 %v8594_v59, %v5072_v63  ;;  %v5117_v54 = vmax.f32 %v8596_v47, %v5074_v14 }
 0x139   : > { %8593 = vst [vmem:[#allocation36_spill] sm:$0xff] %v5090_v51  ;;  %v659_v53 = vmul.f32 %v4583_v26, %v591_v40  ;;  %v5111_v44 = vmax.f32 %v8595_v1, %v5072_v63  ;;  %v8597_v40 = vmax.f32 %v4859_v18, %v4959_v37  ;;  %v8598_v1 = vmax.f32 %v4884_v43, %v4959_v37 }
 0x13b   : > { %v5125_v28 = vmax.f32 %v8597_v40, %v5090_v51  ;;  %v912_v16 = vmax.f32 %v8598_v1, %v5090_v51  ;;  %v695_v47 = vadd.f32 %v4591_v29, %v659_v53  ;;  %4023 = vmatmul.msk.f32.vlgmr.msrb.gmra.mxu0 %vm1482_vm9, %v4738_v20  ;;  %v2055_v59 = vrot.slane %v5111_v44, 6 }
 0x13c   : > { %v2183_v35 = vrot.slane %v5111_v44, 7  ;;  %v8599_v20 = vmax.f32 %v4881_v39, %v4942_v27 }
 0x13d   : > { %v986_v38 = vrot.slane %v912_v16, 6  ;;  %v1115_v42 = vrot.slane %v912_v16, 7  ;;  %v1244_v57 = vrot.slane %v912_v16, 1  ;;  %v1373_v33 = vrot.slane %v912_v16, 2 }
 0x13e   : > { %v727_v45 = vmul.f32 0.01, %v695_v47  ;;  %v5146_v53 = vmax.f32 %v8599_v20, %v5074_v14 }
 0x13f   : > { %v1019_v1 = vsel %vm997_vm1, %v986_v38, %v970_v9  ;;  %v1148_v40 = vsel %vm1126_vm3, %v1115_v42, %v1099_v34  ;;  %v1261_v22 = vsel %vm1255_vm6, %v1228_v19, %v1244_v57  ;;  %v1390_v18 = vsel %vm1384_vm7, %v1357_v17, %v1373_v33  ;;  %4032 = vmatmul.msk.f32.gmra.mxu1 %vm1482_vm9, %v5074_v14 }
 0x140   : > { %v5156_v50 = vmax.f32 %v695_v47, %v727_v45  ;;  %v1040_v43 = vsel %vm782_vm2, %v1019_v1, -3.4028235e+38  ;;  %v1169_v39 = vsel %vm790_vm4, %v1148_v40, -3.4028235e+38  ;;  %v1003_v20 = vsel %vm997_vm1, %v970_v9, %v986_v38  ;;  %v594_v52 = vpop.f32.mrf.mxu0 }
 0x141   : > { %v1072_v46 = vmax.f32 %v5047_v49, %v1040_v43  ;;  %v1073_v48 = vmax.f32 %v912_v16, %v1003_v20  ;;  %v1132_v45 = vsel %vm1126_vm3, %v1099_v34, %v1115_v42  ;;  %v1277_v47 = vsel %vm1255_vm6, %v1244_v57, %v1228_v19 }
 0x142   : > { %8600 = vst [vmem:[#allocation37_spill] sm:$0xff] %v5156_v50  ;;  %v8601_v9 = vmax.f32 %v4921_v61, %v5024_v58  ;;  %v8602_v49 = vmax.f32 %v4930_v23, %v5024_v58  ;;  %v660_v57 = vmul.f32 %v4583_v26, %v594_v52  ;;  %v1299_v42 = vsel %vm801_vm5, %v1277_v47, -3.4028235e+38 }
 0x143   : > { %v1201_v19 = vmax.f32 %v1072_v46, %v1169_v39  ;;  %v1202_v16 = vmax.f32 %v1073_v48, %v1132_v45  ;;  %4024 = vmatmul.msk.f32.gmra.mxu0 %vm1482_vm9, %v4740_v21  ;;  %v1406_v43 = vsel %vm1384_vm7, %v1373_v33, %v1357_v17  ;;  %v2071_v21 = vrot.slane %v5146_v53, 6 }
 0x144   : > { %v5177_v38 = vmax.f32 %v8601_v9, %v5156_v50  ;;  %v5185_v34 = vmax.f32 %v8602_v49, %v5156_v50  ;;  %v696_v49 = vadd.f32 %v4591_v29, %v660_v57  ;;  %v1428_v48 = vsel %vm809_vm8, %v1406_v43, -3.4028235e+38 }
 0x145   : > { %v1330_v52 = vmax.f32 %v1201_v19, %v1261_v22  ;;  %v1331_v46 = vmax.f32 %v1202_v16, %v1299_v42  ;;  %v2199_v45 = vrot.slane %v5146_v53, 7  ;;  %v5211_v22 = vsel %vm997_vm1, %v2055_v59, %v2071_v21 }
 0x146   : > { %v971_v20 = vrot.slane %v5185_v34, 6  ;;  %v1100_v9 = vrot.slane %v5185_v34, 7  ;;  %v1229_v23 = vrot.slane %v5185_v34, 1  ;;  %v728_v33 = vmul.f32 0.01, %v696_v49 }
 0x147   : > { %v5204_v47 = vmax.f32 %v1330_v52, %v1390_v18  ;;  %v5206_v40 = vmax.f32 %v1331_v46, %v1428_v48  ;;  %v2103_v19 = vsel %vm997_vm1, %v2071_v21, %v2055_v59  ;;  %v5217_v16 = vsel %vm1126_vm3, %v2183_v35, %v2199_v45 }
 0x148   : > { %v5221_v42 = vsel %vm1126_vm3, %v2199_v45, %v2183_v35  ;;  %v5223_v18 = vmax.f32 %v696_v49, %v728_v33  ;;  %v8604_v59 = vmax.f32 %v4950_v11, %v5072_v63  ;;  %v597_v46 = vpop.f32.mrf.mxu0  ;;  %v8605_v49 = vmax.f32 %v4942_v27, %v5074_v14 }
 0x149   : > { %4033 = vmatmul.msk.f32.gmra.mxu1 %vm1482_vm9, %v5204_v47  ;;  %v661_v35 = vmul.f32 %v4583_v26, %v597_v46  ;;  %v8606_v33 = vmax.f32 %v4968_v55, %v5072_v63  ;;  %v8608_v46 = vmax.f32 %v4959_v37, %v5090_v51  ;;  %v8609_v45 = vmax.f32 %v4993_v36, %v5090_v51 }
 0x14a   : > { %8603 = vst [vmem:[#allocation38_spill] sm:$0xff] %v5223_v18  ;;  %v5233_v52 = vmax.f32 %v8604_v59, %v5204_v47  ;;  %v5242_v21 = vmax.f32 %v8605_v49, %v5206_v40  ;;  %v8611_v61 = vrot.slane %v5185_v34, 2 }
 0x14b   : > { %v5250_v59 = vmax.f32 %v8606_v33, %v5204_v47  ;;  %v5258_v48 = vmax.f32 %v8608_v46, %v5223_v18  ;;  %v914_v43 = vmax.f32 %v8609_v45, %v5223_v18  ;;  %v697_v55 = vadd.f32 %v4591_v29, %v661_v35  ;;  %4025 = vmatmul.msk.f32.gmra.mxu0 %vm1482_vm9, %v4790_v10 }
 0x14c   : > { %v8610_v10 = vmax.f32 %v4974_v5, %v5074_v14 }
 0x14d   : > { %8607 = vst [vmem:[#allocation39_spill] sm:$0xff] %v5250_v59  ;;  %v2056_v33 = vrot.slane %v5250_v59, 6  ;;  %v987_v17 = vrot.slane %v914_v43, 6  ;;  %v1116_v1 = vrot.slane %v914_v43, 7  ;;  %v1245_v39 = vrot.slane %v914_v43, 1 }
 0x14e   : > { %v1374_v49 = vrot.slane %v914_v43, 2  ;;  %v729_v37 = vmul.f32 0.01, %v697_v55  ;;  %v5279_v35 = vmax.f32 %v8610_v10, %v5206_v40 }
 0x14f   : > { %v1020_v45 = vsel %vm997_vm1, %v987_v17, %v971_v20  ;;  %v1149_v46 = vsel %vm1126_vm3, %v1116_v1, %v1100_v9  ;;  %v1262_v57 = vsel %vm1255_vm6, %v1229_v23, %v1245_v39  ;;  %v1004_v0 = vsel %vm997_vm1, %v971_v20, %v987_v17 }
 0x150   : > { %v1391_v36 = vsel %vm1384_vm7, %v8611_v61, %v1374_v49  ;;  %v5291_v59 = vmax.f32 %v697_v55, %v729_v37  ;;  %v1042_v5 = vsel %vm782_vm2, %v1020_v45, -3.4028235e+38  ;;  %v1171_v10 = vsel %vm790_vm4, %v1149_v46, -3.4028235e+38  ;;  %v600_v30 = vpop.f32.mrf.mxu0 }
 0x151   : > { %4034 = vmatmul.msk.f32.gmra.mxu1 %vm1482_vm9, %v5206_v40  ;;  %v1074_v6 = vmax.f32 %v5185_v34, %v1042_v5  ;;  %v1075_v25 = vmax.f32 %v914_v43, %v1004_v0  ;;  %v1133_v61 = vsel %vm1126_vm3, %v1100_v9, %v1116_v1  ;;  %v1278_v37 = vsel %vm1255_vm6, %v1245_v39, %v1229_v23 }
 0x152   : > { %8612 = vst [vmem:[#allocation40_spill] sm:$0xff] %v5291_v59  ;;  %v831_v55 = vmax.f32 %v5156_v50, %v5291_v59  ;;  %v8613_v20 = vmax.f32 %v5024_v58, %v5156_v50  ;;  %v887_v46 = vmax.f32 %v5177_v38, %v5291_v59  ;;  %v8614_v0 = vmax.f32 %v5044_v56, %v5156_v50 }
 0x153   : > { %v662_v9 = vmul.f32 %v4583_v26, %v600_v30  ;;  %v1203_v23 = vmax.f32 %v1074_v6, %v1171_v10  ;;  %v1204_v39 = vmax.f32 %v1075_v25, %v1133_v61  ;;  %v1301_v43 = vsel %vm801_vm5, %v1278_v37, -3.4028235e+38  ;;  %4026 = vmatmul.msk.f32.gmra.mxu0 %vm1482_vm9, %v4794_v12 }
 0x154   : > { %v5312_v17 = vmax.f32 %v8613_v20, %v5291_v59  ;;  %v5320_v1 = vmax.f32 %v8614_v0, %v5291_v59  ;;  %v8615_v45 = vrot.slane %v5185_v34, 2  ;;  %v2072_v20 = vrot.slane %v5279_v35, 6 }
 0x155   : > { %v5334_v56 = vsel %vm782_vm2, %v2103_v19, -3.4028235e+38  ;;  %v2154_v6 = vmax.f32 %v5146_v53, %v5211_v22  ;;  %v698_v25 = vadd.f32 %v4591_v29, %v662_v9  ;;  %v1332_v30 = vmax.f32 %v1203_v23, %v1262_v57 }
 0x156   : > { %v1407_v5 = vsel %vm1384_vm7, %v1374_v49, %v8615_v45  ;;  %v1333_v10 = vmax.f32 %v1204_v39, %v1301_v43  ;;  %v5343_v34 = vsel %vm997_vm1, %v2056_v33, %v2072_v20  ;;  %v5347_v49 = vsel %vm997_vm1, %v2072_v20, %v2056_v33 }
 0x157   : > { %v1430_v12 = vsel %vm809_vm8, %v1407_v5, -3.4028235e+38  ;;  %v730_v61 = vmul.f32 0.01, %v698_v25  ;;  %v5352_v37 = vmax.f32 %v1332_v30, %v1391_v36  ;;  %v5361_v9 = vsel %vm790_vm4, %v5221_v42, -3.4028235e+38 }
 0x158   : > { %v5354_v57 = vmax.f32 %v1333_v10, %v1430_v12  ;;  %v5364_v33 = vmax.f32 %v2154_v6, %v5217_v16  ;;  %v8616_v39 = vrot.slane %v5146_v53, 1  ;;  %v8617_v36 = vrot.slane %v5111_v44, 1  ;;  %v603_v6 = vpop.f32.mrf.mxu0 }
 0x159   : > { %v5375_v45 = vmax.f32 %v698_v25, %v730_v61  ;;  %4035 = vmatmul.msk.f32.gmra.mxu1 %vm1482_vm9, %v5352_v37  ;;  %v8619_v16 = vmax.f32 %v5072_v63, %v5204_v47  ;;  %v663_v30 = vmul.f32 %v4583_v26, %v603_v6  ;;  %v8620_v25 = vmax.f32 %v5102_v31, %v5204_v47 }
 0x15a   : > { %v5373_v43 = vsel %vm1255_vm6, %v8617_v36, %v8616_v39  ;;  %v8622_v63 = vmax.f32 %v5074_v14, %v5206_v40  ;;  %v3471_v39 = vld [vmem:[#allocation5] sm:$0xff]  ;;  %v8623_v26 = vmax.f32 %v5090_v51, %v5223_v18  ;;  %v8624_v6 = vmax.f32 %v5125_v28, %v5223_v18 }
 0x15b   : > { %8618 = vst [vmem:[#allocation41_spill] sm:$0xff] %v5375_v45  ;;  %v5385_v5 = vmax.f32 %v8619_v16, %v5352_v37  ;;  %v5394_v10 = vmax.f32 %v8620_v25, %v5352_v37  ;;  %3583 = vmatpush.msrb.mxu1 %v3471_v39  ;;  %v699_v25 = vadd.f32 %v4591_v29, %v663_v30  ;;  %v972_v23 = vrot.slane %v5320_v1, 6 }
 0x15c   : > { %v5402_v61 = vmax.f32 %v8622_v63, %v5354_v57  ;;  %v5410_v31 = vmax.f32 %v8623_v26, %v5375_v45  ;;  %v916_v14 = vmax.f32 %v8624_v6, %v5375_v45  ;;  %4027 = vmatmul.msk.f32.gmra.mxu0 %vm1482_vm9, %v4845_v7  ;;  %v8625_v28 = vmax.f32 %v5117_v54, %v5206_v40 }
 0x15d   : > { %8621 = vst [vmem:[#allocation42_spill] sm:$0xff] %v5394_v10  ;;  %v2057_v63 = vrot.slane %v5394_v10, 6  ;;  %v8627_v29 = vmov %v8617_v36  ;;  %v8628_v7 = vrot.slane %v5146_v53, 1  ;;  %v731_v6 = vmul.f32 0.01, %v699_v25 }
 0x15e   : > { %v5431_v39 = vmax.f32 %v8625_v28, %v5354_v57  ;;  %v1117_v28 = vrot.slane %v916_v14, 7  ;;  %v1246_v16 = vrot.slane %v916_v14, 1  ;;  %v1375_v51 = vrot.slane %v916_v14, 2 }
 0x15f   : > { %v2359_v30 = vsel %vm1255_vm6, %v8628_v7, %v8627_v29  ;;  %v5450_v12 = vmax.f32 %v699_v25, %v731_v6  ;;  %v988_v7 = vrot.slane %v916_v14, 6  ;;  %v1230_v25 = vrot.slane %v5320_v1, 1 }
 0x160   : > { %8626 = vst [vmem:[#allocation43_spill] sm:$0xff] %v5431_v39  ;;  %v5441_v0 = vsel %vm801_vm5, %v2359_v30, -3.4028235e+38  ;;  %v2073_v54 = vrot.slane %v5431_v39, 6  ;;  %v1101_v30 = vrot.slane %v5320_v1, 7  ;;  %v606_v26 = vpop.f32.mrf.mxu0 }
 0x161   : > { %8629 = vst [vmem:[#allocation44_spill] sm:$0xff] %v5450_v12  ;;  %4036 = vmatmul.msk.f32.gmra.mxu1 %vm1482_vm9, %v5354_v57  ;;  %v5471_v29 = vmax.f32 %v831_v55, %v5450_v12  ;;  %v1021_v42 = vsel %vm997_vm1, %v988_v7, %v972_v23  ;;  %v5503_v55 = vld [vmem:[%s8455_s3] ss:$0 sm:$0xff] }
 0x162   : > { %v5458_v20 = vsel %vm997_vm1, %v2057_v63, %v2073_v54  ;;  %v5462_v19 = vsel %vm997_vm1, %v2073_v54, %v2057_v63  ;;  %v5479_v63 = vmax.f32 %v887_v46, %v5450_v12  ;;  %v5484_v54 = vld [vmem:[%s8454_s2] ss:$0 sm:$0xff]  ;;  %v1150_v22 = vsel %vm1126_vm3, %v1117_v28, %v1101_v30 }
 0x163   : > { %8630 = vst [vmem:[#allocation45_spill] sm:$0xff] %v5458_v20  ;;  %v664_v6 = vmul.f32 %v5484_v54, %v606_v26  ;;  %v1044_v38 = vsel %vm782_vm2, %v1021_v42, -3.4028235e+38  ;;  %v1173_v46 = vsel %vm790_vm4, %v1150_v22, -3.4028235e+38  ;;  %v1359_v26 = vrot.slane %v5320_v1, 2 }
 0x164   : > { %4028 = vmatmul.msk.f32.gmra.mxu0 %vm1482_vm9, %v4847_v8  ;;  %v1076_v50 = vmax.f32 %v5320_v1, %v1044_v38  ;;  %v1005_v8 = vsel %vm997_vm1, %v972_v23, %v988_v7  ;;  %v1263_v42 = vsel %vm1255_vm6, %v1230_v25, %v1246_v16  ;;  %v1134_v58 = vsel %vm1126_vm3, %v1101_v30, %v1117_v28 }
 0x165   : > { %v700_v36 = vadd.f32 %v5503_v55, %v664_v6  ;;  %v1077_v22 = vmax.f32 %v916_v14, %v1005_v8  ;;  %v1279_v20 = vsel %vm1255_vm6, %v1246_v16, %v1230_v25  ;;  %v1392_v6 = vsel %vm1384_vm7, %v1359_v26, %v1375_v51 }
 0x166   : > { %v1205_v39 = vmax.f32 %v1076_v50, %v1173_v46  ;;  %v1303_v1 = vsel %vm801_vm5, %v1279_v20, -3.4028235e+38  ;;  %v1408_v23 = vsel %vm1384_vm7, %v1375_v51, %v1359_v26  ;;  %v8501_v14 = vrot.slane %v5479_v63, 6 }
 0x167   : > { %v732_v10 = vmul.f32 0.01, %v700_v36  ;;  %v1206_v38 = vmax.f32 %v1077_v22, %v1134_v58  ;;  %v8497_v7 = vrot.slane %v5479_v63, 7  ;;  %v1432_v50 = vsel %vm809_vm8, %v1408_v23, -3.4028235e+38 }
 0x168   : > { %v1334_v30 = vmax.f32 %v1205_v39, %v1263_v42  ;;  %v609_v16 = vpop.f32.mrf.mxu0  ;;  %v8499_v25 = vrot.slane %v5479_v63, 1  ;;  %v8632_v51 = vrot.slane %v4985_v60, 7  ;;  %v8633_v26 = vrot.slane %v4981_v41, 7 }
 0x169   : > { %v5523_v28 = vmax.f32 %v700_v36, %v732_v10  ;;  %v665_v46 = vmul.f32 %v5484_v54, %v609_v16  ;;  %v1335_v20 = vmax.f32 %v1206_v38, %v1303_v1  ;;  %v8634_v39 = vmax.f32 %v5223_v18, %v5375_v45 }
 0x16a   : > { %v2214_v10 = vsel %vm1126_vm3, %v8633_v26, %v8632_v51  ;;  %v8635_v22 = vmax.f32 %v5258_v48, %v5375_v45  ;;  %v5552_v38 = vmax.f32 %v1334_v30, %v1392_v6  ;;  %v8636_v51 = vrot.slane %v4866_v62, 7 }
 0x16b   : > { %8631 = vst [vmem:[#allocation46_spill] sm:$0xff] %v5523_v28  ;;  %v5542_v8 = vmax.f32 %v8634_v39, %v5523_v28  ;;  %v701_v23 = vadd.f32 %v5503_v55, %v665_v46  ;;  %v5557_v16 = vmax.f32 %v1335_v20, %v1432_v50  ;;  %v8637_v26 = vrot.slane %v4901_v3, 7 }
 0x16c   : > { %v5550_v1 = vmax.f32 %v8635_v22, %v5523_v28  ;;  %4029 = vmatmul.msk.f32.gmra.mxu0 %vm1482_vm9, %v4950_v11  ;;  %4037 = vmatmul.msk.f32.gmra.mxu1 %vm1482_vm9, %v5552_v38  ;;  %v1915_v11 = vmax.f32 %v5352_v37, %v5552_v38  ;;  %v8638_v50 = vmax.f32 %v5204_v47, %v5352_v37 }
 0x16d   : > { %v2229_v39 = vsel %vm1126_vm3, %v8637_v26, %v8636_v51  ;;  %v1971_v20 = vmax.f32 %v5385_v5, %v5552_v38  ;;  %v8639_v51 = vmax.f32 %v5233_v52, %v5352_v37  ;;  %v733_v42 = vmul.f32 0.01, %v701_v23 }
 0x16e   : > { %v8502_v48 = vrot.slane %v5550_v1, 6  ;;  %v8500_v22 = vrot.slane %v5550_v1, 7  ;;  %v8498_v6 = vrot.slane %v5550_v1, 1  ;;  %v5577_v46 = vmax.f32 %v8638_v50, %v5552_v38 }
 0x16f   : > { %v5585_v26 = vmax.f32 %v8639_v51, %v5552_v38  ;;  %v8641_v58 = vmax.f32 %v5206_v40, %v5354_v57  ;;  %v8642_v52 = vmax.f32 %v5242_v21, %v5354_v57  ;;  %v8645_v36 = vmax.f32 %v5291_v59, %v5450_v12 }
 0x170   : > { %v1022_v40 = vsel %vm997_vm1, %v8502_v48, %v8501_v14  ;;  %v612_v51 = vpop.f32.mrf.mxu0  ;;  %v1151_v21 = vsel %vm1126_vm3, %v8500_v22, %v8497_v7  ;;  %v8648_v50 = vrot.slane %v5479_v63, 2  ;;  %v8651_v22 = vld [vmem:[#allocation30_spill] sm:$0xff] }
 0x171   : > { %8640 = vst [vmem:[#allocation47_spill] sm:$0xff] %v5585_v26  ;;  %v5593_v47 = vmax.f32 %v8641_v58, %v5557_v16  ;;  %v5603_v37 = vmax.f32 %v8642_v52, %v5557_v16  ;;  %v5611_v58 = vmax.f32 %v701_v23, %v733_v42  ;;  %v1046_v5 = vsel %vm782_vm2, %v1022_v40, -3.4028235e+38 }
 0x172   : > { %v1264_v52 = vsel %vm1255_vm6, %v8499_v25, %v8498_v6  ;;  %v666_v40 = vmul.f32 %v5484_v54, %v612_v51  ;;  %v1078_v30 = vmax.f32 %v5479_v63, %v1046_v5  ;;  %v8646_v23 = vmax.f32 %v5312_v17, %v5450_v12 }
 0x173   : > { %8643 = vst [vmem:[#allocation48_spill] sm:$0xff] %v5603_v37  ;;  %v5637_v7 = vmax.f32 %v8645_v36, %v5611_v58  ;;  %v1175_v51 = vsel %vm790_vm4, %v1151_v21, -3.4028235e+38  ;;  %v8647_v36 = vrot.slane %v5550_v1, 2  ;;  %v8649_v25 = vrot.slane %v4981_v41, 7 }
 0x174   : > { %8644 = vst [vmem:[#allocation49_spill] sm:$0xff] %v5611_v58  ;;  %v5645_v42 = vmax.f32 %v8646_v23, %v5611_v58  ;;  %v702_v5 = vadd.f32 %v5503_v55, %v666_v40  ;;  %4030 = vmatmul.msk.f32.gmra.mxu0 %vm1482_vm9, %v4942_v27  ;;  %v8650_v17 = vrot.slane %v4985_v60, 7  ;;  %v1207_v40 = vmax.f32 %v1078_v30, %v1175_v51  ;;  %v8655_v30 = vld [vmem:[#allocation35_spill] sm:$0xff] }
 0x175   : > { %v1393_v6 = vsel %vm1384_vm7, %v8648_v50, %v8647_v36  ;;  %v2245_v27 = vsel %vm790_vm4, %v2229_v39, -3.4028235e+38  ;;  %v8652_v14 = vmax.f32 %v4901_v3, %v8651_v22  ;;  %4038 = vmatmul.msk.f32.gmra.mxu1 %vm1482_vm9, %v5557_v16  ;;  %v8653_v36 = vld [vmem:[#allocation33_spill] sm:$0xff]  ;;  %v8656_v51 = vmax.f32 %v4981_v41, %v8655_v30 }
 0x176   : > { %v2230_v23 = vsel %vm1126_vm3, %v8650_v17, %v8649_v25  ;;  %v734_v50 = vmul.f32 0.01, %v702_v5  ;;  %v8654_v59 = vmax.f32 %v4866_v62, %v8653_v36  ;;  %v8657_v17 = vld [vmem:[#allocation32_spill] sm:$0xff]  ;;  %v1336_v26 = vmax.f32 %v1207_v40, %v1264_v52 }
 0x177   : > { %v2247_v21 = vsel %vm790_vm4, %v2230_v23, -3.4028235e+38  ;;  %v2278_v48 = vmax.f32 %v8652_v14, %v5088_v32  ;;  %v8658_v23 = vmax.f32 %v4985_v60, %v8657_v17  ;;  %v8659_v32 = vmax.f32 %v5111_v44, %v5334_v56 }
 0x178   : > { %v2277_v25 = vmax.f32 %v8654_v59, %v2245_v27  ;;  %v2279_v39 = vmax.f32 %v8656_v51, %v2247_v21  ;;  %v2310_v22 = vrot.slane %v4981_v41, 1  ;;  %v2326_v37 = vrot.slane %v4985_v60, 1  ;;  %v615_v51 = vpop.f32.mrf.mxu0 }
 0x179   : > { %v2280_v18 = vmax.f32 %v8658_v23, %v2214_v10  ;;  %v2281_v14 = vmax.f32 %v8659_v32, %v5361_v9  ;;  %v5689_v36 = vmax.f32 %v702_v5, %v734_v50  ;;  %v8661_v59 = vrot.slane %v4901_v3, 1 }
 0x17a   : > { %v8662_v27 = vrot.slane %v4866_v62, 1  ;;  %v2438_v9 = vrot.slane %v4981_v41, 2  ;;  %v5704_v40 = vmax.f32 %v1336_v26, %v1393_v6  ;;  %v2342_v5 = vsel %vm1255_vm6, %v2310_v22, %v2326_v37 }
 0x17b   : > { %8660 = vst [vmem:[#allocation30_spill] sm:$0xff] %v5689_v36  ;;  %v8664_v52 = vmov %v8661_v59  ;;  %v2358_v50 = vsel %vm1255_vm6, %v2326_v37, %v2310_v22  ;;  %v8665_v23 = vmax.f32 %v5375_v45, %v5523_v28  ;;  %v8666_v26 = vmax.f32 %v5410_v31, %v5523_v28 }
 0x17c   : > { %v2341_v21 = vsel %vm1255_vm6, %v8662_v27, %v8661_v59  ;;  %v8663_v10 = vmov %v8662_v27  ;;  %4039 = vmatmul.msk.f32.vlgmr.msra.gmra.mxu2 %vm1482_vm9, %v5704_v40  ;;  %v5733_v22 = vmax.f32 %v1915_v11, %v5704_v40  ;;  %v5738_v27 = vmax.f32 %v1971_v20, %v5704_v40 }
 0x17d   : > { %v2357_v56 = vsel %vm1255_vm6, %v8664_v52, %v8663_v10  ;;  %v5718_v41 = vmax.f32 %v8665_v23, %v5689_v36  ;;  %v5726_v37 = vmax.f32 %v8666_v26, %v5689_v36  ;;  %v2376_v31 = vsel %vm801_vm5, %v2358_v50, -3.4028235e+38 }
 0x17e   : > { %v2374_v30 = vsel %vm801_vm5, %v2357_v56, -3.4028235e+38  ;;  %8667 = vst [vmem:[#allocation33_spill] sm:$0xff] %v5738_v27  ;;  %v2405_v10 = vmax.f32 %v2277_v25, %v2341_v21  ;;  %v2407_v56 = vmax.f32 %v2279_v39, %v2342_v5  ;;  %v2408_v17 = vmax.f32 %v2280_v18, %v2376_v31 }
 0x17f   : > { %v2406_v52 = vmax.f32 %v2278_v48, %v2374_v30  ;;  %v2409_v11 = vmax.f32 %v2281_v14, %v5373_v43  ;;  %v2454_v32 = vrot.slane %v4985_v60, 2  ;;  %v8668_v59 = vrot.slane %v4901_v3, 2 }
 0x180   : > { %v8669_v20 = vrot.slane %v4866_v62, 2  ;;  %v8670_v25 = vrot.slane %v5146_v53, 2  ;;  %v8671_v48 = vrot.slane %v5111_v44, 2 }
 0x181   : > { %v8673_v43 = vmov %v8668_v59  ;;  %v2470_v62 = vsel %vm1384_vm7, %v2438_v9, %v2454_v32  ;;  %v2486_v3 = vsel %vm1384_vm7, %v2454_v32, %v2438_v9  ;;  %v667_v32 = vmul.f32 %v5484_v54, %v615_v51 }
 0x182   : > { %v2469_v6 = vsel %vm1384_vm7, %v8669_v20, %v8668_v59  ;;  %v2471_v39 = vsel %vm1384_vm7, %v8671_v48, %v8670_v25  ;;  %v8672_v18 = vmov %v8669_v20  ;;  %v8674_v14 = vmov %v8671_v48 }
 0x183   : > { %v2485_v60 = vsel %vm1384_vm7, %v8673_v43, %v8672_v18  ;;  %v8675_v21 = vmov %v8670_v25  ;;  %v5772_v30 = vmax.f32 %v2405_v10, %v2469_v6  ;;  %v5774_v59 = vmax.f32 %v2409_v11, %v2471_v39  ;;  %v618_v39 = vpop.f32.mrf.mxu0 }
 0x184   : > { %v2487_v5 = vsel %vm1384_vm7, %v8675_v21, %v8674_v14  ;;  %v2502_v50 = vsel %vm809_vm8, %v2485_v60, -3.4028235e+38  ;;  %v2504_v31 = vsel %vm809_vm8, %v2486_v3, -3.4028235e+38  ;;  %v5786_v20 = vmax.f32 %v2407_v56, %v2470_v62 }
 0x185   : > { %v2506_v44 = vsel %vm809_vm8, %v2487_v5, -3.4028235e+38  ;;  %v5782_v53 = vmax.f32 %v2406_v52, %v2502_v50  ;;  %v8677_v6 = vmax.f32 %v5364_v33, %v5441_v0  ;;  %v2807_v11 = vmax.f32 %v5772_v30, -3.4028235e+38 }
 0x186   : > { %8676 = vst [vmem:[#allocation35_spill] sm:$0xff] %v5786_v20  ;;  %v5794_v25 = vmax.f32 %v2408_v17, %v2504_v31  ;;  %v8679_v52 = vrot.slane %v5550_v1, 6  ;;  %v8680_v48 = vrot.slane %v5479_v63, 6  ;;  %v8681_v18 = vrot.slane %v5550_v1, 7 }
 0x187   : > { %v5791_v10 = vmax.f32 %v8677_v6, %v2506_v44  ;;  %v2808_v9 = vmax.f32 %v5782_v53, -3.4028235e+38  ;;  %v2837_v0 = vmax.f32 %v2807_v11, %v5786_v20  ;;  %v8682_v17 = vrot.slane %v5479_v63, 7 }
 0x188   : > { %8678 = vst [vmem:[#allocation32_spill] sm:$0xff] %v5794_v25  ;;  %v1006_v56 = vsel %vm997_vm1, %v8680_v48, %v8679_v52  ;;  %v8683_v51 = vrot.slane %v5479_v63, 1  ;;  %v8684_v60 = vrot.slane %v5550_v1, 1  ;;  %v703_v5 = vadd.f32 %v5503_v55, %v667_v32 }
 0x189   : > { %v1079_v33 = vmax.f32 %v5550_v1, %v1006_v56  ;;  %v1135_v43 = vsel %vm1126_vm3, %v8682_v17, %v8681_v18  ;;  %v2838_v21 = vmax.f32 %v2808_v9, %v5794_v25  ;;  %v8685_v62 = vrot.slane %v5479_v63, 2 }
 0x18a   : > { %v1280_v14 = vsel %vm1255_vm6, %v8684_v60, %v8683_v51  ;;  %v8686_v3 = vrot.slane %v5550_v1, 2  ;;  %v5829_v31 = vmax.f32 %v2837_v0, %v5774_v59  ;;  %v668_v9 = vmul.f32 %v5484_v54, %v618_v39 }
 0x18b   : > { %v1305_v50 = vsel %vm801_vm5, %v1280_v14, -3.4028235e+38  ;;  %v1208_v6 = vmax.f32 %v1079_v33, %v1135_v43  ;;  %v5835_v32 = vmax.f32 %v2838_v21, %v5791_v10  ;;  %v735_v52 = vmul.f32 0.01, %v703_v5 }
 0x18c   : > { %v1409_v44 = vsel %vm1384_vm7, %v8686_v3, %v8685_v62  ;;  %v8509_v63 = vrot.slane %v5645_v42, 6  ;;  %v8510_v1 = vrot.slane %v5726_v37, 6  ;;  %v2959_v48 = vrot.slane %v5829_v31, 6 }
 0x18d   : > { %v1434_v11 = vsel %vm809_vm8, %v1409_v44, -3.4028235e+38  ;;  %v3087_v56 = vrot.slane %v5829_v31, 7  ;;  %v3215_v0 = vrot.slane %v5829_v31, 1  ;;  %v3343_v33 = vrot.slane %v5829_v31, 2 }
 0x18e   : > { %v2975_v18 = vrot.slane %v5835_v32, 6  ;;  %v3103_v39 = vrot.slane %v5835_v32, 7  ;;  %v3231_v17 = vrot.slane %v5835_v32, 1  ;;  %v3359_v43 = vrot.slane %v5835_v32, 2 }
 0x18f   : > { %v5847_v51 = vmax.f32 %v703_v5, %v735_v52  ;;  %v1337_v60 = vmax.f32 %v1208_v6, %v1305_v50  ;;  %v704_v14 = vadd.f32 %v5503_v55, %v668_v9  ;;  %v1023_v21 = vsel %vm997_vm1, %v8510_v1, %v8509_v63 }
 0x190   : > { %v3007_v62 = vsel %vm997_vm1, %v2975_v18, %v2959_v48  ;;  %v3135_v3 = vsel %vm1126_vm3, %v3103_v39, %v3087_v56  ;;  %v3247_v5 = vsel %vm1255_vm6, %v3215_v0, %v3231_v17  ;;  %v3375_v50 = vsel %vm1384_vm7, %v3343_v33, %v3359_v43 }
 0x191   : > { %8687 = vst [vmem:[#allocation50_spill] sm:$0xff] %v5847_v51  ;;  %v3023_v44 = vsel %vm782_vm2, %v3007_v62, -3.4028235e+38  ;;  %v3151_v6 = vsel %vm790_vm4, %v3135_v3, -3.4028235e+38  ;;  %v8688_v52 = vmax.f32 %v5471_v29, %v5611_v58  ;;  %v5877_v63 = vmax.f32 %v1337_v60, %v1434_v11 }
 0x192   : > { %v3055_v23 = vmax.f32 %v5829_v31, %v3023_v44  ;;  %v2991_v1 = vsel %vm997_vm1, %v2959_v48, %v2975_v18  ;;  %v3119_v62 = vsel %vm1126_vm3, %v3087_v56, %v3103_v39  ;;  %v3263_v9 = vsel %vm1255_vm6, %v3231_v17, %v3215_v0 }
 0x193   : > { %v5874_v26 = vmax.f32 %v8688_v52, %v5847_v51  ;;  %v3056_v3 = vmax.f32 %v5835_v32, %v2991_v1  ;;  %v3391_v29 = vsel %vm1384_vm7, %v3359_v43, %v3343_v33  ;;  %v736_v52 = vmul.f32 0.01, %v704_v14  ;;  %4040 = vmatmul.msk.f32.gmra.mxu2 %vm1482_vm9, %v5877_v63 }
 0x194   : > { %v3183_v45 = vmax.f32 %v3055_v23, %v3151_v6  ;;  %v8689_v48 = vmax.f32 %v5354_v57, %v5557_v16  ;;  %v8690_v0 = vmax.f32 %v5402_v61, %v5557_v16  ;;  %v3280_v18 = vsel %vm801_vm5, %v3263_v9, -3.4028235e+38 }
 0x195   : > { %v3184_v33 = vmax.f32 %v3056_v3, %v3119_v62  ;;  %v3408_v39 = vsel %vm809_vm8, %v3391_v29, -3.4028235e+38  ;;  %v5910_v57 = vmax.f32 %v704_v14, %v736_v52  ;;  %v1048_v43 = vsel %vm782_vm2, %v1023_v21, -3.4028235e+38  ;;  %v621_v3 = vpop.f32.mrf.mxu0 }
 0x196   : > { %v5896_v56 = vmax.f32 %v8689_v48, %v5877_v63  ;;  %v5904_v23 = vmax.f32 %v8690_v0, %v5877_v63  ;;  %v3311_v17 = vmax.f32 %v3183_v45, %v3247_v5  ;;  %v1103_v60 = vrot.slane %v5645_v42, 7 }
 0x197   : > { %8692 = vst [vmem:[#allocation52_spill] sm:$0xff] %v5910_v57  ;;  %v3312_v6 = vmax.f32 %v3184_v33, %v3280_v18  ;;  %v1080_v62 = vmax.f32 %v5645_v42, %v1048_v43  ;;  %v8693_v45 = vmax.f32 %v5542_v8, %v5689_v36  ;;  %v1119_v21 = vrot.slane %v5726_v37, 7 }
 0x198   : > { %8691 = vst [vmem:[#allocation51_spill] sm:$0xff] %v5904_v23  ;;  %v3439_v9 = vmax.f32 %v3311_v17, %v3375_v50  ;;  %v1232_v52 = vrot.slane %v5645_v42, 1  ;;  %v1248_v48 = vrot.slane %v5726_v37, 1  ;;  %v1361_v0 = vrot.slane %v5645_v42, 2 }
 0x199   : > { %v5924_v14 = vmax.f32 %v8693_v45, %v5910_v57  ;;  %v3440_v5 = vmax.f32 %v3312_v6, %v3408_v39  ;;  %v1152_v50 = vsel %vm1126_vm3, %v1119_v21, %v1103_v60  ;;  %v1377_v33 = vrot.slane %v5726_v37, 2  ;;  %v8695_v39 = vld [vmem:[#allocation39_spill] sm:$0xff] }
 0x19a   : > { %4119 = vmatmul.msk.f32.vlgmr.msrb.gmra.mxu1 %vm1482_vm9, %v3439_v9  ;;  %v2123_v8 = vsel %vm782_vm2, %v5347_v49, -3.4028235e+38  ;;  %v8694_v18 = vrot.slane %v5279_v35, 7  ;;  %v8696_v17 = vrot.slane %v8695_v39, 7  ;;  %v1177_v6 = vsel %vm790_vm4, %v1152_v50, -3.4028235e+38 }
 0x19b   : > { %v1265_v9 = vsel %vm1255_vm6, %v1232_v52, %v1248_v48  ;;  %v2155_v45 = vmax.f32 %v8695_v39, %v2123_v8  ;;  %v1209_v29 = vmax.f32 %v1080_v62, %v1177_v6  ;;  %v1394_v1 = vsel %vm1384_vm7, %v1361_v0, %v1377_v33 }
 0x19c   : > { %v2216_v43 = vsel %vm1126_vm3, %v8696_v17, %v8694_v18  ;;  %v8697_v61 = vmov %v8696_v17  ;;  %v8698_v44 = vmov %v8694_v18  ;;  %v8699_v50 = vmax.f32 %v5279_v35, %v5343_v34 }
 0x19d   : > { %v2232_v49 = vsel %vm1126_vm3, %v8698_v44, %v8697_v61  ;;  %v8700_v8 = vrot.slane %v5279_v35, 1  ;;  %v8701_v27 = vrot.slane %v8695_v39, 1  ;;  %v8704_v6 = vrot.slane %v5279_v35, 2 }
 0x19e   : > { %v2251_v18 = vsel %vm790_vm4, %v2232_v49, -3.4028235e+38  ;;  %v2284_v17 = vmax.f32 %v8699_v50, %v2216_v43  ;;  %v8705_v34 = vrot.slane %v8695_v39, 2 }
 0x19f   : > { %v2283_v11 = vmax.f32 %v2155_v45, %v2251_v18  ;;  %v2344_v23 = vsel %vm1255_vm6, %v8701_v27, %v8700_v8  ;;  %v8702_v44 = vmov %v8701_v27  ;;  %v8703_v61 = vmov %v8700_v8 }
 0x1a0   : > { %v2360_v62 = vsel %vm1255_vm6, %v8703_v61, %v8702_v44  ;;  %v2472_v43 = vsel %vm1384_vm7, %v8705_v34, %v8704_v6  ;;  %v1338_v45 = vmax.f32 %v1209_v29, %v1265_v9  ;;  %v8706_v27 = vmov %v8705_v34  ;;  %v624_v34 = vpop.f32.mrf.mxu0 }
 0x1a1   : > { %v2380_v49 = vsel %vm801_vm5, %v2360_v62, -3.4028235e+38  ;;  %v8707_v18 = vmov %v8704_v6  ;;  %v669_v8 = vmul.f32 %v5484_v54, %v621_v3  ;;  %v2411_v44 = vmax.f32 %v2283_v11, %v2344_v23 }
 0x1a2   : > { %v2488_v50 = vsel %vm1384_vm7, %v8707_v18, %v8706_v27  ;;  %v2412_v61 = vmax.f32 %v2284_v17, %v2380_v49  ;;  %v8708_v6 = vrot.slane %v5726_v37, 6  ;;  %v8709_v29 = vrot.slane %v5645_v42, 6  ;;  %4120 = vmatmul.msk.f32.gmra.mxu1 %vm1482_vm9, %v3440_v5 }
 0x1a3   : > { %v2508_v36 = vsel %vm809_vm8, %v2488_v50, -3.4028235e+38  ;;  %v5996_v39 = vmax.f32 %v1338_v45, %v1394_v1  ;;  %v705_v35 = vadd.f32 %v5503_v55, %v669_v8  ;;  %v1136_v11 = vsel %vm1126_vm3, %v1103_v60, %v1119_v21 }
 0x1a4   : > { %v1007_v9 = vsel %vm997_vm1, %v8709_v29, %v8708_v6  ;;  %v6002_v23 = vmax.f32 %v2411_v44, %v2472_v43  ;;  %v6004_v3 = vmax.f32 %v2412_v61, %v2508_v36  ;;  %v1281_v17 = vsel %vm1255_vm6, %v1248_v48, %v1232_v52 }
 0x1a5   : > { %v1081_v62 = vmax.f32 %v5726_v37, %v1007_v9  ;;  %v1410_v42 = vsel %vm1384_vm7, %v1377_v33, %v1361_v0  ;;  %4041 = vmatmul.msk.f32.gmra.mxu2 %vm1482_vm9, %v5996_v39  ;;  %v8710_v36 = vmax.f32 %v5552_v38, %v5704_v40  ;;  %v737_v21 = vmul.f32 0.01, %v705_v35 }
 0x1a6   : > { %v8711_v5 = vmax.f32 %v5577_v46, %v5704_v40  ;;  %v2897_v48 = vmax.f32 %v5829_v31, %v6002_v23  ;;  %v2898_v0 = vmax.f32 %v5835_v32, %v6004_v3  ;;  %v1307_v43 = vsel %vm801_vm5, %v1281_v17, -3.4028235e+38 }
 0x1a7   : > { %v6019_v1 = vmax.f32 %v8710_v36, %v5996_v39  ;;  %v1210_v33 = vmax.f32 %v1081_v62, %v1136_v11  ;;  %v6033_v38 = vmax.f32 %v705_v35, %v737_v21  ;;  %v1436_v45 = vsel %vm809_vm8, %v1410_v42, -3.4028235e+38 }
 0x1a8   : > { %v6027_v52 = vmax.f32 %v8711_v5, %v5996_v39  ;;  %v670_v49 = vmul.f32 %v5484_v54, %v624_v34  ;;  %v2960_v18 = vrot.slane %v2897_v48, 6  ;;  %v2976_v31 = vrot.slane %v2898_v0, 6 }
 0x1a9   : > { %8713 = vst [vmem:[#allocation53_spill] sm:$0xff] %v6033_v38  ;;  %v3088_v50 = vrot.slane %v2897_v48, 7  ;;  %v3104_v8 = vrot.slane %v2898_v0, 7  ;;  %v3216_v32 = vrot.slane %v2897_v48, 1  ;;  %v3232_v44 = vrot.slane %v2898_v0, 1 }
 0x1aa   : > { %8712 = vst [vmem:[#allocation39_spill] sm:$0xff] %v6027_v52  ;;  %v3008_v61 = vsel %vm997_vm1, %v2976_v31, %v2960_v18  ;;  %v3344_v6 = vrot.slane %v2897_v48, 2  ;;  %v3360_v29 = vrot.slane %v2898_v0, 2  ;;  %v8714_v9 = vmax.f32 %v5637_v7, %v5847_v51 }
 0x1ab   : > { %v3025_v62 = vsel %vm782_vm2, %v3008_v61, -3.4028235e+38  ;;  %v3136_v11 = vsel %vm1126_vm3, %v3104_v8, %v3088_v50  ;;  %v3248_v17 = vsel %vm1255_vm6, %v3216_v32, %v3232_v44  ;;  %v1339_v42 = vmax.f32 %v1210_v33, %v1307_v43 }
 0x1ac   : > { %v6048_v35 = vmax.f32 %v8714_v9, %v6033_v38  ;;  %v3057_v34 = vmax.f32 %v2897_v48, %v3025_v62  ;;  %v3153_v36 = vsel %vm790_vm4, %v3136_v11, -3.4028235e+38  ;;  %v3376_v21 = vsel %vm1384_vm7, %v3344_v6, %v3360_v29 }
 0x1ad   : > { %v2992_v7 = vsel %vm997_vm1, %v2960_v18, %v2976_v31  ;;  %v6062_v5 = vmax.f32 %v1339_v42, %v1436_v45  ;;  %v3120_v9 = vsel %vm1126_vm3, %v3088_v50, %v3104_v8  ;;  %v3264_v27 = vsel %vm1255_vm6, %v3232_v44, %v3216_v32 }
 0x1ae   : > { %v3058_v61 = vmax.f32 %v2898_v0, %v2992_v7  ;;  %v3185_v33 = vmax.f32 %v3057_v34, %v3153_v36  ;;  %v3282_v48 = vsel %vm801_vm5, %v3264_v27, -3.4028235e+38  ;;  %v3392_v43 = vsel %vm1384_vm7, %v3360_v29, %v3344_v6  ;;  %v8727_v0 = vld [vmem:[#allocation45_spill] sm:$0xff] }
 0x1af   : > { %v706_v62 = vadd.f32 %v5503_v55, %v670_v49  ;;  %4042 = vmatmul.msk.f32.gmra.mxu2 %vm1482_vm9, %v6062_v5  ;;  %v8715_v45 = vmax.f32 %v5557_v16, %v5877_v63  ;;  %v8716_v31 = vmax.f32 %v5593_v47, %v5877_v63  ;;  %v3410_v32 = vsel %vm809_vm8, %v3392_v43, -3.4028235e+38 }
 0x1b0   : > { %v3313_v50 = vmax.f32 %v3185_v33, %v3248_v17  ;;  %v3186_v8 = vmax.f32 %v3058_v61, %v3120_v9  ;;  %v975_v29 = vrot.slane %v5874_v26, 6  ;;  %v991_v11 = vrot.slane %v5924_v14, 6 }
 0x1b1   : > { %v6081_v18 = vmax.f32 %v8715_v45, %v6062_v5  ;;  %v6089_v49 = vmax.f32 %v8716_v31, %v6062_v5  ;;  %v738_v44 = vmul.f32 0.01, %v706_v62  ;;  %v1104_v47 = vrot.slane %v5874_v26, 7  ;;  %v627_v45 = vpop.f32.mrf.mxu0 }
 0x1b2   : > { %v3441_v42 = vmax.f32 %v3313_v50, %v3376_v21  ;;  %v3314_v34 = vmax.f32 %v3186_v8, %v3282_v48  ;;  %v1024_v17 = vsel %vm997_vm1, %v991_v11, %v975_v29  ;;  %v1120_v7 = vrot.slane %v5924_v14, 7 }
 0x1b3   : > { %8717 = vst [vmem:[#allocation54_spill] sm:$0xff] %v6089_v49  ;;  %v6097_v36 = vmax.f32 %v706_v62, %v738_v44  ;;  %v1233_v61 = vrot.slane %v5874_v26, 1  ;;  %v1249_v9 = vrot.slane %v5924_v14, 1  ;;  %v8719_v21 = vmax.f32 %v5718_v41, %v5910_v57 }
 0x1b4   : > { %4121 = vmatmul.msk.f32.gmra.mxu1 %vm1482_vm9, %v3441_v42  ;;  %v3442_v33 = vmax.f32 %v3314_v34, %v3410_v32  ;;  %v1050_v43 = vsel %vm782_vm2, %v1024_v17, -3.4028235e+38  ;;  %v1362_v62 = vrot.slane %v5874_v26, 2  ;;  %v1153_v50 = vsel %vm1126_vm3, %v1120_v7, %v1104_v47  ;;  %v8721_v42 = vld [vmem:[#allocation43_spill] sm:$0xff]  ;;  %v8723_v17 = vld [vmem:[#allocation42_spill] sm:$0xff] }
 0x1b5   : > { %8718 = vst [vmem:[#allocation55_spill] sm:$0xff] %v6097_v36  ;;  %v6110_v48 = vmax.f32 %v8719_v21, %v6097_v36  ;;  %v1082_v31 = vmax.f32 %v5874_v26, %v1050_v43  ;;  %v1266_v8 = vsel %vm1255_vm6, %v1233_v61, %v1249_v9  ;;  %v1378_v32 = vrot.slane %v5924_v14, 2 }
 0x1b6   : > { %v1179_v41 = vsel %vm790_vm4, %v1153_v50, -3.4028235e+38  ;;  %v2125_v44 = vsel %vm782_vm2, %v5462_v19, -3.4028235e+38  ;;  %v8722_v34 = vrot.slane %v8721_v42, 7  ;;  %v8724_v21 = vrot.slane %v8723_v17, 7 }
 0x1b7   : > { %8720 = vst [vmem:[#allocation56_spill] sm:$0xff] %v6110_v48  ;;  %v1211_v6 = vmax.f32 %v1082_v31, %v1179_v41  ;;  %v1395_v50 = vsel %vm1384_vm7, %v1362_v62, %v1378_v32  ;;  %v2157_v19 = vmax.f32 %v8723_v17, %v2125_v44  ;;  %v8728_v60 = vmax.f32 %v8721_v42, %v8727_v0 }
 0x1b8   : > { %v2217_v26 = vsel %vm1126_vm3, %v8724_v21, %v8722_v34  ;;  %v8725_v43 = vmov %v8724_v21  ;;  %v8726_v16 = vmov %v8722_v34  ;;  %v8729_v21 = vrot.slane %v8721_v42, 1 }
 0x1b9   : > { %v2233_v46 = vsel %vm1126_vm3, %v8726_v16, %v8725_v43  ;;  %v2286_v34 = vmax.f32 %v8728_v60, %v2217_v26  ;;  %v8730_v37 = vrot.slane %v8723_v17, 1  ;;  %v8734_v43 = vrot.slane %v8723_v17, 2 }
 0x1ba   : > { %v2253_v27 = vsel %vm790_vm4, %v2233_v46, -3.4028235e+38  ;;  %v8732_v41 = vmov %v8729_v21  ;;  %v8733_v46 = vrot.slane %v8721_v42, 2  ;;  %v1340_v0 = vmax.f32 %v1211_v6, %v1266_v8 }
 0x1bb   : > { %v2345_v16 = vsel %vm1255_vm6, %v8730_v37, %v8729_v21  ;;  %v8731_v31 = vmov %v8730_v37  ;;  %v2285_v26 = vmax.f32 %v2157_v19, %v2253_v27  ;;  %v8735_v37 = vmov %v8734_v43 }
 0x1bc   : > { %v2361_v44 = vsel %vm1255_vm6, %v8732_v41, %v8731_v31  ;;  %v2473_v60 = vsel %vm1384_vm7, %v8734_v43, %v8733_v46  ;;  %v8736_v21 = vmov %v8733_v46  ;;  %v2809_v48 = vmax.f32 %v5772_v30, %v5786_v20  ;;  %4122 = vmatmul.msk.f32.gmra.mxu1 %vm1482_vm9, %v3442_v33 }
 0x1bd   : > { %v2382_v52 = vsel %vm801_vm5, %v2361_v44, -3.4028235e+38  ;;  %v2489_v49 = vsel %vm1384_vm7, %v8736_v21, %v8735_v37  ;;  %v2810_v27 = vmax.f32 %v5782_v53, %v5794_v25  ;;  %v6178_v6 = vmax.f32 %v1340_v0, %v1395_v50 }
 0x1be   : > { %v2414_v31 = vmax.f32 %v2286_v34, %v2382_v52  ;;  %v2510_v41 = vsel %vm809_vm8, %v2489_v49, -3.4028235e+38  ;;  %v2413_v8 = vmax.f32 %v2285_v26, %v2345_v16  ;;  %v671_v17 = vmul.f32 %v5484_v54, %v627_v45 }
 0x1bf   : > { %v8737_v42 = vmax.f32 %v5450_v12, %v5611_v58  ;;  %v2839_v49 = vmax.f32 %v2809_v48, %v5774_v59  ;;  %v2840_v34 = vmax.f32 %v2810_v27, %v5791_v10  ;;  %v1008_v50 = vsel %vm997_vm1, %v975_v29, %v991_v11  ;;  %4043 = vmatmul.msk.f32.gmra.mxu2 %vm1482_vm9, %v6178_v6 }
 0x1c0   : > { %v6186_v52 = vmax.f32 %v2414_v31, %v2510_v41  ;;  %v1921_v45 = vmax.f32 %v5996_v39, %v6178_v6  ;;  %v8739_v16 = vmax.f32 %v5704_v40, %v5996_v39  ;;  %v1977_v48 = vmax.f32 %v6019_v1, %v6178_v6  ;;  %v630_v40 = vpop.f32.mrf.mxu0 }
 0x1c1   : > { %v865_v19 = vmax.f32 %v8737_v42, %v5847_v51  ;;  %v8740_v44 = vmax.f32 %v5733_v22, %v5996_v39  ;;  %v6210_v11 = vmax.f32 %v2413_v8, %v2473_v60  ;;  %v2869_v46 = vmax.f32 %v2839_v49, %v6002_v23 }
 0x1c2   : > { %8738 = vst [vmem:[#allocation43_spill] sm:$0xff] %v6186_v52  ;;  %v6200_v33 = vmax.f32 %v8739_v16, %v6178_v6  ;;  %v2870_v43 = vmax.f32 %v2840_v34, %v6004_v3  ;;  %v707_v0 = vadd.f32 %v5503_v55, %v671_v17  ;;  %v1083_v31 = vmax.f32 %v5924_v14, %v1008_v50 }
 0x1c3   : > { %v6208_v29 = vmax.f32 %v8740_v44, %v6178_v6  ;;  %v895_v21 = vmax.f32 %v865_v19, %v6033_v38  ;;  %v2899_v22 = vmax.f32 %v2869_v46, %v6210_v11  ;;  %v1137_v27 = vsel %vm1126_vm3, %v1104_v47, %v1120_v7 }
 0x1c4   : > { %v2900_v60 = vmax.f32 %v2870_v43, %v6186_v52  ;;  %v739_v41 = vmul.f32 0.01, %v707_v0  ;;  %v1212_v8 = vmax.f32 %v1083_v31, %v1137_v27  ;;  %v1282_v17 = vsel %vm1255_vm6, %v1249_v9, %v1233_v61 }
 0x1c5   : > { %v1411_v42 = vsel %vm1384_vm7, %v1378_v32, %v1362_v62  ;;  %v672_v49 = vmul.f32 %v5484_v54, %v630_v40  ;;  %v2961_v19 = vrot.slane %v2899_v22, 6  ;;  %v3089_v14 = vrot.slane %v2899_v22, 7 }
 0x1c6   : > { %v2977_v34 = vrot.slane %v2900_v60, 6  ;;  %v3105_v50 = vrot.slane %v2900_v60, 7  ;;  %v3217_v16 = vrot.slane %v2899_v22, 1  ;;  %v3233_v44 = vrot.slane %v2900_v60, 1 }
 0x1c7   : > { %v3345_v46 = vrot.slane %v2899_v22, 2  ;;  %v3361_v43 = vrot.slane %v2900_v60, 2  ;;  %v6232_v61 = vmax.f32 %v707_v0, %v739_v41  ;;  %v1309_v9 = vsel %vm801_vm5, %v1282_v17, -3.4028235e+38 }
 0x1c8   : > { %v3009_v47 = vsel %vm997_vm1, %v2977_v34, %v2961_v19  ;;  %v3137_v7 = vsel %vm1126_vm3, %v3105_v50, %v3089_v14  ;;  %v3249_v40 = vsel %vm1255_vm6, %v3217_v16, %v3233_v44  ;;  %v1341_v0 = vmax.f32 %v1212_v8, %v1309_v9 }
 0x1c9   : > { %8741 = vst [vmem:[#allocation42_spill] sm:$0xff] %v6232_v61  ;;  %v3027_v62 = vsel %vm782_vm2, %v3009_v47, -3.4028235e+38  ;;  %v3155_v32 = vsel %vm790_vm4, %v3137_v7, -3.4028235e+38  ;;  %v3377_v31 = vsel %vm1384_vm7, %v3345_v46, %v3361_v43  ;;  %v6245_v37 = vmax.f32 %v895_v21, %v6232_v61 }
 0x1ca   : > { %v3059_v27 = vmax.f32 %v2899_v22, %v3027_v62  ;;  %v1438_v41 = vsel %vm809_vm8, %v1411_v42, -3.4028235e+38  ;;  %v2993_v17 = vsel %vm997_vm1, %v2961_v19, %v2977_v34  ;;  %v3121_v47 = vsel %vm1126_vm3, %v3089_v14, %v3105_v50  ;;  %v8742_v14 = vld [vmem:[#allocation30_spill] sm:$0xff] }
 0x1cb   : > { %v3265_v7 = vsel %vm1255_vm6, %v3233_v44, %v3217_v16  ;;  %v3393_v26 = vsel %vm1384_vm7, %v3361_v43, %v3345_v46  ;;  %v6258_v62 = vmax.f32 %v1341_v0, %v1438_v41  ;;  %v3060_v8 = vmax.f32 %v2900_v60, %v2993_v17  ;;  %v8746_v17 = vld [vmem:[#allocation56_spill] sm:$0xff] }
 0x1cc   : > { %v3187_v22 = vmax.f32 %v3059_v27, %v3155_v32  ;;  %v3284_v42 = vsel %vm801_vm5, %v3265_v7, -3.4028235e+38  ;;  %v3412_v19 = vsel %vm809_vm8, %v3393_v26, -3.4028235e+38  ;;  %v708_v34 = vadd.f32 %v5503_v55, %v672_v49 }
 0x1cd   : > { %v8743_v50 = vmax.f32 %v5523_v28, %v8742_v14  ;;  %4044 = vmatmul.msk.f32.gmra.mxu2 %vm1482_vm9, %v6258_v62  ;;  %v8744_v46 = vmax.f32 %v5877_v63, %v6062_v5  ;;  %v8745_v49 = vmax.f32 %v5896_v56, %v6062_v5  ;;  %v3188_v32 = vmax.f32 %v3060_v8, %v3121_v47 }
 0x1ce   : > { %v3315_v44 = vmax.f32 %v3187_v22, %v3249_v40  ;;  %v740_v40 = vmul.f32 0.01, %v708_v34  ;;  %v8529_v41 = vrot.slane %v6048_v35, 6  ;;  %v8530_v63 = vrot.slane %v8746_v17, 6 }
 0x1cf   : > { %v866_v16 = vmax.f32 %v8743_v50, %v5910_v57  ;;  %v6277_v43 = vmax.f32 %v8744_v46, %v6258_v62  ;;  %v6285_v9 = vmax.f32 %v8745_v49, %v6258_v62  ;;  %v8525_v7 = vrot.slane %v6048_v35, 7 }
 0x1d0   : > { %v3443_v0 = vmax.f32 %v3315_v44, %v3377_v31  ;;  %v3316_v46 = vmax.f32 %v3188_v32, %v3284_v42  ;;  %v6293_v21 = vmax.f32 %v708_v34, %v740_v40  ;;  %v1025_v56 = vsel %vm997_vm1, %v8530_v63, %v8529_v41 }
 0x1d1   : > { %v896_v27 = vmax.f32 %v866_v16, %v6097_v36  ;;  %v8526_v31 = vrot.slane %v8746_v17, 7  ;;  %v8524_v47 = vrot.slane %v6048_v35, 1  ;;  %v8523_v8 = vrot.slane %v8746_v17, 1 }
 0x1d2   : > { %8747 = vst [vmem:[#allocation45_spill] sm:$0xff] %v6293_v21  ;;  %4123 = vmatmul.msk.f32.gmra.mxu1 %vm1482_vm9, %v3443_v0  ;;  %v3444_v16 = vmax.f32 %v3316_v46, %v3412_v19  ;;  %v1052_v34 = vsel %vm782_vm2, %v1025_v56, -3.4028235e+38  ;;  %v8528_v44 = vrot.slane %v6048_v35, 2  ;;  %v8527_v40 = vrot.slane %v8746_v17, 2  ;;  %v8748_v46 = vld [vmem:[#allocation48_spill] sm:$0xff] }
 0x1d3   : > { %v6306_v42 = vmax.f32 %v896_v27, %v6293_v21  ;;  %v1084_v49 = vmax.f32 %v6048_v35, %v1052_v34  ;;  %v1154_v32 = vsel %vm1126_vm3, %v8526_v31, %v8525_v7  ;;  %v1267_v19 = vsel %vm1255_vm6, %v8524_v47, %v8523_v8  ;;  %v8750_v34 = vld [vmem:[#allocation47_spill] sm:$0xff] }
 0x1d4   : > { %v1181_v0 = vsel %vm790_vm4, %v1154_v32, -3.4028235e+38  ;;  %v8749_v56 = vrot.slane %v8748_v46, 6  ;;  %v8751_v50 = vrot.slane %v8750_v34, 6  ;;  %v1396_v32 = vsel %vm1384_vm7, %v8528_v44, %v8527_v40 }
 0x1d5   : > { %v1213_v47 = vmax.f32 %v1084_v49, %v1181_v0  ;;  %v8754_v7 = vrot.slane %v8748_v46, 7  ;;  %v8755_v31 = vrot.slane %v8750_v34, 7  ;;  %v2330_v44 = vrot.slane %v8748_v46, 1 }
 0x1d6   : > { %v2090_v22 = vsel %vm997_vm1, %v8751_v50, %v8749_v56  ;;  %v8752_v26 = vmov %v8751_v50  ;;  %v8753_v60 = vmov %v8749_v56  ;;  %v2442_v63 = vrot.slane %v8750_v34, 2 }
 0x1d7   : > { %v2106_v8 = vsel %vm997_vm1, %v8753_v60, %v8752_v26  ;;  %v2160_v50 = vmax.f32 %v8748_v46, %v2090_v22  ;;  %v2218_v60 = vsel %vm1126_vm3, %v8755_v31, %v8754_v7  ;;  %v8756_v26 = vmov %v8755_v31 }
 0x1d8   : > { %v2127_v27 = vsel %vm782_vm2, %v2106_v8, -3.4028235e+38  ;;  %v8757_v49 = vmov %v8754_v7  ;;  %v2314_v8 = vrot.slane %v8750_v34, 1  ;;  %v1342_v40 = vmax.f32 %v1213_v47, %v1267_v19 }
 0x1d9   : > { %v2159_v56 = vmax.f32 %v8750_v34, %v2127_v27  ;;  %v2234_v0 = vsel %vm1126_vm3, %v8757_v49, %v8756_v26  ;;  %v2288_v27 = vmax.f32 %v2160_v50, %v2218_v60  ;;  %v2458_v7 = vrot.slane %v8748_v46, 2  ;;  %v812_v26 = vld [vmem:[%s8456_s4] sm:$0xff] }
 0x1da   : > { %v2255_v22 = vsel %vm790_vm4, %v2234_v0, -3.4028235e+38  ;;  %v2811_v31 = vmax.f32 %v5786_v20, %v5774_v59  ;;  %4124 = vmatmul.msk.f32.gmra.mxu1 %vm1482_vm9, %v3444_v16  ;;  %v6374_v47 = vmax.f32 %v1342_v40, %v1396_v32  ;;  %v2346_v19 = vsel %vm1255_vm6, %v2314_v8, %v2330_v44  ;;  %v633_v40 = vpop.f32.mrf.mxu0  ;;  %1803 = vmatpush.msrb.mxu2 %v812_v26 }
 0x1db   : > { %v2287_v41 = vmax.f32 %v2159_v56, %v2255_v22  ;;  %v2362_v50 = vsel %vm1255_vm6, %v2330_v44, %v2314_v8  ;;  %v2812_v46 = vmax.f32 %v5794_v25, %v5791_v10  ;;  %v2474_v60 = vsel %vm1384_vm7, %v2442_v63, %v2458_v7 }
 0x1dc   : > { %v2384_v34 = vsel %vm801_vm5, %v2362_v50, -3.4028235e+38  ;;  %v2490_v16 = vsel %vm1384_vm7, %v2458_v7, %v2442_v63  ;;  %4045 = vmatmul.msk.f32.gmra.mxu2 %vm1482_vm9, %v6374_v47  ;;  %v6394_v44 = vmax.f32 %v1921_v45, %v6374_v47  ;;  %v6402_v32 = vmax.f32 %v1977_v48, %v6374_v47  ;;  %v2565_v48 = vld [vmem:[%s8458_s6] sm:$0xff] }
 0x1dd   : > { %v2415_v56 = vmax.f32 %v2287_v41, %v2346_v19  ;;  %v2416_v63 = vmax.f32 %v2288_v27, %v2384_v34  ;;  %v2512_v49 = vsel %vm809_vm8, %v2490_v16, -3.4028235e+38  ;;  %v2841_v8 = vmax.f32 %v2811_v31, %v6002_v23  ;;  %2677 = vmatpush.msrb.mxu3 %v2565_v48 }
 0x1de   : > { %v2842_v39 = vmax.f32 %v2812_v46, %v6004_v3  ;;  %v673_v1 = vmul.f32 %v5484_v54, %v633_v40  ;;  %v837_v31 = vmax.f32 %v5611_v58, %v5847_v51  ;;  %v839_v19 = vmax.f32 %v5847_v51, %v6033_v38 }
 0x1df   : > { %v6406_v0 = vmax.f32 %v2415_v56, %v2474_v60  ;;  %v6412_v7 = vmax.f32 %v2416_v63, %v2512_v49  ;;  %v2871_v27 = vmax.f32 %v2841_v8, %v6210_v11  ;;  %v841_v54 = vmax.f32 %v6033_v38, %v6232_v61 }
 0x1e0   : > { %v2872_v26 = vmax.f32 %v2842_v39, %v6186_v52  ;;  %v709_v50 = vadd.f32 %v5503_v55, %v673_v1  ;;  %v8760_v46 = vrot.slane %v8746_v17, 6  ;;  %v8761_v34 = vrot.slane %v6048_v35, 6 }
 0x1e1   : > { %8758 = vst [vmem:[#allocation56_spill] sm:$0xff] %v6406_v0  ;;  %v8762_v60 = vrot.slane %v8746_v17, 7  ;;  %v8763_v16 = vrot.slane %v6048_v35, 7  ;;  %v2901_v63 = vmax.f32 %v2871_v27, %v6406_v0  ;;  %v867_v49 = vmax.f32 %v837_v31, %v6033_v38 }
 0x1e2   : > { %8759 = vst [vmem:[#allocation48_spill] sm:$0xff] %v6412_v7  ;;  %v1009_v56 = vsel %vm997_vm1, %v8761_v34, %v8760_v46  ;;  %v2902_v55 = vmax.f32 %v2872_v26, %v6412_v7  ;;  %v869_v8 = vmax.f32 %v839_v19, %v6232_v61  ;;  %v741_v39 = vmul.f32 0.01, %v709_v50 }
 0x1e3   : > { %v1138_v40 = vsel %vm1126_vm3, %v8763_v16, %v8762_v60  ;;  %v1085_v1 = vmax.f32 %v8746_v17, %v1009_v56  ;;  %v8764_v48 = vrot.slane %v6048_v35, 1  ;;  %v8765_v46 = vrot.slane %v8746_v17, 1 }
 0x1e4   : > { %v8766_v60 = vrot.slane %v6048_v35, 2  ;;  %v8767_v27 = vrot.slane %v8746_v17, 2  ;;  %v2962_v31 = vrot.slane %v2901_v63, 6  ;;  %v2978_v16 = vrot.slane %v2902_v55, 6 }
 0x1e5   : > { %v1283_v34 = vsel %vm1255_vm6, %v8765_v46, %v8764_v48  ;;  %v3090_v19 = vrot.slane %v2901_v63, 7  ;;  %v3106_v22 = vrot.slane %v2902_v55, 7  ;;  %v3218_v45 = vrot.slane %v2901_v63, 1 }
 0x1e6   : > { %v1412_v26 = vsel %vm1384_vm7, %v8767_v27, %v8766_v60  ;;  %v3234_v56 = vrot.slane %v2902_v55, 1  ;;  %v3346_v41 = vrot.slane %v2901_v63, 2  ;;  %v3362_v38 = vrot.slane %v2902_v55, 2 }
 0x1e7   : > { %v3010_v51 = vsel %vm997_vm1, %v2978_v16, %v2962_v31  ;;  %v3138_v48 = vsel %vm1126_vm3, %v3106_v22, %v3090_v19  ;;  %v6460_v35 = vmax.f32 %v709_v50, %v741_v39  ;;  %v897_v17 = vmax.f32 %v867_v49, %v6232_v61 }
 0x1e8   : > { %v3029_v46 = vsel %vm782_vm2, %v3010_v51, -3.4028235e+38  ;;  %v3157_v60 = vsel %vm790_vm4, %v3138_v48, -3.4028235e+38  ;;  %v3250_v27 = vsel %vm1255_vm6, %v3218_v45, %v3234_v56  ;;  %v3378_v58 = vsel %vm1384_vm7, %v3346_v41, %v3362_v38 }
 0x1e9   : > { %8768 = vst [vmem:[#allocation47_spill] sm:$0xff] %v6460_v35  ;;  %v3061_v28 = vmax.f32 %v2901_v63, %v3029_v46  ;;  %v871_v12 = vmax.f32 %v841_v54, %v6460_v35  ;;  %v899_v50 = vmax.f32 %v869_v8, %v6460_v35  ;;  %v6474_v39 = vmax.f32 %v897_v17, %v6460_v35 }
 0x1ea   : > { %v1214_v49 = vmax.f32 %v1085_v1, %v1138_v40  ;;  %v1311_v51 = vsel %vm801_vm5, %v1283_v34, -3.4028235e+38  ;;  %v1440_v48 = vsel %vm809_vm8, %v1412_v26, -3.4028235e+38  ;;  %v2994_v61 = vsel %vm997_vm1, %v2962_v31, %v2978_v16  ;;  %v636_v1 = vpop.f32.mrf.mxu0 }
 0x1eb   : > { %v3189_v25 = vmax.f32 %v3061_v28, %v3157_v60  ;;  %v901_v20 = vmax.f32 %v871_v12, -3.4028235e+38  ;;  %v6482_v63 = vmax.f32 %v899_v50, -3.4028235e+38  ;;  %v3062_v46 = vmax.f32 %v2902_v55, %v2994_v61 }
 0x1ec   : > { %v1343_v17 = vmax.f32 %v1214_v49, %v1311_v51  ;;  %v3122_v40 = vsel %vm1126_vm3, %v3090_v19, %v3106_v22  ;;  %v3266_v26 = vsel %vm1255_vm6, %v3234_v56, %v3218_v45  ;;  %v3394_v12 = vsel %vm1384_vm7, %v3362_v38, %v3346_v41 }
 0x1ed   : > { %v3317_v34 = vmax.f32 %v3189_v25, %v3250_v27  ;;  %v6488_v35 = vmax.f32 %v901_v20, -3.4028235e+38  ;;  %v3190_v31 = vmax.f32 %v3062_v46, %v3122_v40  ;;  %v3286_v16 = vsel %vm801_vm5, %v3266_v26, -3.4028235e+38  ;;  %v4228_v20 = vld [vmem:[%s8454_s2] ss:$0 sm:$0xff] }
 0x1ee   : > { %v6494_v28 = vmax.f32 %v1343_v17, %v1440_v48  ;;  %v3414_v61 = vsel %vm809_vm8, %v3394_v12, -3.4028235e+38  ;;  %v674_v25 = vmul.f32 %v4228_v20, %v636_v1  ;;  %v838_v45 = vmax.f32 %v8742_v14, %v5910_v57  ;;  %v4229_v27 = vld [vmem:[%s8455_s3] ss:$0 sm:$0xff] }
 0x1ef   : > { %v3445_v22 = vmax.f32 %v3317_v34, %v3378_v58  ;;  %v840_v38 = vmax.f32 %v5910_v57, %v6097_v36  ;;  %v8769_v41 = vmax.f32 %v6062_v5, %v6258_v62  ;;  %v8770_v19 = vmax.f32 %v6081_v18, %v6258_v62 }
 0x1f0   : > { %4046 = vmatmul.msk.f32.gmra.mxu2 %vm1482_vm9, %v6494_v28  ;;  %v3318_v60 = vmax.f32 %v3190_v31, %v3286_v16  ;;  %v710_v50 = vadd.f32 %v4229_v27, %v674_v25  ;;  %v842_v5 = vmax.f32 %v6097_v36, %v6293_v21  ;;  %v868_v49 = vmax.f32 %v838_v45, %v6097_v36 }
 0x1f1   : > { %v6513_v55 = vmax.f32 %v8769_v41, %v6494_v28  ;;  %v6521_v56 = vmax.f32 %v8770_v19, %v6494_v28  ;;  %4125 = vmatmul.msk.f32.gmra.mxu1 %vm1482_vm9, %v3445_v22  ;;  %v870_v51 = vmax.f32 %v840_v38, %v6293_v21  ;;  %v8771_v46 = vrot.slane %v6245_v37, 6  ;;  %v8774_v41 = vld [vmem:[#allocation51_spill] sm:$0xff] }
 0x1f2   : > { %v3446_v17 = vmax.f32 %v3318_v60, %v3414_v61  ;;  %v8772_v40 = vrot.slane %v6306_v42, 6  ;;  %v742_v34 = vmul.f32 0.01, %v710_v50  ;;  %v898_v26 = vmax.f32 %v868_v49, %v6293_v21  ;;  %v8776_v60 = vld [vmem:[#allocation33_spill] sm:$0xff] }
 0x1f3   : > { %v1106_v31 = vrot.slane %v6245_v37, 7  ;;  %v1122_v22 = vrot.slane %v6306_v42, 7  ;;  %v1235_v61 = vrot.slane %v6245_v37, 1  ;;  %v1251_v20 = vrot.slane %v6306_v42, 1 }
 0x1f4   : > { %v1026_v1 = vsel %vm997_vm1, %v8772_v40, %v8771_v46  ;;  %v6547_v25 = vmax.f32 %v710_v50, %v742_v34  ;;  %v8541_v45 = vrot.slane %v6245_v37, 2  ;;  %v8540_v38 = vrot.slane %v6306_v42, 2 }
 0x1f5   : > { %v1054_v12 = vsel %vm782_vm2, %v1026_v1, -3.4028235e+38  ;;  %v8775_v19 = vrot.slane %v8774_v41, 6  ;;  %v8777_v27 = vrot.slane %v8776_v60, 6  ;;  %v1155_v46 = vsel %vm1126_vm3, %v1122_v22, %v1106_v31 }
 0x1f6   : > { %v1086_v16 = vmax.f32 %v6245_v37, %v1054_v12  ;;  %8773 = vst [vmem:[#allocation57_spill] sm:$0xff] %v6547_v25  ;;  %v1268_v50 = vsel %vm1255_vm6, %v1235_v61, %v1251_v20  ;;  %v872_v18 = vmax.f32 %v842_v5, %v6547_v25  ;;  %v1183_v48 = vsel %vm790_vm4, %v1155_v46, -3.4028235e+38  ;;  %v8786_v46 = vld [vmem:[#allocation17_spill] sm:$0xff] }
 0x1f7   : > { %v2091_v49 = vsel %vm997_vm1, %v8777_v27, %v8775_v19  ;;  %v8778_v40 = vmov %v8777_v27  ;;  %v8779_v1 = vmov %v8775_v19  ;;  %v900_v19 = vmax.f32 %v870_v51, %v6547_v25 }
 0x1f8   : > { %v2107_v34 = vsel %vm997_vm1, %v8779_v1, %v8778_v40  ;;  %v2162_v12 = vmax.f32 %v8774_v41, %v2091_v49  ;;  %v6573_v27 = vmax.f32 %v898_v26, %v6547_v25  ;;  %v1215_v58 = vmax.f32 %v1086_v16, %v1183_v48  ;;  %v8780_v1 = vld [vmem:[#allocation18_spill] sm:$0xff]  ;;  %v8795_v25 = vld [vmem:[#allocation20_spill] sm:$0xff] }
 0x1f9   : > { %v1397_v40 = vsel %vm1384_vm7, %v8541_v45, %v8540_v38  ;;  %4055 = vmatmul.msk.f32.vlgmr.msrb.gmra.mxu2 %vm1482_vm9, %v8780_v1  ;;  %v2129_v5 = vsel %vm782_vm2, %v2107_v34, -3.4028235e+38  ;;  %v8781_v51 = vrot.slane %v8774_v41, 7  ;;  %v8782_v26 = vrot.slane %v8776_v60, 7  ;;  %4126 = vmatmul.msk.f32.gmra.mxu1 %vm1482_vm9, %v3446_v17 }
 0x1fa   : > { %v902_v16 = vmax.f32 %v872_v18, -3.4028235e+38  ;;  %v6594_v49 = vmax.f32 %v900_v19, -3.4028235e+38  ;;  %v1344_v1 = vmax.f32 %v1215_v58, %v1268_v50  ;;  %v2161_v54 = vmax.f32 %v8776_v60, %v2129_v5 }
 0x1fb   : > { %v2219_v48 = vsel %vm1126_vm3, %v8782_v26, %v8781_v51  ;;  %v8783_v34 = vmov %v8782_v26  ;;  %v8784_v38 = vmov %v8781_v51  ;;  %v2315_v17 = vrot.slane %v8776_v60, 1 }
 0x1fc   : > { %v2235_v45 = vsel %vm1126_vm3, %v8784_v38, %v8783_v34  ;;  %v2290_v51 = vmax.f32 %v2162_v12, %v2219_v48  ;;  %v6605_v26 = vmax.f32 %v902_v16, -3.4028235e+38  ;;  %v2331_v19 = vrot.slane %v8774_v41, 1 }
 0x1fd   : > { %v2257_v18 = vsel %vm790_vm4, %v2235_v45, -3.4028235e+38  ;;  %v6611_v58 = vmax.f32 %v1344_v1, %v1397_v40  ;;  %v2443_v5 = vrot.slane %v8776_v60, 2  ;;  %v2459_v8 = vrot.slane %v8774_v41, 2 }
 0x1fe   : > { %v2289_v50 = vmax.f32 %v2161_v54, %v2257_v18  ;;  %v2347_v38 = vsel %vm1255_vm6, %v2315_v17, %v2331_v19  ;;  %v2363_v12 = vsel %vm1255_vm6, %v2331_v19, %v2315_v17  ;;  %v2813_v45 = vmax.f32 %v5774_v59, %v6002_v23 }
 0x1ff   : > { %v2814_v48 = vmax.f32 %v5791_v10, %v6004_v3  ;;  %4047 = vmatmul.msk.f32.vlgmr.msra.gmra.mxu3 %vm1482_vm9, %v6611_v58  ;;  %v8785_v41 = vmax.f32 %v6200_v33, %v6374_v47  ;;  %v2386_v40 = vsel %vm801_vm5, %v2363_v12, -3.4028235e+38  ;;  %v2475_v34 = vsel %vm1384_vm7, %v2443_v5, %v2459_v8 }
 0x200   : > { %v2417_v16 = vmax.f32 %v2289_v50, %v2347_v38  ;;  %v2418_v1 = vmax.f32 %v2290_v51, %v2386_v40  ;;  %v2491_v18 = vsel %vm1384_vm7, %v2459_v8, %v2443_v5  ;;  %v2843_v17 = vmax.f32 %v2813_v45, %v6210_v11 }
 0x201   : > { %v6631_v60 = vmax.f32 %v8785_v41, %v6611_v58  ;;  %4056 = vmatmul.msk.f32.gmra.mxu2 %vm1482_vm9, %v8786_v46  ;;  %v2514_v51 = vsel %vm809_vm8, %v2491_v18, -3.4028235e+38  ;;  %v2844_v8 = vmax.f32 %v2814_v48, %v6186_v52  ;;  %v8787_v12 = vrot.slane %v6306_v42, 6 }
 0x202   : > { %v6648_v50 = vmax.f32 %v2417_v16, %v2475_v34  ;;  %v2873_v5 = vmax.f32 %v2843_v17, %v6406_v0  ;;  %v6652_v38 = vmax.f32 %v2418_v1, %v2514_v51  ;;  %v8788_v45 = vrot.slane %v6245_v37, 6 }
 0x203   : > { %v1139_v46 = vsel %vm1126_vm3, %v1106_v31, %v1122_v22  ;;  %v1284_v16 = vsel %vm1255_vm6, %v1251_v20, %v1235_v61  ;;  %v2874_v48 = vmax.f32 %v2844_v8, %v6412_v7  ;;  %v8789_v17 = vrot.slane %v6245_v37, 2 }
 0x204   : > { %v1010_v40 = vsel %vm997_vm1, %v8788_v45, %v8787_v12  ;;  %v2903_v1 = vmax.f32 %v2873_v5, %v6648_v50  ;;  %v1313_v18 = vsel %vm801_vm5, %v1284_v16, -3.4028235e+38  ;;  %v8790_v51 = vrot.slane %v6306_v42, 2 }
 0x205   : > { %v1087_v34 = vmax.f32 %v6306_v42, %v1010_v40  ;;  %v8791_v31 = vrot.slane %v6474_v39, 6  ;;  %v8792_v22 = vrot.slane %v6573_v27, 6  ;;  %v8793_v20 = vrot.slane %v6474_v39, 7 }
 0x206   : > { %v1413_v12 = vsel %vm1384_vm7, %v8790_v51, %v8789_v17  ;;  %v8794_v8 = vrot.slane %v6573_v27, 7  ;;  %v2904_v42 = vmax.f32 %v2874_v48, %v6652_v38  ;;  %v2963_v45 = vrot.slane %v2903_v1, 6 }
 0x207   : > { %v1027_v61 = vsel %vm997_vm1, %v8792_v22, %v8791_v31  ;;  %v3091_v40 = vrot.slane %v2903_v1, 7  ;;  %v3219_v16 = vrot.slane %v2903_v1, 1  ;;  %v3347_v17 = vrot.slane %v2903_v1, 2 }
 0x208   : > { %v1156_v5 = vsel %vm1126_vm3, %v8794_v8, %v8793_v20  ;;  %v1216_v51 = vmax.f32 %v1087_v34, %v1139_v46  ;;  %v1442_v41 = vsel %vm809_vm8, %v1413_v12, -3.4028235e+38  ;;  %v1056_v31 = vsel %vm782_vm2, %v1027_v61, -3.4028235e+38 }
 0x209   : > { %v2979_v22 = vrot.slane %v2904_v42, 6  ;;  %v3107_v33 = vrot.slane %v2904_v42, 7  ;;  %v3235_v54 = vrot.slane %v2904_v42, 1  ;;  %v3363_v19 = vrot.slane %v2904_v42, 2  ;;  %4057 = vmatmul.msk.f32.gmra.mxu2 %vm1482_vm9, %v8795_v25 }
 0x20a   : > { %v1345_v20 = vmax.f32 %v1216_v51, %v1313_v18  ;;  %v1088_v8 = vmax.f32 %v6474_v39, %v1056_v31  ;;  %v1185_v48 = vsel %vm790_vm4, %v1156_v5, -3.4028235e+38 }
 0x20b   : > { %v3011_v46 = vsel %vm997_vm1, %v2979_v22, %v2963_v45  ;;  %v3139_v34 = vsel %vm1126_vm3, %v3107_v33, %v3091_v40  ;;  %v3251_v12 = vsel %vm1255_vm6, %v3219_v16, %v3235_v54  ;;  %v3379_v18 = vsel %vm1384_vm7, %v3347_v17, %v3363_v19 }
 0x20c   : > { %v3031_v61 = vsel %vm782_vm2, %v3011_v46, -3.4028235e+38  ;;  %v3159_v5 = vsel %vm790_vm4, %v3139_v34, -3.4028235e+38  ;;  %v6713_v51 = vmax.f32 %v1345_v20, %v1442_v41  ;;  %v2995_v25 = vsel %vm997_vm1, %v2963_v45, %v2979_v22  ;;  %v8814_v46 = vld [vmem:[#allocation21_spill] sm:$0xff] }
 0x20d   : > { %v3063_v31 = vmax.f32 %v2903_v1, %v3031_v61  ;;  %v3064_v37 = vmax.f32 %v2904_v42, %v2995_v25  ;;  %v3123_v21 = vsel %vm1126_vm3, %v3091_v40, %v3107_v33  ;;  %v3267_v36 = vsel %vm1255_vm6, %v3235_v54, %v3219_v16 }
 0x20e   : > { %4048 = vmatmul.msk.f32.gmra.mxu3 %vm1482_vm9, %v6713_v51  ;;  %v8796_v41 = vmax.f32 %v6277_v43, %v6494_v28  ;;  %v3288_v1 = vsel %vm801_vm5, %v3267_v36, -3.4028235e+38  ;;  %v3395_v33 = vsel %vm1384_vm7, %v3363_v19, %v3347_v17  ;;  %v1217_v40 = vmax.f32 %v1088_v8, %v1185_v48 }
 0x20f   : > { %v3191_v42 = vmax.f32 %v3063_v31, %v3159_v5  ;;  %v3192_v54 = vmax.f32 %v3064_v37, %v3123_v21  ;;  %v3416_v45 = vsel %vm809_vm8, %v3395_v33, -3.4028235e+38  ;;  %v8797_v36 = vrot.slane %v6573_v27, 1  ;;  %v8800_v5 = vld [vmem:[#allocation54_spill] sm:$0xff] }
 0x210   : > { %v6729_v20 = vmax.f32 %v8796_v41, %v6713_v51  ;;  %v8798_v19 = vrot.slane %v6474_v39, 1  ;;  %v1365_v37 = vrot.slane %v6474_v39, 2  ;;  %v8799_v17 = vrot.slane %v6631_v60, 6  ;;  %v8802_v41 = vld [vmem:[#allocation39_spill] sm:$0xff] }
 0x211   : > { %v3319_v61 = vmax.f32 %v3191_v42, %v3251_v12  ;;  %v3320_v25 = vmax.f32 %v3192_v54, %v3288_v1  ;;  %v1381_v12 = vrot.slane %v6573_v27, 2  ;;  %v8801_v31 = vrot.slane %v8800_v5, 6  ;;  %v8804_v42 = vld [vmem:[#allocation19_spill] sm:$0xff] }
 0x212   : > { %v8545_v16 = vrot.slane %v6729_v20, 6  ;;  %v1269_v21 = vsel %vm1255_vm6, %v8798_v19, %v8797_v36  ;;  %v8803_v1 = vrot.slane %v8802_v41, 6  ;;  %4058 = vmatmul.msk.f32.gmra.mxu2 %vm1482_vm9, %v8804_v42 }
 0x213   : > { %v1346_v48 = vmax.f32 %v1217_v40, %v1269_v21  ;;  %v3447_v54 = vmax.f32 %v3319_v61, %v3379_v18  ;;  %v3448_v19 = vmax.f32 %v3320_v25, %v3416_v45  ;;  %v8806_v40 = vmov %v8801_v31 }
 0x214   : > { %v6754_v8 = vsel %vm997_vm1, %v8799_v17, %v8545_v16  ;;  %v2092_v33 = vsel %vm997_vm1, %v8803_v1, %v8801_v31  ;;  %v8805_v17 = vmov %v8803_v1  ;;  %v1398_v34 = vsel %vm1384_vm7, %v1365_v37, %v1381_v12 }
 0x215   : > { %v2108_v21 = vsel %vm997_vm1, %v8806_v40, %v8805_v17  ;;  %v2164_v1 = vmax.f32 %v8800_v5, %v2092_v33  ;;  %v8807_v18 = vrot.slane %v8800_v5, 7  ;;  %v8808_v61 = vrot.slane %v8802_v41, 7  ;;  %4127 = vmatmul.msk.f32.gmra.mxu1 %vm1482_vm9, %v3447_v54 }
 0x216   : > { %v2131_v31 = vsel %vm782_vm2, %v2108_v21, -3.4028235e+38  ;;  %v6785_v25 = vmax.f32 %v1346_v48, %v1398_v34  ;;  %v2316_v21 = vrot.slane %v8802_v41, 1  ;;  %v2444_v34 = vrot.slane %v8802_v41, 2 }
 0x217   : > { %v2220_v45 = vsel %vm1126_vm3, %v8808_v61, %v8807_v18  ;;  %v2163_v42 = vmax.f32 %v8802_v41, %v2131_v31  ;;  %v8809_v17 = vmov %v8808_v61  ;;  %v8810_v40 = vmov %v8807_v18 }
 0x218   : > { %v2236_v33 = vsel %vm1126_vm3, %v8810_v40, %v8809_v17  ;;  %v2292_v36 = vmax.f32 %v2164_v1, %v2220_v45  ;;  %v2332_v18 = vrot.slane %v8800_v5, 1  ;;  %4049 = vmatmul.msk.f32.gmra.mxu3 %vm1482_vm9, %v6785_v25  ;;  %v8811_v48 = vmax.f32 %v6394_v44, %v6611_v58 }
 0x219   : > { %v2259_v43 = vsel %vm790_vm4, %v2236_v33, -3.4028235e+38  ;;  %v2460_v61 = vrot.slane %v8800_v5, 2  ;;  %v2815_v17 = vmax.f32 %v6002_v23, %v6210_v11  ;;  %v2816_v45 = vmax.f32 %v6004_v3, %v6186_v52 }
 0x21a   : > { %v6805_v54 = vmax.f32 %v8811_v48, %v6785_v25  ;;  %v2291_v31 = vmax.f32 %v2163_v42, %v2259_v43  ;;  %v2348_v1 = vsel %vm1255_vm6, %v2316_v21, %v2332_v18  ;;  %v2364_v41 = vsel %vm1255_vm6, %v2332_v18, %v2316_v21  ;;  %4059 = vmatmul.msk.f32.gmra.mxu2 %vm1482_vm9, %v8814_v46 }
 0x21b   : > { %v8812_v40 = vrot.slane %v6573_v27, 6  ;;  %v8813_v44 = vrot.slane %v6474_v39, 6  ;;  %v2388_v21 = vsel %vm801_vm5, %v2364_v41, -3.4028235e+38  ;;  %v2476_v22 = vsel %vm1384_vm7, %v2444_v34, %v2460_v61 }
 0x21c   : > { %v2419_v18 = vmax.f32 %v2291_v31, %v2348_v1  ;;  %v2492_v16 = vsel %vm1384_vm7, %v2460_v61, %v2444_v34  ;;  %v2845_v33 = vmax.f32 %v2815_v17, %v6406_v0  ;;  %v2846_v48 = vmax.f32 %v2816_v45, %v6412_v7 }
 0x21d   : > { %v1011_v43 = vsel %vm997_vm1, %v8813_v44, %v8812_v40  ;;  %v2420_v40 = vmax.f32 %v2292_v36, %v2388_v21  ;;  %v2516_v44 = vsel %vm809_vm8, %v2492_v16, -3.4028235e+38  ;;  %v8815_v1 = vrot.slane %v6573_v27, 7  ;;  %4128 = vmatmul.msk.f32.gmra.mxu1 %vm1482_vm9, %v3448_v19 }
 0x21e   : > { %v6838_v42 = vmax.f32 %v2419_v18, %v2476_v22  ;;  %v1089_v31 = vmax.f32 %v6573_v27, %v1011_v43  ;;  %v8816_v41 = vrot.slane %v6474_v39, 7  ;;  %v8817_v46 = vrot.slane %v6474_v39, 1 }
 0x21f   : > { %v8818_v36 = vrot.slane %v6573_v27, 1  ;;  %v6854_v22 = vmax.f32 %v2420_v40, %v2516_v44  ;;  %v2875_v61 = vmax.f32 %v2845_v33, %v6648_v50  ;;  %v2876_v17 = vmax.f32 %v2846_v48, %v6652_v38 }
 0x220   : > { %v1140_v34 = vsel %vm1126_vm3, %v8816_v41, %v8815_v1  ;;  %v1414_v39 = vsel %vm1384_vm7, %v1381_v12, %v1365_v37  ;;  %v8546_v27 = vrot.slane %v6482_v63, 6  ;;  %v8547_v21 = vrot.slane %v6594_v49, 6 }
 0x221   : > { %v1285_v16 = vsel %vm1255_vm6, %v8818_v36, %v8817_v46  ;;  %v1218_v43 = vmax.f32 %v1089_v31, %v1140_v34  ;;  %v2905_v18 = vmax.f32 %v2875_v61, %v6838_v42  ;;  %v2906_v19 = vmax.f32 %v2876_v17, %v6854_v22  ;;  %v8819_v17 = vld [vmem:[#allocation22_spill] sm:$0xff] }
 0x222   : > { %v1315_v45 = vsel %vm801_vm5, %v1285_v16, -3.4028235e+38  ;;  %v1444_v33 = vsel %vm809_vm8, %v1414_v39, -3.4028235e+38  ;;  %v1108_v48 = vrot.slane %v6482_v63, 7  ;;  %v1028_v37 = vsel %vm997_vm1, %v8547_v21, %v8546_v27  ;;  %4060 = vmatmul.msk.f32.gmra.mxu2 %vm1482_vm9, %v8819_v17 }
 0x223   : > { %v1347_v40 = vmax.f32 %v1218_v43, %v1315_v45  ;;  %v2964_v31 = vrot.slane %v2905_v18, 6  ;;  %v2980_v1 = vrot.slane %v2906_v19, 6  ;;  %v3092_v41 = vrot.slane %v2905_v18, 7 }
 0x224   : > { %v3108_v34 = vrot.slane %v2906_v19, 7  ;;  %v3220_v46 = vrot.slane %v2905_v18, 1  ;;  %v3236_v36 = vrot.slane %v2906_v19, 1  ;;  %v3348_v16 = vrot.slane %v2905_v18, 2 }
 0x225   : > { %v3364_v61 = vrot.slane %v2906_v19, 2  ;;  %v3012_v45 = vsel %vm997_vm1, %v2980_v1, %v2964_v31  ;;  %v6883_v39 = vmax.f32 %v1347_v40, %v1444_v33  ;;  %v2996_v27 = vsel %vm997_vm1, %v2964_v31, %v2980_v1 }
 0x226   : > { %v3140_v43 = vsel %vm1126_vm3, %v3108_v34, %v3092_v41  ;;  %v3033_v21 = vsel %vm782_vm2, %v3012_v45, -3.4028235e+38  ;;  %v3252_v17 = vsel %vm1255_vm6, %v3220_v46, %v3236_v36  ;;  %v8820_v33 = vmax.f32 %v6513_v55, %v6713_v51 }
 0x227   : > { %v3161_v44 = vsel %vm790_vm4, %v3140_v43, -3.4028235e+38  ;;  %v3380_v5 = vsel %vm1384_vm7, %v3348_v16, %v3364_v61  ;;  %v3065_v12 = vmax.f32 %v2905_v18, %v3033_v21  ;;  %4050 = vmatmul.msk.f32.gmra.mxu3 %vm1482_vm9, %v6883_v39  ;;  %v3066_v31 = vmax.f32 %v2906_v19, %v2996_v27 }
 0x228   : > { %v6901_v40 = vmax.f32 %v8820_v33, %v6883_v39  ;;  %v3124_v1 = vsel %vm1126_vm3, %v3092_v41, %v3108_v34  ;;  %v3268_v45 = vsel %vm1255_vm6, %v3236_v36, %v3220_v46  ;;  %v3396_v43 = vsel %vm1384_vm7, %v3364_v61, %v3348_v16 }
 0x229   : > { %v1058_v21 = vsel %vm782_vm2, %v1028_v37, -3.4028235e+38  ;;  %v8821_v18 = vrot.slane %v6594_v49, 7  ;;  %v3193_v27 = vmax.f32 %v3065_v12, %v3161_v44  ;;  %v3194_v36 = vmax.f32 %v3066_v31, %v3124_v1 }
 0x22a   : > { %v8548_v19 = vrot.slane %v6901_v40, 6  ;;  %v3290_v37 = vsel %vm801_vm5, %v3268_v45, -3.4028235e+38  ;;  %v3418_v16 = vsel %vm809_vm8, %v3396_v43, -3.4028235e+38  ;;  %v8822_v12 = vrot.slane %v6805_v54, 6 }
 0x22b   : > { %v1157_v55 = vsel %vm1126_vm3, %v8821_v18, %v1108_v48  ;;  %v3321_v61 = vmax.f32 %v3193_v27, %v3252_v17  ;;  %v1090_v33 = vmax.f32 %v6482_v63, %v1058_v21  ;;  %v3322_v45 = vmax.f32 %v3194_v36, %v3290_v37  ;;  %v8823_v18 = vld [vmem:[#allocation23_spill] sm:$0xff] }
 0x22c   : > { %v6931_v44 = vsel %vm997_vm1, %v8822_v12, %v8548_v19  ;;  %v1187_v31 = vsel %vm790_vm4, %v1157_v55, -3.4028235e+38  ;;  %v1253_v43 = vrot.slane %v6594_v49, 1  ;;  %v1366_v17 = vrot.slane %v6482_v63, 2  ;;  %4061 = vmatmul.msk.f32.gmra.mxu2 %vm1482_vm9, %v8823_v18 }
 0x22d   : > { %v3449_v27 = vmax.f32 %v3321_v61, %v3380_v5  ;;  %v1219_v46 = vmax.f32 %v1090_v33, %v1187_v31  ;;  %v1382_v12 = vrot.slane %v6594_v49, 2  ;;  %v1923_v21 = vmax.f32 %v6178_v6, %v6374_v47 }
 0x22e   : > { %v3450_v34 = vmax.f32 %v3322_v45, %v3418_v16  ;;  %v8824_v55 = vrot.slane %v6482_v63, 1  ;;  %v8825_v37 = vrot.slane %v6285_v9, 6  ;;  %v8826_v1 = vrot.slane %v6208_v29, 6 }
 0x22f   : > { %4129 = vmatmul.msk.f32.gmra.mxu1 %vm1482_vm9, %v3449_v27  ;;  %v1399_v33 = vsel %vm1384_vm7, %v1366_v17, %v1382_v12  ;;  %v1953_v31 = vmax.f32 %v1923_v21, %v6611_v58  ;;  %v8830_v41 = vrot.slane %v6208_v29, 7 }
 0x230   : > { %v1270_v36 = vsel %vm1255_vm6, %v8824_v55, %v1253_v43  ;;  %v2093_v18 = vsel %vm997_vm1, %v8826_v1, %v8825_v37  ;;  %v8827_v5 = vmov %v8826_v1  ;;  %v8828_v61 = vmov %v8825_v37 }
 0x231   : > { %v2109_v6 = vsel %vm997_vm1, %v8828_v61, %v8827_v5  ;;  %v1348_v16 = vmax.f32 %v1219_v46, %v1270_v36  ;;  %v2166_v55 = vmax.f32 %v6285_v9, %v2093_v18  ;;  %v8829_v37 = vrot.slane %v6285_v9, 7 }
 0x232   : > { %v2133_v45 = vsel %vm782_vm2, %v2109_v6, -3.4028235e+38  ;;  %v8831_v46 = vmov %v8830_v41  ;;  %v1983_v61 = vmax.f32 %v1953_v31, %v6785_v25  ;;  %v2317_v6 = vrot.slane %v6208_v29, 1 }
 0x233   : > { %v2165_v1 = vmax.f32 %v6208_v29, %v2133_v45  ;;  %v2221_v27 = vsel %vm1126_vm3, %v8830_v41, %v8829_v37  ;;  %v8832_v36 = vmov %v8829_v37  ;;  %v6981_v5 = vmax.f32 %v1348_v16, %v1399_v33 }
 0x234   : > { %v2237_v21 = vsel %vm1126_vm3, %v8832_v36, %v8831_v46  ;;  %v2294_v19 = vmax.f32 %v2166_v55, %v2221_v27  ;;  %v2333_v41 = vrot.slane %v6285_v9, 1  ;;  %v2445_v37 = vrot.slane %v6208_v29, 2 }
 0x235   : > { %v2261_v18 = vsel %vm790_vm4, %v2237_v21, -3.4028235e+38  ;;  %4051 = vmatmul.msk.f32.gmra.mxu3 %vm1482_vm9, %v6981_v5  ;;  %v6992_v46 = vmax.f32 %v1983_v61, %v6981_v5  ;;  %v2461_v16 = vrot.slane %v6285_v9, 2  ;;  %v2817_v33 = vmax.f32 %v6210_v11, %v6406_v0  ;;  %v8836_v61 = vld [vmem:[#allocation24_spill] sm:$0xff] }
 0x236   : > { %v2293_v45 = vmax.f32 %v2165_v1, %v2261_v18  ;;  %v2818_v31 = vmax.f32 %v6186_v52, %v6412_v7  ;;  %v2349_v1 = vsel %vm1255_vm6, %v2317_v6, %v2333_v41  ;;  %v2365_v29 = vsel %vm1255_vm6, %v2333_v41, %v2317_v6  ;;  %4062 = vmatmul.msk.f32.gmra.mxu2 %vm1482_vm9, %v8836_v61 }
 0x237   : > { %v8833_v55 = vrot.slane %v6594_v49, 6  ;;  %v8834_v27 = vrot.slane %v6482_v63, 6  ;;  %v8835_v9 = vrot.slane %v6594_v49, 7  ;;  %v2477_v14 = vsel %vm1384_vm7, %v2445_v37, %v2461_v16  ;;  %4130 = vmatmul.msk.f32.gmra.mxu1 %vm1482_vm9, %v3450_v34 }
 0x238   : > { %v2847_v41 = vmax.f32 %v2817_v33, %v6648_v50  ;;  %v2848_v57 = vmax.f32 %v2818_v31, %v6652_v38  ;;  %v1415_v34 = vsel %vm1384_vm7, %v1382_v12, %v1366_v17  ;;  %v996_v31 = vrot.slane %v6605_v26, 6 }
 0x239   : > { %v1012_v36 = vsel %vm997_vm1, %v8834_v27, %v8833_v55  ;;  %v1141_v21 = vsel %vm1126_vm3, %v1108_v48, %v8835_v9  ;;  %v2390_v55 = vsel %vm801_vm5, %v2365_v29, -3.4028235e+38  ;;  %v2421_v27 = vmax.f32 %v2293_v45, %v2349_v1 }
 0x23a   : > { %v2493_v48 = vsel %vm1384_vm7, %v2461_v16, %v2445_v37  ;;  %v2422_v9 = vmax.f32 %v2294_v19, %v2390_v55  ;;  %v1091_v45 = vmax.f32 %v6594_v49, %v1012_v36  ;;  %v8837_v1 = vrot.slane %v6482_v63, 1 }
 0x23b   : > { %v2518_v61 = vsel %vm809_vm8, %v2493_v48, -3.4028235e+38  ;;  %v7032_v6 = vmax.f32 %v2421_v27, %v2477_v14  ;;  %v2877_v37 = vmax.f32 %v2847_v41, %v6838_v42  ;;  %v2878_v16 = vmax.f32 %v2848_v57, %v6854_v22  ;;  %v8838_v27 = vld [vmem:[#allocation25_spill] sm:$0xff] }
 0x23c   : > { %v1286_v29 = vsel %vm1255_vm6, %v1253_v43, %v8837_v1  ;;  %v7041_v19 = vmax.f32 %v2422_v9, %v2518_v61  ;;  %v1220_v33 = vmax.f32 %v1091_v45, %v1141_v21  ;;  %v1446_v49 = vsel %vm809_vm8, %v1415_v34, -3.4028235e+38 }
 0x23d   : > { %v1317_v14 = vsel %vm801_vm5, %v1286_v29, -3.4028235e+38  ;;  %v1924_v63 = vmax.f32 %v6258_v62, %v6494_v28  ;;  %v980_v43 = vrot.slane %v6488_v35, 6  ;;  %v2907_v17 = vmax.f32 %v2877_v37, %v7032_v6 }
 0x23e   : > { %v2908_v12 = vmax.f32 %v2878_v16, %v7041_v19  ;;  %v1349_v36 = vmax.f32 %v1220_v33, %v1317_v14  ;;  %4063 = vmatmul.msk.f32.gmra.mxu2 %vm1482_vm9, %v8838_v27 }
 0x23f   : > { %v1954_v41 = vmax.f32 %v1924_v63, %v6713_v51  ;;  %v2965_v62 = vrot.slane %v2907_v17, 6  ;;  %v3093_v9 = vrot.slane %v2907_v17, 7  ;;  %v3221_v45 = vrot.slane %v2907_v17, 1 }
 0x240   : > { %v2981_v48 = vrot.slane %v2908_v12, 6  ;;  %v3109_v61 = vrot.slane %v2908_v12, 7  ;;  %v3237_v1 = vrot.slane %v2908_v12, 1  ;;  %v3349_v29 = vrot.slane %v2907_v17, 2 }
 0x241   : > { %v3365_v34 = vrot.slane %v2908_v12, 2  ;;  %v7065_v14 = vmax.f32 %v1349_v36, %v1446_v49  ;;  %v1984_v33 = vmax.f32 %v1954_v41, %v6883_v39 }
 0x242   : > { %v3013_v37 = vsel %vm997_vm1, %v2981_v48, %v2965_v62  ;;  %v3141_v16 = vsel %vm1126_vm3, %v3109_v61, %v3093_v9  ;;  %v3253_v55 = vsel %vm1255_vm6, %v3221_v45, %v3237_v1  ;;  %v2997_v36 = vsel %vm997_vm1, %v2965_v62, %v2981_v48 }
 0x243   : > { %v3035_v63 = vsel %vm782_vm2, %v3013_v37, -3.4028235e+38  ;;  %v3163_v27 = vsel %vm790_vm4, %v3141_v16, -3.4028235e+38  ;;  %v3381_v21 = vsel %vm1384_vm7, %v3349_v29, %v3365_v34  ;;  %4052 = vmatmul.msk.f32.gmra.mxu3 %vm1482_vm9, %v7065_v14  ;;  %v2014_v49 = vmax.f32 %v1984_v33, %v7065_v14 }
 0x244   : > { %v3067_v57 = vmax.f32 %v2907_v17, %v3035_v63  ;;  %v3125_v41 = vsel %vm1126_vm3, %v3093_v9, %v3109_v61  ;;  %v3068_v37 = vmax.f32 %v2908_v12, %v2997_v36  ;;  %v3269_v16 = vsel %vm1255_vm6, %v3237_v1, %v3221_v45  ;;  %v8839_v45 = vld [vmem:[#allocation26_spill] sm:$0xff] }
 0x245   : > { %v3397_v18 = vsel %vm1384_vm7, %v3365_v34, %v3349_v29  ;;  %v1029_v17 = vsel %vm997_vm1, %v996_v31, %v980_v43  ;;  %v2081_v63 = vrot.slane %v2014_v49, 6  ;;  %v2209_v62 = vrot.slane %v2014_v49, 7 }
 0x246   : > { %v3195_v33 = vmax.f32 %v3067_v57, %v3163_v27  ;;  %v2337_v48 = vrot.slane %v2014_v49, 1  ;;  %v2465_v52 = vrot.slane %v2014_v49, 2  ;;  %v3196_v9 = vmax.f32 %v3068_v37, %v3125_v41  ;;  %4064 = vmatmul.msk.f32.gmra.mxu2 %vm1482_vm9, %v8839_v45 }
 0x247   : > { %v3292_v12 = vsel %vm801_vm5, %v3269_v16, -3.4028235e+38  ;;  %v3420_v61 = vsel %vm809_vm8, %v3397_v18, -3.4028235e+38  ;;  %v8840_v29 = vrot.slane %v6992_v46, 6  ;;  %v8842_v36 = vrot.slane %v6992_v46, 7 }
 0x248   : > { %v3323_v1 = vmax.f32 %v3195_v33, %v3253_v55  ;;  %v8844_v33 = vrot.slane %v6992_v46, 1 }
 0x249   : > { %v2097_v57 = vsel %vm997_vm1, %v8840_v29, %v2081_v63  ;;  %v8841_v34 = vmov %v8840_v29  ;;  %v2225_v41 = vsel %vm1126_vm3, %v8842_v36, %v2209_v62  ;;  %v8843_v55 = vmov %v8842_v36 }
 0x24a   : > { %v2113_v27 = vsel %vm997_vm1, %v2081_v63, %v8841_v34  ;;  %v2174_v37 = vmax.f32 %v2014_v49, %v2097_v57  ;;  %v2241_v16 = vsel %vm1126_vm3, %v2209_v62, %v8843_v55  ;;  %v2353_v45 = vsel %vm1255_vm6, %v8844_v33, %v2337_v48 }
 0x24b   : > { %v2141_v18 = vsel %vm782_vm2, %v2113_v27, -3.4028235e+38  ;;  %v3451_v63 = vmax.f32 %v3323_v1, %v3381_v21  ;;  %v2269_v34 = vsel %vm790_vm4, %v2241_v16, -3.4028235e+38  ;;  %v8845_v36 = vmov %v8844_v33 }
 0x24c   : > { %v2173_v29 = vmax.f32 %v6992_v46, %v2141_v18  ;;  %v2369_v49 = vsel %vm1255_vm6, %v2337_v48, %v8845_v36  ;;  %v2302_v57 = vmax.f32 %v2174_v37, %v2225_v41  ;;  %v8846_v27 = vrot.slane %v6992_v46, 2 }
 0x24d   : > { %v2398_v62 = vsel %vm801_vm5, %v2369_v49, -3.4028235e+38  ;;  %4131 = vmatmul.msk.f32.gmra.mxu1 %vm1482_vm9, %v3451_v63  ;;  %v3324_v41 = vmax.f32 %v3196_v9, %v3292_v12  ;;  %v1060_v37 = vsel %vm782_vm2, %v1029_v17, -3.4028235e+38  ;;  %v8848_v36 = vrot.slane %v6488_v35, 7 }
 0x24e   : > { %v2481_v55 = vsel %vm1384_vm7, %v8846_v27, %v2465_v52  ;;  %v8847_v21 = vmov %v8846_v27  ;;  %v2301_v18 = vmax.f32 %v2173_v29, %v2269_v34  ;;  %v2430_v16 = vmax.f32 %v2302_v57, %v2398_v62 }
 0x24f   : > { %v2497_v1 = vsel %vm1384_vm7, %v2465_v52, %v8847_v21  ;;  %v1092_v33 = vmax.f32 %v6488_v35, %v1060_v37  ;;  %v8849_v46 = vrot.slane %v6605_v26, 7  ;;  %v1254_v63 = vrot.slane %v6605_v26, 1  ;;  %v8851_v21 = vld [vmem:[#allocation27_spill] sm:$0xff] }
 0x250   : > { %v2526_v48 = vsel %vm809_vm8, %v2497_v1, -3.4028235e+38  ;;  %v2429_v29 = vmax.f32 %v2301_v18, %v2353_v45  ;;  %v3452_v34 = vmax.f32 %v3324_v41, %v3420_v61  ;;  %v1367_v12 = vrot.slane %v6488_v35, 2  ;;  %4065 = vmatmul.msk.f32.gmra.mxu2 %vm1482_vm9, %v8851_v21 }
 0x251   : > { %v1158_v52 = vsel %vm1126_vm3, %v8849_v46, %v8848_v36  ;;  %v7154_v17 = vmax.f32 %v2430_v16, %v2526_v48  ;;  %v8850_v57 = vrot.slane %v6488_v35, 1  ;;  %v1383_v27 = vrot.slane %v6605_v26, 2 }
 0x252   : > { %v1189_v9 = vsel %vm790_vm4, %v1158_v52, -3.4028235e+38  ;;  %v7165_v61 = vmax.f32 %v2429_v29, %v2481_v55  ;;  %v1925_v45 = vmax.f32 %v6374_v47, %v6611_v58  ;;  %v1927_v1 = vmax.f32 %v6611_v58, %v6785_v25 }
 0x253   : > { %v1221_v49 = vmax.f32 %v1092_v33, %v1189_v9  ;;  %v1271_v62 = vsel %vm1255_vm6, %v8850_v57, %v1254_v63  ;;  %v1929_v18 = vmax.f32 %v6785_v25, %v6981_v5  ;;  %v1400_v41 = vsel %vm1384_vm7, %v1367_v12, %v1383_v27 }
 0x254   : > { %v8852_v55 = vrot.slane %v6521_v56, 6  ;;  %v8853_v37 = vrot.slane %v6402_v32, 6  ;;  %v1955_v36 = vmax.f32 %v1925_v45, %v6785_v25  ;;  %v1957_v46 = vmax.f32 %v1927_v1, %v6981_v5 }
 0x255   : > { %v1350_v48 = vmax.f32 %v1221_v49, %v1271_v62  ;;  %v8856_v57 = vrot.slane %v6521_v56, 7  ;;  %v8857_v62 = vrot.slane %v6402_v32, 7  ;;  %4132 = vmatmul.msk.f32.gmra.mxu1 %vm1482_vm9, %v3452_v34  ;;  %v2462_v34 = vrot.slane %v6521_v56, 2 }
 0x256   : > { %v2094_v47 = vsel %vm997_vm1, %v8853_v37, %v8852_v55  ;;  %v8854_v58 = vmov %v8853_v37  ;;  %v8855_v16 = vmov %v8852_v55  ;;  %v1985_v1 = vmax.f32 %v1955_v36, %v6981_v5 }
 0x257   : > { %v2110_v33 = vsel %vm997_vm1, %v8855_v16, %v8854_v58  ;;  %v2168_v29 = vmax.f32 %v6521_v56, %v2094_v47  ;;  %v1479_v9 = vmax.f32 %v1350_v48, %v1400_v41  ;;  %v2222_v21 = vsel %vm1126_vm3, %v8857_v62, %v8856_v57 }
 0x258   : > { %v2135_v52 = vsel %vm782_vm2, %v2110_v33, -3.4028235e+38  ;;  %v8858_v55 = vmov %v8857_v62  ;;  %v8859_v25 = vmov %v8856_v57  ;;  %v2318_v37 = vrot.slane %v6402_v32, 1 }
 0x259   : > { %v2167_v49 = vmax.f32 %v6402_v32, %v2135_v52  ;;  %v2238_v45 = vsel %vm1126_vm3, %v8859_v25, %v8858_v55  ;;  %v2296_v41 = vmax.f32 %v2168_v29, %v2222_v21  ;;  %4053 = vmatmul.msk.f32.gmra.mxu3 %vm1482_vm9, %v1479_v9  ;;  %v1959_v47 = vmax.f32 %v1929_v18, %v1479_v9 }
 0x25a   : > { %v2263_v48 = vsel %vm790_vm4, %v2238_v45, -3.4028235e+38  ;;  %v1987_v58 = vmax.f32 %v1957_v46, %v1479_v9  ;;  %v2334_v33 = vrot.slane %v6521_v56, 1  ;;  %v7216_v52 = vmax.f32 %v1985_v1, %v1479_v9  ;;  %v8860_v46 = vld [vmem:[#allocation28_spill] sm:$0xff] }
 0x25b   : > { %v2295_v16 = vmax.f32 %v2167_v49, %v2263_v48  ;;  %v2446_v57 = vrot.slane %v6402_v32, 2  ;;  %v2819_v5 = vmax.f32 %v6406_v0, %v6648_v50  ;;  %v1989_v36 = vmax.f32 %v1959_v47, -3.4028235e+38  ;;  %4066 = vmatmul.msk.f32.gmra.mxu2 %vm1482_vm9, %v8860_v46 }
 0x25c   : > { %v7222_v29 = vmax.f32 %v1987_v58, -3.4028235e+38  ;;  %v2350_v62 = vsel %vm1255_vm6, %v2318_v37, %v2334_v33  ;;  %v2366_v18 = vsel %vm1255_vm6, %v2334_v33, %v2318_v37  ;;  %v2066_v9 = vrot.slane %v7216_v52, 6  ;;  %v7355_v33 = vpop.f32.mrf.mxu1 }
 0x25d   : > { %v8554_v32 = vrot.slane %v7216_v52, 7  ;;  %v7234_v21 = vmax.f32 %v1989_v36, -3.4028235e+38  ;;  %v2392_v48 = vsel %vm801_vm5, %v2366_v18, -3.4028235e+38  ;;  %v2423_v37 = vmax.f32 %v2295_v16, %v2350_v62  ;;  %8870 = vst [vmem:[#allocation51_spill] sm:$0xff] %v7355_v33 }
 0x25e   : > { %v2067_v55 = vrot.slane %v7222_v29, 6  ;;  %v2478_v47 = vsel %vm1384_vm7, %v2446_v57, %v2462_v34  ;;  %v2424_v49 = vmax.f32 %v2296_v41, %v2392_v48  ;;  %v2494_v45 = vsel %vm1384_vm7, %v2462_v34, %v2446_v57 }
 0x25f   : > { %v7250_v1 = vmax.f32 %v2423_v37, %v2478_v47  ;;  %v2820_v16 = vmax.f32 %v6412_v7, %v6652_v38  ;;  %v2520_v62 = vsel %vm809_vm8, %v2494_v45, -3.4028235e+38  ;;  %v2849_v18 = vmax.f32 %v2819_v5, %v6838_v42 }
 0x260   : > { %v1013_v41 = vsel %vm997_vm1, %v980_v43, %v996_v31  ;;  %v8861_v48 = vrot.slane %v6605_v26, 7  ;;  %v8862_v57 = vrot.slane %v6488_v35, 7  ;;  %v7269_v37 = vmax.f32 %v2424_v49, %v2520_v62  ;;  %v8864_v62 = vld [vmem:[#allocation29_spill] sm:$0xff] }
 0x261   : > { %v2850_v45 = vmax.f32 %v2820_v16, %v6854_v22  ;;  %v1093_v5 = vmax.f32 %v6605_v26, %v1013_v41  ;;  %v8863_v47 = vrot.slane %v6488_v35, 1  ;;  %v2879_v31 = vmax.f32 %v2849_v18, %v7032_v6 }
 0x262   : > { %v1142_v34 = vsel %vm1126_vm3, %v8862_v57, %v8861_v48  ;;  %v1416_v49 = vsel %vm1384_vm7, %v1383_v27, %v1367_v12  ;;  %v1926_v16 = vmax.f32 %v6494_v28, %v6713_v51  ;;  %v1928_v35 = vmax.f32 %v6713_v51, %v6883_v39 }
 0x263   : > { %v1287_v43 = vsel %vm1255_vm6, %v1254_v63, %v8863_v47  ;;  %4067 = vmatmul.msk.f32.gmra.mxu2 %vm1482_vm9, %v8864_v62  ;;  %v2880_v63 = vmax.f32 %v2850_v45, %v7041_v19  ;;  %v1222_v41 = vmax.f32 %v1093_v5, %v1142_v34  ;;  %v1448_v18 = vsel %vm809_vm8, %v1416_v49, -3.4028235e+38 }
 0x264   : > { %v1319_v46 = vsel %vm801_vm5, %v1287_v43, -3.4028235e+38  ;;  %v7298_v26 = vmax.f32 %v2879_v31, %v7250_v1  ;;  %v1930_v12 = vmax.f32 %v6883_v39, %v7065_v14  ;;  %v1956_v28 = vmax.f32 %v1926_v16, %v6883_v39 }
 0x265   : > { %v8865_v27 = vrot.slane %v6631_v60, 6  ;;  %v8866_v48 = vrot.slane %v6729_v20, 6  ;;  %v7310_v34 = vmax.f32 %v2880_v63, %v7269_v37  ;;  %v1351_v45 = vmax.f32 %v1222_v41, %v1319_v46 }
 0x266   : > { %v1958_v51 = vmax.f32 %v1928_v35, %v7065_v14  ;;  %v2966_v47 = vrot.slane %v7298_v26, 6  ;;  %v3094_v39 = vrot.slane %v7298_v26, 7  ;;  %v3222_v43 = vrot.slane %v7298_v26, 1  ;;  %v8869_v35 = vld [vmem:[#allocation31_spill] sm:$0xff] }
 0x267   : > { %v2111_v57 = vsel %vm997_vm1, %v8866_v48, %v8865_v27  ;;  %v8553_v31 = vrot.slane %v7298_v26, 2  ;;  %v2982_v49 = vrot.slane %v7310_v34, 6  ;;  %v3110_v16 = vrot.slane %v7310_v34, 7 }
 0x268   : > { %v7315_v5 = vsel %vm782_vm2, %v2111_v57, -3.4028235e+38  ;;  %v3238_v46 = vrot.slane %v7310_v34, 1  ;;  %v8552_v62 = vrot.slane %v7310_v34, 2  ;;  %v1480_v63 = vmax.f32 %v1351_v45, %v1448_v18 }
 0x269   : > { %v1986_v41 = vmax.f32 %v1956_v28, %v7065_v14  ;;  %v8867_v27 = vrot.slane %v6729_v20, 7  ;;  %v8868_v48 = vrot.slane %v6631_v60, 7  ;;  %v3014_v36 = vsel %vm997_vm1, %v2982_v49, %v2966_v47 }
 0x26a   : > { %v3142_v56 = vsel %vm1126_vm3, %v3110_v16, %v3094_v39  ;;  %v3254_v14 = vsel %vm1255_vm6, %v3222_v43, %v3238_v46  ;;  %v3382_v18 = vsel %vm1384_vm7, %v8553_v31, %v8552_v62  ;;  %v3037_v28 = vsel %vm782_vm2, %v3014_v36, -3.4028235e+38  ;;  %4054 = vmatmul.msk.f32.gmra.mxu3 %vm1482_vm9, %v1480_v63 }
 0x26b   : > { %v7334_v57 = vsel %vm1126_vm3, %v8868_v48, %v8867_v27  ;;  %v3165_v45 = vsel %vm790_vm4, %v3142_v56, -3.4028235e+38  ;;  %v1960_v27 = vmax.f32 %v1930_v12, %v1480_v63  ;;  %v1988_v48 = vmax.f32 %v1958_v51, %v1480_v63  ;;  %4068 = vmatmul.msk.f32.gmra.mxu2 %vm1482_vm9, %v8869_v35 }
 0x26c   : > { %v3069_v25 = vmax.f32 %v7298_v26, %v3037_v28  ;;  %v7358_v58 = vmax.f32 %v1986_v41, %v1480_v63  ;;  %v7362_v62 = vsel %vm997_vm1, %v2966_v47, %v2982_v49  ;;  %v7366_v56 = vsel %vm1126_vm3, %v3094_v39, %v3110_v16 }
 0x26d   : > { %v1990_v36 = vmax.f32 %v1960_v27, -3.4028235e+38  ;;  %v7368_v12 = vmax.f32 %v1988_v48, -3.4028235e+38  ;;  %v7374_v35 = vsel %vm1255_vm6, %v3238_v46, %v3222_v43 }
 0x26e   : > { %v3197_v63 = vmax.f32 %v3069_v25, %v3165_v45  ;;  %v2082_v41 = vrot.slane %v7358_v58, 6  ;;  %v2210_v47 = vrot.slane %v7358_v58, 7  ;;  %v2338_v49 = vrot.slane %v7358_v58, 1 }
 0x26f   : > { %v7379_v28 = vmax.f32 %v1990_v36, -3.4028235e+38  ;;  %v2083_v39 = vrot.slane %v7368_v12, 6  ;;  %v2211_v16 = vrot.slane %v7368_v12, 7  ;;  %v2339_v27 = vrot.slane %v7368_v12, 1 }
 0x270   : > { %v3325_v48 = vmax.f32 %v3197_v63, %v3254_v14  ;;  %v2098_v25 = vsel %vm997_vm1, %v2066_v9, %v2082_v41  ;;  %v2114_v43 = vsel %vm997_vm1, %v2082_v41, %v2066_v9  ;;  %v2226_v46 = vsel %vm1126_vm3, %v8554_v32, %v2210_v47 }
 0x271   : > { %v2084_v45 = vrot.slane %v7379_v28, 6  ;;  %v2099_v14 = vsel %vm997_vm1, %v2067_v55, %v2083_v39  ;;  %v2115_v36 = vsel %vm997_vm1, %v2083_v39, %v2067_v55  ;;  %v2143_v9 = vsel %vm782_vm2, %v2114_v43, -3.4028235e+38 }
 0x272   : > { %v3453_v63 = vmax.f32 %v3325_v48, %v3382_v18  ;;  %v2145_v41 = vsel %vm782_vm2, %v2115_v36, -3.4028235e+38  ;;  %v2175_v31 = vmax.f32 %v7216_v52, %v2143_v9  ;;  %v2176_v51 = vmax.f32 %v7358_v58, %v2098_v25  ;;  %4087 = vmatmul.msk.f32.vlgmr.msrb.gmra.mxu3 %vm1482_vm9, %v5772_v30 }
 0x273   : > { %v8871_v32 = vrot.slane %v7234_v21, 6  ;;  %v2177_v39 = vmax.f32 %v7222_v29, %v2145_v41  ;;  %v2178_v18 = vmax.f32 %v7368_v12, %v2099_v14  ;;  %v8873_v43 = vrot.slane %v7222_v29, 7  ;;  %v7443_v41 = vpop.f32.mrf.mxu1 }
 0x274   : > { %4133 = vmatmul.msk.f32.gmra.mxu1 %vm1482_vm9, %v3453_v63  ;;  %v8875_v30 = vrot.slane %v7216_v52, 7  ;;  %v2304_v63 = vmax.f32 %v2176_v51, %v2226_v46  ;;  %8877 = vst [vmem:[#allocation33_spill] sm:$0xff] %v7443_v41  ;;  %v2340_v0 = vrot.slane %v7379_v28, 1 }
 0x275   : > { %v2100_v33 = vsel %vm997_vm1, %v8871_v32, %v2084_v45  ;;  %v8872_v7 = vmov %v8871_v32  ;;  %v2212_v32 = vrot.slane %v7379_v28, 7  ;;  %v8876_v9 = vmov %v8873_v43 }
 0x276   : > { %v2116_v55 = vsel %vm997_vm1, %v2084_v45, %v8872_v7  ;;  %v2180_v25 = vmax.f32 %v7379_v28, %v2100_v33  ;;  %v2227_v7 = vsel %vm1126_vm3, %v8873_v43, %v2211_v16  ;;  %v8874_v45 = vld [vmem:[#allocation34_spill] sm:$0xff]  ;;  %v2242_v36 = vsel %vm1126_vm3, %v2210_v47, %v8875_v30 }
 0x277   : > { %v2147_v48 = vsel %vm782_vm2, %v2116_v55, -3.4028235e+38  ;;  %4069 = vmatmul.msk.f32.gmra.mxu2 %vm1482_vm9, %v8874_v45  ;;  %v2243_v33 = vsel %vm1126_vm3, %v2211_v16, %v8876_v9  ;;  %v8878_v55 = vrot.slane %v7234_v21, 7  ;;  %v2271_v47 = vsel %vm790_vm4, %v2242_v36, -3.4028235e+38 }
 0x278   : > { %v2179_v14 = vmax.f32 %v7234_v21, %v2147_v48  ;;  %v2273_v30 = vsel %vm790_vm4, %v2243_v33, -3.4028235e+38  ;;  %v2303_v16 = vmax.f32 %v2175_v31, %v2271_v47  ;;  %v2306_v9 = vmax.f32 %v2178_v18, %v2227_v7 }
 0x279   : > { %v2228_v43 = vsel %vm1126_vm3, %v8878_v55, %v2212_v32  ;;  %v8879_v48 = vmov %v8878_v55  ;;  %v2305_v46 = vmax.f32 %v2177_v39, %v2273_v30  ;;  %v8882_v33 = vrot.slane %v7222_v29, 1 }
 0x27a   : > { %v2244_v45 = vsel %vm1126_vm3, %v2212_v32, %v8879_v48  ;;  %v7461_v55 = vmax.f32 %v2180_v25, %v2228_v43  ;;  %v8880_v32 = vrot.slane %v7216_v52, 1  ;;  %v7468_v48 = vpop.f32.mrf.mxu2  ;;  %v8885_v43 = vrot.slane %v7234_v21, 1  ;;  %4088 = vmatmul.msk.f32.gmra.mxu3 %vm1482_vm9, %v5782_v53 }
 0x27b   : > { %v2275_v51 = vsel %vm790_vm4, %v2244_v45, -3.4028235e+38  ;;  %8881 = vst [vmem:[#allocation18_spill] sm:$0xff] %v7468_v48  ;;  %v2355_v31 = vsel %vm1255_vm6, %v8882_v33, %v2339_v27  ;;  %v8884_v25 = vmov %v8882_v33 }
 0x27c   : > { %v7459_v41 = vmax.f32 %v2179_v14, %v2275_v51  ;;  %v2354_v36 = vsel %vm1255_vm6, %v8880_v32, %v2338_v49  ;;  %v8883_v39 = vmov %v8880_v32  ;;  %v2371_v7 = vsel %vm1255_vm6, %v2339_v27, %v8884_v25  ;;  %v8887_v25 = vld [vmem:[#allocation36_spill] sm:$0xff] }
 0x27d   : > { %v2370_v18 = vsel %vm1255_vm6, %v2338_v49, %v8883_v39  ;;  %v2431_v14 = vmax.f32 %v2303_v16, %v2354_v36  ;;  %v7486_v45 = vsel %vm1255_vm6, %v8885_v43, %v2340_v0  ;;  %v8886_v47 = vmov %v8885_v43 }
 0x27e   : > { %v2372_v30 = vsel %vm1255_vm6, %v2340_v0, %v8886_v47  ;;  %v2400_v49 = vsel %vm801_vm5, %v2370_v18, -3.4028235e+38  ;;  %v2402_v51 = vsel %vm801_vm5, %v2371_v7, -3.4028235e+38  ;;  %v2433_v32 = vmax.f32 %v2305_v46, %v2355_v31 }
 0x27f   : > { %v7498_v27 = vsel %vm801_vm5, %v2372_v30, -3.4028235e+38  ;;  %v2432_v16 = vmax.f32 %v2304_v63, %v2400_v49  ;;  %v2434_v36 = vmax.f32 %v2306_v9, %v2402_v51  ;;  %v2466_v39 = vrot.slane %v7358_v58, 2  ;;  %4070 = vmatmul.msk.f32.gmra.mxu2 %vm1482_vm9, %v8887_v25 }
 0x280   : > { %v2467_v18 = vrot.slane %v7368_v12, 2  ;;  %v2468_v63 = vrot.slane %v7379_v28, 2  ;;  %v8888_v46 = vmax.f32 %v7310_v34, %v7362_v62  ;;  %v3294_v9 = vsel %vm801_vm5, %v7374_v35, -3.4028235e+38 }
 0x281   : > { %v8889_v31 = vrot.slane %v7298_v26, 2  ;;  %v8890_v58 = vrot.slane %v7310_v34, 2  ;;  %v8891_v7 = vrot.slane %v7216_v52, 2  ;;  %v8892_v43 = vrot.slane %v7222_v29, 2 }
 0x282   : > { %v3198_v53 = vmax.f32 %v8888_v46, %v7366_v56  ;;  %v8895_v47 = vrot.slane %v7234_v21, 2  ;;  %v7566_v21 = vpop.f32.mrf.mxu2 }
 0x283   : > { %v3398_v12 = vsel %vm1384_vm7, %v8890_v58, %v8889_v31  ;;  %v2482_v28 = vsel %vm1384_vm7, %v8891_v7, %v2466_v39  ;;  %v2483_v62 = vsel %vm1384_vm7, %v8892_v43, %v2467_v18  ;;  %v8893_v56 = vmov %v8891_v7  ;;  %8897 = vst [vmem:[#allocation17_spill] sm:$0xff] %v7566_v21 }
 0x284   : > { %v2498_v26 = vsel %vm1384_vm7, %v2466_v39, %v8893_v56  ;;  %v8894_v34 = vmov %v8892_v43  ;;  %v7544_v30 = vsel %vm1384_vm7, %v8895_v47, %v2468_v63  ;;  %v8896_v49 = vmov %v8895_v47  ;;  %v7556_v39 = vpop.f32.mrf.mxu1 }
 0x285   : > { %v2499_v35 = vsel %vm1384_vm7, %v2467_v18, %v8894_v34  ;;  %v7550_v51 = vsel %vm1384_vm7, %v2468_v63, %v8896_v49  ;;  %v2528_v52 = vsel %vm809_vm8, %v2498_v26, -3.4028235e+38  ;;  %v7558_v18 = vmax.f32 %v2431_v14, %v2482_v28 }
 0x286   : > { %v2530_v29 = vsel %vm809_vm8, %v2499_v35, -3.4028235e+38  ;;  %v7560_v25 = vmax.f32 %v2432_v16, %v2528_v52  ;;  %v7562_v46 = vmax.f32 %v2433_v32, %v2483_v62  ;;  %v3326_v63 = vmax.f32 %v3198_v53, %v3294_v9 }
 0x287   : > { %v7564_v31 = vmax.f32 %v2434_v36, %v2530_v29  ;;  %v3422_v58 = vsel %vm809_vm8, %v3398_v12, -3.4028235e+38  ;;  %v8898_v7 = vrot.slane %v6631_v60, 7  ;;  %v8899_v43 = vrot.slane %v6729_v20, 7 }
 0x288   : > { %v8900_v16 = vmax.f32 %v6729_v20, %v6754_v8  ;;  %v8901_v53 = vrot.slane %v6729_v20, 1  ;;  %v8902_v9 = vrot.slane %v6631_v60, 1  ;;  %v8905_v8 = vrot.slane %v6729_v20, 2 }
 0x289   : > { %v2239_v14 = vsel %vm1126_vm3, %v8899_v43, %v8898_v7  ;;  %v3454_v34 = vmax.f32 %v3326_v63, %v3422_v58  ;;  %v8907_v35 = vmax.f32 %v6631_v60, %v7315_v5  ;;  %v8910_v43 = vld [vmem:[#allocation35_spill] sm:$0xff]  ;;  %v2821_v5 = vmax.f32 %v6648_v50, %v6838_v42 }
 0x28a   : > { %v2298_v32 = vmax.f32 %v8900_v16, %v7334_v57  ;;  %v2265_v36 = vsel %vm790_vm4, %v2239_v14, -3.4028235e+38  ;;  %v2351_v12 = vsel %vm1255_vm6, %v8902_v9, %v8901_v53  ;;  %v8903_v28 = vmov %v8902_v9  ;;  %4089 = vmatmul.msk.f32.gmra.mxu3 %vm1482_vm9, %v8910_v43  ;;  %v8911_v16 = vld [vmem:[#allocation37_spill] sm:$0xff] }
 0x28b   : > { %v8904_v62 = vmov %v8901_v53  ;;  %v8906_v57 = vrot.slane %v6631_v60, 2  ;;  %v2297_v47 = vmax.f32 %v8907_v35, %v2265_v36  ;;  %v8909_v29 = vmov %v8905_v8  ;;  %4071 = vmatmul.msk.f32.gmra.mxu2 %vm1482_vm9, %v8911_v16  ;;  %4134 = vmatmul.msk.f32.gmra.mxu1 %vm1482_vm9, %v3454_v34 }
 0x28c   : > { %v2367_v56 = vsel %vm1255_vm6, %v8904_v62, %v8903_v28  ;;  %v2822_v58 = vmax.f32 %v6652_v38, %v6854_v22  ;;  %v8912_v20 = vrot.slane %v6805_v54, 6  ;;  %v8913_v36 = vrot.slane %v6901_v40, 6 }
 0x28d   : > { %v2479_v26 = vsel %vm1384_vm7, %v8906_v57, %v8905_v8  ;;  %v2394_v49 = vsel %vm801_vm5, %v2367_v56, -3.4028235e+38  ;;  %v8908_v52 = vmov %v8906_v57  ;;  %v2425_v60 = vmax.f32 %v2297_v47, %v2351_v12 }
 0x28e   : > { %v2495_v7 = vsel %vm1384_vm7, %v8909_v29, %v8908_v52  ;;  %v2426_v14 = vmax.f32 %v2298_v32, %v2394_v49  ;;  %v2112_v32 = vsel %vm997_vm1, %v8913_v36, %v8912_v20  ;;  %v8914_v53 = vrot.slane %v6901_v40, 7 }
 0x28f   : > { %v2522_v63 = vsel %vm809_vm8, %v2495_v7, -3.4028235e+38  ;;  %v8915_v9 = vrot.slane %v6805_v54, 7  ;;  %v2851_v57 = vmax.f32 %v2821_v5, %v7032_v6  ;;  %v2852_v34 = vmax.f32 %v2822_v58, %v7041_v19 }
 0x290   : > { %v8917_v56 = vmov %v8914_v53  ;;  %v7640_v8 = vmax.f32 %v2426_v14, %v2522_v63  ;;  %v2139_v35 = vsel %vm782_vm2, %v2112_v32, -3.4028235e+38  ;;  %v7646_v47 = vmax.f32 %v2425_v60, %v2479_v26 }
 0x291   : > { %v2224_v28 = vsel %vm1126_vm3, %v8915_v9, %v8914_v53  ;;  %v8916_v62 = vmov %v8915_v9  ;;  %v2171_v49 = vmax.f32 %v6805_v54, %v2139_v35  ;;  %v8918_v29 = vmax.f32 %v6901_v40, %v6931_v44  ;;  %v7668_v44 = vpop.f32.mrf.mxu2 }
 0x292   : > { %v2240_v12 = vsel %vm1126_vm3, %v8917_v56, %v8916_v62  ;;  %v2881_v43 = vmax.f32 %v2851_v57, %v7250_v1  ;;  %v2882_v14 = vmax.f32 %v2852_v34, %v7269_v37  ;;  %v8919_v63 = vrot.slane %v6901_v40, 1  ;;  %8923 = vst [vmem:[#allocation20_spill] sm:$0xff] %v7668_v44 }
 0x293   : > { %v2267_v52 = vsel %vm790_vm4, %v2240_v12, -3.4028235e+38  ;;  %v2300_v7 = vmax.f32 %v8918_v29, %v2224_v28  ;;  %v8920_v5 = vrot.slane %v6805_v54, 1  ;;  %v8924_v32 = vrot.slane %v6901_v40, 2  ;;  %v7684_v12 = vpop.f32.mrf.mxu1 }
 0x294   : > { %v8922_v16 = vmov %v8919_v63  ;;  %v2299_v20 = vmax.f32 %v2171_v49, %v2267_v52  ;;  %v8925_v53 = vrot.slane %v6805_v54, 2  ;;  %v2911_v57 = vmax.f32 %v2881_v43, %v7646_v47  ;;  %v8928_v52 = vld [vmem:[#allocation32_spill] sm:$0xff] }
 0x295   : > { %v2352_v26 = vsel %vm1255_vm6, %v8920_v5, %v8919_v63  ;;  %v8921_v58 = vmov %v8920_v5  ;;  %v8927_v62 = vmov %v8924_v32  ;;  %v2912_v34 = vmax.f32 %v2882_v14, %v7640_v8  ;;  %4090 = vmatmul.msk.f32.gmra.mxu3 %vm1482_vm9, %v8928_v52 }
 0x296   : > { %v2368_v60 = vsel %vm1255_vm6, %v8922_v16, %v8921_v58  ;;  %v2480_v9 = vsel %vm1384_vm7, %v8925_v53, %v8924_v32  ;;  %v8926_v28 = vmov %v8925_v53  ;;  %v2427_v49 = vmax.f32 %v2299_v20, %v2352_v26  ;;  %v8929_v58 = vld [vmem:[#allocation38_spill] sm:$0xff] }
 0x297   : > { %v2396_v36 = vsel %vm801_vm5, %v2368_v60, -3.4028235e+38  ;;  %v2496_v56 = vsel %vm1384_vm7, %v8927_v62, %v8926_v28  ;;  %v2967_v29 = vrot.slane %v2911_v57, 6  ;;  %v2983_v63 = vrot.slane %v2912_v34, 6  ;;  %4072 = vmatmul.msk.f32.gmra.mxu2 %vm1482_vm9, %v8929_v58 }
 0x298   : > { %v2428_v35 = vmax.f32 %v2300_v7, %v2396_v36  ;;  %v3095_v5 = vrot.slane %v2911_v57, 7  ;;  %v3111_v54 = vrot.slane %v2912_v34, 7  ;;  %v2524_v7 = vsel %vm809_vm8, %v2496_v56, -3.4028235e+38 }
 0x299   : > { %v3015_v40 = vsel %vm997_vm1, %v2983_v63, %v2967_v29  ;;  %v3223_v26 = vrot.slane %v2911_v57, 1  ;;  %v3239_v16 = vrot.slane %v2912_v34, 1  ;;  %v2999_v60 = vsel %vm997_vm1, %v2967_v29, %v2983_v63  ;;  %v7706_v28 = vpop.f32.mrf.mxu2 }
 0x29a   : > { %v3143_v43 = vsel %vm1126_vm3, %v3111_v54, %v3095_v5  ;;  %v3039_v14 = vsel %vm782_vm2, %v3015_v40, -3.4028235e+38  ;;  %v3351_v36 = vrot.slane %v2911_v57, 2  ;;  %v2823_v32 = vmax.f32 %v6838_v42, %v7032_v6  ;;  %8930 = vst [vmem:[#allocation54_spill] sm:$0xff] %v7706_v28 }
 0x29b   : > { %v3071_v20 = vmax.f32 %v2911_v57, %v3039_v14  ;;  %v2824_v53 = vmax.f32 %v6854_v22, %v7041_v19  ;;  %v3167_v62 = vsel %vm790_vm4, %v3143_v43, -3.4028235e+38  ;;  %v3367_v56 = vrot.slane %v2912_v34, 2  ;;  %v7722_v0 = vpop.f32.mrf.mxu1 }
 0x29c   : > { %v7710_v52 = vmax.f32 %v2427_v49, %v2480_v9  ;;  %v7712_v58 = vmax.f32 %v2428_v35, %v2524_v7  ;;  %v3072_v29 = vmax.f32 %v2912_v34, %v2999_v60  ;;  %v2853_v57 = vmax.f32 %v2823_v32, %v7250_v1  ;;  %v8931_v7 = vld [vmem:[#allocation40_spill] sm:$0xff] }
 0x29d   : > { %v3199_v40 = vmax.f32 %v3071_v20, %v3167_v62  ;;  %v2854_v63 = vmax.f32 %v2824_v53, %v7269_v37  ;;  %v3255_v14 = vsel %vm1255_vm6, %v3223_v26, %v3239_v16  ;;  %4091 = vmatmul.msk.f32.gmra.mxu3 %vm1482_vm9, %v5774_v59  ;;  %v2825_v43 = vmax.f32 %v7032_v6, %v7250_v1 }
 0x29e   : > { %v3127_v35 = vsel %vm1126_vm3, %v3095_v5, %v3111_v54  ;;  %v2883_v34 = vmax.f32 %v2853_v57, %v7646_v47  ;;  %v3383_v60 = vsel %vm1384_vm7, %v3351_v36, %v3367_v56  ;;  %v3271_v59 = vsel %vm1255_vm6, %v3239_v16, %v3223_v26 }
 0x29f   : > { %v3327_v9 = vmax.f32 %v3199_v40, %v3255_v14  ;;  %v2884_v49 = vmax.f32 %v2854_v63, %v7640_v8  ;;  %4073 = vmatmul.msk.f32.gmra.mxu2 %vm1482_vm9, %v8931_v7  ;;  %v2826_v20 = vmax.f32 %v7041_v19, %v7269_v37  ;;  %v2855_v32 = vmax.f32 %v2825_v43, %v7646_v47 }
 0x2a0   : > { %v3200_v5 = vmax.f32 %v3072_v29, %v3127_v35  ;;  %v2913_v54 = vmax.f32 %v2883_v34, %v7710_v52  ;;  %v3296_v43 = vsel %vm801_vm5, %v3271_v59, -3.4028235e+38  ;;  %v3399_v29 = vsel %vm1384_vm7, %v3367_v56, %v3351_v36  ;;  %v8933_v56 = vld [vmem:[#allocation41_spill] sm:$0xff] }
 0x2a1   : > { %v3455_v53 = vmax.f32 %v3327_v9, %v3383_v60  ;;  %v2914_v62 = vmax.f32 %v2884_v49, %v7712_v58  ;;  %v2856_v40 = vmax.f32 %v2826_v20, %v7640_v8  ;;  %v2885_v57 = vmax.f32 %v2855_v32, %v7710_v52  ;;  %v7742_v7 = vpop.f32.mrf.mxu2 }
 0x2a2   : > { %v2968_v63 = vrot.slane %v2913_v54, 6  ;;  %v3096_v26 = vrot.slane %v2913_v54, 7  ;;  %8932 = vst [vmem:[#allocation39_spill] sm:$0xff] %v7742_v7  ;;  %v3328_v35 = vmax.f32 %v3200_v5, %v3296_v43  ;;  %v3424_v59 = vsel %vm809_vm8, %v3399_v29, -3.4028235e+38 }
 0x2a3   : > { %4135 = vmatmul.msk.f32.gmra.mxu1 %vm1482_vm9, %v3455_v53  ;;  %v2984_v14 = vrot.slane %v2914_v62, 6  ;;  %v3112_v16 = vrot.slane %v2914_v62, 7  ;;  %v2886_v9 = vmax.f32 %v2856_v40, %v7712_v58  ;;  %v7760_v36 = vmax.f32 %v2885_v57, %v7165_v61  ;;  %v7769_v43 = vpop.f32.mrf.mxu1 }
 0x2a4   : > { %v3224_v53 = vrot.slane %v2913_v54, 1  ;;  %v3240_v5 = vrot.slane %v2914_v62, 1  ;;  %v3368_v33 = vrot.slane %v2914_v62, 2 }
 0x2a5   : > { %v3016_v34 = vsel %vm997_vm1, %v2984_v14, %v2968_v63  ;;  %v3144_v49 = vsel %vm1126_vm3, %v3112_v16, %v3096_v26  ;;  %4092 = vmatmul.msk.f32.gmra.mxu3 %vm1482_vm9, %v5791_v10  ;;  %v7767_v40 = vmax.f32 %v2886_v9, %v7154_v17  ;;  %v3456_v10 = vmax.f32 %v3328_v35, %v3424_v59 }
 0x2a6   : > { %v3041_v60 = vsel %vm782_vm2, %v3016_v34, -3.4028235e+38  ;;  %v3169_v32 = vsel %vm790_vm4, %v3144_v49, -3.4028235e+38  ;;  %v3000_v29 = vsel %vm997_vm1, %v2968_v63, %v2984_v14  ;;  %v2969_v57 = vrot.slane %v7760_v36, 6 }
 0x2a7   : > { %v3073_v20 = vmax.f32 %v2913_v54, %v3041_v60  ;;  %4074 = vmatmul.msk.f32.gmra.mxu2 %vm1482_vm9, %v8933_v56  ;;  %v2985_v60 = vrot.slane %v7767_v40, 6  ;;  %v3256_v49 = vsel %vm1255_vm6, %v3224_v53, %v3240_v5  ;;  %v3352_v9 = vrot.slane %v2913_v54, 2  ;;  %v8935_v54 = vld [vmem:[#allocation44_spill] sm:$0xff] }
 0x2a8   : > { %v3074_v28 = vmax.f32 %v2914_v62, %v3000_v29  ;;  %v2827_v35 = vmax.f32 %v7250_v1, %v7646_v47  ;;  %v2828_v63 = vmax.f32 %v7269_v37, %v7640_v8  ;;  %v3097_v29 = vrot.slane %v7760_v36, 7 }
 0x2a9   : > { %v3201_v34 = vmax.f32 %v3073_v20, %v3169_v32  ;;  %v7776_v56 = vpop.f32.mrf.mxu2  ;;  %v3017_v14 = vsel %vm997_vm1, %v2985_v60, %v2969_v57  ;;  %v3384_v62 = vsel %vm1384_vm7, %v3352_v9, %v3368_v33  ;;  %v3128_v32 = vsel %vm1126_vm3, %v3096_v26, %v3112_v16 }
 0x2aa   : > { %8934 = vst [vmem:[#allocation19_spill] sm:$0xff] %v7776_v56  ;;  %v2857_v59 = vmax.f32 %v2827_v35, %v7710_v52  ;;  %v2858_v20 = vmax.f32 %v2828_v63, %v7712_v58  ;;  %v3043_v35 = vsel %vm782_vm2, %v3017_v14, -3.4028235e+38  ;;  %v8953_v56 = vld [vmem:[#allocation53_spill] sm:$0xff] }
 0x2ab   : > { %4136 = vmatmul.msk.f32.gmra.mxu1 %vm1482_vm9, %v3456_v10  ;;  %v3329_v7 = vmax.f32 %v3201_v34, %v3256_v49  ;;  %v3272_v10 = vsel %vm1255_vm6, %v3240_v5, %v3224_v53  ;;  %v3202_v34 = vmax.f32 %v3074_v28, %v3128_v32  ;;  %v3113_v49 = vrot.slane %v7767_v40, 7  ;;  %v7802_v63 = vpop.f32.mrf.mxu1 }
 0x2ac   : > { %v2888_v26 = vmax.f32 %v2858_v20, %v7154_v17  ;;  %v3298_v28 = vsel %vm801_vm5, %v3272_v10, -3.4028235e+38  ;;  %v3075_v5 = vmax.f32 %v7760_v36, %v3043_v35  ;;  %v8937_v20 = vmax.f32 %v7459_v41, %v7486_v45 }
 0x2ad   : > { %4093 = vmatmul.msk.f32.gmra.mxu3 %vm1482_vm9, %v6002_v23  ;;  %v3457_v23 = vmax.f32 %v3329_v7, %v3384_v62  ;;  %v3400_v7 = vsel %vm1384_vm7, %v3368_v33, %v3352_v9  ;;  %v3330_v53 = vmax.f32 %v3202_v34, %v3298_v28  ;;  %v3145_v14 = vsel %vm1126_vm3, %v3113_v49, %v3097_v29 }
 0x2ae   : > { %v7825_v62 = vmax.f32 %v8937_v20, %v7544_v30  ;;  %v8938_v33 = vmax.f32 %v7461_v55, %v7498_v27  ;;  %v7836_v10 = vmax.f32 %v2888_v26, %v7560_v25  ;;  %v3171_v41 = vsel %vm790_vm4, %v3145_v14, -3.4028235e+38 }
 0x2af   : > { %4075 = vmatmul.msk.f32.gmra.mxu2 %vm1482_vm9, %v8935_v54  ;;  %v2887_v54 = vmax.f32 %v2857_v59, %v7165_v61  ;;  %v2532_v59 = vsel %vm809_vm8, %v7550_v51, -3.4028235e+38  ;;  %v8939_v51 = vld [vmem:[#allocation46_spill] sm:$0xff]  ;;  %v3225_v45 = vrot.slane %v7760_v36, 1  ;;  %v3241_v55 = vrot.slane %v7767_v40, 1 }
 0x2b0   : > { %v7830_v9 = vmax.f32 %v8938_v33, %v2532_v59  ;;  %v3203_v30 = vmax.f32 %v3075_v5, %v3171_v41  ;;  %v2986_v35 = vrot.slane %v7836_v10, 6  ;;  %v2829_v26 = vmax.f32 %v7646_v47, %v7710_v52 }
 0x2b1   : > { %v7807_v16 = vpop.f32.mrf.mxu2  ;;  %v7833_v32 = vmax.f32 %v2887_v54, %v7558_v18  ;;  %v2830_v28 = vmax.f32 %v7640_v8, %v7712_v58 }
 0x2b2   : > { %8936 = vst [vmem:[#allocation21_spill] sm:$0xff] %v7807_v16  ;;  %v2859_v20 = vmax.f32 %v2829_v26, %v7165_v61 }
 0x2b3   : > { %4137 = vmatmul.msk.f32.gmra.mxu1 %vm1482_vm9, %v3457_v23  ;;  %v3001_v23 = vsel %vm997_vm1, %v2969_v57, %v2985_v60  ;;  %v2970_v34 = vrot.slane %v7833_v32, 6  ;;  %v3369_v57 = vrot.slane %v7767_v40, 2  ;;  %v7861_v60 = vpop.f32.mrf.mxu1  ;;  %v2860_v33 = vmax.f32 %v2830_v28, %v7154_v17 }
 0x2b4   : > { %8941 = vst [vmem:[#allocation23_spill] sm:$0xff] %v7861_v60  ;;  %v3076_v14 = vmax.f32 %v7767_v40, %v3001_v23  ;;  %v3273_v40 = vsel %vm1255_vm6, %v3241_v55, %v3225_v45  ;;  %v2889_v26 = vmax.f32 %v2859_v20, %v7558_v18 }
 0x2b5   : > { %4094 = vmatmul.msk.f32.gmra.mxu3 %vm1482_vm9, %v6004_v3  ;;  %v3426_v3 = vsel %vm809_vm8, %v3400_v7, -3.4028235e+38  ;;  %v3257_v7 = vsel %vm1255_vm6, %v3225_v45, %v3241_v55  ;;  %v3018_v59 = vsel %vm997_vm1, %v2986_v35, %v2970_v34  ;;  %v2890_v28 = vmax.f32 %v2860_v33, %v7560_v25 }
 0x2b6   : > { %v3458_v27 = vmax.f32 %v3330_v53, %v3426_v3  ;;  %v3353_v53 = vrot.slane %v7760_v36, 2  ;;  %v3331_v5 = vmax.f32 %v3203_v30, %v3257_v7  ;;  %v3129_v3 = vsel %vm1126_vm3, %v3097_v29, %v3113_v49  ;;  %v7885_v7 = vpop.f32.mrf.mxu3 }
 0x2b7   : > { %4076 = vmatmul.msk.f32.gmra.mxu2 %vm1482_vm9, %v8939_v51  ;;  %v8942_v51 = vld [vmem:[#allocation49_spill] sm:$0xff]  ;;  %v3204_v41 = vmax.f32 %v3076_v14, %v3129_v3  ;;  %v3114_v30 = vrot.slane %v7836_v10, 7  ;;  %v3045_v23 = vsel %vm782_vm2, %v3018_v59, -3.4028235e+38  ;;  %8943 = vst [vmem:[#allocation24_spill] sm:$0xff] %v7885_v7  ;;  %v8944_v59 = vld [vmem:[#allocation43_spill] sm:$0xff]  ;;  %v7901_v33 = vmax.f32 %v2889_v26, %v7562_v46 }
 0x2b8   : > { %v3385_v36 = vsel %vm1384_vm7, %v3353_v53, %v3369_v57  ;;  %v3300_v49 = vsel %vm801_vm5, %v3273_v40, -3.4028235e+38  ;;  %v3401_v55 = vsel %vm1384_vm7, %v3369_v57, %v3353_v53  ;;  %v3226_v3 = vrot.slane %v7833_v32, 1  ;;  %v8948_v7 = vld [vmem:[#allocation50_spill] sm:$0xff] }
 0x2b9   : > { %v7851_v54 = vpop.f32.mrf.mxu2  ;;  %v3332_v45 = vmax.f32 %v3204_v41, %v3300_v49  ;;  %v3428_v53 = vsel %vm809_vm8, %v3401_v55, -3.4028235e+38  ;;  %v3242_v40 = vrot.slane %v7836_v10, 1  ;;  %v2971_v26 = vrot.slane %v7901_v33, 6 }
 0x2ba   : > { %8940 = vst [vmem:[#allocation22_spill] sm:$0xff] %v7851_v54 }
 0x2bb   : > { %4138 = vmatmul.msk.f32.gmra.mxu1 %vm1482_vm9, %v3458_v27  ;;  %v3098_v27 = vrot.slane %v7833_v32, 7  ;;  %v7898_v20 = vpop.f32.mrf.mxu1 }
 0x2bd   : > { %4095 = vmatmul.msk.f32.gmra.mxu3 %vm1482_vm9, %v6210_v11  ;;  %v3459_v11 = vmax.f32 %v3331_v5, %v3385_v36  ;;  %v3077_v5 = vmax.f32 %v7833_v32, %v3045_v23  ;;  %v3146_v14 = vsel %vm1126_vm3, %v3114_v30, %v3098_v27  ;;  %v8945_v36 = vld [vmem:[#allocation30_spill] sm:$0xff]  ;;  %v3002_v23 = vsel %vm997_vm1, %v2970_v34, %v2986_v35 }
 0x2be   : > { %v3173_v57 = vsel %vm790_vm4, %v3146_v14, -3.4028235e+38  ;;  %v7919_v49 = vpop.f32.mrf.mxu3  ;;  %v2831_v14 = vmax.f32 %v7710_v52, %v7165_v61  ;;  %v3354_v34 = vrot.slane %v7833_v32, 2  ;;  %v3370_v35 = vrot.slane %v7836_v10, 2 }
 0x2bf   : > { %4077 = vmatmul.msk.f32.gmra.mxu2 %vm1482_vm9, %v8942_v51  ;;  %v7904_v51 = vmax.f32 %v2890_v28, %v7564_v31  ;;  %v3205_v41 = vmax.f32 %v3077_v5, %v3173_v57  ;;  %8946 = vst [vmem:[#allocation25_spill] sm:$0xff] %v7919_v49  ;;  %v3258_v5 = vsel %vm1255_vm6, %v3226_v3, %v3242_v40 }
 0x2c0   : > { %v3386_v32 = vsel %vm1384_vm7, %v3354_v34, %v3370_v35 }
 0x2c1   : > { %v7887_v29 = vpop.f32.mrf.mxu2  ;;  %v2987_v28 = vrot.slane %v7904_v51, 6 }
 0x2c3   : > { %4139 = vmatmul.msk.f32.gmra.mxu1 %vm1482_vm9, %v3459_v11  ;;  %v3460_v11 = vmax.f32 %v3332_v45, %v3428_v53  ;;  %v2832_v45 = vmax.f32 %v7712_v58, %v7154_v17  ;;  %v8947_v53 = vld [vmem:[#allocation56_spill] sm:$0xff]  ;;  %v3019_v57 = vsel %vm997_vm1, %v2987_v28, %v2971_v26 }
 0x2c5   : > { %4096 = vmatmul.msk.f32.gmra.mxu3 %vm1482_vm9, %v8944_v59  ;;  %v3333_v59 = vmax.f32 %v3205_v41, %v3258_v5  ;;  %v2862_v49 = vmax.f32 %v2832_v45, %v7560_v25  ;;  %v3130_v41 = vsel %vm1126_vm3, %v3098_v27, %v3114_v30  ;;  %v3115_v45 = vrot.slane %v7904_v51, 7 }
 0x2c6   : > { %v7955_v30 = vpop.f32.mrf.mxu3 }
 0x2c7   : > { %4078 = vmatmul.msk.f32.gmra.mxu2 %vm1482_vm9, %v8945_v36  ;;  %v3078_v36 = vmax.f32 %v7836_v10, %v3002_v23  ;;  %v3274_v10 = vsel %vm1255_vm6, %v3242_v40, %v3226_v3  ;;  %v7946_v23 = vpop.f32.mrf.mxu1  ;;  %v3461_v5 = vmax.f32 %v3333_v59, %v3386_v32  ;;  %v2892_v27 = vmax.f32 %v2862_v49, %v7564_v31 }
 0x2c8   : > { %8949 = vst [vmem:[#allocation26_spill] sm:$0xff] %v7955_v30  ;;  %v3302_v3 = vsel %vm801_vm5, %v3274_v10, -3.4028235e+38  ;;  %v3402_v59 = vsel %vm1384_vm7, %v3370_v35, %v3354_v34  ;;  %v8951_v10 = vld [vmem:[#allocation52_spill] sm:$0xff] }
 0x2c9   : > { %v7921_v55 = vpop.f32.mrf.mxu2  ;;  %v3430_v34 = vsel %vm809_vm8, %v3402_v59, -3.4028235e+38 }
 0x2cb   : > { %4140 = vmatmul.msk.f32.gmra.mxu1 %vm1482_vm9, %v3460_v11  ;;  %v2861_v11 = vmax.f32 %v2831_v14, %v7558_v18  ;;  %v3099_v14 = vrot.slane %v7901_v33, 7 }
 0x2cd   : > { %4097 = vmatmul.msk.f32.gmra.mxu3 %vm1482_vm9, %v8947_v53  ;;  %v3206_v53 = vmax.f32 %v3078_v36, %v3130_v41  ;;  %v2891_v54 = vmax.f32 %v2861_v11, %v7562_v46  ;;  %v8950_v41 = vld [vmem:[#allocation48_spill] sm:$0xff]  ;;  %v7972_v11 = vmax.f32 %v2892_v27, %v7830_v9 }
 0x2cf   : > { %4079 = vmatmul.msk.f32.gmra.mxu2 %vm1482_vm9, %v8948_v7  ;;  %v3047_v7 = vsel %vm782_vm2, %v3019_v57, -3.4028235e+38  ;;  %v3334_v40 = vmax.f32 %v3206_v53, %v3302_v3  ;;  %v3147_v57 = vsel %vm1126_vm3, %v3115_v45, %v3099_v14  ;;  %v7969_v49 = vmax.f32 %v2891_v54, %v7825_v62  ;;  %v7984_v27 = vpop.f32.mrf.mxu1 }
 0x2d0   : > { %v3079_v36 = vmax.f32 %v7901_v33, %v3047_v7  ;;  %v3175_v35 = vsel %vm790_vm4, %v3147_v57, -3.4028235e+38  ;;  %v3243_v53 = vrot.slane %v7904_v51, 1  ;;  %v3003_v54 = vsel %vm997_vm1, %v2971_v26, %v2987_v28 }
 0x2d1   : > { %v7964_v32 = vpop.f32.mrf.mxu2  ;;  %v3462_v7 = vmax.f32 %v3334_v40, %v3430_v34  ;;  %v2988_v59 = vrot.slane %v7972_v11, 6  ;;  %v2833_v57 = vmax.f32 %v7165_v61, %v7558_v18  ;;  %v2834_v40 = vmax.f32 %v7154_v17, %v7560_v25 }
 0x2d2   : > { %v3207_v3 = vmax.f32 %v3079_v36, %v3175_v35  ;;  %v3355_v26 = vrot.slane %v7901_v33, 2  ;;  %v3371_v28 = vrot.slane %v7904_v51, 2  ;;  %v3080_v35 = vmax.f32 %v7904_v51, %v3003_v54 }
 0x2d3   : > { %4141 = vmatmul.msk.f32.gmra.mxu1 %vm1482_vm9, %v3461_v5  ;;  %v3227_v5 = vrot.slane %v7901_v33, 1  ;;  %v2863_v30 = vmax.f32 %v2833_v57, %v7562_v46  ;;  %v2864_v16 = vmax.f32 %v2834_v40, %v7564_v31  ;;  %v3131_v51 = vsel %vm1126_vm3, %v3099_v14, %v3115_v45 }
 0x2d4   : > { %v3387_v33 = vsel %vm1384_vm7, %v3355_v26, %v3371_v28  ;;  %v3208_v54 = vmax.f32 %v3080_v35, %v3131_v51  ;;  %v3116_v57 = vrot.slane %v7972_v11, 7  ;;  %v3244_v51 = vrot.slane %v7972_v11, 1 }
 0x2d5   : > { %4098 = vmatmul.msk.f32.gmra.mxu3 %vm1482_vm9, %v8950_v41  ;;  %v2972_v41 = vrot.slane %v7969_v49, 6  ;;  %v3259_v36 = vsel %vm1255_vm6, %v3227_v5, %v3243_v53  ;;  %v2894_v44 = vmax.f32 %v2864_v16, %v7830_v9 }
 0x2d6   : > { %v3335_v34 = vmax.f32 %v3207_v3, %v3259_v36  ;;  %v3100_v36 = vrot.slane %v7969_v49, 7 }
 0x2d7   : > { %4080 = vmatmul.msk.f32.gmra.mxu2 %vm1482_vm9, %v8951_v10  ;;  %v7989_v10 = vpop.f32.mrf.mxu3  ;;  %v8027_v45 = vpop.f32.mrf.mxu1 }
 0x2d8   : > { %8952 = vst [vmem:[#allocation27_spill] sm:$0xff] %v7989_v10  ;;  %v3463_v3 = vmax.f32 %v3335_v34, %v3387_v33  ;;  %v3148_v35 = vsel %vm1126_vm3, %v3116_v57, %v3100_v36 }
 0x2d9   : > { %v8004_v10 = vpop.f32.mrf.mxu2 }
 0x2db   : > { %4142 = vmatmul.msk.f32.gmra.mxu1 %vm1482_vm9, %v3462_v7  ;;  %v3020_v7 = vsel %vm997_vm1, %v2988_v59, %v2972_v41 }
 0x2dc   : > { %v3049_v40 = vsel %vm782_vm2, %v3020_v7, -3.4028235e+38  ;;  %v8955_v7 = vld [vmem:[#allocation55_spill] sm:$0xff] }
 0x2dd   : > { %4099 = vmatmul.msk.f32.gmra.mxu3 %vm1482_vm9, %v6648_v50  ;;  %v3275_v50 = vsel %vm1255_vm6, %v3243_v53, %v3227_v5  ;;  %v3403_v53 = vsel %vm1384_vm7, %v3371_v28, %v3355_v26  ;;  %v3081_v34 = vmax.f32 %v7969_v49, %v3049_v40  ;;  %v3177_v26 = vsel %vm790_vm4, %v3148_v35, -3.4028235e+38 }
 0x2de   : > { %v3304_v14 = vsel %vm801_vm5, %v3275_v50, -3.4028235e+38  ;;  %v3432_v33 = vsel %vm809_vm8, %v3403_v53, -3.4028235e+38  ;;  %v3228_v28 = vrot.slane %v7969_v49, 1 }
 0x2df   : > { %4081 = vmatmul.msk.f32.gmra.mxu2 %vm1482_vm9, %v8953_v56  ;;  %v2893_v56 = vmax.f32 %v2863_v30, %v7825_v62  ;;  %v8023_v21 = vpop.f32.mrf.mxu3  ;;  %v3336_v5 = vmax.f32 %v3208_v54, %v3304_v14  ;;  %v8038_v30 = vmax.f32 %v2894_v44, -3.4028235e+38  ;;  %v3004_v44 = vsel %vm997_vm1, %v2972_v41, %v2988_v59 }
 0x2e0   : > { %8954 = vst [vmem:[#allocation28_spill] sm:$0xff] %v8023_v21  ;;  %v2835_v14 = vmax.f32 %v7558_v18, %v7562_v46  ;;  %v3260_v53 = vsel %vm1255_vm6, %v3228_v28, %v3244_v51  ;;  %v3372_v41 = vrot.slane %v7972_v11, 2  ;;  %v3082_v35 = vmax.f32 %v7972_v11, %v3004_v44  ;;  %v1596_v21 = vpop.f32.mrf.mxu0 }
 0x2e1   : > { %v8036_v16 = vmax.f32 %v2893_v56, -3.4028235e+38  ;;  %v3464_v50 = vmax.f32 %v3336_v5, %v3432_v33  ;;  %v2989_v40 = vrot.slane %v8038_v30, 6  ;;  %v2836_v5 = vmax.f32 %v7560_v25, %v7564_v31 }
 0x2e2   : > { %v3132_v11 = vsel %vm1126_vm3, %v3100_v36, %v3116_v57 }
 0x2e3   : > { %4143 = vmatmul.msk.f32.gmra.mxu1 %vm1482_vm9, %v3463_v3  ;;  %v3209_v3 = vmax.f32 %v3081_v34, %v3177_v26  ;;  %v2973_v54 = vrot.slane %v8036_v16, 6  ;;  %v3356_v34 = vrot.slane %v7969_v49, 2  ;;  %v2865_v26 = vmax.f32 %v2835_v14, %v7825_v62 }
 0x2e4   : > { %v3210_v44 = vmax.f32 %v3082_v35, %v3132_v11  ;;  %v3117_v14 = vrot.slane %v8038_v30, 7  ;;  %v3245_v11 = vrot.slane %v8038_v30, 1 }
 0x2e5   : > { %4100 = vmatmul.msk.f32.gmra.mxu3 %vm1482_vm9, %v6652_v38  ;;  %v8048_v38 = vpop.f32.mrf.mxu2  ;;  %v3337_v59 = vmax.f32 %v3209_v3, %v3260_v53  ;;  %v3021_v33 = vsel %vm997_vm1, %v2989_v40, %v2973_v54  ;;  %v3388_v49 = vsel %vm1384_vm7, %v3356_v34, %v3372_v41  ;;  %v3101_v53 = vrot.slane %v8036_v16, 7 }
 0x2e6   : > { %v2895_v48 = vmax.f32 %v2865_v26, -3.4028235e+38 }
 0x2e7   : > { %4082 = vmatmul.msk.f32.gmra.mxu2 %vm1482_vm9, %v8955_v7  ;;  %v8055_v56 = vpop.f32.mrf.mxu3  ;;  %v8068_v7 = vpop.f32.mrf.mxu1  ;;  %v3465_v3 = vmax.f32 %v3337_v59, %v3388_v49  ;;  %v3149_v35 = vsel %vm1126_vm3, %v3117_v14, %v3101_v53 }
 0x2e8   : > { %8956 = vst [vmem:[#allocation29_spill] sm:$0xff] %v8055_v56  ;;  %v8957_v56 = vld [vmem:[#allocation42_spill] sm:$0xff] }
 0x2eb   : > { %4144 = vmatmul.msk.f32.gmra.mxu1 %vm1482_vm9, %v3464_v50  ;;  %v2866_v50 = vmax.f32 %v2836_v5, %v7830_v9  ;;  %v3051_v5 = vsel %vm782_vm2, %v3021_v33, -3.4028235e+38  ;;  %v8100_v33 = vmax.f32 %v2895_v48, -3.4028235e+38 }
 0x2ec   : > { %v3083_v59 = vmax.f32 %v8036_v16, %v3051_v5 }
 0x2ed   : > { %4101 = vmatmul.msk.f32.gmra.mxu3 %vm1482_vm9, %v6838_v42  ;;  %v3276_v42 = vsel %vm1255_vm6, %v3244_v51, %v3228_v28  ;;  %v2896_v60 = vmax.f32 %v2866_v50, -3.4028235e+38  ;;  %v3404_v51 = vsel %vm1384_vm7, %v3372_v41, %v3356_v34  ;;  %v8959_v50 = vld [vmem:[#allocation45_spill] sm:$0xff]  ;;  %v3179_v34 = vsel %vm790_vm4, %v3149_v35, -3.4028235e+38 }
 0x2ee   : > { %v3306_v57 = vsel %vm801_vm5, %v3276_v42, -3.4028235e+38  ;;  %v3434_v49 = vsel %vm809_vm8, %v3404_v51, -3.4028235e+38  ;;  %v3229_v41 = vrot.slane %v8036_v16, 1  ;;  %v3211_v48 = vmax.f32 %v3083_v59, %v3179_v34 }
 0x2ef   : > { %4083 = vmatmul.msk.f32.gmra.mxu2 %vm1482_vm9, %v8957_v56  ;;  %v8087_v56 = vpop.f32.mrf.mxu2  ;;  %v8089_v36 = vpop.f32.mrf.mxu3  ;;  %v3338_v28 = vmax.f32 %v3210_v44, %v3306_v57  ;;  %v8102_v26 = vmax.f32 %v2896_v60, -3.4028235e+38  ;;  %v3005_v60 = vsel %vm997_vm1, %v2973_v54, %v2989_v40  ;;  %v3357_v35 = vrot.slane %v8036_v16, 2 }
 0x2f0   : > { %8958 = vst [vmem:[#allocation31_spill] sm:$0xff] %v8089_v36  ;;  %v8112_v42 = vpop.f32.mrf.mxu1  ;;  %v1599_v57 = vpop.f32.mrf.mxu0  ;;  %v3261_v51 = vsel %vm1255_vm6, %v3229_v41, %v3245_v11  ;;  %v3133_v16 = vsel %vm1126_vm3, %v3101_v53, %v3117_v14  ;;  %v3358_v13 = vrot.slane %v8100_v33, 2 }
 0x2f1   : > { %v2990_v44 = vrot.slane %v8102_v26, 6  ;;  %v3339_v59 = vmax.f32 %v3211_v48, %v3261_v51  ;;  %v1806_v51 = vadd.f32 %v7887_v29, %v1596_v21 }
 0x2f3   : > { %4145 = vmatmul.msk.f32.gmra.mxu1 %vm1482_vm9, %v3465_v3  ;;  %v2974_v3 = vrot.slane %v8100_v33, 6 }
 0x2f5   : > { %4102 = vmatmul.msk.f32.gmra.mxu3 %vm1482_vm9, %v6854_v22  ;;  %v3466_v22 = vmax.f32 %v3338_v28, %v3434_v49  ;;  %v3373_v28 = vrot.slane %v8038_v30, 2  ;;  %v3022_v40 = vsel %vm997_vm1, %v2990_v44, %v2974_v3  ;;  %v8961_v49 = vld [vmem:[#allocation47_spill] sm:$0xff] }
 0x2f7   : > { %4084 = vmatmul.msk.f32.gmra.mxu2 %vm1482_vm9, %v8959_v50  ;;  %v8119_v5 = vpop.f32.mrf.mxu3  ;;  %v3084_v50 = vmax.f32 %v8038_v30, %v3005_v60  ;;  %v8126_v54 = vpop.f32.mrf.mxu2  ;;  %v3389_v34 = vsel %vm1384_vm7, %v3357_v35, %v3373_v28  ;;  %v3277_v30 = vsel %vm1255_vm6, %v3245_v11, %v3229_v41  ;;  %v3102_v60 = vrot.slane %v8100_v33, 7  ;;  %v8155_v11 = vld [vmem:[%s8460_s8] ss:$0 sm:$0xff] }
 0x2f8   : > { %8960 = vst [vmem:[#allocation34_spill] sm:$0xff] %v8119_v5  ;;  %v8145_v5 = vpop.f32.mrf.mxu1  ;;  %v3308_v53 = vsel %vm801_vm5, %v3277_v30, -3.4028235e+38  ;;  %v3405_v14 = vsel %vm1384_vm7, %v3373_v28, %v3357_v35  ;;  %v8962_v28 = vld [vmem:[#allocation57_spill] sm:$0xff] }
 0x2f9   : > { %v3212_v48 = vmax.f32 %v3084_v50, %v3133_v16  ;;  %v3246_v16 = vrot.slane %v8102_v26, 1 }
 0x2fb   : > { %4146 = vmatmul.msk.f32.gmra.mxu1 %vm1482_vm9, %v3466_v22  ;;  %v3467_v22 = vmax.f32 %v3339_v59, %v3389_v34  ;;  %v3340_v21 = vmax.f32 %v3212_v48, %v3308_v53  ;;  %v1602_v59 = vpop.f32.mrf.mxu0 }
 0x2fd   : > { %4103 = vmatmul.msk.f32.gmra.mxu3 %vm1482_vm9, %v7032_v6  ;;  %v3118_v6 = vrot.slane %v8102_v26, 7 }
 0x2ff   : > { %4085 = vmatmul.msk.f32.gmra.mxu2 %vm1482_vm9, %v8961_v49  ;;  %v3053_v49 = vsel %vm782_vm2, %v3022_v40, -3.4028235e+38  ;;  %v2679_v36 = vpop.f32.mrf.mxu3  ;;  %v3150_v29 = vsel %vm1126_vm3, %v3118_v6, %v3102_v60  ;;  %v8164_v40 = vld [vmem:[%s8461_s9] ss:$0 sm:$0xff]  ;;  %v8170_v35 = vpop.f32.mrf.mxu2 }
 0x300   : > { %v2775_v41 = vadd.f32 %v2679_v36, %v1806_v51  ;;  %v3085_v4 = vmax.f32 %v8100_v33, %v3053_v49  ;;  %v3436_v36 = vsel %vm809_vm8, %v3405_v14, -3.4028235e+38  ;;  %v3181_v34 = vsel %vm790_vm4, %v3150_v29, -3.4028235e+38  ;;  %v8188_v29 = vpop.f32.mrf.mxu1 }
 0x301   : > { %v3006_v51 = vsel %vm997_vm1, %v2974_v3, %v2990_v44 }
 0x302   : > { %v3681_v50 = vadd.f32 %v7898_v20, %v2775_v41  ;;  %v3230_v20 = vrot.slane %v8100_v33, 1  ;;  %v3213_v48 = vmax.f32 %v3085_v4, %v3181_v34  ;;  %v3374_v41 = vrot.slane %v8102_v26, 2 }
 0x303   : > { %4147 = vmatmul.msk.f32.gmra.mxu1 %vm1482_vm9, %v3467_v22  ;;  %v3468_v22 = vmax.f32 %v3340_v21, %v3436_v36  ;;  %v3086_v3 = vmax.f32 %v8102_v26, %v3006_v51  ;;  %v1605_v33 = vpop.f32.mrf.mxu0  ;;  %v3134_v36 = vsel %vm1126_vm3, %v3102_v60, %v3118_v6 }
 0x304   : > { %v3717_v30 = vmul.f32 %v8155_v11, %v3681_v50  ;;  %v3262_v14 = vsel %vm1255_vm6, %v3230_v20, %v3246_v16  ;;  %v3390_v50 = vsel %vm1384_vm7, %v3358_v13, %v3374_v41  ;;  %v1815_v2 = vadd.f32 %v8004_v10, %v1605_v33 }
 0x305   : > { %4104 = vmatmul.msk.f32.gmra.mxu3 %vm1482_vm9, %v7041_v19  ;;  %v1809_v19 = vadd.f32 %v7921_v55, %v1599_v57  ;;  %v3341_v55 = vmax.f32 %v3213_v48, %v3262_v14 }
 0x306   : > { %v3753_v49 = vadd.f32 %v8164_v40, %v3717_v30  ;;  %v1812_v30 = vadd.f32 %v7964_v32, %v1602_v59 }
 0x307   : > { %4086 = vmatmul.msk.f32.gmra.mxu2 %vm1482_vm9, %v8962_v28  ;;  %v2682_v53 = vpop.f32.mrf.mxu3  ;;  %v3469_v28 = vmax.f32 %v3341_v55, %v3390_v50  ;;  %v8207_v34 = vpop.f32.mrf.mxu2 }
 0x308   : > { %v3785_v21 = vmul.f32 0.01, %v3753_v49  ;;  %v2776_v4 = vadd.f32 %v2682_v53, %v1809_v19  ;;  %v8219_v32 = vpop.f32.mrf.mxu1 }
 0x30a   : > { %v3817_v44 = vmax.f32 %v3753_v49, %v3785_v21  ;;  %v3682_v57 = vadd.f32 %v7946_v23, %v2776_v4  ;;  %v3214_v23 = vmax.f32 %v3086_v3, %v3134_v36  ;;  %v3406_v49 = vsel %vm1384_vm7, %v3374_v41, %v3358_v13 }
 0x30b   : > { %4148 = vmatmul.msk.f32.gmra.mxu1 %vm1482_vm9, %v3468_v22  ;;  %v3438_v59 = vsel %vm809_vm8, %v3406_v49, -3.4028235e+38  ;;  %v1608_v14 = vpop.f32.mrf.mxu0 }
 0x30c   : > { %3849 = vst.msk [vmem:[%s8200_s7] sm:$0xff] %vm429_vm0, %v3817_v44  ;;  %v3718_v26 = vmul.f32 %v8155_v11, %v3682_v57  ;;  %v1818_v3 = vadd.f32 %v8048_v38, %v1608_v14 }
 0x30d   : > { %4105 = vmatmul.msk.f32.gmra.mxu3 %vm1482_vm9, %v7250_v1  ;;  %v3278_v1 = vsel %vm1255_vm6, %v3246_v16, %v3230_v20 }
 0x30e   : > { %v3754_v60 = vadd.f32 %v8164_v40, %v3718_v26  ;;  %v3310_v22 = vsel %vm801_vm5, %v3278_v1, -3.4028235e+38 }
 0x30f   : > { %v2685_v6 = vpop.f32.mrf.mxu3  ;;  %v3342_v51 = vmax.f32 %v3214_v23, %v3310_v22 }
 0x310   : > { %v3786_v48 = vmul.f32 0.01, %v3754_v60  ;;  %v2777_v19 = vadd.f32 %v2685_v6, %v1812_v30  ;;  %v8237_v55 = vpop.f32.mrf.mxu1 }
 0x311   : > { %v3470_v53 = vmax.f32 %v3342_v51, %v3438_v59 }
 0x312   : > { %v3818_v20 = vmax.f32 %v3754_v60, %v3786_v48  ;;  %v3683_v16 = vadd.f32 %v7984_v27, %v2777_v19  ;;  %v8229_v27 = vpop.f32.mrf.mxu2 }
 0x313   : > { %4149 = vmatmul.msk.f32.gmra.mxu1 %vm1482_vm9, %v3469_v28  ;;  %v1611_v36 = vpop.f32.mrf.mxu0 }
 0x314   : > { %3850 = vst.msk [vmem:[%s8200_s7 + $0x8] sm:$0xff] %vm429_vm0, %v3818_v20  ;;  %v3719_v15 = vmul.f32 %v8155_v11, %v3683_v16  ;;  %v1821_v38 = vadd.f32 %v8087_v56, %v1611_v36 }
 0x315   : > { %4106 = vmatmul.msk.f32.gmra.mxu3 %vm1482_vm9, %v7269_v37 }
 0x316   : > { %v3755_v13 = vadd.f32 %v8164_v40, %v3719_v15 }
 0x318   : > { %v2688_v37 = vpop.f32.mrf.mxu3  ;;  %v3787_v41 = vmul.f32 0.01, %v3755_v13  ;;  %v8251_v1 = vpop.f32.mrf.mxu1 }
 0x319   : > { %v2778_v21 = vadd.f32 %v2688_v37, %v1815_v2 }
 0x31a   : > { %v3819_v24 = vmax.f32 %v3755_v13, %v3787_v41  ;;  %v8241_v26 = vpop.f32.mrf.mxu2 }
 0x31b   : > { %4150 = vmatmul.msk.f32.gmra.mxu1 %vm1482_vm9, %v3470_v53  ;;  %v3684_v4 = vadd.f32 %v8027_v45, %v2778_v21 }
 0x31c   : > { %3851 = vst.msk [vmem:[%s8200_s7 + $0x10] sm:$0xff] %vm429_vm0, %v3819_v24 }
 0x31d   : > { %4107 = vmatmul.msk.f32.gmra.mxu3 %vm1482_vm9, %v7646_v47  ;;  %v3720_v10 = vmul.f32 %v8155_v11, %v3684_v4  ;;  %v8963_v4 = vld [vmem:[#allocation51_spill] sm:$0xff] }
 0x31f   : > { %v3756_v44 = vadd.f32 %v8164_v40, %v3720_v10 }
 0x320   : > { %v2691_v57 = vpop.f32.mrf.mxu3  ;;  %v3618_v59 = vpop.f32.mrf.mxu1 }
 0x321   : > { %v3788_v33 = vmul.f32 0.01, %v3756_v44  ;;  %v2779_v50 = vadd.f32 %v2691_v57, %v1818_v3 }
 0x322   : > { %v1838_v48 = vpop.f32.mrf.mxu2 }
 0x323   : > { %v3820_v45 = vmax.f32 %v3756_v44, %v3788_v33  ;;  %v3685_v47 = vadd.f32 %v8068_v7, %v2779_v50 }
 0x325   : > { %4108 = vmatmul.msk.f32.gmra.mxu3 %vm1482_vm9, %v7640_v8  ;;  %3852 = vst.msk [vmem:[%s8200_s7 + $0x18] sm:$0xff] %vm429_vm0, %v3820_v45  ;;  %v3721_v28 = vmul.f32 %v8155_v11, %v3685_v47  ;;  %v1614_v8 = vpop.f32.mrf.mxu0  ;;  %v8964_v45 = vld [vmem:[#allocation33_spill] sm:$0xff] }
 0x326   : > { %v1824_v19 = vadd.f32 %v8126_v54, %v1614_v8 }
 0x327   : > { %v3757_v23 = vadd.f32 %v8164_v40, %v3721_v28 }
 0x328   : > { %v2694_v30 = vpop.f32.mrf.mxu3 }
 0x329   : > { %v3789_v60 = vmul.f32 0.01, %v3757_v23  ;;  %v2780_v6 = vadd.f32 %v2694_v30, %v1821_v38 }
 0x32a   : > { %v1841_v14 = vpop.f32.mrf.mxu2 }
 0x32b   : > { %v3821_v22 = vmax.f32 %v3757_v23, %v3789_v60  ;;  %v3686_v7 = vadd.f32 %v8112_v42, %v2780_v6 }
 0x32d   : > { %4109 = vmatmul.msk.f32.gmra.mxu3 %vm1482_vm9, %v7710_v52  ;;  %3853 = vst.msk [vmem:[%s8200_s7 + $0x20] sm:$0xff] %vm429_vm0, %v3821_v22  ;;  %v3722_v56 = vmul.f32 %v8155_v11, %v3686_v7  ;;  %v1617_v53 = vpop.f32.mrf.mxu0 }
 0x32e   : > { %v1827_v54 = vadd.f32 %v8170_v35, %v1617_v53  ;;  %v1830_v35 = vadd.f32 %v8207_v34, %v8963_v4  ;;  %v1833_v34 = vadd.f32 %v8229_v27, %v8964_v45  ;;  %v1836_v27 = vadd.f32 %v8241_v26, %v7556_v39 }
 0x32f   : > { %v3758_v51 = vadd.f32 %v8164_v40, %v3722_v56  ;;  %v1839_v39 = vadd.f32 %v1838_v48, %v7684_v12  ;;  %v1842_v53 = vadd.f32 %v1841_v14, %v7722_v0 }
 0x330   : > { %v2697_v49 = vpop.f32.mrf.mxu3 }
 0x331   : > { %v3790_v20 = vmul.f32 0.01, %v3758_v51  ;;  %v2781_v16 = vadd.f32 %v2697_v49, %v1824_v19 }
 0x332   : > { %v1844_v3 = vpop.f32.mrf.mxu2 }
 0x333   : > { %v3822_v15 = vmax.f32 %v3758_v51, %v3790_v20  ;;  %v3687_v42 = vadd.f32 %v8145_v5, %v2781_v16 }
 0x335   : > { %4110 = vmatmul.msk.f32.gmra.mxu3 %vm1482_vm9, %v7712_v58  ;;  %3854 = vst.msk [vmem:[%s8200_s7 + $0x28] sm:$0xff] %vm429_vm0, %v3822_v15  ;;  %v3723_v52 = vmul.f32 %v8155_v11, %v3687_v42  ;;  %v3621_v58 = vpop.f32.mrf.mxu1 }
 0x337   : > { %v3759_v2 = vadd.f32 %v8164_v40, %v3723_v52 }
 0x338   : > { %v2700_v13 = vpop.f32.mrf.mxu3 }
 0x339   : > { %v3791_v37 = vmul.f32 0.01, %v3759_v2  ;;  %v2782_v41 = vadd.f32 %v2700_v13, %v1827_v54 }
 0x33a   : > { %v1847_v30 = vpop.f32.mrf.mxu2 }
 0x33b   : > { %v3823_v21 = vmax.f32 %v3759_v2, %v3791_v37  ;;  %v3688_v5 = vadd.f32 %v8188_v29, %v2782_v41  ;;  %v1845_v41 = vadd.f32 %v1844_v3, %v7769_v43 }
 0x33d   : > { %4111 = vmatmul.msk.f32.gmra.mxu3 %vm1482_vm9, %v7165_v61  ;;  %3855 = vst.msk [vmem:[%s8200_s7 + $0x30] sm:$0xff] %vm429_vm0, %v3823_v21  ;;  %v3724_v24 = vmul.f32 %v8155_v11, %v3688_v5  ;;  %v3624_v36 = vpop.f32.mrf.mxu1 }
 0x33f   : > { %v3760_v10 = vadd.f32 %v8164_v40, %v3724_v24 }
 0x340   : > { %v2703_v44 = vpop.f32.mrf.mxu3 }
 0x341   : > { %v3792_v57 = vmul.f32 0.01, %v3760_v10  ;;  %v2783_v33 = vadd.f32 %v2703_v44, %v1830_v35 }
 0x343   : > { %v3824_v50 = vmax.f32 %v3760_v10, %v3792_v57  ;;  %v3689_v29 = vadd.f32 %v8219_v32, %v2783_v33  ;;  %v1848_v10 = vadd.f32 %v1847_v30, %v7802_v63 }
 0x345   : > { %4112 = vmatmul.msk.f32.gmra.mxu3 %vm1482_vm9, %v7154_v17  ;;  %3856 = vst.msk [vmem:[%s8200_s7 + $0x38] sm:$0xff] %vm429_vm0, %v3824_v50  ;;  %v3725_v61 = vmul.f32 %v8155_v11, %v3689_v29  ;;  %v3627_v22 = vpop.f32.mrf.mxu1 }
 0x347   : > { %v3761_v47 = vadd.f32 %v8164_v40, %v3725_v61  ;;  %v8965_v61 = vld [vmem:[#allocation23_spill] sm:$0xff] }
 0x348   : > { %v2706_v28 = vpop.f32.mrf.mxu3 }
 0x349   : > { %v3793_v38 = vmul.f32 0.01, %v3761_v47  ;;  %v2784_v23 = vadd.f32 %v2706_v28, %v1833_v34 }
 0x34b   : > { %v3825_v60 = vmax.f32 %v3761_v47, %v3793_v38  ;;  %v3690_v32 = vadd.f32 %v8237_v55, %v2784_v23 }
 0x34d   : > { %4113 = vmatmul.msk.f32.gmra.mxu3 %vm1482_vm9, %v7558_v18  ;;  %3857 = vst.msk [vmem:[%s8200_s7 + $0x40] sm:$0xff] %vm429_vm0, %v3825_v60  ;;  %v3726_v17 = vmul.f32 %v8155_v11, %v3690_v32  ;;  %v1850_v18 = vpop.f32.mrf.mxu2  ;;  %v3630_v15 = vpop.f32.mrf.mxu1  ;;  %v8966_v60 = vld [vmem:[#allocation18_spill] sm:$0xff] }
 0x34f   : > { %v3762_v6 = vadd.f32 %v8164_v40, %v3726_v17 }
 0x350   : > { %v2709_v7 = vpop.f32.mrf.mxu3 }
 0x351   : > { %v3794_v8 = vmul.f32 0.01, %v3762_v6  ;;  %v2785_v56 = vadd.f32 %v2709_v7, %v1836_v27 }
 0x353   : > { %v3826_v19 = vmax.f32 %v3762_v6, %v3794_v8  ;;  %v3691_v55 = vadd.f32 %v8251_v1, %v2785_v56 }
 0x355   : > { %4114 = vmatmul.msk.f32.gmra.mxu3 %vm1482_vm9, %v7560_v25  ;;  %3858 = vst.msk [vmem:[%s8200_s7 + $0x48] sm:$0xff] %vm429_vm0, %v3826_v19  ;;  %v3727_v51 = vmul.f32 %v8155_v11, %v3691_v55  ;;  %v1853_v1 = vpop.f32.mrf.mxu2 }
 0x356   : > { %v1854_v32 = vadd.f32 %v1853_v1, %v8966_v60 }
 0x357   : > { %v3763_v26 = vadd.f32 %v8164_v40, %v3727_v51 }
 0x358   : > { %v2712_v49 = vpop.f32.mrf.mxu3 }
 0x359   : > { %v3795_v20 = vmul.f32 0.01, %v3763_v26  ;;  %v2786_v16 = vadd.f32 %v2712_v49, %v1839_v39 }
 0x35b   : > { %v3827_v42 = vmax.f32 %v3763_v26, %v3795_v20  ;;  %v3692_v52 = vadd.f32 %v3618_v59, %v2786_v16  ;;  %v3633_v59 = vpop.f32.mrf.mxu1 }
 0x35d   : > { %4115 = vmatmul.msk.f32.gmra.mxu3 %vm1482_vm9, %v7562_v46  ;;  %3859 = vst.msk [vmem:[%s8200_s7 + $0x50] sm:$0xff] %vm429_vm0, %v3827_v42  ;;  %v3728_v25 = vmul.f32 %v8155_v11, %v3692_v52  ;;  %v1856_v14 = vpop.f32.mrf.mxu2 }
 0x35f   : > { %v3764_v12 = vadd.f32 %v8164_v40, %v3728_v25  ;;  %v8968_v25 = vld [vmem:[#allocation20_spill] sm:$0xff] }
 0x360   : > { %v2715_v48 = vpop.f32.mrf.mxu3 }
 0x361   : > { %v3796_v54 = vmul.f32 0.01, %v3764_v12  ;;  %v2787_v2 = vadd.f32 %v2715_v48, %v1842_v53 }
 0x363   : > { %v3828_v13 = vmax.f32 %v3764_v12, %v3796_v54  ;;  %v3693_v37 = vadd.f32 %v3621_v58, %v2787_v2  ;;  %v3636_v58 = vpop.f32.mrf.mxu1 }
 0x365   : > { %4116 = vmatmul.msk.f32.gmra.mxu3 %vm1482_vm9, %v7564_v31  ;;  %3860 = vst.msk [vmem:[%s8200_s7 + $0x58] sm:$0xff] %vm429_vm0, %v3828_v13  ;;  %v3729_v46 = vmul.f32 %v8155_v11, %v3693_v37  ;;  %v1859_v33 = vpop.f32.mrf.mxu2 }
 0x366   : > { %v1860_v1 = vadd.f32 %v1859_v33, %v8968_v25 }
 0x367   : > { %v3765_v0 = vadd.f32 %v8164_v40, %v3729_v46 }
 0x368   : > { %v2718_v21 = vpop.f32.mrf.mxu3 }
 0x369   : > { %v3797_v5 = vmul.f32 0.01, %v3765_v0  ;;  %v2788_v24 = vadd.f32 %v2718_v21, %v1845_v41  ;;  %v8969_v41 = vld [vmem:[#allocation54_spill] sm:$0xff] }
 0x36b   : > { %v3829_v4 = vmax.f32 %v3765_v0, %v3797_v5  ;;  %v3694_v35 = vadd.f32 %v3624_v36, %v2788_v24  ;;  %v1851_v36 = vadd.f32 %v1850_v18, %v8965_v61  ;;  %v3639_v45 = vpop.f32.mrf.mxu1  ;;  %v8967_v18 = vld [vmem:[#allocation17_spill] sm:$0xff] }
 0x36c   : > { %v1857_v51 = vadd.f32 %v1856_v14, %v8967_v18 }
 0x36d   : > { %4117 = vmatmul.msk.f32.gmra.mxu3 %vm1482_vm9, %v7825_v62  ;;  %3861 = vst.msk [vmem:[%s8200_s7 + $0x60] sm:$0xff] %vm429_vm0, %v3829_v4  ;;  %v3730_v31 = vmul.f32 %v8155_v11, %v3694_v35  ;;  %v1862_v30 = vpop.f32.mrf.mxu2 }
 0x36e   : > { %v1863_v0 = vadd.f32 %v1862_v30, %v8969_v41 }
 0x36f   : > { %v3766_v43 = vadd.f32 %v8164_v40, %v3730_v31 }
 0x370   : > { %v2721_v3 = vpop.f32.mrf.mxu3 }
 0x371   : > { %v3798_v44 = vmul.f32 0.01, %v3766_v43  ;;  %v2789_v57 = vadd.f32 %v2721_v3, %v1848_v10  ;;  %v8970_v10 = vld [vmem:[#allocation39_spill] sm:$0xff] }
 0x373   : > { %v3830_v50 = vmax.f32 %v3766_v43, %v3798_v44  ;;  %v3695_v29 = vadd.f32 %v3627_v22, %v2789_v57  ;;  %v3642_v7 = vpop.f32.mrf.mxu1 }
 0x375   : > { %4118 = vmatmul.msk.f32.gmra.mxu3 %vm1482_vm9, %v7830_v9  ;;  %3862 = vst.msk [vmem:[%s8200_s7 + $0x68] sm:$0xff] %vm429_vm0, %v3830_v50  ;;  %v3731_v62 = vmul.f32 %v8155_v11, %v3695_v29  ;;  %v1865_v55 = vpop.f32.mrf.mxu2 }
 0x376   : > { %v1866_v43 = vadd.f32 %v1865_v55, %v8970_v10 }
 0x377   : > { %v3767_v63 = vadd.f32 %v8164_v40, %v3731_v62 }
 0x378   : > { %v2724_v34 = vpop.f32.mrf.mxu3 }
 0x379   : > { %v3799_v47 = vmul.f32 0.01, %v3767_v63  ;;  %v2790_v28 = vadd.f32 %v2724_v34, %v1851_v36 }
 0x37b   : > { %v3831_v38 = vmax.f32 %v3767_v63, %v3799_v47  ;;  %v3696_v23 = vadd.f32 %v3630_v15, %v2790_v28  ;;  %v3645_v42 = vpop.f32.mrf.mxu1  ;;  %v8971_v63 = vld [vmem:[#allocation19_spill] sm:$0xff] }
 0x37d   : > { %3863 = vst.msk [vmem:[%s8200_s7 + $0x70] sm:$0xff] %vm429_vm0, %v3831_v38  ;;  %v3732_v9 = vmul.f32 %v8155_v11, %v3696_v23  ;;  %v1868_v12 = vpop.f32.mrf.mxu2 }
 0x37f   : > { %v3768_v17 = vadd.f32 %v8164_v40, %v3732_v9 }
 0x380   : > { %v2727_v27 = vpop.f32.mrf.mxu3 }
 0x381   : > { %v3800_v6 = vmul.f32 0.01, %v3768_v17  ;;  %v2791_v22 = vadd.f32 %v2727_v27, %v1854_v32 }
 0x383   : > { %v3832_v8 = vmax.f32 %v3768_v17, %v3800_v6  ;;  %v3697_v56 = vadd.f32 %v3633_v59, %v2791_v22  ;;  %v3648_v46 = vpop.f32.mrf.mxu1  ;;  %v8972_v17 = vld [vmem:[#allocation21_spill] sm:$0xff] }
 0x385   : > { %3864 = vst.msk [vmem:[%s8200_s7 + $0x78] sm:$0xff] %vm429_vm0, %v3832_v8  ;;  %v3733_v19 = vmul.f32 %v8155_v11, %v3697_v56  ;;  %v1871_v4 = vpop.f32.mrf.mxu2 }
 0x386   : > { %v1872_v27 = vadd.f32 %v1871_v4, %v8972_v17 }
 0x387   : > { %v3769_v39 = vadd.f32 %v8164_v40, %v3733_v19 }
 0x388   : > { %v2730_v26 = vpop.f32.mrf.mxu3 }
 0x389   : > { %v3801_v49 = vmul.f32 0.01, %v3769_v39  ;;  %v2792_v20 = vadd.f32 %v2730_v26, %v1857_v51  ;;  %v8973_v51 = vld [vmem:[#allocation22_spill] sm:$0xff] }
 0x38b   : > { %v3833_v16 = vmax.f32 %v3769_v39, %v3801_v49  ;;  %v3698_v15 = vadd.f32 %v3636_v58, %v2792_v20  ;;  %v3651_v44 = vpop.f32.mrf.mxu1 }
 0x38d   : > { %3865 = vst.msk [vmem:[%s8200_s7 + $0x80] sm:$0xff] %vm429_vm0, %v3833_v16  ;;  %v3734_v52 = vmul.f32 %v8155_v11, %v3698_v15  ;;  %v1874_v61 = vpop.f32.mrf.mxu2 }
 0x38e   : > { %v1875_v39 = vadd.f32 %v1874_v61, %v8973_v51 }
 0x38f   : > { %v3770_v53 = vadd.f32 %v8164_v40, %v3734_v52 }
 0x390   : > { %v2733_v48 = vpop.f32.mrf.mxu3 }
 0x391   : > { %v3802_v54 = vmul.f32 0.01, %v3770_v53  ;;  %v2793_v2 = vadd.f32 %v2733_v48, %v1860_v1 }
 0x393   : > { %v3834_v13 = vmax.f32 %v3770_v53, %v3802_v54  ;;  %v3699_v37 = vadd.f32 %v3639_v45, %v2793_v2  ;;  %v1869_v45 = vadd.f32 %v1868_v12, %v8971_v63  ;;  %v3654_v23 = vpop.f32.mrf.mxu1  ;;  %v8974_v53 = vld [vmem:[#allocation24_spill] sm:$0xff] }
 0x395   : > { %3866 = vst.msk [vmem:[%s8200_s7 + $0x88] sm:$0xff] %vm429_vm0, %v3834_v13  ;;  %v3735_v59 = vmul.f32 %v8155_v11, %v3699_v37  ;;  %v1877_v32 = vpop.f32.mrf.mxu2 }
 0x396   : > { %v1878_v12 = vadd.f32 %v1877_v32, %v8974_v53 }
 0x397   : > { %v3771_v14 = vadd.f32 %v8164_v40, %v3735_v59 }
 0x398   : > { %v2736_v21 = vpop.f32.mrf.mxu3 }
 0x399   : > { %v3803_v5 = vmul.f32 0.01, %v3771_v14  ;;  %v2794_v24 = vadd.f32 %v2736_v21, %v1863_v0  ;;  %v8975_v0 = vld [vmem:[#allocation25_spill] sm:$0xff] }
 0x39b   : > { %v3835_v35 = vmax.f32 %v3771_v14, %v3803_v5  ;;  %v3700_v31 = vadd.f32 %v3642_v7, %v2794_v24  ;;  %v3657_v55 = vpop.f32.mrf.mxu1 }
 0x39d   : > { %3867 = vst.msk [vmem:[%s8200_s7 + $0x90] sm:$0xff] %vm429_vm0, %v3835_v35  ;;  %v3736_v58 = vmul.f32 %v8155_v11, %v3700_v31  ;;  %v1880_v49 = vpop.f32.mrf.mxu2 }
 0x39e   : > { %v1881_v14 = vadd.f32 %v1880_v49, %v8975_v0 }
 0x39f   : > { %v3772_v3 = vadd.f32 %v8164_v40, %v3736_v58 }
 0x3a0   : > { %v2739_v57 = vpop.f32.mrf.mxu3 }
 0x3a1   : > { %v3804_v33 = vmul.f32 0.01, %v3772_v3  ;;  %v2795_v50 = vadd.f32 %v2739_v57, %v1866_v43 }
 0x3a3   : > { %v3836_v29 = vmax.f32 %v3772_v3, %v3804_v33  ;;  %v3701_v62 = vadd.f32 %v3645_v42, %v2795_v50  ;;  %v3660_v1 = vpop.f32.mrf.mxu1  ;;  %v8976_v3 = vld [vmem:[#allocation26_spill] sm:$0xff] }
 0x3a5   : > { %3868 = vst.msk [vmem:[%s8200_s7 + $0x98] sm:$0xff] %vm429_vm0, %v3836_v29  ;;  %v3737_v36 = vmul.f32 %v8155_v11, %v3701_v62  ;;  %v1883_v37 = vpop.f32.mrf.mxu2 }
 0x3a7   : > { %v3773_v34 = vadd.f32 %v8164_v40, %v3737_v36 }
 0x3a8   : > { %v2742_v47 = vpop.f32.mrf.mxu3 }
 0x3a9   : > { %v3805_v28 = vmul.f32 0.01, %v3773_v34  ;;  %v2796_v38 = vadd.f32 %v2742_v47, %v1869_v45 }
 0x3ab   : > { %v3837_v30 = vmax.f32 %v3773_v34, %v3805_v28  ;;  %v3702_v9 = vadd.f32 %v3648_v46, %v2796_v38  ;;  %v3663_v5 = vpop.f32.mrf.mxu1  ;;  %v8977_v34 = vld [vmem:[#allocation27_spill] sm:$0xff] }
 0x3ad   : > { %3869 = vst.msk [vmem:[%s8200_s7 + $0xa0] sm:$0xff] %vm429_vm0, %v3837_v30  ;;  %v3738_v60 = vmul.f32 %v8155_v11, %v3702_v9  ;;  %v1886_v10 = vpop.f32.mrf.mxu2 }
 0x3ae   : > { %v1887_v47 = vadd.f32 %v1886_v10, %v8977_v34 }
 0x3af   : > { %v3774_v6 = vadd.f32 %v8164_v40, %v3738_v60 }
 0x3b0   : > { %v2745_v22 = vpop.f32.mrf.mxu3 }
 0x3b1   : > { %v3806_v7 = vmul.f32 0.01, %v3774_v6  ;;  %v2797_v8 = vadd.f32 %v2745_v22, %v1872_v27  ;;  %v8978_v27 = vld [vmem:[#allocation28_spill] sm:$0xff] }
 0x3b3   : > { %v3838_v56 = vmax.f32 %v3774_v6, %v3806_v7  ;;  %v3703_v19 = vadd.f32 %v3651_v44, %v2797_v8  ;;  %v1884_v44 = vadd.f32 %v1883_v37, %v8976_v3  ;;  %v3666_v62 = vpop.f32.mrf.mxu1 }
 0x3b5   : > { %3870 = vst.msk [vmem:[%s8200_s7 + $0xa8] sm:$0xff] %vm429_vm0, %v3838_v56  ;;  %v3739_v18 = vmul.f32 %v8155_v11, %v3703_v19  ;;  %v1889_v45 = vpop.f32.mrf.mxu2 }
 0x3b6   : > { %v1890_v6 = vadd.f32 %v1889_v45, %v8978_v27 }
 0x3b7   : > { %v3775_v26 = vadd.f32 %v8164_v40, %v3739_v18 }
 0x3b8   : > { %v2748_v20 = vpop.f32.mrf.mxu3 }
 0x3b9   : > { %v3807_v16 = vmul.f32 0.01, %v3775_v26  ;;  %v2798_v15 = vadd.f32 %v2748_v20, %v1875_v39 }
 0x3bb   : > { %v3839_v42 = vmax.f32 %v3775_v26, %v3807_v16  ;;  %v3704_v52 = vadd.f32 %v3654_v23, %v2798_v15  ;;  %v3669_v32 = vpop.f32.mrf.mxu1  ;;  %v8979_v26 = vld [vmem:[#allocation29_spill] sm:$0xff] }
 0x3bd   : > { %3871 = vst.msk [vmem:[%s8200_s7 + $0xb0] sm:$0xff] %vm429_vm0, %v3839_v42  ;;  %v3740_v25 = vmul.f32 %v8155_v11, %v3704_v52  ;;  %v1892_v7 = vpop.f32.mrf.mxu2 }
 0x3be   : > { %v1893_v49 = vadd.f32 %v1892_v7, %v8979_v26 }
 0x3bf   : > { %v3776_v48 = vadd.f32 %v8164_v40, %v3740_v25 }
 0x3c0   : > { %v2751_v54 = vpop.f32.mrf.mxu3 }
 0x3c1   : > { %v3808_v2 = vmul.f32 0.01, %v3776_v48  ;;  %v2799_v13 = vadd.f32 %v2751_v54, %v1878_v12  ;;  %v8980_v12 = vld [vmem:[#allocation31_spill] sm:$0xff] }
 0x3c3   : > { %v3840_v59 = vmax.f32 %v3776_v48, %v3808_v2  ;;  %v3705_v46 = vadd.f32 %v3657_v55, %v2799_v13  ;;  %v3672_v39 = vpop.f32.mrf.mxu1 }
 0x3c5   : > { %3872 = vst.msk [vmem:[%s8200_s7 + $0xb8] sm:$0xff] %vm429_vm0, %v3840_v59  ;;  %v3741_v41 = vmul.f32 %v8155_v11, %v3705_v46  ;;  %v1895_v52 = vpop.f32.mrf.mxu2 }
 0x3c6   : > { %v1896_v48 = vadd.f32 %v1895_v52, %v8980_v12 }
 0x3c7   : > { %v3777_v21 = vadd.f32 %v8164_v40, %v3741_v41 }
 0x3c8   : > { %v2754_v24 = vpop.f32.mrf.mxu3 }
 0x3c9   : > { %v3809_v4 = vmul.f32 0.01, %v3777_v21  ;;  %v2800_v35 = vadd.f32 %v2754_v24, %v1881_v14 }
 0x3cb   : > { %v3841_v31 = vmax.f32 %v3777_v21, %v3809_v4  ;;  %v3706_v58 = vadd.f32 %v3660_v1, %v2800_v35  ;;  %v3675_v2 = vpop.f32.mrf.mxu1  ;;  %v8981_v21 = vld [vmem:[#allocation34_spill] sm:$0xff] }
 0x3cd   : > { %3873 = vst.msk [vmem:[%s8200_s7 + $0xc0] sm:$0xff] %vm429_vm0, %v3841_v31  ;;  %v3742_v43 = vmul.f32 %v8155_v11, %v3706_v58  ;;  %v1898_v0 = vpop.f32.mrf.mxu2 }
 0x3cf   : > { %v3778_v57 = vadd.f32 %v8164_v40, %v3742_v43 }
 0x3d0   : > { %v2757_v33 = vpop.f32.mrf.mxu3 }
 0x3d1   : > { %v3810_v50 = vmul.f32 0.01, %v3778_v57  ;;  %v2801_v29 = vadd.f32 %v2757_v33, %v1884_v44 }
 0x3d3   : > { %v3842_v61 = vmax.f32 %v3778_v57, %v3810_v50  ;;  %v3707_v36 = vadd.f32 %v3663_v5, %v2801_v29  ;;  %v1899_v5 = vadd.f32 %v1898_v0, %v8981_v21  ;;  %v3678_v58 = vpop.f32.mrf.mxu1 }
 0x3d5   : > { %3874 = vst.msk [vmem:[%s8200_s7 + $0xc8] sm:$0xff] %vm429_vm0, %v3842_v61  ;;  %v3743_v63 = vmul.f32 %v8155_v11, %v3707_v36 }
 0x3d7   : > { %v3779_v28 = vadd.f32 %v8164_v40, %v3743_v63 }
 0x3d8   : > { %v2760_v38 = vpop.f32.mrf.mxu3 }
 0x3d9   : > { %v3811_v23 = vmul.f32 0.01, %v3779_v28  ;;  %v2802_v30 = vadd.f32 %v2760_v38, %v1887_v47 }
 0x3db   : > { %v3843_v9 = vmax.f32 %v3779_v28, %v3811_v23  ;;  %v3708_v60 = vadd.f32 %v3666_v62, %v2802_v30 }
 0x3dd   : > { %3875 = vst.msk [vmem:[%s8200_s7 + $0xd0] sm:$0xff] %vm429_vm0, %v3843_v9  ;;  %v3744_v17 = vmul.f32 %v8155_v11, %v3708_v60 }
 0x3df   : > { %v3780_v22 = vadd.f32 %v8164_v40, %v3744_v17 }
 0x3e0   : > { %v2763_v8 = vpop.f32.mrf.mxu3 }
 0x3e1   : > { %v3812_v56 = vmul.f32 0.01, %v3780_v22  ;;  %v2803_v19 = vadd.f32 %v2763_v8, %v1890_v6 }
 0x3e3   : > { %v3844_v55 = vmax.f32 %v3780_v22, %v3812_v56  ;;  %v3709_v18 = vadd.f32 %v3669_v32, %v2803_v19 }
 0x3e5   : > { %3876 = vst.msk [vmem:[%s8200_s7 + $0xd8] sm:$0xff] %vm429_vm0, %v3844_v55  ;;  %v3745_v51 = vmul.f32 %v8155_v11, %v3709_v18 }
 0x3e7   : > { %v3781_v20 = vadd.f32 %v8164_v40, %v3745_v51 }
 0x3e8   : > { %v2766_v16 = vpop.f32.mrf.mxu3 }
 0x3e9   : > { %v3813_v15 = vmul.f32 0.01, %v3781_v20  ;;  %v2804_v42 = vadd.f32 %v2766_v16, %v1893_v49 }
 0x3eb   : > { %v3845_v25 = vmax.f32 %v3781_v20, %v3813_v15  ;;  %v3710_v1 = vadd.f32 %v3672_v39, %v2804_v42 }
 0x3ed   : > { %3877 = vst.msk [vmem:[%s8200_s7 + $0xe0] sm:$0xff] %vm429_vm0, %v3845_v25  ;;  %v3746_v53 = vmul.f32 %v8155_v11, %v3710_v1 }
 0x3ef   : > { %v3782_v54 = vadd.f32 %v8164_v40, %v3746_v53 }
 0x3f0   : > { %v2769_v13 = vpop.f32.mrf.mxu3 }
 0x3f1   : > { %v3814_v37 = vmul.f32 0.01, %v3782_v54  ;;  %v2805_v59 = vadd.f32 %v2769_v13, %v1896_v48 }
 0x3f3   : > { %v3846_v46 = vmax.f32 %v3782_v54, %v3814_v37  ;;  %v3711_v41 = vadd.f32 %v3675_v2, %v2805_v59 }
 0x3f5   : > { %3878 = vst.msk [vmem:[%s8200_s7 + $0xe8] sm:$0xff] %vm429_vm0, %v3846_v46  ;;  %v3747_v14 = vmul.f32 %v8155_v11, %v3711_v41 }
 0x3f7   : > { %v3783_v24 = vadd.f32 %v8164_v40, %v3747_v14 }
 0x3f8   : > { %v2772_v4 = vpop.f32.mrf.mxu3 }
 0x3f9   : > { %v3815_v35 = vmul.f32 0.01, %v3783_v24  ;;  %v2806_v31 = vadd.f32 %v2772_v4, %v1899_v5 }
 0x3fb   : > { %v3847_v10 = vmax.f32 %v3783_v24, %v3815_v35  ;;  %v3712_v43 = vadd.f32 %v3678_v58, %v2806_v31 }
 0x3fd   : > { %3879 = vst.msk [vmem:[%s8200_s7 + $0xf0] sm:$0xff] %vm429_vm0, %v3847_v10  ;;  %v3748_v3 = vmul.f32 %v8155_v11, %v3712_v43 }
 0x3ff   : > { %v3784_v44 = vadd.f32 %v8164_v40, %v3748_v3 }
 0x401   : > { %v3816_v57 = vmul.f32 0.01, %v3784_v44 }
 0x403   : > { %v3848_v33 = vmax.f32 %v3784_v44, %v3816_v57 }
 0x405   : > { %3880 = vst.msk [vmem:[%s8200_s7 + $0xf8] sm:$0xff] %vm429_vm0, %v3848_v33 }
 0x406   : > { %4317 = shalt.err (!%p4314_p8)
}
 0x407   : > { %s4365_s18 = smov 128   ;;  %s4366_s23 = smov 8  }
 0x408   : > { %4167 = dma.vmem_to_hbm [thread:$0]  (%p4474_p11), %s3895_s16, 4096, %s3897_s21, %s3882_s17, %s4365_s18, %s4365_s18, %s4366_s23  }
 0x409 PF: > { %s8982_s30 = sld [smem:[#allocation11_spill]] }
 0x40a   : > { %s8984_s7 = sld [smem:[#allocation13_spill]] }
 0x40f   : > { %s3911_s15 = sand.u32 1, %s8982_s30  }
 0x410   : > { %p8985_p9 = scmp.ge.s32.totalorder %s8984_s7, 2  ;;  %s3912_s28 = scalar_lea.sflag [#allocation4], %s3911_s15 }
 0x412   : > { %p4178_p10 = pnand %p8985_p9, %p4478_p12 }
 0x414   : > { %p4179_p1 = pneg %p4178_p10 }
 0x416   : > { %4343 = dma.done.wait (%p4179_p1), %s3912_s28, 4096  }
 0x417   : > { %4345 = vsyncadd (%p4179_p1), %s3912_s28, 4294963200  ;;  %s8986_s16 = sld [smem:[#allocation14_spill]]  ;;  %s8989_s13 = smov %s4352_s14 }
 0x418   : > { %s8987_s19 = sld [smem:[#allocation12_spill]] }
 0x419   : > { %s8988_s15 = sld [smem:[#allocation15_spill]] }
 0x41d   : > { %p24_p2 = scmp.ge.s32.totalorder %s8986_s16, 4  }
 0x41e   : > { %s8990_s14 = smov %s8987_s19 }
 0x41f   :  { %26 = sbr.rel (!%p24_p2) target bundleno = 8 (0x8), region = 109 }
 0x424   :  { %3918 = vsyncpa [#allocation3], 1 }
 0x425   :  { %3920 = vsyncpa [#allocation3 + $0x1], 1 }
 0x426   :  { %3921 = vsyncpa [#allocation6], 1 }
 0x427   :  { %3922 = vsyncpa [#allocation4], 1 }
 0x428   :  { %3924 = vsyncpa [#allocation4 + $0x1], 1 }

</bundles_post_ra>
